<compile_context>
chip_gen: v5e
topology: v5e:2x2
jax: 0.10.0
libtpu: 0.0.40
codegen_flags: <defaults>
</compile_context>

<pallas_src>
import functools

import jax
import jax.numpy as jnp
from jax.experimental import pallas as pl
from jax.experimental.pallas import tpu as pltpu

EPS = 1e-5                      # InstanceNorm2d default eps
NUM_RESBLOCK = 9
VMEM_LIMIT = 64 * 1024 * 1024   # <= physical VMEM on v5e / v6e / v7x


def _round_up(x, m):
    return (x + m - 1) // m * m


def _pick_tk(K):
    """Lane-aligned K tile (<=512 deep) with minimal zero padding."""
    kp = _round_up(K, 128)
    for t in (512, 384, 256, 128):
        if kp % t == 0:
            return t, kp
    return 128, kp


# --------------------------- Pallas kernels ----------------------------------

def _matmul_kernel(a_ref, w_ref, b_ref, o_ref, acc_ref, *, activation):
    """Tiled activation(A @ W + b): bf16 MXU matmul, f32 VMEM accumulator."""
    k = pl.program_id(2)

    @pl.when(k == 0)
    def _():
        acc_ref[...] = jnp.zeros_like(acc_ref)

    acc_ref[...] += jnp.dot(a_ref[...], w_ref[...],
                            preferred_element_type=jnp.float32)

    @pl.when(k == pl.num_programs(2) - 1)
    def _():
        acc = acc_ref[...] + b_ref[...]          # (1, tn) broadcast over rows
        if activation == "tanh":
            acc = jnp.tanh(acc)
        o_ref[...] = acc.astype(o_ref.dtype)


def matmul_bias(a, w, b=None, activation="none", out_dtype=jnp.bfloat16):
    M, K = a.shape
    _, N = w.shape
    tm = 256 if M >= 256 else _round_up(M, 8)
    tn = 256 if N >= 256 else _round_up(N, 128)
    tk, Kp = _pick_tk(K)
    Mp, Np = _round_up(M, tm), _round_up(N, tn)

    a_p = jnp.pad(a.astype(jnp.bfloat16), ((0, Mp - M), (0, Kp - K)))
    w_p = jnp.pad(w.astype(jnp.bfloat16), ((0, Kp - K), (0, Np - N)))
    if b is None:
        b_p = jnp.zeros((1, Np), jnp.float32)
    else:
        b_p = jnp.pad(b.reshape(1, N).astype(jnp.float32),
                      ((0, 0), (0, Np - N)))

    out = pl.pallas_call(
        functools.partial(_matmul_kernel, activation=activation),
        out_shape=jax.ShapeDtypeStruct((Mp, Np), out_dtype),
        grid=(Mp // tm, Np // tn, Kp // tk),
        in_specs=[
            pl.BlockSpec((tm, tk), lambda i, j, k: (i, k)),
            pl.BlockSpec((tk, tn), lambda i, j, k: (k, j)),
            pl.BlockSpec((1, tn), lambda i, j, k: (0, j)),
        ],
        out_specs=pl.BlockSpec((tm, tn), lambda i, j, k: (i, j)),
        scratch_shapes=[pltpu.VMEM((tm, tn), jnp.float32)],
        compiler_params=pltpu.CompilerParams(
            dimension_semantics=("parallel", "parallel", "arbitrary"),
            vmem_limit_bytes=VMEM_LIMIT),
    )(a_p, w_p, b_p)
    return out[:M, :N]


def _conv_in_kernel(*refs, true_p, relu, has_residual):
    """Conv matmul with InstanceNorm(+ReLU / +residual) fused into the epilogue.

    Grid = (batch, K tiles); the (P, Cout) accumulator stays resident in VMEM
    across the K axis, statistics are computed once at the last K step."""
    if has_residual:
        a_ref, w_ref, r_ref, o_ref, acc_ref = refs
    else:
        a_ref, w_ref, o_ref, acc_ref = refs
        r_ref = None
    k = pl.program_id(1)

    @pl.when(k == 0)
    def _():
        acc_ref[...] = jnp.zeros_like(acc_ref)

    acc_ref[...] += jnp.dot(a_ref[...], w_ref[...],
                            preferred_element_type=jnp.float32)

    @pl.when(k == pl.num_programs(1) - 1)
    def _():
        acc = acc_ref[...]                                    # (Pp, Cp) f32
        inv_p = 1.0 / true_p
        mean = jnp.sum(acc, axis=0, keepdims=True) * inv_p
        ex2 = jnp.sum(acc * acc, axis=0, keepdims=True) * inv_p
        var = jnp.maximum(ex2 - mean * mean, 0.0)             # biased (PyTorch IN)
        y = (acc - mean) * jax.lax.rsqrt(var + EPS)
        if relu:
            y = jnp.maximum(y, 0.0)
        if has_residual:
            y = y + r_ref[...].astype(jnp.float32)
        o_ref[...] = y.astype(o_ref.dtype)


def _inorm_kernel(x_ref, o_ref, *, true_p, relu):
    """Standalone per-(n, channel-tile) InstanceNorm, f32 math, bf16 in/out."""
    x = x_ref[0].astype(jnp.float32)                          # (Pp, tc)
    inv_p = 1.0 / true_p
    mean = jnp.sum(x, axis=0, keepdims=True) * inv_p
    ex2 = jnp.sum(x * x, axis=0, keepdims=True) * inv_p
    var = jnp.maximum(ex2 - mean * mean, 0.0)
    y = (x - mean) * jax.lax.rsqrt(var + EPS)
    if relu:
        y = jnp.maximum(y, 0.0)
    o_ref[0] = y.astype(o_ref.dtype)


# ------------------------------ wrappers --------------------------------------

def reflect_pad(x_nhwc, p):
    return jnp.pad(x_nhwc, ((0, 0), (p, p), (p, p), (0, 0)), mode="reflect")


def zero_pad(x_nhwc, p):
    return jnp.pad(x_nhwc, ((0, 0), (p, p), (p, p), (0, 0)))


def _im2col(x_pad, k, stride):
    """(N, Hp, Wp, C) -> (N, Ho, Wo, k*k*C) patches via static slicing.
    # TODO(synk): stream the taps straight from the padded activation inside
    # the kernel (element-offset BlockSpecs / manual DMA) to avoid the HBM
    # patch materialization; kept as plain-JAX glue here for robustness."""
    N, Hp, Wp, C = x_pad.shape
    Ho = (Hp - k) // stride + 1
    Wo = (Wp - k) // stride + 1
    cols = []
    for dy in range(k):
        for dx in range(k):
            cols.append(
                x_pad[:, dy:dy + (Ho - 1) * stride + 1:stride,
                         dx:dx + (Wo - 1) * stride + 1:stride, :])
    return jnp.concatenate(cols, axis=-1), Ho, Wo


def conv2d_in(x_pad_nhwc, w_oihw, stride=1, relu=True, residual=None):
    """Conv (already-padded NHWC input, OIHW weight, bias dropped — cancelled
    by IN) fused with InstanceNorm and optional ReLU / residual add."""
    Cout, Cin, kH, kW = w_oihw.shape
    patches, Ho, Wo = _im2col(x_pad_nhwc, kH, stride)
    N = x_pad_nhwc.shape[0]
    P, K = Ho * Wo, kH * kW * Cin
    Pp = _round_up(P, 8)
    tk, Kp = _pick_tk(K)
    Cp = _round_up(Cout, 128)

    a = patches.astype(jnp.bfloat16).reshape(N, P, K)
    a = jnp.pad(a, ((0, 0), (0, Pp - P), (0, Kp - K))).reshape(N * Pp, Kp)
    w_mat = jnp.transpose(w_oihw, (2, 3, 1, 0)).reshape(K, Cout)
    w_mat = jnp.pad(w_mat.astype(jnp.bfloat16), ((0, Kp - K), (0, Cp - Cout)))

    in_specs = [
        pl.BlockSpec((Pp, tk), lambda n, k: (n, k)),
        pl.BlockSpec((tk, Cp), lambda n, k: (k, 0)),
    ]
    operands = [a, w_mat]
    has_residual = residual is not None
    if has_residual:
        r = residual.astype(jnp.bfloat16).reshape(N, P, Cout)
        r = jnp.pad(r, ((0, 0), (0, Pp - P), (0, Cp - Cout))).reshape(N * Pp, Cp)
        in_specs.append(pl.BlockSpec((Pp, Cp), lambda n, k: (n, 0)))
        operands.append(r)

    out = pl.pallas_call(
        functools.partial(_conv_in_kernel, true_p=float(P), relu=relu,
                          has_residual=has_residual),
        out_shape=jax.ShapeDtypeStruct((N * Pp, Cp), jnp.bfloat16),
        grid=(N, Kp // tk),
        in_specs=in_specs,
        out_specs=pl.BlockSpec((Pp, Cp), lambda n, k: (n, 0)),
        scratch_shapes=[pltpu.VMEM((Pp, Cp), jnp.float32)],
        compiler_params=pltpu.CompilerParams(
            dimension_semantics=("parallel", "arbitrary"),
            vmem_limit_bytes=VMEM_LIMIT),
    )(*operands)
    out = out.reshape(N, Pp, Cp)[:, :P, :Cout]
    return out.reshape(N, Ho, Wo, Cout)


def conv2d(x_pad_nhwc, w_oihw, b, stride=1, activation="none",
           out_dtype=jnp.float32):
    """Plain conv (already-padded NHWC input, OIHW weight) -> tiled matmul.
    Output channels are padded to 128 inside the kernel (lane-dense stores)
    and sliced back here."""
    Cout, Cin, kH, kW = w_oihw.shape
    patches, Ho, Wo = _im2col(x_pad_nhwc, kH, stride)
    N = x_pad_nhwc.shape[0]
    a = patches.reshape(N * Ho * Wo, kH * kW * Cin)
    w_mat = jnp.transpose(w_oihw, (2, 3, 1, 0)).reshape(kH * kW * Cin, Cout)
    out = matmul_bias(a, w_mat, b, activation=activation, out_dtype=out_dtype)
    return out.reshape(N, Ho, Wo, Cout)


# Sub-pixel decomposition of ConvTranspose2d(k=3, stride=2, padding=1,
# output_padding=1): output phase (a, b) = (p%2, q%2) only touches a fixed
# subset of kernel taps, so run 4 small dense convs on the *undilated* input
# and interleave — no 75%-zero dilated intermediate, ~4x fewer MXU FLOPs.
_PHASE_TAPS = {0: ((0, 1),), 1: ((0, 2), (1, 0))}   # (input offset, kernel tap)


def conv_transpose2d(x_nhwc, wt_iohw):
    N, H, W, Cin = x_nhwc.shape
    _, Cout, _, _ = wt_iohw.shape
    xp = jnp.pad(x_nhwc, ((0, 0), (0, 1), (0, 1), (0, 0)))   # bottom/right halo
    out = jnp.zeros((N, 2 * H, 2 * W, Cout), jnp.bfloat16)
    for a in (0, 1):
        for b in (0, 1):
            slabs, wcols = [], []
            for di, kh in _PHASE_TAPS[a]:
                for dj, kw in _PHASE_TAPS[b]:
                    slabs.append(xp[:, di:di + H, dj:dj + W, :])
                    wcols.append(wt_iohw[:, :, kh, kw])       # (Cin, Cout)
            amat = jnp.concatenate(slabs, axis=-1).reshape(N * H * W, -1)
            wmat = jnp.concatenate(wcols, axis=0)
            y = matmul_bias(amat, wmat, None)                 # bias cancelled by IN
            out = out.at[:, a::2, b::2, :].set(y.reshape(N, H, W, Cout))
    return out


def instance_norm(x_nhwc, relu=False):
    N, H, W, C = x_nhwc.shape
    P = H * W
    Pp = _round_up(P, 8)
    tc = 128 if C % 128 == 0 else C
    x3 = jnp.pad(x_nhwc.astype(jnp.bfloat16).reshape(N, P, C),
                 ((0, 0), (0, Pp - P), (0, 0)))
    spec = pl.BlockSpec((1, Pp, tc), lambda n, c: (n, 0, c))
    out = pl.pallas_call(
        functools.partial(_inorm_kernel, true_p=float(P), relu=relu),
        out_shape=jax.ShapeDtypeStruct((N, Pp, C), jnp.bfloat16),
        grid=(N, C // tc),
        in_specs=[spec],
        out_specs=spec,
        compiler_params=pltpu.CompilerParams(
            dimension_semantics=("parallel", "parallel"),
            vmem_limit_bytes=VMEM_LIMIT),
    )(x3)
    # TODO(synk): for very large images the spatial axis should also be tiled
    # (two-pass sum / sum-of-squares) instead of one (H*W, tc) block per step.
    return out[:, :P, :].reshape(N, H, W, C)


# -------------------------------- model ---------------------------------------

def init_params(key):
    """normal(0, 0.02) weights, zero biases — matches params_init().
    Biases of layers followed by InstanceNorm are kept for state parity but
    never applied: IN subtracts the per-channel mean, so they cancel exactly."""
    ks = jax.random.split(key, 8)
    w = lambda k, s: 0.02 * jax.random.normal(k, s, jnp.float32)
    z = lambda n: jnp.zeros((n,), jnp.float32)
    return {
        "conv1_w": w(ks[0], (64, 3, 7, 7)),       "conv1_b": z(64),
        "conv2_w": w(ks[1], (128, 64, 3, 3)),     "conv2_b": z(128),
        "conv3_w": w(ks[2], (256, 128, 3, 3)),    "conv3_b": z(256),
        "rb_conv1_w": w(ks[3], (256, 256, 3, 3)), "rb_conv1_b": z(256),
        "rb_conv2_w": w(ks[4], (256, 256, 3, 3)), "rb_conv2_b": z(256),
        "deconv4_w": w(ks[5], (256, 128, 3, 3)),  "deconv4_b": z(128),  # (in,out,kH,kW)
        "deconv5_w": w(ks[6], (128, 64, 3, 3)),   "deconv5_b": z(64),
        "conv6_w": w(ks[7], (3, 64, 7, 7)),       "conv6_b": z(3),
    }


def resblock(x, w1, w2):
    out = conv2d_in(reflect_pad(x, 1), w1, stride=1, relu=True)
    out = conv2d_in(reflect_pad(out, 1), w2, stride=1, relu=False, residual=x)
    return out                                   # x + IN(conv2(...))


def generator_forward(x_nchw, p):
    x = jnp.transpose(x_nchw, (0, 2, 3, 1)).astype(jnp.bfloat16)   # NCHW -> NHWC

    out = conv2d_in(reflect_pad(x, 3), p["conv1_w"], stride=1, relu=True)
    out = conv2d_in(zero_pad(out, 1), p["conv2_w"], stride=2, relu=True)
    out = conv2d_in(zero_pad(out, 1), p["conv3_w"], stride=2, relu=True)

    for _ in range(NUM_RESBLOCK):   # shared weights, as in the PyTorch module
        out = resblock(out, p["rb_conv1_w"], p["rb_conv2_w"])

    out = conv_transpose2d(out, p["deconv4_w"])
    out = instance_norm(out, relu=True)
    out = conv_transpose2d(out, p["deconv5_w"])
    out = instance_norm(out, relu=True)

    out = conv2d(reflect_pad(out, 3), p["conv6_w"], p["conv6_b"],
                 stride=1, activation="tanh", out_dtype=jnp.float32)
    return jnp.transpose(out, (0, 3, 1, 2))                        # NHWC -> NCHW


if __name__ == "__main__":
    key = jax.random.PRNGKey(0)
    pkey, xkey = jax.random.split(key)
    params = init_params(pkey)
    x = jax.random.normal(xkey, (2, 3, 16, 16), jnp.float32)       # NCHW input

    fwd = jax.jit(generator_forward)
    y = fwd(x, params)
    jax.block_until_ready(y)

    assert y.shape == (2, 3, 16, 16), y.shape
    assert bool(jnp.all(jnp.isfinite(y)))
    assert bool(jnp.all(jnp.abs(y) <= 1.0 + 1e-5))                 # tanh range
    print("KERNEL_OK")
</pallas_src>

<mosaic_0001>
module attributes {stable_mosaic.version = 11 : i64} {
  func.func @_conv_in_kernel(%arg0: i32, %arg1: i32, %arg2: memref<256x256xbf16, #tpu.memory_space<vmem>>, %arg3: memref<256x128xbf16, #tpu.memory_space<vmem>>, %arg4: memref<256x128xbf16, #tpu.memory_space<vmem>>, %arg5: memref<256x128xf32, #tpu.memory_space<vmem>>) attributes {dimension_semantics = [#tpu.dimension_semantics<parallel>, #tpu.dimension_semantics<arbitrary>], iteration_bounds = array<i64: 2, 1>, scalar_prefetch = 0 : i64, scratch_operands = 1 : i64, tpu.core_type = #tpu.core_type<tc>, window_params = [{transform_indices = @transform_0, window_bounds = array<i64: 256, 256>}, {transform_indices = @transform_1, window_bounds = array<i64: 256, 128>}, {transform_indices = @transform_2, window_bounds = array<i64: 256, 128>}]} {
    %c0_i32 = arith.constant 0 : i32
    %0 = arith.cmpi eq, %arg1, %c0_i32 : i32
    %1 = arith.extui %0 : i1 to i32
    %c0_i32_0 = arith.constant 0 : i32
    %2 = arith.cmpi ne, %1, %c0_i32_0 : i32
    scf.if %2 {
      %cst_10 = arith.constant 0.000000e+00 : f32
      %12 = vector.broadcast %cst_10 : f32 to vector<256x128xf32>
      %c0_11 = arith.constant 0 : index
      %c0_12 = arith.constant 0 : index
      %13 = vector.load %arg5[%c0_11, %c0_12] : memref<256x128xf32, #tpu.memory_space<vmem>>, vector<256x128xf32>
      tpu.vector_store %arg5[%c0_11, %c0_12], %12 {strides = array<i32>} : memref<256x128xf32, #tpu.memory_space<vmem>>, vector<256x128xf32>,
    } else {
    }
    %c0 = arith.constant 0 : index
    %c0_1 = arith.constant 0 : index
    %3 = vector.load %arg5[%c0, %c0_1] : memref<256x128xf32, #tpu.memory_space<vmem>>, vector<256x128xf32>
    %c0_2 = arith.constant 0 : index
    %c0_3 = arith.constant 0 : index
    %4 = vector.load %arg2[%c0_2, %c0_3] : memref<256x256xbf16, #tpu.memory_space<vmem>>, vector<256x256xbf16>
    %c0_4 = arith.constant 0 : index
    %c0_5 = arith.constant 0 : index
    %5 = vector.load %arg3[%c0_4, %c0_5] : memref<256x128xbf16, #tpu.memory_space<vmem>>, vector<256x128xbf16>
    %cst = arith.constant dense<0.000000e+00> : vector<256x128xf32>
    %6 = tpu.matmul %4, %5, %cst {dimension_numbers = #tpu.dot_dimension_numbers<[1], [0], [0], [1], [0, 0, 1, 1], [], []>} : vector<256x256xbf16>, vector<256x128xbf16>, vector<256x128xf32> -> vector<256x128xf32>
    %7 = arith.addf %3, %6 : vector<256x128xf32>
    %c0_6 = arith.constant 0 : index
    %c0_7 = arith.constant 0 : index
    %8 = vector.load %arg5[%c0_6, %c0_7] : memref<256x128xf32, #tpu.memory_space<vmem>>, vector<256x128xf32>
    tpu.vector_store %arg5[%c0_6, %c0_7], %7 {strides = array<i32>} : memref<256x128xf32, #tpu.memory_space<vmem>>, vector<256x128xf32>,
    %c0_i32_8 = arith.constant 0 : i32
    %9 = arith.cmpi eq, %arg1, %c0_i32_8 : i32
    %10 = arith.extui %9 : i1 to i32
    %c0_i32_9 = arith.constant 0 : i32
    %11 = arith.cmpi ne, %10, %c0_i32_9 : i32
    scf.if %11 {
      %c0_10 = arith.constant 0 : index
      %c0_11 = arith.constant 0 : index
      %12 = vector.load %arg5[%c0_10, %c0_11] : memref<256x128xf32, #tpu.memory_space<vmem>>, vector<256x128xf32>
      %cst_12 = arith.constant dense<0.000000e+00> : vector<128xf32>
      %13 = vector.multi_reduction <add>, %12, %cst_12 [0] : vector<256x128xf32> to vector<128xf32>
      %14 = vector.shape_cast %13 : vector<128xf32> to vector<1x128xf32>
      %cst_13 = arith.constant 3.906250e-03 : f32
      %15 = vector.broadcast %cst_13 : f32 to vector<1x128xf32>
      %16 = arith.mulf %14, %15 : vector<1x128xf32>
      %17 = arith.mulf %12, %12 : vector<256x128xf32>
      %cst_14 = arith.constant dense<0.000000e+00> : vector<128xf32>
      %18 = vector.multi_reduction <add>, %17, %cst_14 [0] : vector<256x128xf32> to vector<128xf32>
      %19 = vector.shape_cast %18 : vector<128xf32> to vector<1x128xf32>
      %cst_15 = arith.constant 3.906250e-03 : f32
      %20 = vector.broadcast %cst_15 : f32 to vector<1x128xf32>
      %21 = arith.mulf %19, %20 : vector<1x128xf32>
      %22 = arith.mulf %16, %16 : vector<1x128xf32>
      %23 = arith.subf %21, %22 : vector<1x128xf32>
      %cst_16 = arith.constant 0.000000e+00 : f32
      %24 = vector.broadcast %cst_16 : f32 to vector<1x128xf32>
      %25 = arith.maximumf %23, %24 : vector<1x128xf32>
      %26 = vector.broadcast %16 : vector<1x128xf32> to vector<256x128xf32>
      %27 = arith.subf %12, %26 : vector<256x128xf32>
      %cst_17 = arith.constant 9.99999974E-6 : f32
      %28 = vector.broadcast %cst_17 : f32 to vector<1x128xf32>
      %29 = arith.addf %25, %28 : vector<1x128xf32>
      %30 = math.rsqrt %29 : vector<1x128xf32>
      %31 = vector.broadcast %30 : vector<1x128xf32> to vector<256x128xf32>
      %32 = arith.mulf %27, %31 : vector<256x128xf32>
      %cst_18 = arith.constant 0.000000e+00 : f32
      %33 = vector.broadcast %cst_18 : f32 to vector<256x128xf32>
      %34 = arith.maximumf %32, %33 : vector<256x128xf32>
      %35 = arith.truncf %34 : vector<256x128xf32> to vector<256x128xbf16>
      %c0_19 = arith.constant 0 : index
      %c0_20 = arith.constant 0 : index
      %36 = vector.load %arg4[%c0_19, %c0_20] : memref<256x128xbf16, #tpu.memory_space<vmem>>, vector<256x128xbf16>
      tpu.vector_store %arg4[%c0_19, %c0_20], %35 {strides = array<i32>} : memref<256x128xbf16, #tpu.memory_space<vmem>>, vector<256x128xbf16>,
    } else {
    }
    return
  }
  func.func @transform_0(%arg0: i32, %arg1: i32) -> (i32, i32) {
    %c0_i32 = arith.constant 0 : i32
    return %arg0, %arg1 : i32, i32
  }
  func.func @transform_1(%arg0: i32, %arg1: i32) -> (i32, i32) {
    %c0_i32 = arith.constant 0 : i32
    %c0_i32_0 = arith.constant 0 : i32
    return %arg1, %c0_i32 : i32, i32
  }
  func.func @transform_2(%arg0: i32, %arg1: i32) -> (i32, i32) {
    %c0_i32 = arith.constant 0 : i32
    %c0_i32_0 = arith.constant 0 : i32
    return %arg0, %c0_i32 : i32, i32
  }
}

module attributes {stable_mosaic.version = 11 : i64} {
  func.func @_conv_in_kernel(%arg0: i32, %arg1: i32, %arg2: memref<64x128xbf16, #tpu.memory_space<vmem>>, %arg3: memref<128x128xbf16, #tpu.memory_space<vmem>>, %arg4: memref<64x128xbf16, #tpu.memory_space<vmem>>, %arg5: memref<64x128xf32, #tpu.memory_space<vmem>>) attributes {dimension_semantics = [#tpu.dimension_semantics<parallel>, #tpu.dimension_semantics<arbitrary>], iteration_bounds = array<i64: 2, 5>, scalar_prefetch = 0 : i64, scratch_operands = 1 : i64, tpu.core_type = #tpu.core_type<tc>, window_params = [{transform_indices = @transform_0, window_bounds = array<i64: 64, 128>}, {transform_indices = @transform_1, window_bounds = array<i64: 128, 128>}, {transform_indices = @transform_2, window_bounds = array<i64: 64, 128>}]} {
    %c0_i32 = arith.constant 0 : i32
    %0 = arith.cmpi eq, %arg1, %c0_i32 : i32
    %1 = arith.extui %0 : i1 to i32
    %c0_i32_0 = arith.constant 0 : i32
    %2 = arith.cmpi ne, %1, %c0_i32_0 : i32
    scf.if %2 {
      %cst_9 = arith.constant 0.000000e+00 : f32
      %12 = vector.broadcast %cst_9 : f32 to vector<64x128xf32>
      %c0_10 = arith.constant 0 : index
      %c0_11 = arith.constant 0 : index
      %13 = vector.load %arg5[%c0_10, %c0_11] : memref<64x128xf32, #tpu.memory_space<vmem>>, vector<64x128xf32>
      tpu.vector_store %arg5[%c0_10, %c0_11], %12 {strides = array<i32>} : memref<64x128xf32, #tpu.memory_space<vmem>>, vector<64x128xf32>,
    } else {
    }
    %c0 = arith.constant 0 : index
    %c0_1 = arith.constant 0 : index
    %3 = vector.load %arg5[%c0, %c0_1] : memref<64x128xf32, #tpu.memory_space<vmem>>, vector<64x128xf32>
    %c0_2 = arith.constant 0 : index
    %c0_3 = arith.constant 0 : index
    %4 = vector.load %arg2[%c0_2, %c0_3] : memref<64x128xbf16, #tpu.memory_space<vmem>>, vector<64x128xbf16>
    %c0_4 = arith.constant 0 : index
    %c0_5 = arith.constant 0 : index
    %5 = vector.load %arg3[%c0_4, %c0_5] : memref<128x128xbf16, #tpu.memory_space<vmem>>, vector<128x128xbf16>
    %cst = arith.constant dense<0.000000e+00> : vector<64x128xf32>
    %6 = tpu.matmul %4, %5, %cst {dimension_numbers = #tpu.dot_dimension_numbers<[1], [0], [0], [1], [0, 0, 1, 1], [], []>} : vector<64x128xbf16>, vector<128x128xbf16>, vector<64x128xf32> -> vector<64x128xf32>
    %7 = arith.addf %3, %6 : vector<64x128xf32>
    %c0_6 = arith.constant 0 : index
    %c0_7 = arith.constant 0 : index
    %8 = vector.load %arg5[%c0_6, %c0_7] : memref<64x128xf32, #tpu.memory_space<vmem>>, vector<64x128xf32>
    tpu.vector_store %arg5[%c0_6, %c0_7], %7 {strides = array<i32>} : memref<64x128xf32, #tpu.memory_space<vmem>>, vector<64x128xf32>,
    %c4_i32 = arith.constant 4 : i32
    %9 = arith.cmpi eq, %arg1, %c4_i32 : i32
    %10 = arith.extui %9 : i1 to i32
    %c0_i32_8 = arith.constant 0 : i32
    %11 = arith.cmpi ne, %10, %c0_i32_8 : i32
    scf.if %11 {
      %c0_9 = arith.constant 0 : index
      %c0_10 = arith.constant 0 : index
      %12 = vector.load %arg5[%c0_9, %c0_10] : memref<64x128xf32, #tpu.memory_space<vmem>>, vector<64x128xf32>
      %cst_11 = arith.constant dense<0.000000e+00> : vector<128xf32>
      %13 = vector.multi_reduction <add>, %12, %cst_11 [0] : vector<64x128xf32> to vector<128xf32>
      %14 = vector.shape_cast %13 : vector<128xf32> to vector<1x128xf32>
      %cst_12 = arith.constant 1.562500e-02 : f32
      %15 = vector.broadcast %cst_12 : f32 to vector<1x128xf32>
      %16 = arith.mulf %14, %15 : vector<1x128xf32>
      %17 = arith.mulf %12, %12 : vector<64x128xf32>
      %cst_13 = arith.constant dense<0.000000e+00> : vector<128xf32>
      %18 = vector.multi_reduction <add>, %17, %cst_13 [0] : vector<64x128xf32> to vector<128xf32>
      %19 = vector.shape_cast %18 : vector<128xf32> to vector<1x128xf32>
      %cst_14 = arith.constant 1.562500e-02 : f32
      %20 = vector.broadcast %cst_14 : f32 to vector<1x128xf32>
      %21 = arith.mulf %19, %20 : vector<1x128xf32>
      %22 = arith.mulf %16, %16 : vector<1x128xf32>
      %23 = arith.subf %21, %22 : vector<1x128xf32>
      %cst_15 = arith.constant 0.000000e+00 : f32
      %24 = vector.broadcast %cst_15 : f32 to vector<1x128xf32>
      %25 = arith.maximumf %23, %24 : vector<1x128xf32>
      %26 = vector.broadcast %16 : vector<1x128xf32> to vector<64x128xf32>
      %27 = arith.subf %12, %26 : vector<64x128xf32>
      %cst_16 = arith.constant 9.99999974E-6 : f32
      %28 = vector.broadcast %cst_16 : f32 to vector<1x128xf32>
      %29 = arith.addf %25, %28 : vector<1x128xf32>
      %30 = math.rsqrt %29 : vector<1x128xf32>
      %31 = vector.broadcast %30 : vector<1x128xf32> to vector<64x128xf32>
      %32 = arith.mulf %27, %31 : vector<64x128xf32>
      %cst_17 = arith.constant 0.000000e+00 : f32
      %33 = vector.broadcast %cst_17 : f32 to vector<64x128xf32>
      %34 = arith.maximumf %32, %33 : vector<64x128xf32>
      %35 = arith.truncf %34 : vector<64x128xf32> to vector<64x128xbf16>
      %c0_18 = arith.constant 0 : index
      %c0_19 = arith.constant 0 : index
      %36 = vector.load %arg4[%c0_18, %c0_19] : memref<64x128xbf16, #tpu.memory_space<vmem>>, vector<64x128xbf16>
      tpu.vector_store %arg4[%c0_18, %c0_19], %35 {strides = array<i32>} : memref<64x128xbf16, #tpu.memory_space<vmem>>, vector<64x128xbf16>,
    } else {
    }
    return
  }
  func.func @transform_0(%arg0: i32, %arg1: i32) -> (i32, i32) {
    %c0_i32 = arith.constant 0 : i32
    return %arg0, %arg1 : i32, i32
  }
  func.func @transform_1(%arg0: i32, %arg1: i32) -> (i32, i32) {
    %c0_i32 = arith.constant 0 : i32
    %c0_i32_0 = arith.constant 0 : i32
    return %arg1, %c0_i32 : i32, i32
  }
  func.func @transform_2(%arg0: i32, %arg1: i32) -> (i32, i32) {
    %c0_i32 = arith.constant 0 : i32
    %c0_i32_0 = arith.constant 0 : i32
    return %arg0, %c0_i32 : i32, i32
  }
}

module attributes {stable_mosaic.version = 11 : i64} {
  func.func @_conv_in_kernel(%arg0: i32, %arg1: i32, %arg2: memref<16x384xbf16, #tpu.memory_space<vmem>>, %arg3: memref<384x256xbf16, #tpu.memory_space<vmem>>, %arg4: memref<16x256xbf16, #tpu.memory_space<vmem>>, %arg5: memref<16x256xf32, #tpu.memory_space<vmem>>) attributes {dimension_semantics = [#tpu.dimension_semantics<parallel>, #tpu.dimension_semantics<arbitrary>], iteration_bounds = array<i64: 2, 3>, scalar_prefetch = 0 : i64, scratch_operands = 1 : i64, tpu.core_type = #tpu.core_type<tc>, window_params = [{transform_indices = @transform_0, window_bounds = array<i64: 16, 384>}, {transform_indices = @transform_1, window_bounds = array<i64: 384, 256>}, {transform_indices = @transform_2, window_bounds = array<i64: 16, 256>}]} {
    %c0_i32 = arith.constant 0 : i32
    %0 = arith.cmpi eq, %arg1, %c0_i32 : i32
    %1 = arith.extui %0 : i1 to i32
    %c0_i32_0 = arith.constant 0 : i32
    %2 = arith.cmpi ne, %1, %c0_i32_0 : i32
    scf.if %2 {
      %cst_9 = arith.constant 0.000000e+00 : f32
      %12 = vector.broadcast %cst_9 : f32 to vector<16x256xf32>
      %c0_10 = arith.constant 0 : index
      %c0_11 = arith.constant 0 : index
      %13 = vector.load %arg5[%c0_10, %c0_11] : memref<16x256xf32, #tpu.memory_space<vmem>>, vector<16x256xf32>
      tpu.vector_store %arg5[%c0_10, %c0_11], %12 {strides = array<i32>} : memref<16x256xf32, #tpu.memory_space<vmem>>, vector<16x256xf32>,
    } else {
    }
    %c0 = arith.constant 0 : index
    %c0_1 = arith.constant 0 : index
    %3 = vector.load %arg5[%c0, %c0_1] : memref<16x256xf32, #tpu.memory_space<vmem>>, vector<16x256xf32>
    %c0_2 = arith.constant 0 : index
    %c0_3 = arith.constant 0 : index
    %4 = vector.load %arg2[%c0_2, %c0_3] : memref<16x384xbf16, #tpu.memory_space<vmem>>, vector<16x384xbf16>
    %c0_4 = arith.constant 0 : index
    %c0_5 = arith.constant 0 : index
    %5 = vector.load %arg3[%c0_4, %c0_5] : memref<384x256xbf16, #tpu.memory_space<vmem>>, vector<384x256xbf16>
    %cst = arith.constant dense<0.000000e+00> : vector<16x256xf32>
    %6 = tpu.matmul %4, %5, %cst {dimension_numbers = #tpu.dot_dimension_numbers<[1], [0], [0], [1], [0, 0, 1, 1], [], []>} : vector<16x384xbf16>, vector<384x256xbf16>, vector<16x256xf32> -> vector<16x256xf32>
    %7 = arith.addf %3, %6 : vector<16x256xf32>
    %c0_6 = arith.constant 0 : index
    %c0_7 = arith.constant 0 : index
    %8 = vector.load %arg5[%c0_6, %c0_7] : memref<16x256xf32, #tpu.memory_space<vmem>>, vector<16x256xf32>
    tpu.vector_store %arg5[%c0_6, %c0_7], %7 {strides = array<i32>} : memref<16x256xf32, #tpu.memory_space<vmem>>, vector<16x256xf32>,
    %c2_i32 = arith.constant 2 : i32
    %9 = arith.cmpi eq, %arg1, %c2_i32 : i32
    %10 = arith.extui %9 : i1 to i32
    %c0_i32_8 = arith.constant 0 : i32
    %11 = arith.cmpi ne, %10, %c0_i32_8 : i32
    scf.if %11 {
      %c0_9 = arith.constant 0 : index
      %c0_10 = arith.constant 0 : index
      %12 = vector.load %arg5[%c0_9, %c0_10] : memref<16x256xf32, #tpu.memory_space<vmem>>, vector<16x256xf32>
      %cst_11 = arith.constant dense<0.000000e+00> : vector<256xf32>
      %13 = vector.multi_reduction <add>, %12, %cst_11 [0] : vector<16x256xf32> to vector<256xf32>
      %14 = vector.shape_cast %13 : vector<256xf32> to vector<1x256xf32>
      %cst_12 = arith.constant 6.250000e-02 : f32
      %15 = vector.broadcast %cst_12 : f32 to vector<1x256xf32>
      %16 = arith.mulf %14, %15 : vector<1x256xf32>
      %17 = arith.mulf %12, %12 : vector<16x256xf32>
      %cst_13 = arith.constant dense<0.000000e+00> : vector<256xf32>
      %18 = vector.multi_reduction <add>, %17, %cst_13 [0] : vector<16x256xf32> to vector<256xf32>
      %19 = vector.shape_cast %18 : vector<256xf32> to vector<1x256xf32>
      %cst_14 = arith.constant 6.250000e-02 : f32
      %20 = vector.broadcast %cst_14 : f32 to vector<1x256xf32>
      %21 = arith.mulf %19, %20 : vector<1x256xf32>
      %22 = arith.mulf %16, %16 : vector<1x256xf32>
      %23 = arith.subf %21, %22 : vector<1x256xf32>
      %cst_15 = arith.constant 0.000000e+00 : f32
      %24 = vector.broadcast %cst_15 : f32 to vector<1x256xf32>
      %25 = arith.maximumf %23, %24 : vector<1x256xf32>
      %26 = vector.broadcast %16 : vector<1x256xf32> to vector<16x256xf32>
      %27 = arith.subf %12, %26 : vector<16x256xf32>
      %cst_16 = arith.constant 9.99999974E-6 : f32
      %28 = vector.broadcast %cst_16 : f32 to vector<1x256xf32>
      %29 = arith.addf %25, %28 : vector<1x256xf32>
      %30 = math.rsqrt %29 : vector<1x256xf32>
      %31 = vector.broadcast %30 : vector<1x256xf32> to vector<16x256xf32>
      %32 = arith.mulf %27, %31 : vector<16x256xf32>
      %cst_17 = arith.constant 0.000000e+00 : f32
      %33 = vector.broadcast %cst_17 : f32 to vector<16x256xf32>
      %34 = arith.maximumf %32, %33 : vector<16x256xf32>
      %35 = arith.truncf %34 : vector<16x256xf32> to vector<16x256xbf16>
      %c0_18 = arith.constant 0 : index
      %c0_19 = arith.constant 0 : index
      %36 = vector.load %arg4[%c0_18, %c0_19] : memref<16x256xbf16, #tpu.memory_space<vmem>>, vector<16x256xbf16>
      tpu.vector_store %arg4[%c0_18, %c0_19], %35 {strides = array<i32>} : memref<16x256xbf16, #tpu.memory_space<vmem>>, vector<16x256xbf16>,
    } else {
    }
    return
  }
  func.func @transform_0(%arg0: i32, %arg1: i32) -> (i32, i32) {
    %c0_i32 = arith.constant 0 : i32
    return %arg0, %arg1 : i32, i32
  }
  func.func @transform_1(%arg0: i32, %arg1: i32) -> (i32, i32) {
    %c0_i32 = arith.constant 0 : i32
    %c0_i32_0 = arith.constant 0 : i32
    return %arg1, %c0_i32 : i32, i32
  }
  func.func @transform_2(%arg0: i32, %arg1: i32) -> (i32, i32) {
    %c0_i32 = arith.constant 0 : i32
    %c0_i32_0 = arith.constant 0 : i32
    return %arg0, %c0_i32 : i32, i32
  }
}

module attributes {stable_mosaic.version = 11 : i64} {
  func.func @_conv_in_kernel(%arg0: i32, %arg1: i32, %arg2: memref<16x384xbf16, #tpu.memory_space<vmem>>, %arg3: memref<384x256xbf16, #tpu.memory_space<vmem>>, %arg4: memref<16x256xbf16, #tpu.memory_space<vmem>>, %arg5: memref<16x256xf32, #tpu.memory_space<vmem>>) attributes {dimension_semantics = [#tpu.dimension_semantics<parallel>, #tpu.dimension_semantics<arbitrary>], iteration_bounds = array<i64: 2, 6>, scalar_prefetch = 0 : i64, scratch_operands = 1 : i64, tpu.core_type = #tpu.core_type<tc>, window_params = [{transform_indices = @transform_0, window_bounds = array<i64: 16, 384>}, {transform_indices = @transform_1, window_bounds = array<i64: 384, 256>}, {transform_indices = @transform_2, window_bounds = array<i64: 16, 256>}]} {
    %c0_i32 = arith.constant 0 : i32
    %0 = arith.cmpi eq, %arg1, %c0_i32 : i32
    %1 = arith.extui %0 : i1 to i32
    %c0_i32_0 = arith.constant 0 : i32
    %2 = arith.cmpi ne, %1, %c0_i32_0 : i32
    scf.if %2 {
      %cst_9 = arith.constant 0.000000e+00 : f32
      %12 = vector.broadcast %cst_9 : f32 to vector<16x256xf32>
      %c0_10 = arith.constant 0 : index
      %c0_11 = arith.constant 0 : index
      %13 = vector.load %arg5[%c0_10, %c0_11] : memref<16x256xf32, #tpu.memory_space<vmem>>, vector<16x256xf32>
      tpu.vector_store %arg5[%c0_10, %c0_11], %12 {strides = array<i32>} : memref<16x256xf32, #tpu.memory_space<vmem>>, vector<16x256xf32>,
    } else {
    }
    %c0 = arith.constant 0 : index
    %c0_1 = arith.constant 0 : index
    %3 = vector.load %arg5[%c0, %c0_1] : memref<16x256xf32, #tpu.memory_space<vmem>>, vector<16x256xf32>
    %c0_2 = arith.constant 0 : index
    %c0_3 = arith.constant 0 : index
    %4 = vector.load %arg2[%c0_2, %c0_3] : memref<16x384xbf16, #tpu.memory_space<vmem>>, vector<16x384xbf16>
    %c0_4 = arith.constant 0 : index
    %c0_5 = arith.constant 0 : index
    %5 = vector.load %arg3[%c0_4, %c0_5] : memref<384x256xbf16, #tpu.memory_space<vmem>>, vector<384x256xbf16>
    %cst = arith.constant dense<0.000000e+00> : vector<16x256xf32>
    %6 = tpu.matmul %4, %5, %cst {dimension_numbers = #tpu.dot_dimension_numbers<[1], [0], [0], [1], [0, 0, 1, 1], [], []>} : vector<16x384xbf16>, vector<384x256xbf16>, vector<16x256xf32> -> vector<16x256xf32>
    %7 = arith.addf %3, %6 : vector<16x256xf32>
    %c0_6 = arith.constant 0 : index
    %c0_7 = arith.constant 0 : index
    %8 = vector.load %arg5[%c0_6, %c0_7] : memref<16x256xf32, #tpu.memory_space<vmem>>, vector<16x256xf32>
    tpu.vector_store %arg5[%c0_6, %c0_7], %7 {strides = array<i32>} : memref<16x256xf32, #tpu.memory_space<vmem>>, vector<16x256xf32>,
    %c5_i32 = arith.constant 5 : i32
    %9 = arith.cmpi eq, %arg1, %c5_i32 : i32
    %10 = arith.extui %9 : i1 to i32
    %c0_i32_8 = arith.constant 0 : i32
    %11 = arith.cmpi ne, %10, %c0_i32_8 : i32
    scf.if %11 {
      %c0_9 = arith.constant 0 : index
      %c0_10 = arith.constant 0 : index
      %12 = vector.load %arg5[%c0_9, %c0_10] : memref<16x256xf32, #tpu.memory_space<vmem>>, vector<16x256xf32>
      %cst_11 = arith.constant dense<0.000000e+00> : vector<256xf32>
      %13 = vector.multi_reduction <add>, %12, %cst_11 [0] : vector<16x256xf32> to vector<256xf32>
      %14 = vector.shape_cast %13 : vector<256xf32> to vector<1x256xf32>
      %cst_12 = arith.constant 6.250000e-02 : f32
      %15 = vector.broadcast %cst_12 : f32 to vector<1x256xf32>
      %16 = arith.mulf %14, %15 : vector<1x256xf32>
      %17 = arith.mulf %12, %12 : vector<16x256xf32>
      %cst_13 = arith.constant dense<0.000000e+00> : vector<256xf32>
      %18 = vector.multi_reduction <add>, %17, %cst_13 [0] : vector<16x256xf32> to vector<256xf32>
      %19 = vector.shape_cast %18 : vector<256xf32> to vector<1x256xf32>
      %cst_14 = arith.constant 6.250000e-02 : f32
      %20 = vector.broadcast %cst_14 : f32 to vector<1x256xf32>
      %21 = arith.mulf %19, %20 : vector<1x256xf32>
      %22 = arith.mulf %16, %16 : vector<1x256xf32>
      %23 = arith.subf %21, %22 : vector<1x256xf32>
      %cst_15 = arith.constant 0.000000e+00 : f32
      %24 = vector.broadcast %cst_15 : f32 to vector<1x256xf32>
      %25 = arith.maximumf %23, %24 : vector<1x256xf32>
      %26 = vector.broadcast %16 : vector<1x256xf32> to vector<16x256xf32>
      %27 = arith.subf %12, %26 : vector<16x256xf32>
      %cst_16 = arith.constant 9.99999974E-6 : f32
      %28 = vector.broadcast %cst_16 : f32 to vector<1x256xf32>
      %29 = arith.addf %25, %28 : vector<1x256xf32>
      %30 = math.rsqrt %29 : vector<1x256xf32>
      %31 = vector.broadcast %30 : vector<1x256xf32> to vector<16x256xf32>
      %32 = arith.mulf %27, %31 : vector<16x256xf32>
      %cst_17 = arith.constant 0.000000e+00 : f32
      %33 = vector.broadcast %cst_17 : f32 to vector<16x256xf32>
      %34 = arith.maximumf %32, %33 : vector<16x256xf32>
      %35 = arith.truncf %34 : vector<16x256xf32> to vector<16x256xbf16>
      %c0_18 = arith.constant 0 : index
      %c0_19 = arith.constant 0 : index
      %36 = vector.load %arg4[%c0_18, %c0_19] : memref<16x256xbf16, #tpu.memory_space<vmem>>, vector<16x256xbf16>
      tpu.vector_store %arg4[%c0_18, %c0_19], %35 {strides = array<i32>} : memref<16x256xbf16, #tpu.memory_space<vmem>>, vector<16x256xbf16>,
    } else {
    }
    return
  }
  func.func @transform_0(%arg0: i32, %arg1: i32) -> (i32, i32) {
    %c0_i32 = arith.constant 0 : i32
    return %arg0, %arg1 : i32, i32
  }
  func.func @transform_1(%arg0: i32, %arg1: i32) -> (i32, i32) {
    %c0_i32 = arith.constant 0 : i32
    %c0_i32_0 = arith.constant 0 : i32
    return %arg1, %c0_i32 : i32, i32
  }
  func.func @transform_2(%arg0: i32, %arg1: i32) -> (i32, i32) {
    %c0_i32 = arith.constant 0 : i32
    %c0_i32_0 = arith.constant 0 : i32
    return %arg0, %c0_i32 : i32, i32
  }
}

module attributes {stable_mosaic.version = 11 : i64} {
  func.func @_conv_in_kernel(%arg0: i32, %arg1: i32, %arg2: memref<16x384xbf16, #tpu.memory_space<vmem>>, %arg3: memref<384x256xbf16, #tpu.memory_space<vmem>>, %arg4: memref<16x256xbf16, #tpu.memory_space<vmem>>, %arg5: memref<16x256xbf16, #tpu.memory_space<vmem>>, %arg6: memref<16x256xf32, #tpu.memory_space<vmem>>) attributes {dimension_semantics = [#tpu.dimension_semantics<parallel>, #tpu.dimension_semantics<arbitrary>], iteration_bounds = array<i64: 2, 6>, scalar_prefetch = 0 : i64, scratch_operands = 1 : i64, tpu.core_type = #tpu.core_type<tc>, window_params = [{transform_indices = @transform_0, window_bounds = array<i64: 16, 384>}, {transform_indices = @transform_1, window_bounds = array<i64: 384, 256>}, {transform_indices = @transform_2, window_bounds = array<i64: 16, 256>}, {transform_indices = @transform_3, window_bounds = array<i64: 16, 256>}]} {
    %c0_i32 = arith.constant 0 : i32
    %0 = arith.cmpi eq, %arg1, %c0_i32 : i32
    %1 = arith.extui %0 : i1 to i32
    %c0_i32_0 = arith.constant 0 : i32
    %2 = arith.cmpi ne, %1, %c0_i32_0 : i32
    scf.if %2 {
      %cst_9 = arith.constant 0.000000e+00 : f32
      %12 = vector.broadcast %cst_9 : f32 to vector<16x256xf32>
      %c0_10 = arith.constant 0 : index
      %c0_11 = arith.constant 0 : index
      %13 = vector.load %arg6[%c0_10, %c0_11] : memref<16x256xf32, #tpu.memory_space<vmem>>, vector<16x256xf32>
      tpu.vector_store %arg6[%c0_10, %c0_11], %12 {strides = array<i32>} : memref<16x256xf32, #tpu.memory_space<vmem>>, vector<16x256xf32>,
    } else {
    }
    %c0 = arith.constant 0 : index
    %c0_1 = arith.constant 0 : index
    %3 = vector.load %arg6[%c0, %c0_1] : memref<16x256xf32, #tpu.memory_space<vmem>>, vector<16x256xf32>
    %c0_2 = arith.constant 0 : index
    %c0_3 = arith.constant 0 : index
    %4 = vector.load %arg2[%c0_2, %c0_3] : memref<16x384xbf16, #tpu.memory_space<vmem>>, vector<16x384xbf16>
    %c0_4 = arith.constant 0 : index
    %c0_5 = arith.constant 0 : index
    %5 = vector.load %arg3[%c0_4, %c0_5] : memref<384x256xbf16, #tpu.memory_space<vmem>>, vector<384x256xbf16>
    %cst = arith.constant dense<0.000000e+00> : vector<16x256xf32>
    %6 = tpu.matmul %4, %5, %cst {dimension_numbers = #tpu.dot_dimension_numbers<[1], [0], [0], [1], [0, 0, 1, 1], [], []>} : vector<16x384xbf16>, vector<384x256xbf16>, vector<16x256xf32> -> vector<16x256xf32>
    %7 = arith.addf %3, %6 : vector<16x256xf32>
    %c0_6 = arith.constant 0 : index
    %c0_7 = arith.constant 0 : index
    %8 = vector.load %arg6[%c0_6, %c0_7] : memref<16x256xf32, #tpu.memory_space<vmem>>, vector<16x256xf32>
    tpu.vector_store %arg6[%c0_6, %c0_7], %7 {strides = array<i32>} : memref<16x256xf32, #tpu.memory_space<vmem>>, vector<16x256xf32>,
    %c5_i32 = arith.constant 5 : i32
    %9 = arith.cmpi eq, %arg1, %c5_i32 : i32
    %10 = arith.extui %9 : i1 to i32
    %c0_i32_8 = arith.constant 0 : i32
    %11 = arith.cmpi ne, %10, %c0_i32_8 : i32
    scf.if %11 {
      %c0_9 = arith.constant 0 : index
      %c0_10 = arith.constant 0 : index
      %12 = vector.load %arg6[%c0_9, %c0_10] : memref<16x256xf32, #tpu.memory_space<vmem>>, vector<16x256xf32>
      %cst_11 = arith.constant dense<0.000000e+00> : vector<256xf32>
      %13 = vector.multi_reduction <add>, %12, %cst_11 [0] : vector<16x256xf32> to vector<256xf32>
      %14 = vector.shape_cast %13 : vector<256xf32> to vector<1x256xf32>
      %cst_12 = arith.constant 6.250000e-02 : f32
      %15 = vector.broadcast %cst_12 : f32 to vector<1x256xf32>
      %16 = arith.mulf %14, %15 : vector<1x256xf32>
      %17 = arith.mulf %12, %12 : vector<16x256xf32>
      %cst_13 = arith.constant dense<0.000000e+00> : vector<256xf32>
      %18 = vector.multi_reduction <add>, %17, %cst_13 [0] : vector<16x256xf32> to vector<256xf32>
      %19 = vector.shape_cast %18 : vector<256xf32> to vector<1x256xf32>
      %cst_14 = arith.constant 6.250000e-02 : f32
      %20 = vector.broadcast %cst_14 : f32 to vector<1x256xf32>
      %21 = arith.mulf %19, %20 : vector<1x256xf32>
      %22 = arith.mulf %16, %16 : vector<1x256xf32>
      %23 = arith.subf %21, %22 : vector<1x256xf32>
      %cst_15 = arith.constant 0.000000e+00 : f32
      %24 = vector.broadcast %cst_15 : f32 to vector<1x256xf32>
      %25 = arith.maximumf %23, %24 : vector<1x256xf32>
      %26 = vector.broadcast %16 : vector<1x256xf32> to vector<16x256xf32>
      %27 = arith.subf %12, %26 : vector<16x256xf32>
      %cst_16 = arith.constant 9.99999974E-6 : f32
      %28 = vector.broadcast %cst_16 : f32 to vector<1x256xf32>
      %29 = arith.addf %25, %28 : vector<1x256xf32>
      %30 = math.rsqrt %29 : vector<1x256xf32>
      %31 = vector.broadcast %30 : vector<1x256xf32> to vector<16x256xf32>
      %32 = arith.mulf %27, %31 : vector<16x256xf32>
      %c0_17 = arith.constant 0 : index
      %c0_18 = arith.constant 0 : index
      %33 = vector.load %arg4[%c0_17, %c0_18] : memref<16x256xbf16, #tpu.memory_space<vmem>>, vector<16x256xbf16>
      %34 = arith.extf %33 : vector<16x256xbf16> to vector<16x256xf32>
      %35 = arith.addf %32, %34 : vector<16x256xf32>
      %36 = arith.truncf %35 : vector<16x256xf32> to vector<16x256xbf16>
      %c0_19 = arith.constant 0 : index
      %c0_20 = arith.constant 0 : index
      %37 = vector.load %arg5[%c0_19, %c0_20] : memref<16x256xbf16, #tpu.memory_space<vmem>>, vector<16x256xbf16>
      tpu.vector_store %arg5[%c0_19, %c0_20], %36 {strides = array<i32>} : memref<16x256xbf16, #tpu.memory_space<vmem>>, vector<16x256xbf16>,
    } else {
    }
    return
  }
  func.func @transform_0(%arg0: i32, %arg1: i32) -> (i32, i32) {
    %c0_i32 = arith.constant 0 : i32
    return %arg0, %arg1 : i32, i32
  }
  func.func @transform_1(%arg0: i32, %arg1: i32) -> (i32, i32) {
    %c0_i32 = arith.constant 0 : i32
    %c0_i32_0 = arith.constant 0 : i32
    return %arg1, %c0_i32 : i32, i32
  }
  func.func @transform_2(%arg0: i32, %arg1: i32) -> (i32, i32) {
    %c0_i32 = arith.constant 0 : i32
    %c0_i32_0 = arith.constant 0 : i32
    return %arg0, %c0_i32 : i32, i32
  }
  func.func @transform_3(%arg0: i32, %arg1: i32) -> (i32, i32) {
    %c0_i32 = arith.constant 0 : i32
    %c0_i32_0 = arith.constant 0 : i32
    return %arg0, %c0_i32 : i32, i32
  }
}

module attributes {stable_mosaic.version = 11 : i64} {
  func.func @_conv_in_kernel(%arg0: i32, %arg1: i32, %arg2: memref<16x384xbf16, #tpu.memory_space<vmem>>, %arg3: memref<384x256xbf16, #tpu.memory_space<vmem>>, %arg4: memref<16x256xbf16, #tpu.memory_space<vmem>>, %arg5: memref<16x256xbf16, #tpu.memory_space<vmem>>, %arg6: memref<16x256xf32, #tpu.memory_space<vmem>>) attributes {dimension_semantics = [#tpu.dimension_semantics<parallel>, #tpu.dimension_semantics<arbitrary>], iteration_bounds = array<i64: 2, 6>, scalar_prefetch = 0 : i64, scratch_operands = 1 : i64, tpu.core_type = #tpu.core_type<tc>, window_params = [{transform_indices = @transform_0, window_bounds = array<i64: 16, 384>}, {transform_indices = @transform_1, window_bounds = array<i64: 384, 256>}, {transform_indices = @transform_2, window_bounds = array<i64: 16, 256>}, {transform_indices = @transform_3, window_bounds = array<i64: 16, 256>}]} {
    %c0_i32 = arith.constant 0 : i32
    %0 = arith.cmpi eq, %arg1, %c0_i32 : i32
    %1 = arith.extui %0 : i1 to i32
    %c0_i32_0 = arith.constant 0 : i32
    %2 = arith.cmpi ne, %1, %c0_i32_0 : i32
    scf.if %2 {
      %cst_9 = arith.constant 0.000000e+00 : f32
      %12 = vector.broadcast %cst_9 : f32 to vector<16x256xf32>
      %c0_10 = arith.constant 0 : index
      %c0_11 = arith.constant 0 : index
      %13 = vector.load %arg6[%c0_10, %c0_11] : memref<16x256xf32, #tpu.memory_space<vmem>>, vector<16x256xf32>
      tpu.vector_store %arg6[%c0_10, %c0_11], %12 {strides = array<i32>} : memref<16x256xf32, #tpu.memory_space<vmem>>, vector<16x256xf32>,
    } else {
    }
    %c0 = arith.constant 0 : index
    %c0_1 = arith.constant 0 : index
    %3 = vector.load %arg6[%c0, %c0_1] : memref<16x256xf32, #tpu.memory_space<vmem>>, vector<16x256xf32>
    %c0_2 = arith.constant 0 : index
    %c0_3 = arith.constant 0 : index
    %4 = vector.load %arg2[%c0_2, %c0_3] : memref<16x384xbf16, #tpu.memory_space<vmem>>, vector<16x384xbf16>
    %c0_4 = arith.constant 0 : index
    %c0_5 = arith.constant 0 : index
    %5 = vector.load %arg3[%c0_4, %c0_5] : memref<384x256xbf16, #tpu.memory_space<vmem>>, vector<384x256xbf16>
    %cst = arith.constant dense<0.000000e+00> : vector<16x256xf32>
    %6 = tpu.matmul %4, %5, %cst {dimension_numbers = #tpu.dot_dimension_numbers<[1], [0], [0], [1], [0, 0, 1, 1], [], []>} : vector<16x384xbf16>, vector<384x256xbf16>, vector<16x256xf32> -> vector<16x256xf32>
    %7 = arith.addf %3, %6 : vector<16x256xf32>
    %c0_6 = arith.constant 0 : index
    %c0_7 = arith.constant 0 : index
    %8 = vector.load %arg6[%c0_6, %c0_7] : memref<16x256xf32, #tpu.memory_space<vmem>>, vector<16x256xf32>
    tpu.vector_store %arg6[%c0_6, %c0_7], %7 {strides = array<i32>} : memref<16x256xf32, #tpu.memory_space<vmem>>, vector<16x256xf32>,
    %c5_i32 = arith.constant 5 : i32
    %9 = arith.cmpi eq, %arg1, %c5_i32 : i32
    %10 = arith.extui %9 : i1 to i32
    %c0_i32_8 = arith.constant 0 : i32
    %11 = arith.cmpi ne, %10, %c0_i32_8 : i32
    scf.if %11 {
      %c0_9 = arith.constant 0 : index
      %c0_10 = arith.constant 0 : index
      %12 = vector.load %arg6[%c0_9, %c0_10] : memref<16x256xf32, #tpu.memory_space<vmem>>, vector<16x256xf32>
      %cst_11 = arith.constant dense<0.000000e+00> : vector<256xf32>
      %13 = vector.multi_reduction <add>, %12, %cst_11 [0] : vector<16x256xf32> to vector<256xf32>
      %14 = vector.shape_cast %13 : vector<256xf32> to vector<1x256xf32>
      %cst_12 = arith.constant 6.250000e-02 : f32
      %15 = vector.broadcast %cst_12 : f32 to vector<1x256xf32>
      %16 = arith.mulf %14, %15 : vector<1x256xf32>
      %17 = arith.mulf %12, %12 : vector<16x256xf32>
      %cst_13 = arith.constant dense<0.000000e+00> : vector<256xf32>
      %18 = vector.multi_reduction <add>, %17, %cst_13 [0] : vector<16x256xf32> to vector<256xf32>
      %19 = vector.shape_cast %18 : vector<256xf32> to vector<1x256xf32>
      %cst_14 = arith.constant 6.250000e-02 : f32
      %20 = vector.broadcast %cst_14 : f32 to vector<1x256xf32>
      %21 = arith.mulf %19, %20 : vector<1x256xf32>
      %22 = arith.mulf %16, %16 : vector<1x256xf32>
      %23 = arith.subf %21, %22 : vector<1x256xf32>
      %cst_15 = arith.constant 0.000000e+00 : f32
      %24 = vector.broadcast %cst_15 : f32 to vector<1x256xf32>
      %25 = arith.maximumf %23, %24 : vector<1x256xf32>
      %26 = vector.broadcast %16 : vector<1x256xf32> to vector<16x256xf32>
      %27 = arith.subf %12, %26 : vector<16x256xf32>
      %cst_16 = arith.constant 9.99999974E-6 : f32
      %28 = vector.broadcast %cst_16 : f32 to vector<1x256xf32>
      %29 = arith.addf %25, %28 : vector<1x256xf32>
      %30 = math.rsqrt %29 : vector<1x256xf32>
      %31 = vector.broadcast %30 : vector<1x256xf32> to vector<16x256xf32>
      %32 = arith.mulf %27, %31 : vector<16x256xf32>
      %c0_17 = arith.constant 0 : index
      %c0_18 = arith.constant 0 : index
      %33 = vector.load %arg4[%c0_17, %c0_18] : memref<16x256xbf16, #tpu.memory_space<vmem>>, vector<16x256xbf16>
      %34 = arith.extf %33 : vector<16x256xbf16> to vector<16x256xf32>
      %35 = arith.addf %32, %34 : vector<16x256xf32>
      %36 = arith.truncf %35 : vector<16x256xf32> to vector<16x256xbf16>
      %c0_19 = arith.constant 0 : index
      %c0_20 = arith.constant 0 : index
      %37 = vector.load %arg5[%c0_19, %c0_20] : memref<16x256xbf16, #tpu.memory_space<vmem>>, vector<16x256xbf16>
      tpu.vector_store %arg5[%c0_19, %c0_20], %36 {strides = array<i32>} : memref<16x256xbf16, #tpu.memory_space<vmem>>, vector<16x256xbf16>,
    } else {
    }
    return
  }
  func.func @transform_0(%arg0: i32, %arg1: i32) -> (i32, i32) {
    %c0_i32 = arith.constant 0 : i32
    return %arg0, %arg1 : i32, i32
  }
  func.func @transform_1(%arg0: i32, %arg1: i32) -> (i32, i32) {
    %c0_i32 = arith.constant 0 : i32
    %c0_i32_0 = arith.constant 0 : i32
    return %arg1, %c0_i32 : i32, i32
  }
  func.func @transform_2(%arg0: i32, %arg1: i32) -> (i32, i32) {
    %c0_i32 = arith.constant 0 : i32
    %c0_i32_0 = arith.constant 0 : i32
    return %arg0, %c0_i32 : i32, i32
  }
  func.func @transform_3(%arg0: i32, %arg1: i32) -> (i32, i32) {
    %c0_i32 = arith.constant 0 : i32
    %c0_i32_0 = arith.constant 0 : i32
    return %arg0, %c0_i32 : i32, i32
  }
}

module attributes {stable_mosaic.version = 11 : i64} {
  func.func @_conv_in_kernel(%arg0: i32, %arg1: i32, %arg2: memref<16x384xbf16, #tpu.memory_space<vmem>>, %arg3: memref<384x256xbf16, #tpu.memory_space<vmem>>, %arg4: memref<16x256xbf16, #tpu.memory_space<vmem>>, %arg5: memref<16x256xf32, #tpu.memory_space<vmem>>) attributes {dimension_semantics = [#tpu.dimension_semantics<parallel>, #tpu.dimension_semantics<arbitrary>], iteration_bounds = array<i64: 2, 6>, scalar_prefetch = 0 : i64, scratch_operands = 1 : i64, tpu.core_type = #tpu.core_type<tc>, window_params = [{transform_indices = @transform_0, window_bounds = array<i64: 16, 384>}, {transform_indices = @transform_1, window_bounds = array<i64: 384, 256>}, {transform_indices = @transform_2, window_bounds = array<i64: 16, 256>}]} {
    %c0_i32 = arith.constant 0 : i32
    %0 = arith.cmpi eq, %arg1, %c0_i32 : i32
    %1 = arith.extui %0 : i1 to i32
    %c0_i32_0 = arith.constant 0 : i32
    %2 = arith.cmpi ne, %1, %c0_i32_0 : i32
    scf.if %2 {
      %cst_9 = arith.constant 0.000000e+00 : f32
      %12 = vector.broadcast %cst_9 : f32 to vector<16x256xf32>
      %c0_10 = arith.constant 0 : index
      %c0_11 = arith.constant 0 : index
      %13 = vector.load %arg5[%c0_10, %c0_11] : memref<16x256xf32, #tpu.memory_space<vmem>>, vector<16x256xf32>
      tpu.vector_store %arg5[%c0_10, %c0_11], %12 {strides = array<i32>} : memref<16x256xf32, #tpu.memory_space<vmem>>, vector<16x256xf32>,
    } else {
    }
    %c0 = arith.constant 0 : index
    %c0_1 = arith.constant 0 : index
    %3 = vector.load %arg5[%c0, %c0_1] : memref<16x256xf32, #tpu.memory_space<vmem>>, vector<16x256xf32>
    %c0_2 = arith.constant 0 : index
    %c0_3 = arith.constant 0 : index
    %4 = vector.load %arg2[%c0_2, %c0_3] : memref<16x384xbf16, #tpu.memory_space<vmem>>, vector<16x384xbf16>
    %c0_4 = arith.constant 0 : index
    %c0_5 = arith.constant 0 : index
    %5 = vector.load %arg3[%c0_4, %c0_5] : memref<384x256xbf16, #tpu.memory_space<vmem>>, vector<384x256xbf16>
    %cst = arith.constant dense<0.000000e+00> : vector<16x256xf32>
    %6 = tpu.matmul %4, %5, %cst {dimension_numbers = #tpu.dot_dimension_numbers<[1], [0], [0], [1], [0, 0, 1, 1], [], []>} : vector<16x384xbf16>, vector<384x256xbf16>, vector<16x256xf32> -> vector<16x256xf32>
    %7 = arith.addf %3, %6 : vector<16x256xf32>
    %c0_6 = arith.constant 0 : index
    %c0_7 = arith.constant 0 : index
    %8 = vector.load %arg5[%c0_6, %c0_7] : memref<16x256xf32, #tpu.memory_space<vmem>>, vector<16x256xf32>
    tpu.vector_store %arg5[%c0_6, %c0_7], %7 {strides = array<i32>} : memref<16x256xf32, #tpu.memory_space<vmem>>, vector<16x256xf32>,
    %c5_i32 = arith.constant 5 : i32
    %9 = arith.cmpi eq, %arg1, %c5_i32 : i32
    %10 = arith.extui %9 : i1 to i32
    %c0_i32_8 = arith.constant 0 : i32
    %11 = arith.cmpi ne, %10, %c0_i32_8 : i32
    scf.if %11 {
      %c0_9 = arith.constant 0 : index
      %c0_10 = arith.constant 0 : index
      %12 = vector.load %arg5[%c0_9, %c0_10] : memref<16x256xf32, #tpu.memory_space<vmem>>, vector<16x256xf32>
      %cst_11 = arith.constant dense<0.000000e+00> : vector<256xf32>
      %13 = vector.multi_reduction <add>, %12, %cst_11 [0] : vector<16x256xf32> to vector<256xf32>
      %14 = vector.shape_cast %13 : vector<256xf32> to vector<1x256xf32>
      %cst_12 = arith.constant 6.250000e-02 : f32
      %15 = vector.broadcast %cst_12 : f32 to vector<1x256xf32>
      %16 = arith.mulf %14, %15 : vector<1x256xf32>
      %17 = arith.mulf %12, %12 : vector<16x256xf32>
      %cst_13 = arith.constant dense<0.000000e+00> : vector<256xf32>
      %18 = vector.multi_reduction <add>, %17, %cst_13 [0] : vector<16x256xf32> to vector<256xf32>
      %19 = vector.shape_cast %18 : vector<256xf32> to vector<1x256xf32>
      %cst_14 = arith.constant 6.250000e-02 : f32
      %20 = vector.broadcast %cst_14 : f32 to vector<1x256xf32>
      %21 = arith.mulf %19, %20 : vector<1x256xf32>
      %22 = arith.mulf %16, %16 : vector<1x256xf32>
      %23 = arith.subf %21, %22 : vector<1x256xf32>
      %cst_15 = arith.constant 0.000000e+00 : f32
      %24 = vector.broadcast %cst_15 : f32 to vector<1x256xf32>
      %25 = arith.maximumf %23, %24 : vector<1x256xf32>
      %26 = vector.broadcast %16 : vector<1x256xf32> to vector<16x256xf32>
      %27 = arith.subf %12, %26 : vector<16x256xf32>
      %cst_16 = arith.constant 9.99999974E-6 : f32
      %28 = vector.broadcast %cst_16 : f32 to vector<1x256xf32>
      %29 = arith.addf %25, %28 : vector<1x256xf32>
      %30 = math.rsqrt %29 : vector<1x256xf32>
      %31 = vector.broadcast %30 : vector<1x256xf32> to vector<16x256xf32>
      %32 = arith.mulf %27, %31 : vector<16x256xf32>
      %cst_17 = arith.constant 0.000000e+00 : f32
      %33 = vector.broadcast %cst_17 : f32 to vector<16x256xf32>
      %34 = arith.maximumf %32, %33 : vector<16x256xf32>
      %35 = arith.truncf %34 : vector<16x256xf32> to vector<16x256xbf16>
      %c0_18 = arith.constant 0 : index
      %c0_19 = arith.constant 0 : index
      %36 = vector.load %arg4[%c0_18, %c0_19] : memref<16x256xbf16, #tpu.memory_space<vmem>>, vector<16x256xbf16>
      tpu.vector_store %arg4[%c0_18, %c0_19], %35 {strides = array<i32>} : memref<16x256xbf16, #tpu.memory_space<vmem>>, vector<16x256xbf16>,
    } else {
    }
    return
  }
  func.func @transform_0(%arg0: i32, %arg1: i32) -> (i32, i32) {
    %c0_i32 = arith.constant 0 : i32
    return %arg0, %arg1 : i32, i32
  }
  func.func @transform_1(%arg0: i32, %arg1: i32) -> (i32, i32) {
    %c0_i32 = arith.constant 0 : i32
    %c0_i32_0 = arith.constant 0 : i32
    return %arg1, %c0_i32 : i32, i32
  }
  func.func @transform_2(%arg0: i32, %arg1: i32) -> (i32, i32) {
    %c0_i32 = arith.constant 0 : i32
    %c0_i32_0 = arith.constant 0 : i32
    return %arg0, %c0_i32 : i32, i32
  }
}

module attributes {stable_mosaic.version = 11 : i64} {
  func.func @_matmul_kernel(%arg0: i32, %arg1: i32, %arg2: i32, %arg3: memref<32x256xbf16, #tpu.memory_space<vmem>>, %arg4: memref<256x128xbf16, #tpu.memory_space<vmem>>, %arg5: memref<1x128xf32, #tpu.memory_space<vmem>>, %arg6: memref<32x128xbf16, #tpu.memory_space<vmem>>, %arg7: memref<32x128xf32, #tpu.memory_space<vmem>>) attributes {dimension_semantics = [#tpu.dimension_semantics<parallel>, #tpu.dimension_semantics<parallel>, #tpu.dimension_semantics<arbitrary>], iteration_bounds = array<i64: 1, 1, 1>, scalar_prefetch = 0 : i64, scratch_operands = 1 : i64, tpu.core_type = #tpu.core_type<tc>, window_params = [{transform_indices = @transform_0, window_bounds = array<i64: 32, 256>}, {transform_indices = @transform_1, window_bounds = array<i64: 256, 128>}, {transform_indices = @transform_2, window_bounds = array<i64: 1, 128>}, {transform_indices = @transform_3, window_bounds = array<i64: 32, 128>}]} {
    %c0_i32 = arith.constant 0 : i32
    %0 = arith.cmpi eq, %arg2, %c0_i32 : i32
    %1 = arith.extui %0 : i1 to i32
    %c0_i32_0 = arith.constant 0 : i32
    %2 = arith.cmpi ne, %1, %c0_i32_0 : i32
    scf.if %2 {
      %cst_10 = arith.constant 0.000000e+00 : f32
      %12 = vector.broadcast %cst_10 : f32 to vector<32x128xf32>
      %c0_11 = arith.constant 0 : index
      %c0_12 = arith.constant 0 : index
      %13 = vector.load %arg7[%c0_11, %c0_12] : memref<32x128xf32, #tpu.memory_space<vmem>>, vector<32x128xf32>
      tpu.vector_store %arg7[%c0_11, %c0_12], %12 {strides = array<i32>} : memref<32x128xf32, #tpu.memory_space<vmem>>, vector<32x128xf32>,
    } else {
    }
    %c0 = arith.constant 0 : index
    %c0_1 = arith.constant 0 : index
    %3 = vector.load %arg7[%c0, %c0_1] : memref<32x128xf32, #tpu.memory_space<vmem>>, vector<32x128xf32>
    %c0_2 = arith.constant 0 : index
    %c0_3 = arith.constant 0 : index
    %4 = vector.load %arg3[%c0_2, %c0_3] : memref<32x256xbf16, #tpu.memory_space<vmem>>, vector<32x256xbf16>
    %c0_4 = arith.constant 0 : index
    %c0_5 = arith.constant 0 : index
    %5 = vector.load %arg4[%c0_4, %c0_5] : memref<256x128xbf16, #tpu.memory_space<vmem>>, vector<256x128xbf16>
    %cst = arith.constant dense<0.000000e+00> : vector<32x128xf32>
    %6 = tpu.matmul %4, %5, %cst {dimension_numbers = #tpu.dot_dimension_numbers<[1], [0], [0], [1], [0, 0, 1, 1], [], []>} : vector<32x256xbf16>, vector<256x128xbf16>, vector<32x128xf32> -> vector<32x128xf32>
    %7 = arith.addf %3, %6 : vector<32x128xf32>
    %c0_6 = arith.constant 0 : index
    %c0_7 = arith.constant 0 : index
    %8 = vector.load %arg7[%c0_6, %c0_7] : memref<32x128xf32, #tpu.memory_space<vmem>>, vector<32x128xf32>
    tpu.vector_store %arg7[%c0_6, %c0_7], %7 {strides = array<i32>} : memref<32x128xf32, #tpu.memory_space<vmem>>, vector<32x128xf32>,
    %c0_i32_8 = arith.constant 0 : i32
    %9 = arith.cmpi eq, %arg2, %c0_i32_8 : i32
    %10 = arith.extui %9 : i1 to i32
    %c0_i32_9 = arith.constant 0 : i32
    %11 = arith.cmpi ne, %10, %c0_i32_9 : i32
    scf.if %11 {
      %c0_10 = arith.constant 0 : index
      %c0_11 = arith.constant 0 : index
      %12 = vector.load %arg7[%c0_10, %c0_11] : memref<32x128xf32, #tpu.memory_space<vmem>>, vector<32x128xf32>
      %c0_12 = arith.constant 0 : index
      %c0_13 = arith.constant 0 : index
      %13 = vector.load %arg5[%c0_12, %c0_13] : memref<1x128xf32, #tpu.memory_space<vmem>>, vector<1x128xf32>
      %14 = vector.broadcast %13 : vector<1x128xf32> to vector<32x128xf32>
      %15 = arith.addf %12, %14 : vector<32x128xf32>
      %16 = arith.truncf %15 : vector<32x128xf32> to vector<32x128xbf16>
      %c0_14 = arith.constant 0 : index
      %c0_15 = arith.constant 0 : index
      %17 = vector.load %arg6[%c0_14, %c0_15] : memref<32x128xbf16, #tpu.memory_space<vmem>>, vector<32x128xbf16>
      tpu.vector_store %arg6[%c0_14, %c0_15], %16 {strides = array<i32>} : memref<32x128xbf16, #tpu.memory_space<vmem>>, vector<32x128xbf16>,
    } else {
    }
    return
  }
  func.func @transform_0(%arg0: i32, %arg1: i32, %arg2: i32) -> (i32, i32) {
    %c0_i32 = arith.constant 0 : i32
    return %arg0, %arg2 : i32, i32
  }
  func.func @transform_1(%arg0: i32, %arg1: i32, %arg2: i32) -> (i32, i32) {
    %c0_i32 = arith.constant 0 : i32
    return %arg2, %arg1 : i32, i32
  }
  func.func @transform_2(%arg0: i32, %arg1: i32, %arg2: i32) -> (i32, i32) {
    %c0_i32 = arith.constant 0 : i32
    %c0_i32_0 = arith.constant 0 : i32
    return %c0_i32, %arg1 : i32, i32
  }
  func.func @transform_3(%arg0: i32, %arg1: i32, %arg2: i32) -> (i32, i32) {
    %c0_i32 = arith.constant 0 : i32
    return %arg0, %arg1 : i32, i32
  }
}

module attributes {stable_mosaic.version = 11 : i64} {
  func.func @_matmul_kernel(%arg0: i32, %arg1: i32, %arg2: i32, %arg3: memref<32x512xbf16, #tpu.memory_space<vmem>>, %arg4: memref<512x128xbf16, #tpu.memory_space<vmem>>, %arg5: memref<1x128xf32, #tpu.memory_space<vmem>>, %arg6: memref<32x128xbf16, #tpu.memory_space<vmem>>, %arg7: memref<32x128xf32, #tpu.memory_space<vmem>>) attributes {dimension_semantics = [#tpu.dimension_semantics<parallel>, #tpu.dimension_semantics<parallel>, #tpu.dimension_semantics<arbitrary>], iteration_bounds = array<i64: 1, 1, 1>, scalar_prefetch = 0 : i64, scratch_operands = 1 : i64, tpu.core_type = #tpu.core_type<tc>, window_params = [{transform_indices = @transform_0, window_bounds = array<i64: 32, 512>}, {transform_indices = @transform_1, window_bounds = array<i64: 512, 128>}, {transform_indices = @transform_2, window_bounds = array<i64: 1, 128>}, {transform_indices = @transform_3, window_bounds = array<i64: 32, 128>}]} {
    %c0_i32 = arith.constant 0 : i32
    %0 = arith.cmpi eq, %arg2, %c0_i32 : i32
    %1 = arith.extui %0 : i1 to i32
    %c0_i32_0 = arith.constant 0 : i32
    %2 = arith.cmpi ne, %1, %c0_i32_0 : i32
    scf.if %2 {
      %cst_10 = arith.constant 0.000000e+00 : f32
      %12 = vector.broadcast %cst_10 : f32 to vector<32x128xf32>
      %c0_11 = arith.constant 0 : index
      %c0_12 = arith.constant 0 : index
      %13 = vector.load %arg7[%c0_11, %c0_12] : memref<32x128xf32, #tpu.memory_space<vmem>>, vector<32x128xf32>
      tpu.vector_store %arg7[%c0_11, %c0_12], %12 {strides = array<i32>} : memref<32x128xf32, #tpu.memory_space<vmem>>, vector<32x128xf32>,
    } else {
    }
    %c0 = arith.constant 0 : index
    %c0_1 = arith.constant 0 : index
    %3 = vector.load %arg7[%c0, %c0_1] : memref<32x128xf32, #tpu.memory_space<vmem>>, vector<32x128xf32>
    %c0_2 = arith.constant 0 : index
    %c0_3 = arith.constant 0 : index
    %4 = vector.load %arg3[%c0_2, %c0_3] : memref<32x512xbf16, #tpu.memory_space<vmem>>, vector<32x512xbf16>
    %c0_4 = arith.constant 0 : index
    %c0_5 = arith.constant 0 : index
    %5 = vector.load %arg4[%c0_4, %c0_5] : memref<512x128xbf16, #tpu.memory_space<vmem>>, vector<512x128xbf16>
    %cst = arith.constant dense<0.000000e+00> : vector<32x128xf32>
    %6 = tpu.matmul %4, %5, %cst {dimension_numbers = #tpu.dot_dimension_numbers<[1], [0], [0], [1], [0, 0, 1, 1], [], []>} : vector<32x512xbf16>, vector<512x128xbf16>, vector<32x128xf32> -> vector<32x128xf32>
    %7 = arith.addf %3, %6 : vector<32x128xf32>
    %c0_6 = arith.constant 0 : index
    %c0_7 = arith.constant 0 : index
    %8 = vector.load %arg7[%c0_6, %c0_7] : memref<32x128xf32, #tpu.memory_space<vmem>>, vector<32x128xf32>
    tpu.vector_store %arg7[%c0_6, %c0_7], %7 {strides = array<i32>} : memref<32x128xf32, #tpu.memory_space<vmem>>, vector<32x128xf32>,
    %c0_i32_8 = arith.constant 0 : i32
    %9 = arith.cmpi eq, %arg2, %c0_i32_8 : i32
    %10 = arith.extui %9 : i1 to i32
    %c0_i32_9 = arith.constant 0 : i32
    %11 = arith.cmpi ne, %10, %c0_i32_9 : i32
    scf.if %11 {
      %c0_10 = arith.constant 0 : index
      %c0_11 = arith.constant 0 : index
      %12 = vector.load %arg7[%c0_10, %c0_11] : memref<32x128xf32, #tpu.memory_space<vmem>>, vector<32x128xf32>
      %c0_12 = arith.constant 0 : index
      %c0_13 = arith.constant 0 : index
      %13 = vector.load %arg5[%c0_12, %c0_13] : memref<1x128xf32, #tpu.memory_space<vmem>>, vector<1x128xf32>
      %14 = vector.broadcast %13 : vector<1x128xf32> to vector<32x128xf32>
      %15 = arith.addf %12, %14 : vector<32x128xf32>
      %16 = arith.truncf %15 : vector<32x128xf32> to vector<32x128xbf16>
      %c0_14 = arith.constant 0 : index
      %c0_15 = arith.constant 0 : index
      %17 = vector.load %arg6[%c0_14, %c0_15] : memref<32x128xbf16, #tpu.memory_space<vmem>>, vector<32x128xbf16>
      tpu.vector_store %arg6[%c0_14, %c0_15], %16 {strides = array<i32>} : memref<32x128xbf16, #tpu.memory_space<vmem>>, vector<32x128xbf16>,
    } else {
    }
    return
  }
  func.func @transform_0(%arg0: i32, %arg1: i32, %arg2: i32) -> (i32, i32) {
    %c0_i32 = arith.constant 0 : i32
    return %arg0, %arg2 : i32, i32
  }
  func.func @transform_1(%arg0: i32, %arg1: i32, %arg2: i32) -> (i32, i32) {
    %c0_i32 = arith.constant 0 : i32
    return %arg2, %arg1 : i32, i32
  }
  func.func @transform_2(%arg0: i32, %arg1: i32, %arg2: i32) -> (i32, i32) {
    %c0_i32 = arith.constant 0 : i32
    %c0_i32_0 = arith.constant 0 : i32
    return %c0_i32, %arg1 : i32, i32
  }
  func.func @transform_3(%arg0: i32, %arg1: i32, %arg2: i32) -> (i32, i32) {
    %c0_i32 = arith.constant 0 : i32
    return %arg0, %arg1 : i32, i32
  }
}

module attributes {stable_mosaic.version = 11 : i64} {
  func.func @_matmul_kernel(%arg0: i32, %arg1: i32, %arg2: i32, %arg3: memref<32x512xbf16, #tpu.memory_space<vmem>>, %arg4: memref<512x128xbf16, #tpu.memory_space<vmem>>, %arg5: memref<1x128xf32, #tpu.memory_space<vmem>>, %arg6: memref<32x128xbf16, #tpu.memory_space<vmem>>, %arg7: memref<32x128xf32, #tpu.memory_space<vmem>>) attributes {dimension_semantics = [#tpu.dimension_semantics<parallel>, #tpu.dimension_semantics<parallel>, #tpu.dimension_semantics<arbitrary>], iteration_bounds = array<i64: 1, 1, 2>, scalar_prefetch = 0 : i64, scratch_operands = 1 : i64, tpu.core_type = #tpu.core_type<tc>, window_params = [{transform_indices = @transform_0, window_bounds = array<i64: 32, 512>}, {transform_indices = @transform_1, window_bounds = array<i64: 512, 128>}, {transform_indices = @transform_2, window_bounds = array<i64: 1, 128>}, {transform_indices = @transform_3, window_bounds = array<i64: 32, 128>}]} {
    %c0_i32 = arith.constant 0 : i32
    %0 = arith.cmpi eq, %arg2, %c0_i32 : i32
    %1 = arith.extui %0 : i1 to i32
    %c0_i32_0 = arith.constant 0 : i32
    %2 = arith.cmpi ne, %1, %c0_i32_0 : i32
    scf.if %2 {
      %cst_9 = arith.constant 0.000000e+00 : f32
      %12 = vector.broadcast %cst_9 : f32 to vector<32x128xf32>
      %c0_10 = arith.constant 0 : index
      %c0_11 = arith.constant 0 : index
      %13 = vector.load %arg7[%c0_10, %c0_11] : memref<32x128xf32, #tpu.memory_space<vmem>>, vector<32x128xf32>
      tpu.vector_store %arg7[%c0_10, %c0_11], %12 {strides = array<i32>} : memref<32x128xf32, #tpu.memory_space<vmem>>, vector<32x128xf32>,
    } else {
    }
    %c0 = arith.constant 0 : index
    %c0_1 = arith.constant 0 : index
    %3 = vector.load %arg7[%c0, %c0_1] : memref<32x128xf32, #tpu.memory_space<vmem>>, vector<32x128xf32>
    %c0_2 = arith.constant 0 : index
    %c0_3 = arith.constant 0 : index
    %4 = vector.load %arg3[%c0_2, %c0_3] : memref<32x512xbf16, #tpu.memory_space<vmem>>, vector<32x512xbf16>
    %c0_4 = arith.constant 0 : index
    %c0_5 = arith.constant 0 : index
    %5 = vector.load %arg4[%c0_4, %c0_5] : memref<512x128xbf16, #tpu.memory_space<vmem>>, vector<512x128xbf16>
    %cst = arith.constant dense<0.000000e+00> : vector<32x128xf32>
    %6 = tpu.matmul %4, %5, %cst {dimension_numbers = #tpu.dot_dimension_numbers<[1], [0], [0], [1], [0, 0, 1, 1], [], []>} : vector<32x512xbf16>, vector<512x128xbf16>, vector<32x128xf32> -> vector<32x128xf32>
    %7 = arith.addf %3, %6 : vector<32x128xf32>
    %c0_6 = arith.constant 0 : index
    %c0_7 = arith.constant 0 : index
    %8 = vector.load %arg7[%c0_6, %c0_7] : memref<32x128xf32, #tpu.memory_space<vmem>>, vector<32x128xf32>
    tpu.vector_store %arg7[%c0_6, %c0_7], %7 {strides = array<i32>} : memref<32x128xf32, #tpu.memory_space<vmem>>, vector<32x128xf32>,
    %c1_i32 = arith.constant 1 : i32
    %9 = arith.cmpi eq, %arg2, %c1_i32 : i32
    %10 = arith.extui %9 : i1 to i32
    %c0_i32_8 = arith.constant 0 : i32
    %11 = arith.cmpi ne, %10, %c0_i32_8 : i32
    scf.if %11 {
      %c0_9 = arith.constant 0 : index
      %c0_10 = arith.constant 0 : index
      %12 = vector.load %arg7[%c0_9, %c0_10] : memref<32x128xf32, #tpu.memory_space<vmem>>, vector<32x128xf32>
      %c0_11 = arith.constant 0 : index
      %c0_12 = arith.constant 0 : index
      %13 = vector.load %arg5[%c0_11, %c0_12] : memref<1x128xf32, #tpu.memory_space<vmem>>, vector<1x128xf32>
      %14 = vector.broadcast %13 : vector<1x128xf32> to vector<32x128xf32>
      %15 = arith.addf %12, %14 : vector<32x128xf32>
      %16 = arith.truncf %15 : vector<32x128xf32> to vector<32x128xbf16>
      %c0_13 = arith.constant 0 : index
      %c0_14 = arith.constant 0 : index
      %17 = vector.load %arg6[%c0_13, %c0_14] : memref<32x128xbf16, #tpu.memory_space<vmem>>, vector<32x128xbf16>
      tpu.vector_store %arg6[%c0_13, %c0_14], %16 {strides = array<i32>} : memref<32x128xbf16, #tpu.memory_space<vmem>>, vector<32x128xbf16>,
    } else {
    }
    return
  }
  func.func @transform_0(%arg0: i32, %arg1: i32, %arg2: i32) -> (i32, i32) {
    %c0_i32 = arith.constant 0 : i32
    return %arg0, %arg2 : i32, i32
  }
  func.func @transform_1(%arg0: i32, %arg1: i32, %arg2: i32) -> (i32, i32) {
    %c0_i32 = arith.constant 0 : i32
    return %arg2, %arg1 : i32, i32
  }
  func.func @transform_2(%arg0: i32, %arg1: i32, %arg2: i32) -> (i32, i32) {
    %c0_i32 = arith.constant 0 : i32
    %c0_i32_0 = arith.constant 0 : i32
    return %c0_i32, %arg1 : i32, i32
  }
  func.func @transform_3(%arg0: i32, %arg1: i32, %arg2: i32) -> (i32, i32) {
    %c0_i32 = arith.constant 0 : i32
    return %arg0, %arg1 : i32, i32
  }
}

module attributes {stable_mosaic.version = 11 : i64} {
  func.func @_inorm_kernel(%arg0: i32, %arg1: i32, %arg2: memref<1x64x128xbf16, #tpu.memory_space<vmem>>, %arg3: memref<1x64x128xbf16, #tpu.memory_space<vmem>>) attributes {dimension_semantics = [#tpu.dimension_semantics<parallel>, #tpu.dimension_semantics<parallel>], iteration_bounds = array<i64: 2, 1>, scalar_prefetch = 0 : i64, scratch_operands = 0 : i64, tpu.core_type = #tpu.core_type<tc>, window_params = [{transform_indices = @transform_0, window_bounds = array<i64: 1, 64, 128>}, {transform_indices = @transform_1, window_bounds = array<i64: 1, 64, 128>}]} {
    %c0 = arith.constant 0 : index
    %c0_0 = arith.constant 0 : index
    %c0_1 = arith.constant 0 : index
    %0 = vector.load %arg2[%c0, %c0_0, %c0_1] : memref<1x64x128xbf16, #tpu.memory_space<vmem>>, vector<1x64x128xbf16>
    %1 = vector.shape_cast %0 : vector<1x64x128xbf16> to vector<64x128xbf16>
    %2 = arith.extf %1 : vector<64x128xbf16> to vector<64x128xf32>
    %cst = arith.constant dense<0.000000e+00> : vector<128xf32>
    %3 = vector.multi_reduction <add>, %2, %cst [0] : vector<64x128xf32> to vector<128xf32>
    %4 = vector.shape_cast %3 : vector<128xf32> to vector<1x128xf32>
    %cst_2 = arith.constant 1.562500e-02 : f32
    %5 = vector.broadcast %cst_2 : f32 to vector<1x128xf32>
    %6 = arith.mulf %4, %5 : vector<1x128xf32>
    %7 = arith.mulf %2, %2 : vector<64x128xf32>
    %cst_3 = arith.constant dense<0.000000e+00> : vector<128xf32>
    %8 = vector.multi_reduction <add>, %7, %cst_3 [0] : vector<64x128xf32> to vector<128xf32>
    %9 = vector.shape_cast %8 : vector<128xf32> to vector<1x128xf32>
    %cst_4 = arith.constant 1.562500e-02 : f32
    %10 = vector.broadcast %cst_4 : f32 to vector<1x128xf32>
    %11 = arith.mulf %9, %10 : vector<1x128xf32>
    %12 = arith.mulf %6, %6 : vector<1x128xf32>
    %13 = arith.subf %11, %12 : vector<1x128xf32>
    %cst_5 = arith.constant 0.000000e+00 : f32
    %14 = vector.broadcast %cst_5 : f32 to vector<1x128xf32>
    %15 = arith.maximumf %13, %14 : vector<1x128xf32>
    %16 = vector.broadcast %6 : vector<1x128xf32> to vector<64x128xf32>
    %17 = arith.subf %2, %16 : vector<64x128xf32>
    %cst_6 = arith.constant 9.99999974E-6 : f32
    %18 = vector.broadcast %cst_6 : f32 to vector<1x128xf32>
    %19 = arith.addf %15, %18 : vector<1x128xf32>
    %20 = math.rsqrt %19 : vector<1x128xf32>
    %21 = vector.broadcast %20 : vector<1x128xf32> to vector<64x128xf32>
    %22 = arith.mulf %17, %21 : vector<64x128xf32>
    %cst_7 = arith.constant 0.000000e+00 : f32
    %23 = vector.broadcast %cst_7 : f32 to vector<64x128xf32>
    %24 = arith.maximumf %22, %23 : vector<64x128xf32>
    %25 = arith.truncf %24 : vector<64x128xf32> to vector<64x128xbf16>
    %c0_8 = arith.constant 0 : index
    %c0_9 = arith.constant 0 : index
    %c0_10 = arith.constant 0 : index
    %26 = vector.load %arg3[%c0_8, %c0_9, %c0_10] : memref<1x64x128xbf16, #tpu.memory_space<vmem>>, vector<1x64x128xbf16>
    %27 = vector.shape_cast %26 : vector<1x64x128xbf16> to vector<64x128xbf16>
    %28 = vector.shape_cast %25 : vector<64x128xbf16> to vector<1x64x128xbf16>
    tpu.vector_store %arg3[%c0_8, %c0_9, %c0_10], %28 {strides = array<i32>} : memref<1x64x128xbf16, #tpu.memory_space<vmem>>, vector<1x64x128xbf16>,
    return
  }
  func.func @transform_0(%arg0: i32, %arg1: i32) -> (i32, i32, i32) {
    %c0_i32 = arith.constant 0 : i32
    %c0_i32_0 = arith.constant 0 : i32
    return %arg0, %c0_i32, %arg1 : i32, i32, i32
  }
  func.func @transform_1(%arg0: i32, %arg1: i32) -> (i32, i32, i32) {
    %c0_i32 = arith.constant 0 : i32
    %c0_i32_0 = arith.constant 0 : i32
    return %arg0, %c0_i32, %arg1 : i32, i32, i32
  }
}

module attributes {stable_mosaic.version = 11 : i64} {
  func.func @_matmul_kernel(%arg0: i32, %arg1: i32, %arg2: i32, %arg3: memref<128x512xbf16, #tpu.memory_space<vmem>>, %arg4: memref<512x128xbf16, #tpu.memory_space<vmem>>, %arg5: memref<1x128xf32, #tpu.memory_space<vmem>>, %arg6: memref<128x128xbf16, #tpu.memory_space<vmem>>, %arg7: memref<128x128xf32, #tpu.memory_space<vmem>>) attributes {dimension_semantics = [#tpu.dimension_semantics<parallel>, #tpu.dimension_semantics<parallel>, #tpu.dimension_semantics<arbitrary>], iteration_bounds = array<i64: 1, 1, 1>, scalar_prefetch = 0 : i64, scratch_operands = 1 : i64, tpu.core_type = #tpu.core_type<tc>, window_params = [{transform_indices = @transform_0, window_bounds = array<i64: 128, 512>}, {transform_indices = @transform_1, window_bounds = array<i64: 512, 128>}, {transform_indices = @transform_2, window_bounds = array<i64: 1, 128>}, {transform_indices = @transform_3, window_bounds = array<i64: 128, 128>}]} {
    %c0_i32 = arith.constant 0 : i32
    %0 = arith.cmpi eq, %arg2, %c0_i32 : i32
    %1 = arith.extui %0 : i1 to i32
    %c0_i32_0 = arith.constant 0 : i32
    %2 = arith.cmpi ne, %1, %c0_i32_0 : i32
    scf.if %2 {
      %cst_10 = arith.constant 0.000000e+00 : f32
      %12 = vector.broadcast %cst_10 : f32 to vector<128x128xf32>
      %c0_11 = arith.constant 0 : index
      %c0_12 = arith.constant 0 : index
      %13 = vector.load %arg7[%c0_11, %c0_12] : memref<128x128xf32, #tpu.memory_space<vmem>>, vector<128x128xf32>
      tpu.vector_store %arg7[%c0_11, %c0_12], %12 {strides = array<i32>} : memref<128x128xf32, #tpu.memory_space<vmem>>, vector<128x128xf32>,
    } else {
    }
    %c0 = arith.constant 0 : index
    %c0_1 = arith.constant 0 : index
    %3 = vector.load %arg7[%c0, %c0_1] : memref<128x128xf32, #tpu.memory_space<vmem>>, vector<128x128xf32>
    %c0_2 = arith.constant 0 : index
    %c0_3 = arith.constant 0 : index
    %4 = vector.load %arg3[%c0_2, %c0_3] : memref<128x512xbf16, #tpu.memory_space<vmem>>, vector<128x512xbf16>
    %c0_4 = arith.constant 0 : index
    %c0_5 = arith.constant 0 : index
    %5 = vector.load %arg4[%c0_4, %c0_5] : memref<512x128xbf16, #tpu.memory_space<vmem>>, vector<512x128xbf16>
    %cst = arith.constant dense<0.000000e+00> : vector<128x128xf32>
    %6 = tpu.matmul %4, %5, %cst {dimension_numbers = #tpu.dot_dimension_numbers<[1], [0], [0], [1], [0, 0, 1, 1], [], []>} : vector<128x512xbf16>, vector<512x128xbf16>, vector<128x128xf32> -> vector<128x128xf32>
    %7 = arith.addf %3, %6 : vector<128x128xf32>
    %c0_6 = arith.constant 0 : index
    %c0_7 = arith.constant 0 : index
    %8 = vector.load %arg7[%c0_6, %c0_7] : memref<128x128xf32, #tpu.memory_space<vmem>>, vector<128x128xf32>
    tpu.vector_store %arg7[%c0_6, %c0_7], %7 {strides = array<i32>} : memref<128x128xf32, #tpu.memory_space<vmem>>, vector<128x128xf32>,
    %c0_i32_8 = arith.constant 0 : i32
    %9 = arith.cmpi eq, %arg2, %c0_i32_8 : i32
    %10 = arith.extui %9 : i1 to i32
    %c0_i32_9 = arith.constant 0 : i32
    %11 = arith.cmpi ne, %10, %c0_i32_9 : i32
    scf.if %11 {
      %c0_10 = arith.constant 0 : index
      %c0_11 = arith.constant 0 : index
      %12 = vector.load %arg7[%c0_10, %c0_11] : memref<128x128xf32, #tpu.memory_space<vmem>>, vector<128x128xf32>
      %c0_12 = arith.constant 0 : index
      %c0_13 = arith.constant 0 : index
      %13 = vector.load %arg5[%c0_12, %c0_13] : memref<1x128xf32, #tpu.memory_space<vmem>>, vector<1x128xf32>
      %14 = vector.broadcast %13 : vector<1x128xf32> to vector<128x128xf32>
      %15 = arith.addf %12, %14 : vector<128x128xf32>
      %16 = arith.truncf %15 : vector<128x128xf32> to vector<128x128xbf16>
      %c0_14 = arith.constant 0 : index
      %c0_15 = arith.constant 0 : index
      %17 = vector.load %arg6[%c0_14, %c0_15] : memref<128x128xbf16, #tpu.memory_space<vmem>>, vector<128x128xbf16>
      tpu.vector_store %arg6[%c0_14, %c0_15], %16 {strides = array<i32>} : memref<128x128xbf16, #tpu.memory_space<vmem>>, vector<128x128xbf16>,
    } else {
    }
    return
  }
  func.func @transform_0(%arg0: i32, %arg1: i32, %arg2: i32) -> (i32, i32) {
    %c0_i32 = arith.constant 0 : i32
    return %arg0, %arg2 : i32, i32
  }
  func.func @transform_1(%arg0: i32, %arg1: i32, %arg2: i32) -> (i32, i32) {
    %c0_i32 = arith.constant 0 : i32
    return %arg2, %arg1 : i32, i32
  }
  func.func @transform_2(%arg0: i32, %arg1: i32, %arg2: i32) -> (i32, i32) {
    %c0_i32 = arith.constant 0 : i32
    %c0_i32_0 = arith.constant 0 : i32
    return %c0_i32, %arg1 : i32, i32
  }
  func.func @transform_3(%arg0: i32, %arg1: i32, %arg2: i32) -> (i32, i32) {
    %c0_i32 = arith.constant 0 : i32
    return %arg0, %arg1 : i32, i32
  }
}

module attributes {stable_mosaic.version = 11 : i64} {
  func.func @_matmul_kernel(%arg0: i32, %arg1: i32, %arg2: i32, %arg3: memref<128x128xbf16, #tpu.memory_space<vmem>>, %arg4: memref<128x128xbf16, #tpu.memory_space<vmem>>, %arg5: memref<1x128xf32, #tpu.memory_space<vmem>>, %arg6: memref<128x128xbf16, #tpu.memory_space<vmem>>, %arg7: memref<128x128xf32, #tpu.memory_space<vmem>>) attributes {dimension_semantics = [#tpu.dimension_semantics<parallel>, #tpu.dimension_semantics<parallel>, #tpu.dimension_semantics<arbitrary>], iteration_bounds = array<i64: 1, 1, 1>, scalar_prefetch = 0 : i64, scratch_operands = 1 : i64, tpu.core_type = #tpu.core_type<tc>, window_params = [{transform_indices = @transform_0, window_bounds = array<i64: 128, 128>}, {transform_indices = @transform_1, window_bounds = array<i64: 128, 128>}, {transform_indices = @transform_2, window_bounds = array<i64: 1, 128>}, {transform_indices = @transform_3, window_bounds = array<i64: 128, 128>}]} {
    %c0_i32 = arith.constant 0 : i32
    %0 = arith.cmpi eq, %arg2, %c0_i32 : i32
    %1 = arith.extui %0 : i1 to i32
    %c0_i32_0 = arith.constant 0 : i32
    %2 = arith.cmpi ne, %1, %c0_i32_0 : i32
    scf.if %2 {
      %cst_10 = arith.constant 0.000000e+00 : f32
      %12 = vector.broadcast %cst_10 : f32 to vector<128x128xf32>
      %c0_11 = arith.constant 0 : index
      %c0_12 = arith.constant 0 : index
      %13 = vector.load %arg7[%c0_11, %c0_12] : memref<128x128xf32, #tpu.memory_space<vmem>>, vector<128x128xf32>
      tpu.vector_store %arg7[%c0_11, %c0_12], %12 {strides = array<i32>} : memref<128x128xf32, #tpu.memory_space<vmem>>, vector<128x128xf32>,
    } else {
    }
    %c0 = arith.constant 0 : index
    %c0_1 = arith.constant 0 : index
    %3 = vector.load %arg7[%c0, %c0_1] : memref<128x128xf32, #tpu.memory_space<vmem>>, vector<128x128xf32>
    %c0_2 = arith.constant 0 : index
    %c0_3 = arith.constant 0 : index
    %4 = vector.load %arg3[%c0_2, %c0_3] : memref<128x128xbf16, #tpu.memory_space<vmem>>, vector<128x128xbf16>
    %c0_4 = arith.constant 0 : index
    %c0_5 = arith.constant 0 : index
    %5 = vector.load %arg4[%c0_4, %c0_5] : memref<128x128xbf16, #tpu.memory_space<vmem>>, vector<128x128xbf16>
    %cst = arith.constant dense<0.000000e+00> : vector<128x128xf32>
    %6 = tpu.matmul %4, %5, %cst {dimension_numbers = #tpu.dot_dimension_numbers<[1], [0], [0], [1], [0, 0, 1, 1], [], []>} : vector<128x128xbf16>, vector<128x128xbf16>, vector<128x128xf32> -> vector<128x128xf32>
    %7 = arith.addf %3, %6 : vector<128x128xf32>
    %c0_6 = arith.constant 0 : index
    %c0_7 = arith.constant 0 : index
    %8 = vector.load %arg7[%c0_6, %c0_7] : memref<128x128xf32, #tpu.memory_space<vmem>>, vector<128x128xf32>
    tpu.vector_store %arg7[%c0_6, %c0_7], %7 {strides = array<i32>} : memref<128x128xf32, #tpu.memory_space<vmem>>, vector<128x128xf32>,
    %c0_i32_8 = arith.constant 0 : i32
    %9 = arith.cmpi eq, %arg2, %c0_i32_8 : i32
    %10 = arith.extui %9 : i1 to i32
    %c0_i32_9 = arith.constant 0 : i32
    %11 = arith.cmpi ne, %10, %c0_i32_9 : i32
    scf.if %11 {
      %c0_10 = arith.constant 0 : index
      %c0_11 = arith.constant 0 : index
      %12 = vector.load %arg7[%c0_10, %c0_11] : memref<128x128xf32, #tpu.memory_space<vmem>>, vector<128x128xf32>
      %c0_12 = arith.constant 0 : index
      %c0_13 = arith.constant 0 : index
      %13 = vector.load %arg5[%c0_12, %c0_13] : memref<1x128xf32, #tpu.memory_space<vmem>>, vector<1x128xf32>
      %14 = vector.broadcast %13 : vector<1x128xf32> to vector<128x128xf32>
      %15 = arith.addf %12, %14 : vector<128x128xf32>
      %16 = arith.truncf %15 : vector<128x128xf32> to vector<128x128xbf16>
      %c0_14 = arith.constant 0 : index
      %c0_15 = arith.constant 0 : index
      %17 = vector.load %arg6[%c0_14, %c0_15] : memref<128x128xbf16, #tpu.memory_space<vmem>>, vector<128x128xbf16>
      tpu.vector_store %arg6[%c0_14, %c0_15], %16 {strides = array<i32>} : memref<128x128xbf16, #tpu.memory_space<vmem>>, vector<128x128xbf16>,
    } else {
    }
    return
  }
  func.func @transform_0(%arg0: i32, %arg1: i32, %arg2: i32) -> (i32, i32) {
    %c0_i32 = arith.constant 0 : i32
    return %arg0, %arg2 : i32, i32
  }
  func.func @transform_1(%arg0: i32, %arg1: i32, %arg2: i32) -> (i32, i32) {
    %c0_i32 = arith.constant 0 : i32
    return %arg2, %arg1 : i32, i32
  }
  func.func @transform_2(%arg0: i32, %arg1: i32, %arg2: i32) -> (i32, i32) {
    %c0_i32 = arith.constant 0 : i32
    %c0_i32_0 = arith.constant 0 : i32
    return %c0_i32, %arg1 : i32, i32
  }
  func.func @transform_3(%arg0: i32, %arg1: i32, %arg2: i32) -> (i32, i32) {
    %c0_i32 = arith.constant 0 : i32
    return %arg0, %arg1 : i32, i32
  }
}

module attributes {stable_mosaic.version = 11 : i64} {
  func.func @_matmul_kernel(%arg0: i32, %arg1: i32, %arg2: i32, %arg3: memref<128x256xbf16, #tpu.memory_space<vmem>>, %arg4: memref<256x128xbf16, #tpu.memory_space<vmem>>, %arg5: memref<1x128xf32, #tpu.memory_space<vmem>>, %arg6: memref<128x128xbf16, #tpu.memory_space<vmem>>, %arg7: memref<128x128xf32, #tpu.memory_space<vmem>>) attributes {dimension_semantics = [#tpu.dimension_semantics<parallel>, #tpu.dimension_semantics<parallel>, #tpu.dimension_semantics<arbitrary>], iteration_bounds = array<i64: 1, 1, 1>, scalar_prefetch = 0 : i64, scratch_operands = 1 : i64, tpu.core_type = #tpu.core_type<tc>, window_params = [{transform_indices = @transform_0, window_bounds = array<i64: 128, 256>}, {transform_indices = @transform_1, window_bounds = array<i64: 256, 128>}, {transform_indices = @transform_2, window_bounds = array<i64: 1, 128>}, {transform_indices = @transform_3, window_bounds = array<i64: 128, 128>}]} {
    %c0_i32 = arith.constant 0 : i32
    %0 = arith.cmpi eq, %arg2, %c0_i32 : i32
    %1 = arith.extui %0 : i1 to i32
    %c0_i32_0 = arith.constant 0 : i32
    %2 = arith.cmpi ne, %1, %c0_i32_0 : i32
    scf.if %2 {
      %cst_10 = arith.constant 0.000000e+00 : f32
      %12 = vector.broadcast %cst_10 : f32 to vector<128x128xf32>
      %c0_11 = arith.constant 0 : index
      %c0_12 = arith.constant 0 : index
      %13 = vector.load %arg7[%c0_11, %c0_12] : memref<128x128xf32, #tpu.memory_space<vmem>>, vector<128x128xf32>
      tpu.vector_store %arg7[%c0_11, %c0_12], %12 {strides = array<i32>} : memref<128x128xf32, #tpu.memory_space<vmem>>, vector<128x128xf32>,
    } else {
    }
    %c0 = arith.constant 0 : index
    %c0_1 = arith.constant 0 : index
    %3 = vector.load %arg7[%c0, %c0_1] : memref<128x128xf32, #tpu.memory_space<vmem>>, vector<128x128xf32>
    %c0_2 = arith.constant 0 : index
    %c0_3 = arith.constant 0 : index
    %4 = vector.load %arg3[%c0_2, %c0_3] : memref<128x256xbf16, #tpu.memory_space<vmem>>, vector<128x256xbf16>
    %c0_4 = arith.constant 0 : index
    %c0_5 = arith.constant 0 : index
    %5 = vector.load %arg4[%c0_4, %c0_5] : memref<256x128xbf16, #tpu.memory_space<vmem>>, vector<256x128xbf16>
    %cst = arith.constant dense<0.000000e+00> : vector<128x128xf32>
    %6 = tpu.matmul %4, %5, %cst {dimension_numbers = #tpu.dot_dimension_numbers<[1], [0], [0], [1], [0, 0, 1, 1], [], []>} : vector<128x256xbf16>, vector<256x128xbf16>, vector<128x128xf32> -> vector<128x128xf32>
    %7 = arith.addf %3, %6 : vector<128x128xf32>
    %c0_6 = arith.constant 0 : index
    %c0_7 = arith.constant 0 : index
    %8 = vector.load %arg7[%c0_6, %c0_7] : memref<128x128xf32, #tpu.memory_space<vmem>>, vector<128x128xf32>
    tpu.vector_store %arg7[%c0_6, %c0_7], %7 {strides = array<i32>} : memref<128x128xf32, #tpu.memory_space<vmem>>, vector<128x128xf32>,
    %c0_i32_8 = arith.constant 0 : i32
    %9 = arith.cmpi eq, %arg2, %c0_i32_8 : i32
    %10 = arith.extui %9 : i1 to i32
    %c0_i32_9 = arith.constant 0 : i32
    %11 = arith.cmpi ne, %10, %c0_i32_9 : i32
    scf.if %11 {
      %c0_10 = arith.constant 0 : index
      %c0_11 = arith.constant 0 : index
      %12 = vector.load %arg7[%c0_10, %c0_11] : memref<128x128xf32, #tpu.memory_space<vmem>>, vector<128x128xf32>
      %c0_12 = arith.constant 0 : index
      %c0_13 = arith.constant 0 : index
      %13 = vector.load %arg5[%c0_12, %c0_13] : memref<1x128xf32, #tpu.memory_space<vmem>>, vector<1x128xf32>
      %14 = vector.broadcast %13 : vector<1x128xf32> to vector<128x128xf32>
      %15 = arith.addf %12, %14 : vector<128x128xf32>
      %16 = arith.truncf %15 : vector<128x128xf32> to vector<128x128xbf16>
      %c0_14 = arith.constant 0 : index
      %c0_15 = arith.constant 0 : index
      %17 = vector.load %arg6[%c0_14, %c0_15] : memref<128x128xbf16, #tpu.memory_space<vmem>>, vector<128x128xbf16>
      tpu.vector_store %arg6[%c0_14, %c0_15], %16 {strides = array<i32>} : memref<128x128xbf16, #tpu.memory_space<vmem>>, vector<128x128xbf16>,
    } else {
    }
    return
  }
  func.func @transform_0(%arg0: i32, %arg1: i32, %arg2: i32) -> (i32, i32) {
    %c0_i32 = arith.constant 0 : i32
    return %arg0, %arg2 : i32, i32
  }
  func.func @transform_1(%arg0: i32, %arg1: i32, %arg2: i32) -> (i32, i32) {
    %c0_i32 = arith.constant 0 : i32
    return %arg2, %arg1 : i32, i32
  }
  func.func @transform_2(%arg0: i32, %arg1: i32, %arg2: i32) -> (i32, i32) {
    %c0_i32 = arith.constant 0 : i32
    %c0_i32_0 = arith.constant 0 : i32
    return %c0_i32, %arg1 : i32, i32
  }
  func.func @transform_3(%arg0: i32, %arg1: i32, %arg2: i32) -> (i32, i32) {
    %c0_i32 = arith.constant 0 : i32
    return %arg0, %arg1 : i32, i32
  }
}

module attributes {stable_mosaic.version = 11 : i64} {
  func.func @_inorm_kernel(%arg0: i32, %arg1: i32, %arg2: memref<1x256x64xbf16, #tpu.memory_space<vmem>>, %arg3: memref<1x256x64xbf16, #tpu.memory_space<vmem>>) attributes {dimension_semantics = [#tpu.dimension_semantics<parallel>, #tpu.dimension_semantics<parallel>], iteration_bounds = array<i64: 2, 1>, scalar_prefetch = 0 : i64, scratch_operands = 0 : i64, tpu.core_type = #tpu.core_type<tc>, window_params = [{transform_indices = @transform_0, window_bounds = array<i64: 1, 256, 64>}, {transform_indices = @transform_1, window_bounds = array<i64: 1, 256, 64>}]} {
    %c0 = arith.constant 0 : index
    %c0_0 = arith.constant 0 : index
    %c0_1 = arith.constant 0 : index
    %0 = vector.load %arg2[%c0, %c0_0, %c0_1] : memref<1x256x64xbf16, #tpu.memory_space<vmem>>, vector<1x256x64xbf16>
    %1 = vector.shape_cast %0 : vector<1x256x64xbf16> to vector<256x64xbf16>
    %2 = arith.extf %1 : vector<256x64xbf16> to vector<256x64xf32>
    %cst = arith.constant dense<0.000000e+00> : vector<64xf32>
    %3 = vector.multi_reduction <add>, %2, %cst [0] : vector<256x64xf32> to vector<64xf32>
    %4 = vector.shape_cast %3 : vector<64xf32> to vector<1x64xf32>
    %cst_2 = arith.constant 3.906250e-03 : f32
    %5 = vector.broadcast %cst_2 : f32 to vector<1x64xf32>
    %6 = arith.mulf %4, %5 : vector<1x64xf32>
    %7 = arith.mulf %2, %2 : vector<256x64xf32>
    %cst_3 = arith.constant dense<0.000000e+00> : vector<64xf32>
    %8 = vector.multi_reduction <add>, %7, %cst_3 [0] : vector<256x64xf32> to vector<64xf32>
    %9 = vector.shape_cast %8 : vector<64xf32> to vector<1x64xf32>
    %cst_4 = arith.constant 3.906250e-03 : f32
    %10 = vector.broadcast %cst_4 : f32 to vector<1x64xf32>
    %11 = arith.mulf %9, %10 : vector<1x64xf32>
    %12 = arith.mulf %6, %6 : vector<1x64xf32>
    %13 = arith.subf %11, %12 : vector<1x64xf32>
    %cst_5 = arith.constant 0.000000e+00 : f32
    %14 = vector.broadcast %cst_5 : f32 to vector<1x64xf32>
    %15 = arith.maximumf %13, %14 : vector<1x64xf32>
    %16 = vector.broadcast %6 : vector<1x64xf32> to vector<256x64xf32>
    %17 = arith.subf %2, %16 : vector<256x64xf32>
    %cst_6 = arith.constant 9.99999974E-6 : f32
    %18 = vector.broadcast %cst_6 : f32 to vector<1x64xf32>
    %19 = arith.addf %15, %18 : vector<1x64xf32>
    %20 = math.rsqrt %19 : vector<1x64xf32>
    %21 = vector.broadcast %20 : vector<1x64xf32> to vector<256x64xf32>
    %22 = arith.mulf %17, %21 : vector<256x64xf32>
    %cst_7 = arith.constant 0.000000e+00 : f32
    %23 = vector.broadcast %cst_7 : f32 to vector<256x64xf32>
    %24 = arith.maximumf %22, %23 : vector<256x64xf32>
    %25 = arith.truncf %24 : vector<256x64xf32> to vector<256x64xbf16>
    %c0_8 = arith.constant 0 : index
    %c0_9 = arith.constant 0 : index
    %c0_10 = arith.constant 0 : index
    %26 = vector.load %arg3[%c0_8, %c0_9, %c0_10] : memref<1x256x64xbf16, #tpu.memory_space<vmem>>, vector<1x256x64xbf16>
    %27 = vector.shape_cast %26 : vector<1x256x64xbf16> to vector<256x64xbf16>
    %28 = vector.shape_cast %25 : vector<256x64xbf16> to vector<1x256x64xbf16>
    tpu.vector_store %arg3[%c0_8, %c0_9, %c0_10], %28 {strides = array<i32>} : memref<1x256x64xbf16, #tpu.memory_space<vmem>>, vector<1x256x64xbf16>,
    return
  }
  func.func @transform_0(%arg0: i32, %arg1: i32) -> (i32, i32, i32) {
    %c0_i32 = arith.constant 0 : i32
    %c0_i32_0 = arith.constant 0 : i32
    return %arg0, %c0_i32, %arg1 : i32, i32, i32
  }
  func.func @transform_1(%arg0: i32, %arg1: i32) -> (i32, i32, i32) {
    %c0_i32 = arith.constant 0 : i32
    %c0_i32_0 = arith.constant 0 : i32
    return %arg0, %c0_i32, %arg1 : i32, i32, i32
  }
}

module attributes {stable_mosaic.version = 11 : i64} {
  func.func @_matmul_kernel(%arg0: i32, %arg1: i32, %arg2: i32, %arg3: memref<256x128xbf16, #tpu.memory_space<vmem>>, %arg4: memref<128x128xbf16, #tpu.memory_space<vmem>>, %arg5: memref<1x128xf32, #tpu.memory_space<vmem>>, %arg6: memref<256x128xf32, #tpu.memory_space<vmem>>, %arg7: memref<256x128xf32, #tpu.memory_space<vmem>>) attributes {dimension_semantics = [#tpu.dimension_semantics<parallel>, #tpu.dimension_semantics<parallel>, #tpu.dimension_semantics<arbitrary>], iteration_bounds = array<i64: 2, 1, 25>, scalar_prefetch = 0 : i64, scratch_operands = 1 : i64, tpu.core_type = #tpu.core_type<tc>, window_params = [{transform_indices = @transform_0, window_bounds = array<i64: 256, 128>}, {transform_indices = @transform_1, window_bounds = array<i64: 128, 128>}, {transform_indices = @transform_2, window_bounds = array<i64: 1, 128>}, {transform_indices = @transform_3, window_bounds = array<i64: 256, 128>}]} {
    %c0_i32 = arith.constant 0 : i32
    %0 = arith.cmpi eq, %arg2, %c0_i32 : i32
    %1 = arith.extui %0 : i1 to i32
    %c0_i32_0 = arith.constant 0 : i32
    %2 = arith.cmpi ne, %1, %c0_i32_0 : i32
    scf.if %2 {
      %cst_9 = arith.constant 0.000000e+00 : f32
      %12 = vector.broadcast %cst_9 : f32 to vector<256x128xf32>
      %c0_10 = arith.constant 0 : index
      %c0_11 = arith.constant 0 : index
      %13 = vector.load %arg7[%c0_10, %c0_11] : memref<256x128xf32, #tpu.memory_space<vmem>>, vector<256x128xf32>
      tpu.vector_store %arg7[%c0_10, %c0_11], %12 {strides = array<i32>} : memref<256x128xf32, #tpu.memory_space<vmem>>, vector<256x128xf32>,
    } else {
    }
    %c0 = arith.constant 0 : index
    %c0_1 = arith.constant 0 : index
    %3 = vector.load %arg7[%c0, %c0_1] : memref<256x128xf32, #tpu.memory_space<vmem>>, vector<256x128xf32>
    %c0_2 = arith.constant 0 : index
    %c0_3 = arith.constant 0 : index
    %4 = vector.load %arg3[%c0_2, %c0_3] : memref<256x128xbf16, #tpu.memory_space<vmem>>, vector<256x128xbf16>
    %c0_4 = arith.constant 0 : index
    %c0_5 = arith.constant 0 : index
    %5 = vector.load %arg4[%c0_4, %c0_5] : memref<128x128xbf16, #tpu.memory_space<vmem>>, vector<128x128xbf16>
    %cst = arith.constant dense<0.000000e+00> : vector<256x128xf32>
    %6 = tpu.matmul %4, %5, %cst {dimension_numbers = #tpu.dot_dimension_numbers<[1], [0], [0], [1], [0, 0, 1, 1], [], []>} : vector<256x128xbf16>, vector<128x128xbf16>, vector<256x128xf32> -> vector<256x128xf32>
    %7 = arith.addf %3, %6 : vector<256x128xf32>
    %c0_6 = arith.constant 0 : index
    %c0_7 = arith.constant 0 : index
    %8 = vector.load %arg7[%c0_6, %c0_7] : memref<256x128xf32, #tpu.memory_space<vmem>>, vector<256x128xf32>
    tpu.vector_store %arg7[%c0_6, %c0_7], %7 {strides = array<i32>} : memref<256x128xf32, #tpu.memory_space<vmem>>, vector<256x128xf32>,
    %c24_i32 = arith.constant 24 : i32
    %9 = arith.cmpi eq, %arg2, %c24_i32 : i32
    %10 = arith.extui %9 : i1 to i32
    %c0_i32_8 = arith.constant 0 : i32
    %11 = arith.cmpi ne, %10, %c0_i32_8 : i32
    scf.if %11 {
      %c0_9 = arith.constant 0 : index
      %c0_10 = arith.constant 0 : index
      %12 = vector.load %arg7[%c0_9, %c0_10] : memref<256x128xf32, #tpu.memory_space<vmem>>, vector<256x128xf32>
      %c0_11 = arith.constant 0 : index
      %c0_12 = arith.constant 0 : index
      %13 = vector.load %arg5[%c0_11, %c0_12] : memref<1x128xf32, #tpu.memory_space<vmem>>, vector<1x128xf32>
      %14 = vector.broadcast %13 : vector<1x128xf32> to vector<256x128xf32>
      %15 = arith.addf %12, %14 : vector<256x128xf32>
      %16 = math.tanh %15 : vector<256x128xf32>
      %c0_13 = arith.constant 0 : index
      %c0_14 = arith.constant 0 : index
      %17 = vector.load %arg6[%c0_13, %c0_14] : memref<256x128xf32, #tpu.memory_space<vmem>>, vector<256x128xf32>
      tpu.vector_store %arg6[%c0_13, %c0_14], %16 {strides = array<i32>} : memref<256x128xf32, #tpu.memory_space<vmem>>, vector<256x128xf32>,
    } else {
    }
    return
  }
  func.func @transform_0(%arg0: i32, %arg1: i32, %arg2: i32) -> (i32, i32) {
    %c0_i32 = arith.constant 0 : i32
    return %arg0, %arg2 : i32, i32
  }
  func.func @transform_1(%arg0: i32, %arg1: i32, %arg2: i32) -> (i32, i32) {
    %c0_i32 = arith.constant 0 : i32
    return %arg2, %arg1 : i32, i32
  }
  func.func @transform_2(%arg0: i32, %arg1: i32, %arg2: i32) -> (i32, i32) {
    %c0_i32 = arith.constant 0 : i32
    %c0_i32_0 = arith.constant 0 : i32
    return %c0_i32, %arg1 : i32, i32
  }
  func.func @transform_3(%arg0: i32, %arg1: i32, %arg2: i32) -> (i32, i32) {
    %c0_i32 = arith.constant 0 : i32
    return %arg0, %arg1 : i32, i32
  }
}

</mosaic_0001>

<bundles_post_ra>
// kernel: generator_forward.32
= control target key start
LH: loop header
LB: loop body
LE: loop exit
PB: predicated region body
PF: predicated region fallthrough
CT: control target
= control target key end

     0   :  { %s1663_s9 = smov 0   ;;  %s1665_s10 = smov 0   ;;  %s2148_s0 = inlined_call_operand.vmem [shape: bf16[512,256], index: 0, kind: input, shape index: {}]   ;;  %s2149_s1 = inlined_call_operand.vmem [shape: bf16[256,128], index: 1, kind: input, shape index: {}]   ;;  %s2150_s2 = inlined_call_operand.vmem [shape: bf16[512,128], index: 2, kind: output, shape index: {}]  }
   0x1   :  { %s1667_s11 = smov 0  }
   0x2 LB: > { %s24_s12 = sadd.s32 1, %s1642_s10  ;;  %p1238_p0 = scmp.ge.s32.totalorder %s1646_s11, 1  ;;  %s1646_s11 = sphi %s1667_s11, %s12_s11   ;;  %s1642_s10 = sphi %s1665_s10, %s2152_s10   ;;  %s1638_s9 = sphi %s1663_s9, %s2151_s9  }
   0x3   : > { %p26_p1 = scmp.ge.s32.totalorder %s24_s12, 2  ;;  %p144_p2 = scmp.lt.s32.totalorder %s1646_s11, 3 }
   0x5   : > { %s2154_s12 = smov (%p26_p1, %s24_s12), 0  ;;  %p145_p3 = pnand %p1238_p0, %p144_p2 }
   0x6   : > { %s1239_s25 = sshll.u32 (!%p145_p3), %s1638_s9, 5 }
   0x7   : > { %148 = sbr.rel (%p145_p3) target bundleno = 395 (0x18b), region = 28  ;;  %p178_p4 = scmp.lt.s32.totalorder (!%p145_p3), %s1239_s25, 63 }
   0xc   : > { %v1478_v0 = vld [vmem:[%s2149_s1 + $0x38] sm:$0xff]  ;;  %v1477_v2 = vld [vmem:[%s2149_s1 + $0x30] sm:$0xff]  ;;  %v1476_v4 = vld [vmem:[%s2149_s1 + $0x28] sm:$0xff]  ;;  %s2156_s25 = smov (!%p178_p4, %s1239_s25), 63 }
   0xd   : > { %v1486_v1 = vld [vmem:[%s2149_s1 + $0x78] sm:$0xff]  ;;  %588 = vmatpush.bf16.msra.mxu0 %v1478_v0  ;;  %v1485_v3 = vld [vmem:[%s2149_s1 + $0x70] sm:$0xff]  ;;  %1582 = vmatpush.bf16.msra.mxu2 %v1478_v0  ;;  %v1484_v5 = vld [vmem:[%s2149_s1 + $0x68] sm:$0xff]  ;;  %s1438_s13 = sshll.u32 %s2156_s25, 3  ;;  %s1243_s26 = sshll.u32 %s2156_s25, 2 }
   0xe   : > { %677 = vmatpush.bf16.msra.mxu1 %v1486_v1  ;;  %1590 = vmatpush.bf16.msra.mxu3 %v1486_v1  ;;  %v1475_v6 = vld [vmem:[%s2149_s1 + $0x20] sm:$0xff]  ;;  %v1474_v8 = vld [vmem:[%s2149_s1 + $0x18] sm:$0xff]  ;;  %v1473_v10 = vld [vmem:[%s2149_s1 + $0x10] sm:$0xff]  ;;  %s1732_s20 = scalar_lea.vmem %s2148_s0, %s1438_s13  ;;  %s2104_s29 = scalar_lea.vmem %s2150_s2, %s1243_s26 }
   0xf   : > { %v1483_v7 = vld [vmem:[%s2149_s1 + $0x60] sm:$0xff]  ;;  %v1482_v9 = vld [vmem:[%s2149_s1 + $0x58] sm:$0xff]  ;;  %v1481_v11 = vld [vmem:[%s2149_s1 + $0x50] sm:$0xff] }
  0x10   : > { %v1472_v12 = vld [vmem:[%s2149_s1 + $0x8] sm:$0xff]  ;;  %v1471_v14 = vld [vmem:[%s2149_s1] sm:$0xff]  ;;  %v1254_v28 = vld [vmem:[%s1732_s20 + $0x10] sm:$0xf] }
  0x11   : > { %589 = vmatpush.bf16.msra.mxu0 %v1477_v2  ;;  %1583 = vmatpush.bf16.msra.mxu2 %v1477_v2  ;;  %v1480_v13 = vld [vmem:[%s2149_s1 + $0x48] sm:$0xff]  ;;  %v1479_v15 = vld [vmem:[%s2149_s1 + $0x40] sm:$0xff]  ;;  %v1442_v29 = vld [vmem:[%s1732_s20 + $0x14] sm:$0xf0] }
  0x12   : > { %678 = vmatpush.bf16.msra.mxu1 %v1485_v3  ;;  %1591 = vmatpush.bf16.msra.mxu3 %v1485_v3  ;;  %v1246_v16 = vld [vmem:[%s1732_s20] sm:$0xf]  ;;  %v1440_v17 = vld [vmem:[%s1732_s20 + $0x4] sm:$0xf0]  ;;  %v1439_v18 = vld [vmem:[%s1732_s20 + $0x4] sm:$0xf]  ;;  %v1255_v36 = vor.u32 %v1442_v29, %v1254_v28 }
  0x13   : > { %v1248_v19 = vld [vmem:[%s1732_s20 + $0x8] sm:$0xf0]  ;;  %v1310_v20 = vld [vmem:[%s1732_s20 + $0x80] sm:$0xf]  ;;  %v1456_v21 = vld [vmem:[%s1732_s20 + $0x84] sm:$0xf0]  ;;  %v1247_v24 = vor.u32 %v1440_v17, %v1246_v16 }
  0x14   : > { %v1455_v22 = vld [vmem:[%s1732_s20 + $0x84] sm:$0xf]  ;;  %v1312_v23 = vld [vmem:[%s1732_s20 + $0x88] sm:$0xf0]  ;;  %v1251_v25 = vor.u32 %v1439_v18, %v1248_v19  ;;  %v1311_v26 = vor.u32 %v1456_v21, %v1310_v20  ;;  %v1441_v30 = vld [vmem:[%s1732_s20 + $0x14] sm:$0xf] }
  0x15   : > { %590 = vmatpush.bf16.msra.mxu0 %v1476_v4  ;;  %1584 = vmatpush.bf16.msra.mxu2 %v1476_v4  ;;  %v1315_v27 = vor.u32 %v1455_v22, %v1312_v23  ;;  %v1256_v31 = vld [vmem:[%s1732_s20 + $0x18] sm:$0xf0]  ;;  %v1318_v32 = vld [vmem:[%s1732_s20 + $0x90] sm:$0xf]  ;;  %v1458_v33 = vld [vmem:[%s1732_s20 + $0x94] sm:$0xf0] }
  0x16   : > { %679 = vmatpush.bf16.msra.mxu1 %v1484_v5  ;;  %1592 = vmatpush.bf16.msra.mxu3 %v1484_v5  ;;  %v1457_v34 = vld [vmem:[%s1732_s20 + $0x94] sm:$0xf]  ;;  %v1320_v35 = vld [vmem:[%s1732_s20 + $0x98] sm:$0xf0]  ;;  %v1259_v37 = vor.u32 %v1441_v30, %v1256_v31  ;;  %v1319_v38 = vor.u32 %v1458_v33, %v1318_v32  ;;  %v1262_v40 = vld [vmem:[%s1732_s20 + $0x20] sm:$0xf] }
  0x17   : > { %v1323_v39 = vor.u32 %v1457_v34, %v1320_v35  ;;  %v1444_v41 = vld [vmem:[%s1732_s20 + $0x24] sm:$0xf0]  ;;  %v1443_v42 = vld [vmem:[%s1732_s20 + $0x24] sm:$0xf]  ;;  %v1264_v43 = vld [vmem:[%s1732_s20 + $0x28] sm:$0xf0] }
  0x18   : > { %v1326_v44 = vld [vmem:[%s1732_s20 + $0xa0] sm:$0xf]  ;;  %v1460_v45 = vld [vmem:[%s1732_s20 + $0xa4] sm:$0xf0]  ;;  %v1459_v46 = vld [vmem:[%s1732_s20 + $0xa4] sm:$0xf]  ;;  %v1263_v48 = vor.u32 %v1444_v41, %v1262_v40  ;;  %v1267_v49 = vor.u32 %v1443_v42, %v1264_v43 }
  0x19   : > { %591 = vmatpush.bf16.msra.mxu0 %v1475_v6  ;;  %1585 = vmatpush.bf16.msra.mxu2 %v1475_v6  ;;  %v1328_v47 = vld [vmem:[%s1732_s20 + $0xa8] sm:$0xf0]  ;;  %v1327_v50 = vor.u32 %v1460_v45, %v1326_v44  ;;  %v1270_v52 = vld [vmem:[%s1732_s20 + $0x30] sm:$0xf]  ;;  %v1446_v53 = vld [vmem:[%s1732_s20 + $0x34] sm:$0xf0] }
  0x1a   : > { %680 = vmatpush.bf16.msra.mxu1 %v1483_v7  ;;  %1593 = vmatpush.bf16.msra.mxu3 %v1483_v7  ;;  %v1331_v51 = vor.u32 %v1459_v46, %v1328_v47  ;;  %v1445_v54 = vld [vmem:[%s1732_s20 + $0x34] sm:$0xf]  ;;  %v1272_v55 = vld [vmem:[%s1732_s20 + $0x38] sm:$0xf0]  ;;  %v1334_v56 = vld [vmem:[%s1732_s20 + $0xb0] sm:$0xf]  ;;  %v1271_v60 = vor.u32 %v1446_v53, %v1270_v52 }
  0x1b   : > { %v1462_v57 = vld [vmem:[%s1732_s20 + $0xb4] sm:$0xf0]  ;;  %v1461_v58 = vld [vmem:[%s1732_s20 + $0xb4] sm:$0xf]  ;;  %v1336_v59 = vld [vmem:[%s1732_s20 + $0xb8] sm:$0xf0]  ;;  %v1275_v61 = vor.u32 %v1445_v54, %v1272_v55 }
  0x1c   : > { %v1335_v62 = vor.u32 %v1462_v57, %v1334_v56  ;;  %v1339_v63 = vor.u32 %v1461_v58, %v1336_v59  ;;  %v1278_v0 = vld [vmem:[%s1732_s20 + $0x40] sm:$0xf]  ;;  %v1448_v1 = vld [vmem:[%s1732_s20 + $0x44] sm:$0xf0]  ;;  %v1447_v2 = vld [vmem:[%s1732_s20 + $0x44] sm:$0xf] }
  0x1d   : > { %592 = vmatpush.bf16.msra.mxu0 %v1474_v8  ;;  %1586 = vmatpush.bf16.msra.mxu2 %v1474_v8  ;;  %v1280_v3 = vld [vmem:[%s1732_s20 + $0x48] sm:$0xf0]  ;;  %v1342_v4 = vld [vmem:[%s1732_s20 + $0xc0] sm:$0xf]  ;;  %v1464_v5 = vld [vmem:[%s1732_s20 + $0xc4] sm:$0xf0]  ;;  %v1279_v8 = vor.u32 %v1448_v1, %v1278_v0 }
  0x1e   : > { %681 = vmatpush.bf16.msra.mxu1 %v1482_v9  ;;  %1594 = vmatpush.bf16.msra.mxu3 %v1482_v9  ;;  %v1463_v6 = vld [vmem:[%s1732_s20 + $0xc4] sm:$0xf]  ;;  %v1344_v7 = vld [vmem:[%s1732_s20 + $0xc8] sm:$0xf0]  ;;  %v1283_v9 = vor.u32 %v1447_v2, %v1280_v3  ;;  %v1350_v16 = vld [vmem:[%s1732_s20 + $0xd0] sm:$0xf] }
  0x1f   : > { %v1466_v17 = vld [vmem:[%s1732_s20 + $0xd4] sm:$0xf0]  ;;  %v1465_v18 = vld [vmem:[%s1732_s20 + $0xd4] sm:$0xf]  ;;  %v1352_v19 = vld [vmem:[%s1732_s20 + $0xd8] sm:$0xf0] }
  0x20   : > { %v1351_v22 = vor.u32 %v1466_v17, %v1350_v16  ;;  %v1355_v23 = vor.u32 %v1465_v18, %v1352_v19  ;;  %v1358_v28 = vld [vmem:[%s1732_s20 + $0xe0] sm:$0xf]  ;;  %v1468_v29 = vld [vmem:[%s1732_s20 + $0xe4] sm:$0xf0]  ;;  %v1467_v30 = vld [vmem:[%s1732_s20 + $0xe4] sm:$0xf] }
  0x21   : > { %593 = vmatpush.bf16.msra.mxu0 %v1473_v10  ;;  %1587 = vmatpush.bf16.msra.mxu2 %v1473_v10  ;;  %v1343_v10 = vor.u32 %v1464_v5, %v1342_v4  ;;  %v1360_v31 = vld [vmem:[%s1732_s20 + $0xe8] sm:$0xf0]  ;;  %v1359_v34 = vor.u32 %v1468_v29, %v1358_v28  ;;  %v1366_v40 = vld [vmem:[%s1732_s20 + $0xf0] sm:$0xf]  ;;  %v1470_v41 = vld [vmem:[%s1732_s20 + $0xf4] sm:$0xf0] }
  0x22   : > { %682 = vmatpush.bf16.msra.mxu1 %v1481_v11  ;;  %1595 = vmatpush.bf16.msra.mxu3 %v1481_v11  ;;  %v1347_v11 = vor.u32 %v1463_v6, %v1344_v7  ;;  %v1363_v35 = vor.u32 %v1467_v30, %v1360_v31  ;;  %v1469_v42 = vld [vmem:[%s1732_s20 + $0xf4] sm:$0xf]  ;;  %v1368_v43 = vld [vmem:[%s1732_s20 + $0xf8] sm:$0xf0]  ;;  %v1367_v46 = vor.u32 %v1470_v41, %v1366_v40 }
  0x23   : > { %v1371_v47 = vor.u32 %v1469_v42, %v1368_v43 }
  0x25   : > { %594 = vmatpush.bf16.msra.mxu0 %v1472_v12  ;;  %1588 = vmatpush.bf16.msra.mxu2 %v1472_v12  ;;  %v1286_v12 = vld [vmem:[%s1732_s20 + $0x50] sm:$0xf] }
  0x26   : > { %683 = vmatpush.bf16.msra.mxu1 %v1480_v13  ;;  %1596 = vmatpush.bf16.msra.mxu3 %v1480_v13  ;;  %v1450_v13 = vld [vmem:[%s1732_s20 + $0x54] sm:$0xf0] }
  0x27   : > { %v1287_v20 = vor.u32 %v1450_v13, %v1286_v12 }
  0x29   : > { %595 = vmatpush.bf16.msra.mxu0 %v1471_v14  ;;  %1589 = vmatpush.bf16.msra.mxu2 %v1471_v14  ;;  %v1449_v14 = vld [vmem:[%s1732_s20 + $0x54] sm:$0xf] }
  0x2a   : > { %684 = vmatpush.bf16.msra.mxu1 %v1479_v15  ;;  %1597 = vmatpush.bf16.msra.mxu3 %v1479_v15  ;;  %v1288_v15 = vld [vmem:[%s1732_s20 + $0x58] sm:$0xf0] }
  0x2b   : > { %v1291_v21 = vor.u32 %v1449_v14, %v1288_v15 }
  0x2c   : > { %596 = vmatmul.bf16.vlgmr.msra.gmra.mxu0 %v1247_v24  ;;  %636 = vmatmul.bf16.vlgmr.msra.gmra.mxu2 %v1311_v26  ;;  %v1294_v24 = vld [vmem:[%s1732_s20 + $0x60] sm:$0xf]  ;;  %v1451_v26 = vld [vmem:[%s1732_s20 + $0x64] sm:$0xf] }
  0x2d   : > { %685 = vmatmul.bf16.vlgmr.msra.gmra.mxu1 %v1251_v25  ;;  %725 = vmatmul.bf16.vlgmr.msra.gmra.mxu3 %v1315_v27  ;;  %v1452_v25 = vld [vmem:[%s1732_s20 + $0x64] sm:$0xf0]  ;;  %v1296_v27 = vld [vmem:[%s1732_s20 + $0x68] sm:$0xf0] }
  0x2e   : > { %v1295_v32 = vor.u32 %v1452_v25, %v1294_v24  ;;  %v1299_v33 = vor.u32 %v1451_v26, %v1296_v27 }
  0x3c   : > { %601 = vmatmul.bf16.gmra.mxu0 %v1255_v36  ;;  %641 = vmatmul.bf16.gmra.mxu2 %v1319_v38  ;;  %v1302_v36 = vld [vmem:[%s1732_s20 + $0x70] sm:$0xf]  ;;  %v1453_v38 = vld [vmem:[%s1732_s20 + $0x74] sm:$0xf] }
  0x3d   : > { %690 = vmatmul.bf16.gmra.mxu1 %v1259_v37  ;;  %730 = vmatmul.bf16.gmra.mxu3 %v1323_v39  ;;  %v1454_v37 = vld [vmem:[%s1732_s20 + $0x74] sm:$0xf0]  ;;  %v1304_v39 = vld [vmem:[%s1732_s20 + $0x78] sm:$0xf0] }
  0x3e   : > { %v1303_v44 = vor.u32 %v1454_v37, %v1302_v36  ;;  %v1307_v45 = vor.u32 %v1453_v38, %v1304_v39 }
  0x4c   : > { %606 = vmatmul.bf16.gmra.mxu0 %v1263_v48  ;;  %646 = vmatmul.bf16.gmra.mxu2 %v1327_v50 }
  0x4d   : > { %695 = vmatmul.bf16.gmra.mxu1 %v1267_v49  ;;  %735 = vmatmul.bf16.gmra.mxu3 %v1331_v51 }
  0x5c   : > { %611 = vmatmul.bf16.gmra.mxu0 %v1271_v60  ;;  %651 = vmatmul.bf16.gmra.mxu2 %v1335_v62 }
  0x5d   : > { %700 = vmatmul.bf16.gmra.mxu1 %v1275_v61  ;;  %740 = vmatmul.bf16.gmra.mxu3 %v1339_v63 }
  0x6c   : > { %616 = vmatmul.bf16.gmra.mxu0 %v1279_v8  ;;  %656 = vmatmul.bf16.gmra.mxu2 %v1343_v10 }
  0x6d   : > { %705 = vmatmul.bf16.gmra.mxu1 %v1283_v9  ;;  %745 = vmatmul.bf16.gmra.mxu3 %v1347_v11 }
  0x7c   : > { %621 = vmatmul.bf16.gmra.mxu0 %v1287_v20  ;;  %661 = vmatmul.bf16.gmra.mxu2 %v1351_v22 }
  0x7d   : > { %710 = vmatmul.bf16.gmra.mxu1 %v1291_v21  ;;  %750 = vmatmul.bf16.gmra.mxu3 %v1355_v23 }
  0x8c   : > { %626 = vmatmul.bf16.gmra.mxu0 %v1295_v32  ;;  %666 = vmatmul.bf16.gmra.mxu2 %v1359_v34 }
  0x8d   : > { %715 = vmatmul.bf16.gmra.mxu1 %v1299_v33  ;;  %755 = vmatmul.bf16.gmra.mxu3 %v1363_v35 }
  0x9c   : > { %631 = vmatmul.bf16.gmra.mxu0 %v1303_v44  ;;  %671 = vmatmul.bf16.gmra.mxu2 %v1367_v46 }
  0x9d   : > { %720 = vmatmul.bf16.gmra.mxu1 %v1307_v45  ;;  %760 = vmatmul.bf16.gmra.mxu3 %v1371_v47 }
  0xa9   : > { %v597_v48 = vpop.f32.mrf.mxu0 }
  0xaa   : > { %v686_v49 = vpop.f32.mrf.mxu1 }
  0xab   : > { %v1804_v50 = vadd.f32 %v686_v49, %v597_v48 }
  0xad   : > { %v903_v39 = vmul.f32 %v1804_v50, %v1804_v50 }
  0xaf   : > { %v637_v51 = vpop.f32.mrf.mxu2 }
  0xb0   : > { %v726_v52 = vpop.f32.mrf.mxu3 }
  0xb1   : > { %v599_v53 = vpop.f32.mrf.mxu0  ;;  %v1806_v55 = vadd.f32 %v726_v52, %v637_v51 }
  0xb2   : > { %v688_v54 = vpop.f32.mrf.mxu1 }
  0xb3   : > { %v1808_v56 = vadd.f32 %v688_v54, %v599_v53 }
  0xb5   : > { %v904_v38 = vmul.f32 %v1808_v56, %v1808_v56  ;;  %v865_v40 = vadd.f32 %v1808_v56, %v1804_v50 }
  0xb7   : > { %v639_v57 = vpop.f32.mrf.mxu2  ;;  %v935_v44 = vadd.f32 %v904_v38, %v903_v39 }
  0xb8   : > { %v728_v58 = vpop.f32.mrf.mxu3 }
  0xb9   : > { %v602_v59 = vpop.f32.mrf.mxu0  ;;  %v1810_v61 = vadd.f32 %v728_v58, %v639_v57 }
  0xba   : > { %v691_v60 = vpop.f32.mrf.mxu1 }
  0xbb   : > { %v1812_v62 = vadd.f32 %v691_v60, %v602_v59 }
  0xbd   : > { %v905_v41 = vmul.f32 %v1812_v62, %v1812_v62  ;;  %v866_v45 = vadd.f32 %v865_v40, %v1812_v62 }
  0xbf   : > { %v642_v63 = vpop.f32.mrf.mxu2  ;;  %v936_v51 = vadd.f32 %v935_v44, %v905_v41 }
  0xc0   : > { %v731_v0 = vpop.f32.mrf.mxu3 }
  0xc1   : > { %v604_v1 = vpop.f32.mrf.mxu0  ;;  %v1814_v3 = vadd.f32 %v731_v0, %v642_v63 }
  0xc2   : > { %v693_v2 = vpop.f32.mrf.mxu1 }
  0xc3   : > { %v1816_v4 = vadd.f32 %v693_v2, %v604_v1 }
  0xc5   : > { %v906_v46 = vmul.f32 %v1816_v4, %v1816_v4  ;;  %v867_v52 = vadd.f32 %v866_v45, %v1816_v4 }
  0xc7   : > { %v644_v5 = vpop.f32.mrf.mxu2  ;;  %v937_v57 = vadd.f32 %v936_v51, %v906_v46 }
  0xc8   : > { %v733_v6 = vpop.f32.mrf.mxu3 }
  0xc9   : > { %v607_v7 = vpop.f32.mrf.mxu0  ;;  %v1818_v9 = vadd.f32 %v733_v6, %v644_v5 }
  0xca   : > { %v696_v8 = vpop.f32.mrf.mxu1 }
  0xcb   : > { %v1820_v10 = vadd.f32 %v696_v8, %v607_v7 }
  0xcd   : > { %v907_v53 = vmul.f32 %v1820_v10, %v1820_v10  ;;  %v868_v58 = vadd.f32 %v867_v52, %v1820_v10 }
  0xcf   : > { %v647_v11 = vpop.f32.mrf.mxu2  ;;  %v938_v63 = vadd.f32 %v937_v57, %v907_v53 }
  0xd0   : > { %v736_v12 = vpop.f32.mrf.mxu3 }
  0xd1   : > { %v609_v13 = vpop.f32.mrf.mxu0  ;;  %v1822_v15 = vadd.f32 %v736_v12, %v647_v11 }
  0xd2   : > { %v698_v14 = vpop.f32.mrf.mxu1 }
  0xd3   : > { %v1855_v47 = vadd.f32 %v698_v14, %v609_v13 }
  0xd5   : > { %v908_v59 = vmul.f32 %v1855_v47, %v1855_v47  ;;  %v869_v0 = vadd.f32 %v868_v58, %v1855_v47 }
  0xd7   : > { %v1824_v16 = vpop.f32.mrf.mxu2  ;;  %v939_v7 = vadd.f32 %v938_v63, %v908_v59 }
  0xd8   : > { %v1826_v17 = vpop.f32.mrf.mxu3 }
  0xd9   : > { %v612_v18 = vpop.f32.mrf.mxu0 }
  0xda   : > { %v701_v19 = vpop.f32.mrf.mxu1 }
  0xdb   : > { %v1864_v54 = vadd.f32 %v701_v19, %v612_v18 }
  0xdd   : > { %v909_v1 = vmul.f32 %v1864_v54, %v1864_v54  ;;  %v870_v8 = vadd.f32 %v869_v0, %v1864_v54 }
  0xdf   : > { %v1828_v22 = vpop.f32.mrf.mxu2  ;;  %v940_v13 = vadd.f32 %v939_v7, %v909_v1 }
  0xe0   : > { %v1830_v23 = vpop.f32.mrf.mxu3 }
  0xe1   : > { %v614_v20 = vpop.f32.mrf.mxu0 }
  0xe2   : > { %v703_v21 = vpop.f32.mrf.mxu1 }
  0xe3   : > { %v1869_v60 = vadd.f32 %v703_v21, %v614_v20 }
  0xe5   : > { %v910_v11 = vmul.f32 %v1869_v60, %v1869_v60  ;;  %v871_v14 = vadd.f32 %v870_v8, %v1869_v60 }
  0xe7   : > { %v1832_v26 = vpop.f32.mrf.mxu2 }
  0xe8   : > { %v1834_v27 = vpop.f32.mrf.mxu3 }
  0xe9   : > { %v617_v24 = vpop.f32.mrf.mxu0 }
  0xea   : > { %v706_v25 = vpop.f32.mrf.mxu1 }
  0xeb   : > { %v1874_v2 = vadd.f32 %v706_v25, %v617_v24  ;;  %v941_v24 = vadd.f32 %v940_v13, %v910_v11 }
  0xed   : > { %v911_v18 = vmul.f32 %v1874_v2, %v1874_v2  ;;  %v872_v25 = vadd.f32 %v871_v14, %v1874_v2 }
  0xef   : > { %v1836_v30 = vpop.f32.mrf.mxu2 }
  0xf0   : > { %v1838_v31 = vpop.f32.mrf.mxu3 }
  0xf1   : > { %v619_v28 = vpop.f32.mrf.mxu0 }
  0xf2   : > { %v708_v29 = vpop.f32.mrf.mxu1 }
  0xf3   : > { %v1879_v12 = vadd.f32 %v708_v29, %v619_v28  ;;  %v942_v29 = vadd.f32 %v941_v24, %v911_v18  ;;  %v919_v24 = vmul.f32 %v1806_v55, %v1806_v55 }
  0xf5   : > { %v912_v38 = vmul.f32 %v1879_v12, %v1879_v12  ;;  %v873_v39 = vadd.f32 %v872_v25, %v1879_v12 }
  0xf7   : > { %v1840_v34 = vpop.f32.mrf.mxu2  ;;  %v943_v44 = vadd.f32 %v942_v29, %v912_v38  ;;  %v920_v29 = vmul.f32 %v1810_v61, %v1810_v61 }
  0xf8   : > { %v1842_v35 = vpop.f32.mrf.mxu3 }
  0xf9   : > { %v622_v32 = vpop.f32.mrf.mxu0 }
  0xfa   : > { %v711_v33 = vpop.f32.mrf.mxu1 }
  0xfb   : > { %v1884_v19 = vadd.f32 %v711_v33, %v622_v32 }
  0xfd   : > { %v913_v40 = vmul.f32 %v1884_v19, %v1884_v19  ;;  %v874_v45 = vadd.f32 %v873_v39, %v1884_v19 }
  0xff   : > { %v1857_v48 = vpop.f32.mrf.mxu2 }
 0x100   : > { %v1859_v49 = vpop.f32.mrf.mxu3 }
 0x101   : > { %v624_v36 = vpop.f32.mrf.mxu0 }
 0x102   : > { %v713_v37 = vpop.f32.mrf.mxu1 }
 0x103   : > { %v1893_v28 = vadd.f32 %v713_v37, %v624_v36  ;;  %v944_v36 = vadd.f32 %v943_v44, %v913_v40  ;;  %v921_v44 = vmul.f32 %v1814_v3, %v1814_v3 }
 0x105   : > { %v914_v46 = vmul.f32 %v1893_v28, %v1893_v28  ;;  %v875_v37 = vadd.f32 %v874_v45, %v1893_v28 }
 0x107   : > { %v1886_v20 = vpop.f32.mrf.mxu2 }
 0x108   : > { %v1888_v21 = vpop.f32.mrf.mxu3 }
 0x109   : > { %v627_v42 = vpop.f32.mrf.mxu0 }
 0x10a   : > { %v716_v43 = vpop.f32.mrf.mxu1 }
 0x10b   : > { %v1898_v32 = vadd.f32 %v716_v43, %v627_v42  ;;  %v945_v42 = vadd.f32 %v944_v36, %v914_v46  ;;  %v922_v36 = vmul.f32 %v1818_v9, %v1818_v9 }
 0x10d   : > { %v915_v52 = vmul.f32 %v1898_v32, %v1898_v32  ;;  %v876_v43 = vadd.f32 %v875_v37, %v1898_v32  ;;  %v1935_v37 = vadd.f32 %v1826_v17, %v1824_v16  ;;  %v1949_v16 = vadd.f32 %v1834_v27, %v1832_v26 }
 0x10e   : > { %v1963_v26 = vadd.f32 %v1842_v35, %v1840_v34  ;;  %v1977_v34 = vadd.f32 %v1888_v21, %v1886_v20 }
 0x10f   : > { %v667_v58 = vpop.f32.mrf.mxu2  ;;  %v946_v63 = vadd.f32 %v945_v42, %v915_v52 }
 0x110   : > { %v756_v59 = vpop.f32.mrf.mxu3 }
 0x111   : > { %v629_v5 = vpop.f32.mrf.mxu0 }
 0x112   : > { %v718_v6 = vpop.f32.mrf.mxu1 }
 0x113   : > { %v1903_v51 = vadd.f32 %v718_v6, %v629_v5 }
 0x115   : > { %v916_v57 = vmul.f32 %v1903_v51, %v1903_v51  ;;  %v877_v0 = vadd.f32 %v876_v43, %v1903_v51  ;;  %v923_v43 = vmul.f32 %v1822_v15, %v1822_v15 }
 0x117   : > { %v947_v7 = vadd.f32 %v946_v63, %v916_v57  ;;  %v1942_v57 = vadd.f32 %v1830_v23, %v1828_v22  ;;  %v1956_v22 = vadd.f32 %v1838_v31, %v1836_v30  ;;  %v1970_v30 = vadd.f32 %v1859_v49, %v1857_v48 }
 0x119   : > { %v632_v33 = vpop.f32.mrf.mxu0 }
 0x11a   : > { %v721_v41 = vpop.f32.mrf.mxu1 }
 0x11b   : > { %v1908_v53 = vadd.f32 %v721_v41, %v632_v33  ;;  %v669_v33 = vpop.f32.mrf.mxu2  ;;  %v758_v41 = vpop.f32.mrf.mxu3 }
 0x11d   : > { %v917_v1 = vmul.f32 %v1908_v53, %v1908_v53  ;;  %v878_v8 = vadd.f32 %v877_v0, %v1908_v53 }
 0x11f   : > { %v948_v13 = vadd.f32 %v947_v7, %v917_v1  ;;  %v924_v1 = vmul.f32 %v1935_v37, %v1935_v37 }
 0x121   : > { %v634_v5 = vpop.f32.mrf.mxu0 }
 0x122   : > { %v723_v6 = vpop.f32.mrf.mxu1 }
 0x123   : > { %v1917_v11 = vadd.f32 %v723_v6, %v634_v5  ;;  %v925_v6 = vmul.f32 %v1942_v57, %v1942_v57 }
 0x125   : > { %v879_v14 = vadd.f32 %v878_v8, %v1917_v11  ;;  %v918_v18 = vmul.f32 %v1917_v11, %v1917_v11  ;;  %v672_v8 = vpop.f32.mrf.mxu2 }
 0x127   : > { %v880_v25 = vadd.f32 %v879_v14, %v1806_v55  ;;  %v949_v38 = vadd.f32 %v948_v13, %v918_v18  ;;  %v761_v13 = vpop.f32.mrf.mxu3  ;;  %v926_v14 = vmul.f32 %v1949_v16, %v1949_v16 }
 0x129   : > { %v881_v39 = vadd.f32 %v880_v25, %v1810_v61  ;;  %v950_v40 = vadd.f32 %v949_v38, %v919_v24  ;;  %v927_v24 = vmul.f32 %v1956_v22, %v1956_v22  ;;  %v928_v38 = vmul.f32 %v1963_v26, %v1963_v26 }
 0x12b   : > { %v882_v45 = vadd.f32 %v881_v39, %v1814_v3  ;;  %v951_v46 = vadd.f32 %v950_v40, %v920_v29  ;;  %v929_v39 = vmul.f32 %v1970_v30, %v1970_v30  ;;  %v1982_v40 = vadd.f32 %v756_v59, %v667_v58 }
 0x12c   : > { %v1993_v59 = vadd.f32 %v761_v13, %v672_v8 }
 0x12d   : > { %v883_v52 = vadd.f32 %v882_v45, %v1818_v9  ;;  %v952_v42 = vadd.f32 %v951_v46, %v921_v44  ;;  %v930_v44 = vmul.f32 %v1977_v34, %v1977_v34  ;;  %v674_v20 = vpop.f32.mrf.mxu2 }
 0x12f   : > { %v884_v63 = vadd.f32 %v883_v52, %v1822_v15  ;;  %v953_v0 = vadd.f32 %v952_v42, %v922_v36  ;;  %v1988_v36 = vadd.f32 %v758_v41, %v669_v33  ;;  %v763_v21 = vpop.f32.mrf.mxu3  ;;  %v931_v42 = vmul.f32 %v1982_v40, %v1982_v40 }
 0x131   : > { %v885_v17 = vadd.f32 %v884_v63, %v1935_v37  ;;  %v954_v5 = vadd.f32 %v953_v0, %v923_v43  ;;  %v932_v0 = vmul.f32 %v1988_v36, %v1988_v36 }
 0x133   : > { %v955_v23 = vadd.f32 %v954_v5, %v924_v1  ;;  %v886_v7 = vadd.f32 %v885_v17, %v1942_v57  ;;  %v1998_v1 = vadd.f32 %v763_v21, %v674_v20  ;;  %v933_v17 = vmul.f32 %v1993_v59, %v1993_v59 }
 0x135   : > { %v887_v27 = vadd.f32 %v886_v7, %v1949_v16  ;;  %v956_v18 = vadd.f32 %v955_v23, %v925_v6  ;;  %v934_v23 = vmul.f32 %v1998_v1, %v1998_v1 }
 0x137   : > { %v888_v31 = vadd.f32 %v887_v27, %v1956_v22  ;;  %v957_v25 = vadd.f32 %v956_v18, %v926_v14 }
 0x139   : > { %v889_v35 = vadd.f32 %v888_v31, %v1963_v26  ;;  %v958_v29 = vadd.f32 %v957_v25, %v927_v24 }
 0x13b   : > { %v890_v48 = vadd.f32 %v889_v35, %v1970_v30  ;;  %v959_v49 = vadd.f32 %v958_v29, %v928_v38 }
 0x13d   : > { %v891_v45 = vadd.f32 %v890_v48, %v1977_v34  ;;  %v960_v46 = vadd.f32 %v959_v49, %v929_v39 }
 0x13f   : > { %v892_v52 = vadd.f32 %v891_v45, %v1982_v40  ;;  %v961_v58 = vadd.f32 %v960_v46, %v930_v44 }
 0x141   : > { %v962_v43 = vadd.f32 %v961_v58, %v931_v42  ;;  %v893_v63 = vadd.f32 %v892_v52, %v1988_v36 }
 0x143   : > { %v963_v33 = vadd.f32 %v962_v43, %v932_v0  ;;  %v894_v41 = vadd.f32 %v893_v63, %v1993_v59 }
 0x145   : > { %v964_v5 = vadd.f32 %v963_v33, %v933_v17  ;;  %v895_v6 = vadd.f32 %v894_v41, %v1998_v1 }
 0x147   : > { %v896_v7 = vrot.slane %v895_v6, 4  ;;  %v965_v8 = vadd.f32 %v964_v5, %v934_v23 }
 0x149   : > { %v897_v13 = vadd.f32 %v896_v7, %v895_v6  ;;  %v966_v14 = vrot.slane %v965_v8, 4 }
 0x14b   : > { %v898_v27 = vrot.slane %v897_v13, 2  ;;  %v967_v18 = vadd.f32 %v966_v14, %v965_v8 }
 0x14d   : > { %v899_v24 = vadd.f32 %v898_v27, %v897_v13  ;;  %v968_v31 = vrot.slane %v967_v18, 2 }
 0x14f   : > { %v900_v25 = vrot.slane %v899_v24, 1  ;;  %v969_v38 = vadd.f32 %v968_v31, %v967_v18 }
 0x151   : > { %v901_v35 = vadd.f32 %v900_v25, %v899_v24  ;;  %v970_v29 = vrot.slane %v969_v38, 1 }
 0x153   : > { %v2006_v39 = vmul.f32 0.00390625, %v901_v35  ;;  %v971_v48 = vadd.f32 %v970_v29, %v969_v38 }
 0x155   : > { %v972_v49 = vmul.f32 0.00390625, %v971_v48  ;;  %v973_v44 = vmul.f32 %v2006_v39, %v2006_v39  ;;  %v976_v63 = vsub.f32 %v1804_v50, %v2006_v39  ;;  %v977_v0 = vsub.f32 %v1808_v56, %v2006_v39 }
 0x156   : > { %v978_v33 = vsub.f32 %v1812_v62, %v2006_v39  ;;  %v979_v41 = vsub.f32 %v1816_v4, %v2006_v39  ;;  %v980_v17 = vsub.f32 %v1820_v10, %v2006_v39  ;;  %v981_v5 = vsub.f32 %v1855_v47, %v2006_v39 }
 0x157   : > { %v974_v45 = vsub.f32 %v972_v49, %v973_v44  ;;  %v982_v6 = vsub.f32 %v1864_v54, %v2006_v39  ;;  %v983_v50 = vsub.f32 %v1869_v60, %v2006_v39  ;;  %v984_v56 = vsub.f32 %v1874_v2, %v2006_v39 }
 0x158   : > { %v985_v62 = vsub.f32 %v1879_v12, %v2006_v39  ;;  %v986_v4 = vsub.f32 %v1884_v19, %v2006_v39  ;;  %v987_v10 = vsub.f32 %v1893_v28, %v2006_v39  ;;  %v988_v47 = vsub.f32 %v1898_v32, %v2006_v39 }
 0x159   : > { %v975_v46 = vmax.f32 %v974_v45, 0.0  ;;  %v989_v54 = vsub.f32 %v1903_v51, %v2006_v39  ;;  %v990_v60 = vsub.f32 %v1908_v53, %v2006_v39  ;;  %v991_v2 = vsub.f32 %v1917_v11, %v2006_v39 }
 0x15a   : > { %v992_v12 = vsub.f32 %v1806_v55, %v2006_v39  ;;  %v993_v19 = vsub.f32 %v1810_v61, %v2006_v39  ;;  %v994_v28 = vsub.f32 %v1814_v3, %v2006_v39  ;;  %v995_v32 = vsub.f32 %v1818_v9, %v2006_v39 }
 0x15b   : > { %v1008_v20 = vadd.f32 1e-05, %v975_v46  ;;  %v996_v51 = vsub.f32 %v1822_v15, %v2006_v39  ;;  %v997_v53 = vsub.f32 %v1935_v37, %v2006_v39  ;;  %v998_v55 = vsub.f32 %v1942_v57, %v2006_v39 }
 0x15c   : > { %v999_v11 = vsub.f32 %v1949_v16, %v2006_v39  ;;  %v1000_v3 = vsub.f32 %v1956_v22, %v2006_v39  ;;  %v1001_v9 = vsub.f32 %v1963_v26, %v2006_v39  ;;  %v1002_v15 = vsub.f32 %v1970_v30, %v2006_v39 }
 0x15d   : > { %1622 = vrsqrt.f32 %v1008_v20  ;;  %vm1015_vm1 = vweird.f32 %v1008_v20  ;;  %v1003_v37 = vsub.f32 %v1977_v34, %v2006_v39  ;;  %v1004_v57 = vsub.f32 %v1982_v40, %v2006_v39 }
 0x15e   : > { %v1005_v16 = vsub.f32 %v1988_v36, %v2006_v39  ;;  %v1006_v7 = vsub.f32 %v1993_v59, %v2006_v39  ;;  %v1007_v22 = vsub.f32 %v1998_v1, %v2006_v39 }
 0x163   : > { %v1623_v21 = vpop.eup %1622 }
 0x164   : > { %v1010_v52 = vmul.f32 %v1623_v21, %v1008_v20  ;;  %vm1016_vm0 = vweird.f32 %v1623_v21 }
 0x165   : > { %vm1017_vm2 = vmor %vm1015_vm1, %vm1016_vm0 }
 0x166   : > { %v1011_v42 = vmul.f32 %v1623_v21, %v1010_v52 }
 0x168   : > { %v1012_v58 = vmul.f32 0.5, %v1011_v42 }
 0x16a   : > { %v1013_v43 = vsub.f32 1.5, %v1012_v58 }
 0x16c   : > { %v1014_v23 = vmul.f32 %v1623_v21, %v1013_v43 }
 0x16e   : > { %v2058_v61 = vsel %vm1017_vm2, %v1623_v21, %v1014_v23 }
 0x16f   : > { %v1019_v26 = vmul.f32 %v2058_v61, %v976_v63  ;;  %v1020_v8 = vmul.f32 %v2058_v61, %v977_v0  ;;  %v1021_v30 = vmul.f32 %v2058_v61, %v978_v33  ;;  %v1022_v34 = vmul.f32 %v2058_v61, %v979_v41 }
 0x170   : > { %v1023_v13 = vmul.f32 %v2058_v61, %v980_v17  ;;  %v1024_v40 = vmul.f32 %v2058_v61, %v981_v5  ;;  %v1025_v14 = vmul.f32 %v2058_v61, %v982_v6  ;;  %v1026_v27 = vmul.f32 %v2058_v61, %v983_v50 }
 0x171   : > { %v1027_v18 = vmul.f32 %v2058_v61, %v984_v56  ;;  %v1028_v24 = vmul.f32 %v2058_v61, %v985_v62  ;;  %v1029_v31 = vmul.f32 %v2058_v61, %v986_v4  ;;  %v1030_v25 = vmul.f32 %v2058_v61, %v987_v10 }
 0x172   : > { %v1031_v38 = vmul.f32 %v2058_v61, %v988_v47  ;;  %v1032_v35 = vmul.f32 %v2058_v61, %v989_v54  ;;  %v1033_v29 = vmul.f32 %v2058_v61, %v990_v60  ;;  %v1034_v48 = vmul.f32 %v2058_v61, %v991_v2 }
 0x173   : > { %v1035_v49 = vmul.f32 %v2058_v61, %v992_v12  ;;  %v1036_v44 = vmul.f32 %v2058_v61, %v993_v19  ;;  %v1037_v45 = vmul.f32 %v2058_v61, %v994_v28  ;;  %v1038_v46 = vmul.f32 %v2058_v61, %v995_v32 }
 0x174   : > { %v1039_v20 = vmul.f32 %v2058_v61, %v996_v51  ;;  %v1040_v21 = vmul.f32 %v2058_v61, %v997_v53  ;;  %v1051_v52 = vmax.f32 %v1019_v26, 0.0  ;;  %v1052_v42 = vmax.f32 %v1020_v8, 0.0 }
 0x175   : > { %v1053_v58 = vmax.f32 %v1021_v30, 0.0  ;;  %v1054_v43 = vmax.f32 %v1022_v34, 0.0  ;;  %v1055_v63 = vmax.f32 %v1023_v13, 0.0  ;;  %v1056_v0 = vmax.f32 %v1024_v40, 0.0 }
 0x176   : > { %v1057_v33 = vmax.f32 %v1025_v14, 0.0  ;;  %v1058_v41 = vmax.f32 %v1026_v27, 0.0  ;;  %v1065_v17 = vmax.f32 %v1033_v29, 0.0  ;;  %v1066_v5 = vmax.f32 %v1034_v48, 0.0 }
 0x177   : > { %v1041_v6 = vmul.f32 %v2058_v61, %v998_v55  ;;  %v1042_v50 = vmul.f32 %v2058_v61, %v999_v11  ;;  %v1059_v56 = vmax.f32 %v1027_v18, 0.0  ;;  %v1060_v62 = vmax.f32 %v1028_v24, 0.0 }
 0x178   : > { %v1043_v23 = vmul.f32 %v2058_v61, %v1000_v3  ;;  %v1061_v4 = vmax.f32 %v1029_v31, 0.0  ;;  %v1062_v10 = vmax.f32 %v1030_v25, 0.0  ;;  %v1063_v47 = vmax.f32 %v1031_v38, 0.0 }
 0x179   : > { %v1064_v54 = vmax.f32 %v1032_v35, 0.0  ;;  %v1490_v60 = vpack.c.bf16 %v1052_v42, %v1051_v52  ;;  %v1495_v2 = vpack.c.bf16 %v1054_v43, %v1053_v58  ;;  %v1500_v12 = vpack.c.bf16 %v1056_v0, %v1055_v63 }
 0x17a   : > { %v1044_v19 = vmul.f32 %v2058_v61, %v1001_v9  ;;  %v1045_v28 = vmul.f32 %v2058_v61, %v1002_v15  ;;  %v1505_v32 = vpack.c.bf16 %v1058_v41, %v1057_v33  ;;  %v1525_v51 = vpack.c.bf16 %v1066_v5, %v1065_v17 }
 0x17b   : > { %v1046_v53 = vmul.f32 %v2058_v61, %v1003_v37  ;;  %v1067_v55 = vmax.f32 %v1035_v49, 0.0  ;;  %v1068_v11 = vmax.f32 %v1036_v44, 0.0  ;;  %1491 = vst [vmem:[%s2104_s29] sm:$0xff] %v1490_v60   ;;  %v1510_v3 = vpack.c.bf16 %v1060_v62, %v1059_v56 }
 0x17c   : > { %v1047_v26 = vmul.f32 %v2058_v61, %v1004_v57  ;;  %v1069_v8 = vmax.f32 %v1037_v45, 0.0  ;;  %v1070_v30 = vmax.f32 %v1038_v46, 0.0  ;;  %1567 = vst [vmem:[%s2104_s29 + $0x8] sm:$0xff] %v1495_v2   ;;  %v1515_v34 = vpack.c.bf16 %v1062_v10, %v1061_v4 }
 0x17d   : > { %v1048_v9 = vmul.f32 %v2058_v61, %v1005_v16  ;;  %v1071_v15 = vmax.f32 %v1039_v20, 0.0  ;;  %v1072_v37 = vmax.f32 %v1040_v21, 0.0  ;;  %1568 = vst [vmem:[%s2104_s29 + $0x10] sm:$0xff] %v1500_v12   ;;  %v1520_v13 = vpack.c.bf16 %v1064_v54, %v1063_v47 }
 0x17e   : > { %v1049_v57 = vmul.f32 %v2058_v61, %v1006_v7  ;;  %v1050_v40 = vmul.f32 %v2058_v61, %v1007_v22  ;;  %v1073_v14 = vmax.f32 %v1041_v6, 0.0  ;;  %v1074_v36 = vmax.f32 %v1042_v50, 0.0  ;;  %1569 = vst [vmem:[%s2104_s29 + $0x18] sm:$0xff] %v1505_v32  }
 0x17f   : > { %v1075_v16 = vmax.f32 %v1043_v23, 0.0  ;;  %v1076_v27 = vmax.f32 %v1044_v19, 0.0  ;;  %1570 = vst [vmem:[%s2104_s29 + $0x20] sm:$0xff] %v1510_v3   ;;  %v1530_v18 = vpack.c.bf16 %v1068_v11, %v1067_v55  ;;  %v1077_v24 = vmax.f32 %v1045_v28, 0.0 }
 0x180   : > { %v1078_v59 = vmax.f32 %v1046_v53, 0.0  ;;  %1571 = vst [vmem:[%s2104_s29 + $0x28] sm:$0xff] %v1515_v34   ;;  %v1535_v7 = vpack.c.bf16 %v1070_v30, %v1069_v8  ;;  %v1079_v31 = vmax.f32 %v1047_v26, 0.0  ;;  %v1080_v1 = vmax.f32 %v1048_v9, 0.0 }
 0x181   : > { %1572 = vst [vmem:[%s2104_s29 + $0x30] sm:$0xff] %v1520_v13   ;;  %v1540_v39 = vpack.c.bf16 %v1072_v37, %v1071_v15  ;;  %v1081_v61 = vmax.f32 %v1049_v57, 0.0  ;;  %v1082_v22 = vmax.f32 %v1050_v40, 0.0  ;;  %v1545_v25 = vpack.c.bf16 %v1074_v36, %v1073_v14 }
 0x182   : > { %1573 = vst [vmem:[%s2104_s29 + $0x38] sm:$0xff] %v1525_v51   ;;  %v1550_v38 = vpack.c.bf16 %v1076_v27, %v1075_v16  ;;  %v1555_v35 = vpack.c.bf16 %v1078_v59, %v1077_v24  ;;  %v1560_v29 = vpack.c.bf16 %v1080_v1, %v1079_v31 }
 0x183   : > { %1574 = vst [vmem:[%s2104_s29 + $0x40] sm:$0xff] %v1530_v18   ;;  %v1565_v48 = vpack.c.bf16 %v1082_v22, %v1081_v61 }
 0x184   : > { %1575 = vst [vmem:[%s2104_s29 + $0x48] sm:$0xff] %v1535_v7  }
 0x185   : > { %1576 = vst [vmem:[%s2104_s29 + $0x50] sm:$0xff] %v1540_v39  }
 0x186   : > { %1577 = vst [vmem:[%s2104_s29 + $0x58] sm:$0xff] %v1545_v25  }
 0x187   : > { %1578 = vst [vmem:[%s2104_s29 + $0x60] sm:$0xff] %v1550_v38  }
 0x188   : > { %1579 = vst [vmem:[%s2104_s29 + $0x68] sm:$0xff] %v1555_v35  }
 0x189   : > { %1580 = vst [vmem:[%s2104_s29 + $0x70] sm:$0xff] %v1560_v29  }
 0x18a   : > { %1581 = vst [vmem:[%s2104_s29 + $0x78] sm:$0xff] %v1565_v48  }
 0x18b PF: > { %s12_s11 = sadd.s32 1, %s1646_s11   ;;  %s2151_s9 = smov %s1642_s10 }
 0x18c   : > { %p9_p5 = scmp.ge.s32.totalorder %s12_s11, 4   ;;  %s2152_s10 = smov %s2154_s12 }
 0x18e   :  { %11 = sbr.rel (!%p9_p5) target bundleno = 2 (0x2), region = 69 }

// kernel: generator_forward.33
= control target key start
LH: loop header
LB: loop body
LE: loop exit
PB: predicated region body
PF: predicated region fallthrough
CT: control target
= control target key end

     0   :  { %s864_s9 = smov 0   ;;  %s866_s10 = smov 0   ;;  %s1010_s0 = inlined_call_operand.vmem [shape: bf16[128,640], index: 0, kind: input, shape index: {}]   ;;  %s1011_s1 = inlined_call_operand.vmem [shape: bf16[640,128], index: 1, kind: input, shape index: {}]   ;;  %s1012_s2 = inlined_call_operand.vmem [shape: bf16[128,128], index: 2, kind: output, shape index: {}]  }
   0x1   :  { %s868_s11 = smov 0   ;;  %s870_s12 = smov 0  }
   0x2   :  { %s872_s13 = smov 0   ;;  %s874_s14 = smov 0  }
   0x3   :  { %s876_s15 = smov 0  }
   0x4 LB: > { %s21_s16 = sadd.s32 1, %s838_s13  ;;  %s24_s17 = sadd.s32 1, %s842_s14  ;;  %s846_s15 = sphi %s876_s15, %s12_s15   ;;  %s842_s14 = sphi %s874_s14, %s1018_s14   ;;  %s838_s13 = sphi %s872_s13, %s1017_s13   ;;  %s834_s12 = sphi %s870_s12, %s1016_s12   ;;  %s830_s11 = sphi %s868_s11, %s1015_s11   ;;  %s826_s10 = sphi %s866_s10, %s1014_s10   ;;  %s822_s9 = sphi %s864_s9, %s1013_s9  }
   0x5   : > { %p22_p0 = scmp.ge.s32.totalorder %s21_s16, 5  ;;  %p40_p1 = scmp.ne.s32.totalorder %s826_s10, %s822_s9 }
   0x6   : > { %p41_p2 = scmp.eq.s32.totalorder %s846_s15, 0  ;;  %s33_s21 = sadd.s32 1, %s826_s10 }
   0x7   : > { %s1020_s16 = smov (%p22_p0, %s21_s16), 0  ;;  %s1022_s17 = smov (!%p22_p0, %s24_s17), %s842_s14 }
   0x8   : > { %p42_p3 = por %p41_p2, %p40_p1  ;;  %p26_p4 = scmp.ge.s32.totalorder %s1022_s17, 2 }
   0x9   : > { %s29_s18 = ssub.s32 %s838_s13, %s1020_s16  ;;  %p610_p6 = scmp.ge.s32.totalorder %s846_s15, 10 }
   0xa   : > { %s1024_s17 = smov (%p26_p4, %s1022_s17), 0 }
   0xb   : > { %s28_s19 = ssub.s32 %s842_s14, %s1024_s17  ;;  %118 = sbr.rel (%p610_p6) target bundleno = 31 (0x1f), region = 16 }
   0xc   : > { %s30_s20 = sor.u32 %s29_s18, %s28_s19 }
   0xd   : > { %p31_p5 = scmp.eq.s32.totalorder %s30_s20, 0 }
   0xf   : > { %s915_s22 = scalar_select %p31_p5, %s826_s10, %s33_s21  }
  0x10   : > { %121 = sbr.rel (!%p42_p3) target bundleno = 31 (0x1f), region = 20  ;;  %s123_s23 = sand.u32 (%p42_p3), 1, %s826_s10  }
  0x11   : > { %s732_s24 = smul.u32 (%p42_p3), 40, %s842_s14  ;;  %s611_s25 = sshll.u32 (%p42_p3), %s123_s23, 5 }
  0x12   : > { %s125_s3 = scalar_lea.vmem (%p42_p3), [#allocation3], %s611_s25 }
  0x13   : > { %s128_s26 = sadd.s32 (%p42_p3), %s838_s13, %s732_s24 }
  0x14   : > { %s614_s27 = sshll.u32 (%p42_p3), %s128_s26, 2 }
  0x15   : > { %s130_s30 = scalar_lea.vmem %s1010_s0, %s614_s27 }
  0x16   : > { %v147_v0 = vld [vmem:[%s130_s30] sm:$0xf]  ;;  %v149_v1 = vld [vmem:[%s130_s30 + $0x14] sm:$0xf]  ;;  %v151_v2 = vld [vmem:[%s130_s30 + $0x28] sm:$0xf] }
  0x17   : > { %148 = vst [vmem:[%s125_s3] sm:$0xf] %v147_v0  ;;  %v153_v3 = vld [vmem:[%s130_s30 + $0x3c] sm:$0xf]  ;;  %v155_v4 = vld [vmem:[%s130_s30 + $0x50] sm:$0xf] }
  0x18   : > { %150 = vst [vmem:[%s125_s3 + $0x4] sm:$0xf] %v149_v1  ;;  %v157_v5 = vld [vmem:[%s130_s30 + $0x64] sm:$0xf]  ;;  %v159_v6 = vld [vmem:[%s130_s30 + $0x78] sm:$0xf] }
  0x19   : > { %152 = vst [vmem:[%s125_s3 + $0x8] sm:$0xf] %v151_v2  ;;  %v161_v7 = vld [vmem:[%s130_s30 + $0x8c] sm:$0xf] }
  0x1a   : > { %154 = vst [vmem:[%s125_s3 + $0xc] sm:$0xf] %v153_v3 }
  0x1b   : > { %156 = vst [vmem:[%s125_s3 + $0x10] sm:$0xf] %v155_v4 }
  0x1c   : > { %158 = vst [vmem:[%s125_s3 + $0x14] sm:$0xf] %v157_v5 }
  0x1d   : > { %160 = vst [vmem:[%s125_s3 + $0x18] sm:$0xf] %v159_v6 }
  0x1e   : > { %162 = vst [vmem:[%s125_s3 + $0x1c] sm:$0xf] %v161_v7 }
  0x1f PF: > { %p615_p7 = scmp.ge.s32.totalorder %s846_s15, 1  ;;  %p210_p8 = scmp.lt.s32.totalorder %s846_s15, 11 }
  0x21   : > { %p211_p9 = pnand %p615_p7, %p210_p8 }
  0x22   : > { %s217_s4 = sand.u32 (!%p211_p9), 1, %s822_s9   ;;  %s617_s5 = sshll.u32 (!%p211_p9), %s830_s11, 4 }
  0x23   : > { %214 = sbr.rel (%p211_p9) target bundleno = 299 (0x12b), region = 65  ;;  %s616_s6 = sshll.u32 (!%p211_p9), %s217_s4, 5 }
  0x24   : > { %p245_p10 = scmp.lt.s32.totalorder (!%p211_p9), %s617_s5, 79  ;;  %s619_s7 = sshll.u32 (!%p211_p9), %s834_s12, 3 }
  0x25   : > { %p251_p11 = scmp.lt.s32.totalorder (!%p211_p9), %s619_s7, 15  ;;  %s939_s9 = scalar_lea.vmem (!%p211_p9), [#allocation3], %s616_s6 }
  0x26   : > { %p621_p12 = scmp.ne.s32.totalorder (!%p211_p9), %s830_s11, 0 }
  0x28   : > { %s1026_s5 = smov (!%p245_p10, %s617_s5), 79  ;;  %s1028_s7 = smov (!%p251_p11, %s619_s7), 15 }
  0x29   : > { %s618_s8 = sshll.u32 %s1026_s5, 2  ;;  %s620_s21 = sshll.u32 %s1028_s7, 2 }
  0x2a   : > { %s932_s20 = scalar_lea.vmem %s1011_s1, %s618_s8  ;;  %s937_s25 = scalar_lea.vmem %s1012_s2, %s620_s21 }
  0x2b   : > { %259 = sbr.rel (%p621_p12) target bundleno = 57 (0x39), region = 73 }
  0x30   : > { %v848_v8 = vmov 0.0  }
  0x31   : > { %260 = vst [vmem:[#allocation2 + $0x30] sm:$0xff] %v848_v8 }
  0x32   : > { %261 = vst [vmem:[#allocation2] sm:$0xff] %v848_v8 }
  0x33   : > { %262 = vst [vmem:[#allocation2 + $0x18] sm:$0xff] %v848_v8 }
  0x34   : > { %263 = vst [vmem:[#allocation2 + $0x10] sm:$0xff] %v848_v8 }
  0x35   : > { %264 = vst [vmem:[#allocation2 + $0x8] sm:$0xff] %v848_v8 }
  0x36   : > { %265 = vst [vmem:[#allocation2 + $0x20] sm:$0xff] %v848_v8 }
  0x37   : > { %266 = vst [vmem:[#allocation2 + $0x28] sm:$0xff] %v848_v8 }
  0x38   : > { %267 = vst [vmem:[#allocation2 + $0x38] sm:$0xff] %v848_v8 }
  0x39 PF: > { %v684_v9 = vld [vmem:[%s932_s20 + $0x38] sm:$0xff]  ;;  %v683_v10 = vld [vmem:[%s932_s20 + $0x30] sm:$0xff]  ;;  %v682_v11 = vld [vmem:[%s932_s20 + $0x28] sm:$0xff]  ;;  %p670_p13 = scmp.ne.s32.totalorder %s830_s11, 4 }
  0x3a   : > { %372 = vmatpush.bf16.msra.mxu0 %v684_v9  ;;  %708 = vmatpush.bf16.msra.mxu1 %v684_v9  ;;  %v681_v12 = vld [vmem:[%s932_s20 + $0x20] sm:$0xff]  ;;  %v680_v13 = vld [vmem:[%s932_s20 + $0x18] sm:$0xff]  ;;  %v679_v14 = vld [vmem:[%s932_s20 + $0x10] sm:$0xff] }
  0x3b   : > { %709 = vmatpush.bf16.msra.mxu2 %v684_v9  ;;  %710 = vmatpush.bf16.msra.mxu3 %v684_v9  ;;  %v678_v15 = vld [vmem:[%s932_s20 + $0x8] sm:$0xff]  ;;  %v677_v16 = vld [vmem:[%s932_s20] sm:$0xff]  ;;  %v675_v19 = vld [vmem:[%s939_s9 + $0x10] sm:$0xff] }
  0x3c   : > { %v673_v17 = vld [vmem:[%s939_s9] sm:$0xff]  ;;  %v674_v18 = vld [vmem:[%s939_s9 + $0x8] sm:$0xff]  ;;  %v676_v20 = vld [vmem:[%s939_s9 + $0x18] sm:$0xff] }
  0x3d   : > { %v268_v21 = vld [vmem:[#allocation2 + $0x30] sm:$0xff]  ;;  %v270_v22 = vld [vmem:[#allocation2 + $0x18] sm:$0xff]  ;;  %v272_v27 = vld [vmem:[#allocation2 + $0x8] sm:$0xff] }
  0x3e   : > { %373 = vmatpush.bf16.msra.mxu0 %v683_v10  ;;  %711 = vmatpush.bf16.msra.mxu1 %v683_v10  ;;  %v274_v28 = vld [vmem:[#allocation2 + $0x28] sm:$0xff]  ;;  %v269_v29 = vld [vmem:[#allocation2] sm:$0xff]  ;;  %v271_v30 = vld [vmem:[#allocation2 + $0x10] sm:$0xff] }
  0x3f   : > { %712 = vmatpush.bf16.msra.mxu2 %v683_v10  ;;  %713 = vmatpush.bf16.msra.mxu3 %v683_v10  ;;  %v273_v39 = vld [vmem:[#allocation2 + $0x20] sm:$0xff]  ;;  %v275_v40 = vld [vmem:[#allocation2 + $0x38] sm:$0xff] }
  0x42   : > { %374 = vmatpush.bf16.msra.mxu0 %v682_v11  ;;  %714 = vmatpush.bf16.msra.mxu1 %v682_v11 }
  0x43   : > { %715 = vmatpush.bf16.msra.mxu2 %v682_v11  ;;  %716 = vmatpush.bf16.msra.mxu3 %v682_v11 }
  0x46   : > { %375 = vmatpush.bf16.msra.mxu0 %v681_v12  ;;  %717 = vmatpush.bf16.msra.mxu1 %v681_v12 }
  0x47   : > { %718 = vmatpush.bf16.msra.mxu2 %v681_v12  ;;  %719 = vmatpush.bf16.msra.mxu3 %v681_v12 }
  0x4a   : > { %376 = vmatpush.bf16.msra.mxu0 %v680_v13  ;;  %720 = vmatpush.bf16.msra.mxu1 %v680_v13 }
  0x4b   : > { %721 = vmatpush.bf16.msra.mxu2 %v680_v13  ;;  %722 = vmatpush.bf16.msra.mxu3 %v680_v13 }
  0x4e   : > { %377 = vmatpush.bf16.msra.mxu0 %v679_v14  ;;  %723 = vmatpush.bf16.msra.mxu1 %v679_v14 }
  0x4f   : > { %724 = vmatpush.bf16.msra.mxu2 %v679_v14  ;;  %725 = vmatpush.bf16.msra.mxu3 %v679_v14 }
  0x52   : > { %378 = vmatpush.bf16.msra.mxu0 %v678_v15  ;;  %726 = vmatpush.bf16.msra.mxu1 %v678_v15 }
  0x53   : > { %727 = vmatpush.bf16.msra.mxu2 %v678_v15  ;;  %728 = vmatpush.bf16.msra.mxu3 %v678_v15 }
  0x56   : > { %379 = vmatpush.bf16.msra.mxu0 %v677_v16  ;;  %729 = vmatpush.bf16.msra.mxu1 %v677_v16 }
  0x57   : > { %730 = vmatpush.bf16.msra.mxu2 %v677_v16  ;;  %731 = vmatpush.bf16.msra.mxu3 %v677_v16 }
  0x59   : > { %380 = vmatmul.bf16.vlgmr.msra.gmra.mxu0 %v673_v17  ;;  %385 = vmatmul.bf16.vlgmr.msra.gmra.mxu1 %v674_v18 }
  0x5a   : > { %390 = vmatmul.bf16.vlgmr.msra.gmra.mxu2 %v675_v19  ;;  %395 = vmatmul.bf16.vlgmr.msra.gmra.mxu3 %v676_v20 }
  0xd6   : > { %v381_v23 = vpop.f32.mrf.mxu0  ;;  %v386_v24 = vpop.f32.mrf.mxu1 }
  0xd7   : > { %v401_v25 = vadd.f32 %v381_v23, %v268_v21  ;;  %v403_v26 = vadd.f32 %v386_v24, %v270_v22 }
  0xd9   : > { %409 = vst [vmem:[#allocation2 + $0x30] sm:$0xff] %v401_v25 }
  0xda   : > { %411 = vst [vmem:[#allocation2 + $0x18] sm:$0xff] %v403_v26 }
  0xdd   : > { %v391_v31 = vpop.f32.mrf.mxu2  ;;  %v396_v32 = vpop.f32.mrf.mxu3 }
  0xde   : > { %v405_v33 = vadd.f32 %v391_v31, %v272_v27  ;;  %v407_v34 = vadd.f32 %v396_v32, %v274_v28  ;;  %v383_v35 = vpop.f32.mrf.mxu0  ;;  %v388_v36 = vpop.f32.mrf.mxu1 }
  0xdf   : > { %v402_v37 = vadd.f32 %v383_v35, %v269_v29  ;;  %v404_v38 = vadd.f32 %v388_v36, %v271_v30 }
  0xe0   : > { %413 = vst [vmem:[#allocation2 + $0x8] sm:$0xff] %v405_v33 }
  0xe1   : > { %415 = vst [vmem:[#allocation2 + $0x28] sm:$0xff] %v407_v34 }
  0xe2   : > { %410 = vst [vmem:[#allocation2] sm:$0xff] %v402_v37 }
  0xe3   : > { %412 = vst [vmem:[#allocation2 + $0x10] sm:$0xff] %v404_v38 }
  0xe5   : > { %v393_v41 = vpop.f32.mrf.mxu2  ;;  %v398_v42 = vpop.f32.mrf.mxu3  ;;  %420 = sbr.rel (%p670_p13) target bundleno = 299 (0x12b), region = 77 }
  0xe6   : > { %v406_v43 = vadd.f32 %v393_v41, %v273_v39  ;;  %v408_v44 = vadd.f32 %v398_v42, %v275_v40 }
  0xe8   : > { %414 = vst [vmem:[#allocation2 + $0x20] sm:$0xff] %v406_v43 }
  0xe9   : > { %416 = vst [vmem:[#allocation2 + $0x38] sm:$0xff] %v408_v44 }
  0xea   : > { %v955_v45 = vld [vmem:[#allocation2 + $0x30] sm:$0xff]  ;;  %v957_v46 = vld [vmem:[#allocation2] sm:$0xff]  ;;  %v959_v47 = vld [vmem:[#allocation2 + $0x18] sm:$0xff] }
  0xeb   : > { %v961_v48 = vld [vmem:[#allocation2 + $0x10] sm:$0xff]  ;;  %v429_v49 = vadd.f32 %v957_v46, %v955_v45  ;;  %v443_v50 = vmul.f32 %v955_v45, %v955_v45  ;;  %v444_v51 = vmul.f32 %v957_v46, %v957_v46  ;;  %v445_v52 = vmul.f32 %v959_v47, %v959_v47  ;;  %v971_v53 = vld [vmem:[#allocation2 + $0x8] sm:$0xff] }
  0xec   : > { %v446_v55 = vmul.f32 %v961_v48, %v961_v48  ;;  %v447_v59 = vmul.f32 %v971_v53, %v971_v53  ;;  %v427_v61 = vld [vmem:[#allocation2 + $0x28] sm:$0xff] }
  0xed   : > { %v430_v54 = vadd.f32 %v429_v49, %v959_v47  ;;  %v451_v56 = vadd.f32 %v444_v51, %v443_v50  ;;  %v449_v3 = vmul.f32 %v427_v61, %v427_v61 }
  0xef   : > { %v426_v57 = vld [vmem:[#allocation2 + $0x20] sm:$0xff]  ;;  %v431_v58 = vadd.f32 %v430_v54, %v961_v48  ;;  %v452_v60 = vadd.f32 %v451_v56, %v445_v52 }
  0xf0   : > { %v448_v63 = vmul.f32 %v426_v57, %v426_v57  ;;  %v428_v1 = vld [vmem:[#allocation2 + $0x38] sm:$0xff] }
  0xf1   : > { %v432_v62 = vadd.f32 %v431_v58, %v971_v53  ;;  %v453_v0 = vadd.f32 %v452_v60, %v446_v55  ;;  %v450_v6 = vmul.f32 %v428_v1, %v428_v1 }
  0xf3   : > { %v433_v2 = vadd.f32 %v432_v62, %v426_v57  ;;  %v454_v4 = vadd.f32 %v453_v0, %v447_v59 }
  0xf5   : > { %v434_v5 = vadd.f32 %v433_v2, %v427_v61  ;;  %v455_v7 = vadd.f32 %v454_v4, %v448_v63 }
  0xf7   : > { %v435_v8 = vadd.f32 %v434_v5, %v428_v1  ;;  %v456_v9 = vadd.f32 %v455_v7, %v449_v3 }
  0xf9   : > { %v436_v10 = vrot.slane %v435_v8, 4  ;;  %v457_v11 = vadd.f32 %v456_v9, %v450_v6 }
  0xfb   : > { %v437_v12 = vadd.f32 %v436_v10, %v435_v8  ;;  %v458_v13 = vrot.slane %v457_v11, 4 }
  0xfd   : > { %v438_v14 = vrot.slane %v437_v12, 2  ;;  %v459_v15 = vadd.f32 %v458_v13, %v457_v11 }
  0xff   : > { %v439_v16 = vadd.f32 %v438_v14, %v437_v12  ;;  %v460_v17 = vrot.slane %v459_v15, 2 }
 0x101   : > { %v440_v18 = vrot.slane %v439_v16, 1  ;;  %v461_v19 = vadd.f32 %v460_v17, %v459_v15 }
 0x103   : > { %v441_v20 = vadd.f32 %v440_v18, %v439_v16  ;;  %v462_v21 = vrot.slane %v461_v19, 1 }
 0x105   : > { %v442_v22 = vmul.f32 0.015625, %v441_v20  ;;  %v463_v23 = vadd.f32 %v462_v21, %v461_v19 }
 0x107   : > { %v464_v24 = vmul.f32 0.015625, %v463_v23  ;;  %v465_v25 = vmul.f32 %v442_v22, %v442_v22  ;;  %v468_v33 = vsub.f32 %v955_v45, %v442_v22  ;;  %v469_v35 = vsub.f32 %v957_v46, %v442_v22 }
 0x108   : > { %v470_v36 = vsub.f32 %v959_v47, %v442_v22  ;;  %v471_v37 = vsub.f32 %v961_v48, %v442_v22  ;;  %v472_v38 = vsub.f32 %v971_v53, %v442_v22  ;;  %v473_v40 = vsub.f32 %v426_v57, %v442_v22 }
 0x109   : > { %v466_v26 = vsub.f32 %v464_v24, %v465_v25  ;;  %v474_v41 = vsub.f32 %v427_v61, %v442_v22  ;;  %v475_v42 = vsub.f32 %v428_v1, %v442_v22 }
 0x10b   : > { %v467_v27 = vmax.f32 %v466_v26, 0.0 }
 0x10d   : > { %v476_v28 = vadd.f32 1e-05, %v467_v27 }
 0x10f   : > { %790 = vrsqrt.f32 %v476_v28  ;;  %vm483_vm0 = vweird.f32 %v476_v28 }
 0x115   : > { %v791_v29 = vpop.eup %790 }
 0x116   : > { %v478_v30 = vmul.f32 %v791_v29, %v476_v28  ;;  %vm484_vm1 = vweird.f32 %v791_v29 }
 0x117   : > { %vm485_vm2 = vmor %vm483_vm0, %vm484_vm1 }
 0x118   : > { %v479_v31 = vmul.f32 %v791_v29, %v478_v30 }
 0x11a   : > { %v480_v32 = vmul.f32 0.5, %v479_v31 }
 0x11c   : > { %v481_v34 = vsub.f32 1.5, %v480_v32 }
 0x11e   : > { %v482_v39 = vmul.f32 %v791_v29, %v481_v34 }
 0x120   : > { %v486_v43 = vsel %vm485_vm2, %v791_v29, %v482_v39 }
 0x121   : > { %v487_v44 = vmul.f32 %v486_v43, %v468_v33  ;;  %v488_v49 = vmul.f32 %v486_v43, %v469_v35  ;;  %v489_v50 = vmul.f32 %v486_v43, %v470_v36  ;;  %v490_v51 = vmul.f32 %v486_v43, %v471_v37 }
 0x122   : > { %v491_v45 = vmul.f32 %v486_v43, %v472_v38  ;;  %v492_v52 = vmul.f32 %v486_v43, %v473_v40  ;;  %v493_v46 = vmul.f32 %v486_v43, %v474_v41  ;;  %v494_v47 = vmul.f32 %v486_v43, %v475_v42 }
 0x123   : > { %v495_v48 = vmax.f32 %v487_v44, 0.0  ;;  %v496_v54 = vmax.f32 %v488_v49, 0.0  ;;  %v497_v53 = vmax.f32 %v489_v50, 0.0  ;;  %v498_v55 = vmax.f32 %v490_v51, 0.0 }
 0x124   : > { %v499_v56 = vmax.f32 %v491_v45, 0.0  ;;  %v500_v57 = vmax.f32 %v492_v52, 0.0  ;;  %v501_v58 = vmax.f32 %v493_v46, 0.0  ;;  %v502_v59 = vmax.f32 %v494_v47, 0.0 }
 0x125   : > { %v688_v60 = vpack.c.bf16 %v496_v54, %v495_v48  ;;  %v693_v61 = vpack.c.bf16 %v498_v55, %v497_v53 }
 0x126   : > { %v698_v62 = vpack.c.bf16 %v500_v57, %v499_v56  ;;  %v703_v63 = vpack.c.bf16 %v502_v59, %v501_v58 }
 0x127   : > { %689 = vst [vmem:[%s937_s25] sm:$0xff] %v688_v60  }
 0x128   : > { %705 = vst [vmem:[%s937_s25 + $0x8] sm:$0xff] %v693_v61  }
 0x129   : > { %706 = vst [vmem:[%s937_s25 + $0x10] sm:$0xff] %v698_v62  }
 0x12a   : > { %707 = vst [vmem:[%s937_s25 + $0x18] sm:$0xff] %v703_v63  }
 0x12b PF: > { %s12_s15 = sadd.s32 1, %s846_s15   ;;  %s1013_s9 = smov %s826_s10 }
 0x12c   : > { %p9_p0 = scmp.ge.s32.totalorder %s12_s15, 12   ;;  %s1014_s10 = smov %s915_s22 }
 0x12d   : > { %s1015_s11 = smov %s838_s13  ;;  %s1016_s12 = smov %s842_s14 }
 0x12e   : > { %s1017_s13 = smov %s1020_s16  ;;  %s1018_s14 = smov %s1024_s17 }
 0x12f   :  { %11 = sbr.rel (!%p9_p0) target bundleno = 4 (0x4), region = 115 }

// kernel: generator_forward.34
= control target key start
LH: loop header
LB: loop body
LE: loop exit
PB: predicated region body
PF: predicated region fallthrough
CT: control target
= control target key end

     0   :  { %s1236_s9 = smov 0   ;;  %s1238_s10 = smov 0   ;;  %s1472_s0 = inlined_call_operand.vmem [shape: bf16[32,1152], index: 0, kind: input, shape index: {}]   ;;  %s1473_s1 = inlined_call_operand.vmem [shape: bf16[1152,256], index: 1, kind: input, shape index: {}]   ;;  %s1474_s2 = inlined_call_operand.vmem [shape: bf16[32,256], index: 2, kind: output, shape index: {}]  }
   0x1   :  { %s1240_s11 = smov 0   ;;  %s1242_s12 = smov 0  }
   0x2   :  { %s1244_s13 = smov 0   ;;  %s1246_s14 = smov 0  }
   0x3   :  { %s1248_s15 = smov 0  }
   0x4 LB: > { %s21_s16 = sadd.s32 1, %s1210_s13  ;;  %s24_s17 = sadd.s32 1, %s1214_s14  ;;  %s1218_s15 = sphi %s1248_s15, %s12_s15   ;;  %s1214_s14 = sphi %s1246_s14, %s1480_s14   ;;  %s1210_s13 = sphi %s1244_s13, %s1479_s13   ;;  %s1206_s12 = sphi %s1242_s12, %s1478_s12   ;;  %s1202_s11 = sphi %s1240_s11, %s1477_s11   ;;  %s1198_s10 = sphi %s1238_s10, %s1476_s10   ;;  %s1194_s9 = sphi %s1236_s9, %s1475_s9  }
   0x5   : > { %p22_p0 = scmp.ge.s32.totalorder %s21_s16, 3  ;;  %p40_p1 = scmp.ne.s32.totalorder %s1198_s10, %s1194_s9 }
   0x6   : > { %p41_p2 = scmp.eq.s32.totalorder %s1218_s15, 0  ;;  %s33_s21 = sadd.s32 1, %s1198_s10 }
   0x7   : > { %s1482_s16 = smov (%p22_p0, %s21_s16), 0  ;;  %s1484_s17 = smov (!%p22_p0, %s24_s17), %s1214_s14 }
   0x8   : > { %p42_p3 = por %p41_p2, %p40_p1  ;;  %p26_p4 = scmp.ge.s32.totalorder %s1484_s17, 2 }
   0x9   : > { %s29_s18 = ssub.s32 %s1210_s13, %s1482_s16  ;;  %p825_p6 = scmp.ge.s32.totalorder %s1218_s15, 6 }
   0xa   : > { %s1486_s17 = smov (%p26_p4, %s1484_s17), 0 }
   0xb   : > { %s28_s19 = ssub.s32 %s1214_s14, %s1486_s17  ;;  %118 = sbr.rel (%p825_p6) target bundleno = 29 (0x1d), region = 16 }
   0xc   : > { %s30_s20 = sor.u32 %s29_s18, %s28_s19 }
   0xd   : > { %p31_p5 = scmp.eq.s32.totalorder %s30_s20, 0 }
   0xf   : > { %s1287_s22 = scalar_select %p31_p5, %s1198_s10, %s33_s21  }
  0x10   : > { %121 = sbr.rel (!%p42_p3) target bundleno = 29 (0x1d), region = 20  ;;  %s123_s23 = sand.u32 (%p42_p3), 1, %s1198_s10  }
  0x11   : > { %s127_s24 = smul.u32 (%p42_p3), 3, %s1210_s13 }
  0x12   : > { %s1100_s25 = smul.u32 (%p42_p3), 24, %s123_s23 }
  0x13   : > { %s1101_s26 = smul.u32 (%p42_p3), 18, %s1214_s14 }
  0x14   : > { %s125_s4 = scalar_lea.vmem (%p42_p3), [#allocation3], %s1100_s25 }
  0x15   : > { %s129_s27 = sadd.s32 %s1101_s26, %s127_s24 }
  0x16   : > { %s828_s28 = sshll.u32 %s129_s27, 2 }
  0x17   : > { %s131_s3 = scalar_lea.vmem %s1472_s0, %s828_s28 }
  0x18   : > { %v146_v0 = vld [vmem:[%s131_s3] sm:$0xff]  ;;  %v829_v2 = vld [vmem:[%s131_s3 + $0x8] sm:$0xf]  ;;  %v831_v3 = vld [vmem:[%s131_s3 + $0x2c] sm:$0xf] }
  0x19   : > { %v148_v1 = vld [vmem:[%s131_s3 + $0x24] sm:$0xff]  ;;  %147 = vst [vmem:[%s125_s4] sm:$0xff] %v146_v0 }
  0x1a   : > { %149 = vst [vmem:[%s125_s4 + $0xc] sm:$0xff] %v148_v1 }
  0x1b   : > { %830 = vst [vmem:[%s125_s4 + $0x8] sm:$0xf] %v829_v2 }
  0x1c   : > { %832 = vst [vmem:[%s125_s4 + $0x14] sm:$0xf] %v831_v3 }
  0x1d PF: > { %p833_p7 = scmp.ge.s32.totalorder %s1218_s15, 1  ;;  %p176_p8 = scmp.lt.s32.totalorder %s1218_s15, 7 }
  0x1f   : > { %p177_p9 = pnand %p833_p7, %p176_p8 }
  0x20   : > { %s183_s5 = sand.u32 (!%p177_p9), 1, %s1194_s9   ;;  %s213_s6 = smul.u32 (!%p177_p9), 48, %s1202_s11 }
  0x21   : > { %180 = sbr.rel (%p177_p9) target bundleno = 315 (0x13b), region = 50  ;;  %s836_s8 = sshll.u32 (!%p177_p9), %s1206_s12, 1 }
  0x22   : > { %s1102_s7 = smul.u32 (!%p177_p9), 24, %s183_s5  ;;  %p214_p10 = scmp.lt.s32.totalorder (!%p177_p9), %s213_s6, 143 }
  0x23   : > { %p221_p11 = scmp.lt.s32.totalorder (!%p177_p9), %s836_s8, 3  ;;  %p839_p12 = scmp.ne.s32.totalorder (!%p177_p9), %s1202_s11, 0 }
  0x24   : > { %s1311_s9 = scalar_lea.vmem (!%p177_p9), [#allocation3], %s1102_s7 }
  0x26   : > { %s1488_s6 = smov (!%p214_p10, %s213_s6), 143  ;;  %s1490_s8 = smov (!%p221_p11, %s836_s8), 3 }
  0x27   : > { %s1047_s18 = sshll.u32 %s1488_s6, 3  ;;  %s1048_s23 = sshll.u32 %s1490_s8, 3 }
  0x28   : > { %s1304_s21 = scalar_lea.vmem %s1473_s1, %s1047_s18  ;;  %s1309_s26 = scalar_lea.vmem %s1474_s2, %s1048_s23 }
  0x29   : > { %230 = sbr.rel (%p839_p12) target bundleno = 51 (0x33), region = 58 }
  0x2e   : > { %v1220_v4 = vmov 0.0  }
  0x2f   : > { %231 = vst [vmem:[#allocation2 + $0x10] sm:$0xff] %v1220_v4 }
  0x30   : > { %232 = vst [vmem:[#allocation2] sm:$0xff] %v1220_v4 }
  0x31   : > { %233 = vst [vmem:[#allocation2 + $0x18] sm:$0xff] %v1220_v4 }
  0x32   : > { %234 = vst [vmem:[#allocation2 + $0x8] sm:$0xff] %v1220_v4 }
  0x33 PF: > { %v910_v5 = vld [vmem:[%s1304_s21 + $0x70] sm:$0xf]  ;;  %v1067_v6 = vld [vmem:[%s1304_s21 + $0x74] sm:$0xf0]  ;;  %v902_v14 = vld [vmem:[%s1304_s21 + $0x60] sm:$0xf] }
  0x34   : > { %v974_v7 = vld [vmem:[%s1304_s21 + $0xf0] sm:$0xf]  ;;  %v911_v8 = vor.u32 %v1067_v6, %v910_v5  ;;  %v1083_v9 = vld [vmem:[%s1304_s21 + $0xf4] sm:$0xf0]  ;;  %v1065_v15 = vld [vmem:[%s1304_s21 + $0x64] sm:$0xf0] }
  0x35   : > { %v1038_v10 = vld [vmem:[%s1304_s21 + $0x170] sm:$0xf]  ;;  %v1099_v11 = vld [vmem:[%s1304_s21 + $0x174] sm:$0xf0]  ;;  %v975_v12 = vor.u32 %v1083_v9, %v974_v7  ;;  %v966_v16 = vld [vmem:[%s1304_s21 + $0xe0] sm:$0xf]  ;;  %v903_v17 = vor.u32 %v1065_v15, %v902_v14 }
  0x36   : > { %v1039_v13 = vor.u32 %v1099_v11, %v1038_v10  ;;  %547 = vmatpush.bf16.msra.mxu0 %v911_v8  ;;  %v1081_v18 = vld [vmem:[%s1304_s21 + $0xe4] sm:$0xf0]  ;;  %v1030_v19 = vld [vmem:[%s1304_s21 + $0x160] sm:$0xf]  ;;  %v894_v23 = vld [vmem:[%s1304_s21 + $0x50] sm:$0xf] }
  0x37   : > { %v1097_v20 = vld [vmem:[%s1304_s21 + $0x164] sm:$0xf0]  ;;  %561 = vmatpush.bf16.msra.mxu1 %v975_v12  ;;  %v967_v21 = vor.u32 %v1081_v18, %v966_v16  ;;  %v1063_v24 = vld [vmem:[%s1304_s21 + $0x54] sm:$0xf0]  ;;  %v958_v25 = vld [vmem:[%s1304_s21 + $0xd0] sm:$0xf] }
  0x38   : > { %575 = vmatpush.bf16.msra.mxu2 %v1039_v13  ;;  %v1031_v22 = vor.u32 %v1097_v20, %v1030_v19  ;;  %v1079_v26 = vld [vmem:[%s1304_s21 + $0xd4] sm:$0xf0]  ;;  %v1022_v27 = vld [vmem:[%s1304_s21 + $0x150] sm:$0xf]  ;;  %v895_v29 = vor.u32 %v1063_v24, %v894_v23  ;;  %v886_v30 = vld [vmem:[%s1304_s21 + $0x40] sm:$0xf] }
  0x39   : > { %v1095_v28 = vld [vmem:[%s1304_s21 + $0x154] sm:$0xf0]  ;;  %v1061_v31 = vld [vmem:[%s1304_s21 + $0x44] sm:$0xf0]  ;;  %v959_v32 = vor.u32 %v1079_v26, %v958_v25  ;;  %v950_v34 = vld [vmem:[%s1304_s21 + $0xc0] sm:$0xf] }
  0x3a   : > { %548 = vmatpush.bf16.msra.mxu0 %v903_v17  ;;  %v1023_v33 = vor.u32 %v1095_v28, %v1022_v27  ;;  %v1066_v35 = vld [vmem:[%s1304_s21 + $0x74] sm:$0xf]  ;;  %v912_v36 = vld [vmem:[%s1304_s21 + $0x78] sm:$0xf0]  ;;  %v1077_v37 = vld [vmem:[%s1304_s21 + $0xc4] sm:$0xf0]  ;;  %v887_v42 = vor.u32 %v1061_v31, %v886_v30 }
  0x3b   : > { %562 = vmatpush.bf16.msra.mxu1 %v967_v21  ;;  %v1014_v38 = vld [vmem:[%s1304_s21 + $0x140] sm:$0xf]  ;;  %v1093_v39 = vld [vmem:[%s1304_s21 + $0x144] sm:$0xf0]  ;;  %v915_v40 = vor.u32 %v1066_v35, %v912_v36  ;;  %v1064_v41 = vld [vmem:[%s1304_s21 + $0x64] sm:$0xf]  ;;  %v951_v46 = vor.u32 %v1077_v37, %v950_v34 }
  0x3c   : > { %576 = vmatpush.bf16.msra.mxu2 %v1031_v22  ;;  %v878_v43 = vld [vmem:[%s1304_s21 + $0x30] sm:$0xf]  ;;  %v1059_v44 = vld [vmem:[%s1304_s21 + $0x34] sm:$0xf0]  ;;  %v904_v45 = vld [vmem:[%s1304_s21 + $0x68] sm:$0xf0]  ;;  %v1015_v47 = vor.u32 %v1093_v39, %v1014_v38 }
  0x3d   : > { %589 = vmatpush.bf16.msra.mxu3 %v915_v40  ;;  %v942_v48 = vld [vmem:[%s1304_s21 + $0xb0] sm:$0xf]  ;;  %v1075_v49 = vld [vmem:[%s1304_s21 + $0xb4] sm:$0xf0]  ;;  %v907_v51 = vor.u32 %v1064_v41, %v904_v45  ;;  %v1062_v53 = vld [vmem:[%s1304_s21 + $0x54] sm:$0xf]  ;;  %v879_v55 = vor.u32 %v1059_v44, %v878_v43 }
  0x3e   : > { %549 = vmatpush.bf16.msra.mxu0 %v895_v29  ;;  %v1006_v50 = vld [vmem:[%s1304_s21 + $0x130] sm:$0xf]  ;;  %v1091_v52 = vld [vmem:[%s1304_s21 + $0x134] sm:$0xf0]  ;;  %v896_v54 = vld [vmem:[%s1304_s21 + $0x58] sm:$0xf0]  ;;  %v943_v59 = vor.u32 %v1075_v49, %v942_v48 }
  0x3f   : > { %563 = vmatpush.bf16.msra.mxu1 %v959_v32  ;;  %v870_v56 = vld [vmem:[%s1304_s21 + $0x20] sm:$0xf]  ;;  %v1057_v57 = vld [vmem:[%s1304_s21 + $0x24] sm:$0xf0]  ;;  %v899_v58 = vor.u32 %v1062_v53, %v896_v54  ;;  %v1007_v60 = vor.u32 %v1091_v52, %v1006_v50  ;;  %v1060_v62 = vld [vmem:[%s1304_s21 + $0x44] sm:$0xf] }
  0x40   : > { %577 = vmatpush.bf16.msra.mxu2 %v1023_v33  ;;  %v934_v61 = vld [vmem:[%s1304_s21 + $0xa0] sm:$0xf]  ;;  %v888_v63 = vld [vmem:[%s1304_s21 + $0x48] sm:$0xf0]  ;;  %v1073_v0 = vld [vmem:[%s1304_s21 + $0xa4] sm:$0xf0]  ;;  %v871_v3 = vor.u32 %v1057_v57, %v870_v56 }
  0x41   : > { %590 = vmatpush.bf16.msra.mxu3 %v907_v51  ;;  %v998_v1 = vld [vmem:[%s1304_s21 + $0x120] sm:$0xf]  ;;  %v1089_v2 = vld [vmem:[%s1304_s21 + $0x124] sm:$0xf0]  ;;  %v862_v4 = vld [vmem:[%s1304_s21 + $0x10] sm:$0xf]  ;;  %v891_v6 = vor.u32 %v1060_v62, %v888_v63  ;;  %v935_v7 = vor.u32 %v1073_v0, %v934_v61 }
  0x42   : > { %550 = vmatpush.bf16.msra.mxu0 %v887_v42  ;;  %v1055_v5 = vld [vmem:[%s1304_s21 + $0x14] sm:$0xf0]  ;;  %v999_v8 = vor.u32 %v1089_v2, %v998_v1  ;;  %v926_v9 = vld [vmem:[%s1304_s21 + $0x90] sm:$0xf]  ;;  %v1058_v10 = vld [vmem:[%s1304_s21 + $0x34] sm:$0xf] }
  0x43   : > { %564 = vmatpush.bf16.msra.mxu1 %v951_v46  ;;  %v880_v11 = vld [vmem:[%s1304_s21 + $0x38] sm:$0xf0]  ;;  %v1071_v12 = vld [vmem:[%s1304_s21 + $0x94] sm:$0xf0]  ;;  %v990_v13 = vld [vmem:[%s1304_s21 + $0x110] sm:$0xf]  ;;  %v863_v15 = vor.u32 %v1055_v5, %v862_v4 }
  0x44   : > { %578 = vmatpush.bf16.msra.mxu2 %v1015_v47  ;;  %v1087_v14 = vld [vmem:[%s1304_s21 + $0x114] sm:$0xf0]  ;;  %v854_v16 = vld [vmem:[%s1304_s21] sm:$0xf]  ;;  %v1053_v17 = vld [vmem:[%s1304_s21 + $0x4] sm:$0xf0]  ;;  %v883_v19 = vor.u32 %v1058_v10, %v880_v11  ;;  %v927_v20 = vor.u32 %v1071_v12, %v926_v9 }
  0x45   : > { %591 = vmatpush.bf16.msra.mxu3 %v899_v58  ;;  %v918_v18 = vld [vmem:[%s1304_s21 + $0x80] sm:$0xf]  ;;  %v991_v21 = vor.u32 %v1087_v14, %v990_v13  ;;  %v1069_v22 = vld [vmem:[%s1304_s21 + $0x84] sm:$0xf0]  ;;  %v1056_v23 = vld [vmem:[%s1304_s21 + $0x24] sm:$0xf]  ;;  %v855_v31 = vor.u32 %v1053_v17, %v854_v16 }
  0x46   : > { %551 = vmatpush.bf16.msra.mxu0 %v879_v55  ;;  %v872_v24 = vld [vmem:[%s1304_s21 + $0x28] sm:$0xf0]  ;;  %v982_v25 = vld [vmem:[%s1304_s21 + $0x100] sm:$0xf]  ;;  %v1085_v26 = vld [vmem:[%s1304_s21 + $0x104] sm:$0xf0]  ;;  %v919_v36 = vor.u32 %v1069_v22, %v918_v18 }
  0x47   : > { %565 = vmatpush.bf16.msra.mxu1 %v943_v59  ;;  %v1082_v27 = vld [vmem:[%s1304_s21 + $0xf4] sm:$0xf]  ;;  %v976_v28 = vld [vmem:[%s1304_s21 + $0xf8] sm:$0xf0]  ;;  %v850_v32 = vld [vmem:[%s1311_s9 + $0x8] sm:$0xf]  ;;  %v875_v33 = vor.u32 %v1056_v23, %v872_v24  ;;  %v983_v37 = vor.u32 %v1085_v26, %v982_v25 }
  0x48   : > { %579 = vmatpush.bf16.msra.mxu2 %v1007_v60  ;;  %v1098_v29 = vld [vmem:[%s1304_s21 + $0x174] sm:$0xf]  ;;  %v1040_v30 = vld [vmem:[%s1304_s21 + $0x178] sm:$0xf0]  ;;  %v842_v34 = vld [vmem:[%s1311_s9] sm:$0xf]  ;;  %v979_v41 = vor.u32 %v1082_v27, %v976_v28 }
  0x49   : > { %592 = vmatpush.bf16.msra.mxu3 %v891_v6  ;;  %v1050_v35 = vld [vmem:[%s1311_s9 + $0x8] sm:$0xf0]  ;;  %v1051_v38 = vld [vmem:[%s1311_s9 + $0x10] sm:$0xf0]  ;;  %v1049_v39 = vld [vmem:[%s1311_s9 + $0x4] sm:$0xf]  ;;  %v1043_v42 = vor.u32 %v1098_v29, %v1040_v30 }
  0x4a   : > { %552 = vmatpush.bf16.msra.mxu0 %v871_v3  ;;  %v844_v40 = vld [vmem:[%s1311_s9 + $0xc] sm:$0xf0]  ;;  %v1080_v43 = vld [vmem:[%s1304_s21 + $0xe4] sm:$0xf]  ;;  %v1054_v44 = vld [vmem:[%s1304_s21 + $0x14] sm:$0xf]  ;;  %v843_v49 = vor.u32 %v1050_v35, %v842_v34  ;;  %v1390_v50 = vor.u32 %v1051_v38, %v850_v32 }
  0x4b   : > { %566 = vmatpush.bf16.msra.mxu1 %v935_v7  ;;  %v864_v45 = vld [vmem:[%s1304_s21 + $0x18] sm:$0xf0]  ;;  %v968_v46 = vld [vmem:[%s1304_s21 + $0xe8] sm:$0xf0]  ;;  %v1096_v47 = vld [vmem:[%s1304_s21 + $0x164] sm:$0xf]  ;;  %v1392_v51 = vor.u32 %v1049_v39, %v844_v40 }
  0x4c   : > { %580 = vmatpush.bf16.msra.mxu2 %v999_v8  ;;  %v1032_v48 = vld [vmem:[%s1304_s21 + $0x168] sm:$0xf0]  ;;  %v867_v52 = vor.u32 %v1054_v44, %v864_v45  ;;  %v971_v53 = vor.u32 %v1080_v43, %v968_v46  ;;  %v1078_v55 = vld [vmem:[%s1304_s21 + $0xd4] sm:$0xf]  ;;  %v1052_v56 = vld [vmem:[%s1304_s21 + $0x4] sm:$0xf] }
  0x4d   : > { %593 = vmatpush.bf16.msra.mxu3 %v883_v19  ;;  %v1035_v54 = vor.u32 %v1096_v47, %v1032_v48  ;;  %v856_v57 = vld [vmem:[%s1304_s21 + $0x8] sm:$0xf0]  ;;  %v960_v58 = vld [vmem:[%s1304_s21 + $0xd8] sm:$0xf0]  ;;  %v1094_v59 = vld [vmem:[%s1304_s21 + $0x154] sm:$0xf] }
  0x4e   : > { %553 = vmatpush.bf16.msra.mxu0 %v863_v15  ;;  %v1024_v60 = vld [vmem:[%s1304_s21 + $0x158] sm:$0xf0]  ;;  %v859_v61 = vor.u32 %v1052_v56, %v856_v57  ;;  %v963_v62 = vor.u32 %v1078_v55, %v960_v58  ;;  %v1076_v0 = vld [vmem:[%s1304_s21 + $0xc4] sm:$0xf]  ;;  %v952_v1 = vld [vmem:[%s1304_s21 + $0xc8] sm:$0xf0] }
  0x4f   : > { %567 = vmatpush.bf16.msra.mxu1 %v927_v20  ;;  %v1027_v63 = vor.u32 %v1094_v59, %v1024_v60  ;;  %v1092_v2 = vld [vmem:[%s1304_s21 + $0x144] sm:$0xf]  ;;  %v1016_v3 = vld [vmem:[%s1304_s21 + $0x148] sm:$0xf0]  ;;  %v955_v4 = vor.u32 %v1076_v0, %v952_v1  ;;  %v1074_v6 = vld [vmem:[%s1304_s21 + $0xb4] sm:$0xf] }
  0x50   : > { %581 = vmatpush.bf16.msra.mxu2 %v991_v21  ;;  %v1019_v5 = vor.u32 %v1092_v2, %v1016_v3  ;;  %v944_v7 = vld [vmem:[%s1304_s21 + $0xb8] sm:$0xf0]  ;;  %v1090_v8 = vld [vmem:[%s1304_s21 + $0x134] sm:$0xf]  ;;  %v1072_v12 = vld [vmem:[%s1304_s21 + $0xa4] sm:$0xf] }
  0x51   : > { %594 = vmatpush.bf16.msra.mxu3 %v875_v33  ;;  %v1008_v9 = vld [vmem:[%s1304_s21 + $0x138] sm:$0xf0]  ;;  %v947_v10 = vor.u32 %v1074_v6, %v944_v7  ;;  %v936_v13 = vld [vmem:[%s1304_s21 + $0xa8] sm:$0xf0]  ;;  %v1088_v14 = vld [vmem:[%s1304_s21 + $0x124] sm:$0xf] }
  0x52   : > { %554 = vmatpush.bf16.msra.mxu0 %v855_v31  ;;  %v1011_v11 = vor.u32 %v1090_v8, %v1008_v9  ;;  %v1000_v15 = vld [vmem:[%s1304_s21 + $0x128] sm:$0xf0]  ;;  %v939_v16 = vor.u32 %v1072_v12, %v936_v13  ;;  %v1070_v18 = vld [vmem:[%s1304_s21 + $0x94] sm:$0xf]  ;;  %v928_v19 = vld [vmem:[%s1304_s21 + $0x98] sm:$0xf0] }
  0x53   : > { %568 = vmatpush.bf16.msra.mxu1 %v919_v36  ;;  %v1003_v17 = vor.u32 %v1088_v14, %v1000_v15  ;;  %v1086_v20 = vld [vmem:[%s1304_s21 + $0x114] sm:$0xf]  ;;  %v992_v21 = vld [vmem:[%s1304_s21 + $0x118] sm:$0xf0]  ;;  %v931_v22 = vor.u32 %v1070_v18, %v928_v19  ;;  %v1068_v24 = vld [vmem:[%s1304_s21 + $0x84] sm:$0xf] }
  0x54   : > { %582 = vmatpush.bf16.msra.mxu2 %v983_v37  ;;  %v995_v23 = vor.u32 %v1086_v20, %v992_v21  ;;  %v920_v25 = vld [vmem:[%s1304_s21 + $0x88] sm:$0xf0]  ;;  %v1084_v26 = vld [vmem:[%s1304_s21 + $0x104] sm:$0xf]  ;;  %v235_v33 = vld [vmem:[#allocation2 + $0x10] sm:$0xff]  ;;  %p1044_p13 = scmp.ne.s32.totalorder %s1202_s11, 2 }
  0x55   : > { %555 = vmatmul.bf16.vlgmr.msra.gmra.mxu0 %v843_v49  ;;  %595 = vmatpush.bf16.msra.mxu3 %v867_v52  ;;  %v984_v27 = vld [vmem:[%s1304_s21 + $0x108] sm:$0xf0]  ;;  %v923_v28 = vor.u32 %v1068_v24, %v920_v25  ;;  %v237_v40 = vld [vmem:[#allocation2 + $0x18] sm:$0xff]  ;;  %v236_v48 = vld [vmem:[#allocation2] sm:$0xff] }
  0x56   : > { %603 = vmatpush.bf16.msrb.mxu0 %v979_v41  ;;  %569 = vmatmul.bf16.vlgmr.msra.gmra.mxu1 %v1392_v51  ;;  %v987_v29 = vor.u32 %v1084_v26, %v984_v27 }
  0x57   : > { %617 = vmatpush.bf16.msrb.mxu1 %v1043_v42  ;;  %583 = vmatmul.bf16.vlgmr.msra.gmra.mxu2 %v1390_v50 }
  0x59   : > { %596 = vmatpush.bf16.msra.mxu3 %v859_v61 }
  0x5a   : > { %604 = vmatpush.bf16.msrb.mxu0 %v971_v53 }
  0x5b   : > { %618 = vmatpush.bf16.msrb.mxu1 %v1035_v54  ;;  %v238_v54 = vld [vmem:[#allocation2 + $0x8] sm:$0xff] }
  0x5c   : > { %597 = vmatmul.bf16.vlgmr.msra.gmra.mxu3 %v843_v49 }
  0x5e   : > { %605 = vmatpush.bf16.msrb.mxu0 %v963_v62 }
  0x5f   : > { %619 = vmatpush.bf16.msrb.mxu1 %v1027_v63 }
  0x62   : > { %606 = vmatpush.bf16.msrb.mxu0 %v955_v4 }
  0x63   : > { %620 = vmatpush.bf16.msrb.mxu1 %v1019_v5 }
  0x66   : > { %607 = vmatpush.bf16.msrb.mxu0 %v947_v10 }
  0x67   : > { %621 = vmatpush.bf16.msrb.mxu1 %v1011_v11 }
  0x6a   : > { %608 = vmatpush.bf16.msrb.mxu0 %v939_v16 }
  0x6b   : > { %622 = vmatpush.bf16.msrb.mxu1 %v1003_v17 }
  0x6e   : > { %609 = vmatpush.bf16.msrb.mxu0 %v931_v22 }
  0x6f   : > { %623 = vmatpush.bf16.msrb.mxu1 %v995_v23 }
  0x72   : > { %610 = vmatpush.bf16.msrb.mxu0 %v923_v28 }
  0x73   : > { %624 = vmatpush.bf16.msrb.mxu1 %v987_v29 }
  0x75   : > { %611 = vmatmul.bf16.vlgmr.msrb.gmra.mxu0 %v1392_v51 }
  0x76   : > { %625 = vmatmul.bf16.vlgmr.msrb.gmra.mxu1 %v1390_v50 }
  0xd2   : > { %v556_v30 = vpop.f32.mrf.mxu0 }
  0xd3   : > { %v570_v31 = vpop.f32.mrf.mxu1 }
  0xd4   : > { %v571_v32 = vadd.f32 %v570_v31, %v556_v30 }
  0xda   : > { %v584_v34 = vpop.f32.mrf.mxu2  ;;  %v558_v36 = vpop.f32.mrf.mxu0 }
  0xdb   : > { %v585_v35 = vadd.f32 %v584_v34, %v571_v32  ;;  %v572_v37 = vpop.f32.mrf.mxu1 }
  0xdc   : > { %v573_v39 = vadd.f32 %v572_v37, %v558_v36 }
  0xdd   : > { %v631_v38 = vadd.f32 %v585_v35, %v235_v33 }
  0xdf   : > { %635 = vst [vmem:[#allocation2 + $0x10] sm:$0xff] %v631_v38  ;;  %v598_v44 = vpop.f32.mrf.mxu3 }
  0xe2   : > { %v586_v41 = vpop.f32.mrf.mxu2 }
  0xe3   : > { %v587_v42 = vadd.f32 %v586_v41, %v573_v39 }
  0xe5   : > { %v633_v43 = vadd.f32 %v587_v42, %v237_v40 }
  0xe7   : > { %637 = vst [vmem:[#allocation2 + $0x18] sm:$0xff] %v633_v43  ;;  %v600_v51 = vpop.f32.mrf.mxu3 }
  0xf2   : > { %v612_v45 = vpop.f32.mrf.mxu0 }
  0xf3   : > { %v626_v46 = vpop.f32.mrf.mxu1  ;;  %v613_v47 = vadd.f32 %v612_v45, %v598_v44 }
  0xf5   : > { %v627_v49 = vadd.f32 %v626_v46, %v613_v47 }
  0xf7   : > { %v632_v50 = vadd.f32 %v627_v49, %v236_v48 }
  0xf9   : > { %636 = vst [vmem:[#allocation2] sm:$0xff] %v632_v50 }
  0xfa   : > { %v614_v52 = vpop.f32.mrf.mxu0 }
  0xfb   : > { %v615_v53 = vadd.f32 %v614_v52, %v600_v51  ;;  %v628_v55 = vpop.f32.mrf.mxu1 }
  0xfd   : > { %v629_v56 = vadd.f32 %v628_v55, %v615_v53  ;;  %642 = sbr.rel (%p1044_p13) target bundleno = 315 (0x13b), region = 62 }
  0xff   : > { %v634_v57 = vadd.f32 %v629_v56, %v238_v54 }
 0x101   : > { %638 = vst [vmem:[#allocation2 + $0x8] sm:$0xff] %v634_v57 }
 0x102   : > { %v1425_v58 = vld [vmem:[#allocation2 + $0x10] sm:$0xff]  ;;  %v1427_v59 = vld [vmem:[#allocation2] sm:$0xff]  ;;  %v1429_v60 = vld [vmem:[#allocation2 + $0x18] sm:$0xff] }
 0x103   : > { %v647_v62 = vadd.f32 %v1429_v60, %v1425_v58  ;;  %v663_v63 = vmul.f32 %v1425_v58, %v1425_v58  ;;  %v664_v0 = vmul.f32 %v1427_v59, %v1427_v59  ;;  %v665_v1 = vmul.f32 %v1429_v60, %v1429_v60 }
 0x105   : > { %v648_v4 = vrot.slane %v647_v62, 4  ;;  %v667_v5 = vadd.f32 %v665_v1, %v663_v63 }
 0x107   : > { %v649_v8 = vadd.f32 %v648_v4, %v647_v62  ;;  %v668_v9 = vrot.slane %v667_v5, 4 }
 0x108   : > { %v1431_v61 = vld [vmem:[#allocation2 + $0x8] sm:$0xff] }
 0x109   : > { %v654_v2 = vadd.f32 %v1431_v61, %v1427_v59  ;;  %v666_v3 = vmul.f32 %v1431_v61, %v1431_v61  ;;  %v650_v12 = vrot.slane %v649_v8, 2  ;;  %v669_v13 = vadd.f32 %v668_v9, %v667_v5 }
 0x10b   : > { %v655_v6 = vrot.slane %v654_v2, 4  ;;  %v674_v7 = vadd.f32 %v666_v3, %v664_v0  ;;  %v651_v16 = vadd.f32 %v650_v12, %v649_v8  ;;  %v670_v17 = vrot.slane %v669_v13, 2 }
 0x10d   : > { %v656_v10 = vadd.f32 %v655_v6, %v654_v2  ;;  %v675_v11 = vrot.slane %v674_v7, 4  ;;  %v652_v20 = vrot.slane %v651_v16, 1  ;;  %v671_v21 = vadd.f32 %v670_v17, %v669_v13 }
 0x10f   : > { %v657_v14 = vrot.slane %v656_v10, 2  ;;  %v676_v15 = vadd.f32 %v675_v11, %v674_v7  ;;  %v653_v24 = vadd.f32 %v652_v20, %v651_v16  ;;  %v672_v25 = vrot.slane %v671_v21, 1 }
 0x111   : > { %v658_v18 = vadd.f32 %v657_v14, %v656_v10  ;;  %v677_v19 = vrot.slane %v676_v15, 2  ;;  %v661_v28 = vmul.f32 0.0625, %v653_v24  ;;  %v673_v29 = vadd.f32 %v672_v25, %v671_v21 }
 0x113   : > { %v659_v22 = vrot.slane %v658_v18, 1  ;;  %v678_v23 = vadd.f32 %v677_v19, %v676_v15  ;;  %v681_v32 = vmul.f32 0.0625, %v673_v29  ;;  %v683_v33 = vmul.f32 %v661_v28, %v661_v28 }
 0x114   : > { %v689_v51 = vsub.f32 %v1425_v58, %v661_v28  ;;  %v691_v53 = vsub.f32 %v1429_v60, %v661_v28 }
 0x115   : > { %v660_v26 = vadd.f32 %v659_v22, %v658_v18  ;;  %v679_v27 = vrot.slane %v678_v23, 1  ;;  %v685_v36 = vsub.f32 %v681_v32, %v683_v33 }
 0x117   : > { %v662_v30 = vmul.f32 0.0625, %v660_v26  ;;  %v680_v31 = vadd.f32 %v679_v27, %v678_v23  ;;  %v687_v38 = vmax.f32 %v685_v36, 0.0 }
 0x119   : > { %v682_v34 = vmul.f32 0.0625, %v680_v31  ;;  %v684_v35 = vmul.f32 %v662_v30, %v662_v30  ;;  %v693_v40 = vadd.f32 1e-05, %v687_v38  ;;  %v690_v54 = vsub.f32 %v1427_v59, %v662_v30 }
 0x11a   : > { %v692_v56 = vsub.f32 %v1431_v61, %v662_v30 }
 0x11b   : > { %v686_v37 = vsub.f32 %v682_v34, %v684_v35  ;;  %1160 = vrsqrt.f32 %v693_v40  ;;  %vm701_vm0 = vweird.f32 %v693_v40 }
 0x11d   : > { %v688_v39 = vmax.f32 %v686_v37, 0.0 }
 0x11f   : > { %v694_v41 = vadd.f32 1e-05, %v688_v39 }
 0x121   : > { %1162 = vrsqrt.f32 %v694_v41  ;;  %v1161_v42 = vpop.eup %1160  ;;  %vm711_vm2 = vweird.f32 %v694_v41 }
 0x122   : > { %v696_v44 = vmul.f32 %v1161_v42, %v693_v40  ;;  %vm702_vm1 = vweird.f32 %v1161_v42 }
 0x123   : > { %vm703_vm4 = vmor %vm701_vm0, %vm702_vm1 }
 0x124   : > { %v697_v46 = vmul.f32 %v1161_v42, %v696_v44 }
 0x126   : > { %v698_v48 = vmul.f32 0.5, %v697_v46 }
 0x127   : > { %v1163_v43 = vpop.eup %1162 }
 0x128   : > { %v706_v45 = vmul.f32 %v1163_v43, %v694_v41  ;;  %vm712_vm3 = vweird.f32 %v1163_v43  ;;  %v699_v50 = vsub.f32 1.5, %v698_v48 }
 0x129   : > { %vm713_vm5 = vmor %vm711_vm2, %vm712_vm3 }
 0x12a   : > { %v707_v47 = vmul.f32 %v1163_v43, %v706_v45  ;;  %v700_v55 = vmul.f32 %v1161_v42, %v699_v50 }
 0x12c   : > { %v708_v49 = vmul.f32 0.5, %v707_v47  ;;  %v704_v62 = vsel %vm703_vm4, %v1161_v42, %v700_v55 }
 0x12d   : > { %v715_v0 = vmul.f32 %v704_v62, %v689_v51  ;;  %v717_v1 = vmul.f32 %v704_v62, %v691_v53 }
 0x12e   : > { %v709_v52 = vsub.f32 1.5, %v708_v49 }
 0x12f   : > { %v719_v58 = vmax.f32 %v715_v0, 0.0  ;;  %v721_v4 = vmax.f32 %v717_v1, 0.0 }
 0x130   : > { %v710_v57 = vmul.f32 %v1163_v43, %v709_v52 }
 0x132   : > { %v714_v63 = vsel %vm713_vm5, %v1163_v43, %v710_v57 }
 0x133   : > { %v716_v2 = vmul.f32 %v714_v63, %v690_v54  ;;  %v718_v3 = vmul.f32 %v714_v63, %v692_v56 }
 0x135   : > { %v720_v5 = vmax.f32 %v716_v2, 0.0  ;;  %v722_v6 = vmax.f32 %v718_v3, 0.0 }
 0x137   : > { %v723_v60 = vpack.c.bf16 %v720_v5, %v719_v58  ;;  %v724_v7 = vpack.c.bf16 %v722_v6, %v721_v4 }
 0x139   : > { %725 = vst [vmem:[%s1309_s26] sm:$0xff] %v723_v60 }
 0x13a   : > { %726 = vst [vmem:[%s1309_s26 + $0x8] sm:$0xff] %v724_v7 }
 0x13b PF: > { %s12_s15 = sadd.s32 1, %s1218_s15   ;;  %s1475_s9 = smov %s1198_s10 }
 0x13c   : > { %p9_p0 = scmp.ge.s32.totalorder %s12_s15, 8   ;;  %s1476_s10 = smov %s1287_s22 }
 0x13d   : > { %s1477_s11 = smov %s1210_s13  ;;  %s1478_s12 = smov %s1214_s14 }
 0x13e   : > { %s1479_s13 = smov %s1482_s16  ;;  %s1480_s14 = smov %s1486_s17 }
 0x13f   :  { %11 = sbr.rel (!%p9_p0) target bundleno = 4 (0x4), region = 106 }

// kernel: generator_forward.36
= control target key start
LH: loop header
LB: loop body
LE: loop exit
PB: predicated region body
PF: predicated region fallthrough
CT: control target
= control target key end

     0   :  { %s1315_s12 = smov 0   ;;  %s1317_s13 = smov 0   ;;  %s1558_s0 = inlined_call_operand.vmem [shape: bf16[32,2304], index: 0, kind: input, shape index: {}]   ;;  %s1559_s1 = inlined_call_operand.vmem [shape: bf16[2304,256], index: 1, kind: input, shape index: {}]   ;;  %s1560_s2 = inlined_call_operand.vmem [shape: bf16[32,256], index: 2, kind: input, shape index: {}]   ;;  %s1561_s3 = inlined_call_operand.vmem [shape: bf16[32,256], index: 3, kind: output, shape index: {}]  }
   0x1   :  { %s1319_s14 = smov 0   ;;  %s1321_s15 = smov 0  }
   0x2   :  { %s1323_s16 = smov 0   ;;  %s1325_s17 = smov 0  }
   0x3   :  { %s1327_s18 = smov 0  }
   0x4 LB: > { %s22_s19 = sadd.s32 1, %s1284_s16  ;;  %s25_s20 = sadd.s32 1, %s1288_s17  ;;  %s1292_s18 = sphi %s1327_s18, %s13_s18   ;;  %s1288_s17 = sphi %s1325_s17, %s1567_s17   ;;  %s1284_s16 = sphi %s1323_s16, %s1566_s16   ;;  %s1280_s15 = sphi %s1321_s15, %s1565_s15   ;;  %s1276_s14 = sphi %s1319_s14, %s1564_s14   ;;  %s1272_s13 = sphi %s1317_s13, %s1563_s13   ;;  %s1268_s12 = sphi %s1315_s12, %s1562_s12  }
   0x5   : > { %p23_p0 = scmp.ge.s32.totalorder %s22_s19, 6  ;;  %p41_p1 = scmp.ne.s32.totalorder %s1272_s13, %s1268_s12 }
   0x6   : > { %p42_p2 = scmp.eq.s32.totalorder %s1292_s18, 0  ;;  %s34_s24 = sadd.s32 1, %s1272_s13 }
   0x7   : > { %s1569_s19 = smov (%p23_p0, %s22_s19), 0  ;;  %s1571_s20 = smov (!%p23_p0, %s25_s20), %s1288_s17 }
   0x8   : > { %p43_p3 = por %p42_p2, %p41_p1  ;;  %p27_p4 = scmp.ge.s32.totalorder %s1571_s20, 2 }
   0x9   : > { %s30_s21 = ssub.s32 %s1284_s16, %s1569_s19  ;;  %p895_p6 = scmp.ge.s32.totalorder %s1292_s18, 12 }
   0xa   : > { %s1573_s20 = smov (%p27_p4, %s1571_s20), 0 }
   0xb   : > { %s29_s22 = ssub.s32 %s1288_s17, %s1573_s20  ;;  %145 = sbr.rel (%p895_p6) target bundleno = 29 (0x1d), region = 16 }
   0xc   : > { %s31_s23 = sor.u32 %s30_s21, %s29_s22 }
   0xd   : > { %p32_p5 = scmp.eq.s32.totalorder %s31_s23, 0 }
   0xf   : > { %s1366_s25 = scalar_select %p32_p5, %s1272_s13, %s34_s24  }
  0x10   : > { %148 = sbr.rel (!%p43_p3) target bundleno = 29 (0x1d), region = 20  ;;  %s150_s26 = sand.u32 (%p43_p3), 1, %s1272_s13  }
  0x11   : > { %s154_s27 = smul.u32 (%p43_p3), 3, %s1284_s16 }
  0x12   : > { %s1174_s28 = smul.u32 (%p43_p3), 24, %s150_s26 }
  0x13   : > { %s1175_s29 = smul.u32 (%p43_p3), 36, %s1288_s17 }
  0x14   : > { %s152_s8 = scalar_lea.vmem (%p43_p3), [#allocation3], %s1174_s28 }
  0x15   : > { %s156_s30 = sadd.s32 %s1175_s29, %s154_s27 }
  0x16   : > { %s898_s4 = sshll.u32 %s156_s30, 2 }
  0x17   : > { %s158_s7 = scalar_lea.vmem %s1558_s0, %s898_s4 }
  0x18   : > { %v173_v0 = vld [vmem:[%s158_s7] sm:$0xff]  ;;  %v175_v1 = vld [vmem:[%s158_s7 + $0x48] sm:$0xff]  ;;  %v901_v3 = vld [vmem:[%s158_s7 + $0x50] sm:$0xf] }
  0x19   : > { %v899_v2 = vld [vmem:[%s158_s7 + $0x8] sm:$0xf]  ;;  %174 = vst [vmem:[%s152_s8] sm:$0xff] %v173_v0 }
  0x1a   : > { %176 = vst [vmem:[%s152_s8 + $0xc] sm:$0xff] %v175_v1 }
  0x1b   : > { %900 = vst [vmem:[%s152_s8 + $0x8] sm:$0xf] %v899_v2 }
  0x1c   : > { %902 = vst [vmem:[%s152_s8 + $0x14] sm:$0xf] %v901_v3 }
  0x1d PF: > { %p903_p7 = scmp.ge.s32.totalorder %s1292_s18, 1  ;;  %p213_p8 = scmp.lt.s32.totalorder %s1292_s18, 13 }
  0x1f   : > { %p214_p9 = pnand %p903_p7, %p213_p8 }
  0x20   : > { %s220_s9 = sand.u32 (!%p214_p9), 1, %s1268_s12   ;;  %s258_s10 = smul.u32 (!%p214_p9), 48, %s1276_s14 }
  0x21   : > { %217 = sbr.rel (%p214_p9) target bundleno = 315 (0x13b), region = 54  ;;  %s906_s21 = sshll.u32 (!%p214_p9), %s1280_s15, 1 }
  0x22   : > { %s1176_s11 = smul.u32 (!%p214_p9), 24, %s220_s9  ;;  %p259_p10 = scmp.lt.s32.totalorder (!%p214_p9), %s258_s10, 287 }
  0x23   : > { %p266_p11 = scmp.lt.s32.totalorder (!%p214_p9), %s906_s21, 3  ;;  %p912_p12 = scmp.ne.s32.totalorder (!%p214_p9), %s1276_s14, 0 }
  0x24   : > { %s1395_s5 = scalar_lea.vmem (!%p214_p9), [#allocation3], %s1176_s11 }
  0x26   : > { %s1575_s10 = smov (!%p259_p10, %s258_s10), 287  ;;  %s1577_s21 = smov (!%p266_p11, %s906_s21), 3 }
  0x27   : > { %s1120_s22 = sshll.u32 %s1575_s10, 3  ;;  %s1121_s27 = sshll.u32 %s1577_s21, 3 }
  0x28   : > { %s1383_s26 = scalar_lea.vmem %s1559_s1, %s1120_s22  ;;  %s1388_s30 = scalar_lea.vmem %s1560_s2, %s1121_s27 }
  0x29   : > { %s1393_s15 = scalar_lea.vmem %s1561_s3, %s1121_s27  ;;  %282 = sbr.rel (%p912_p12) target bundleno = 51 (0x33), region = 62 }
  0x2e   : > { %v1294_v4 = vmov 0.0  }
  0x2f   : > { %283 = vst [vmem:[#allocation2 + $0x10] sm:$0xff] %v1294_v4 }
  0x30   : > { %284 = vst [vmem:[#allocation2] sm:$0xff] %v1294_v4 }
  0x31   : > { %285 = vst [vmem:[#allocation2 + $0x18] sm:$0xff] %v1294_v4 }
  0x32   : > { %286 = vst [vmem:[#allocation2 + $0x8] sm:$0xff] %v1294_v4 }
  0x33 PF: > { %v983_v5 = vld [vmem:[%s1383_s26 + $0x70] sm:$0xf]  ;;  %v1141_v6 = vld [vmem:[%s1383_s26 + $0x74] sm:$0xf0]  ;;  %v975_v14 = vld [vmem:[%s1383_s26 + $0x60] sm:$0xf] }
  0x34   : > { %v1047_v7 = vld [vmem:[%s1383_s26 + $0xf0] sm:$0xf]  ;;  %v984_v8 = vor.u32 %v1141_v6, %v983_v5  ;;  %v1157_v9 = vld [vmem:[%s1383_s26 + $0xf4] sm:$0xf0]  ;;  %v1139_v15 = vld [vmem:[%s1383_s26 + $0x64] sm:$0xf0] }
  0x35   : > { %v1111_v10 = vld [vmem:[%s1383_s26 + $0x170] sm:$0xf]  ;;  %v1173_v11 = vld [vmem:[%s1383_s26 + $0x174] sm:$0xf0]  ;;  %v1048_v12 = vor.u32 %v1157_v9, %v1047_v7  ;;  %v1039_v16 = vld [vmem:[%s1383_s26 + $0xe0] sm:$0xf]  ;;  %v976_v17 = vor.u32 %v1139_v15, %v975_v14 }
  0x36   : > { %v1112_v13 = vor.u32 %v1173_v11, %v1111_v10  ;;  %599 = vmatpush.bf16.msra.mxu0 %v984_v8  ;;  %v1155_v18 = vld [vmem:[%s1383_s26 + $0xe4] sm:$0xf0]  ;;  %v1103_v19 = vld [vmem:[%s1383_s26 + $0x160] sm:$0xf]  ;;  %v967_v23 = vld [vmem:[%s1383_s26 + $0x50] sm:$0xf] }
  0x37   : > { %v1171_v20 = vld [vmem:[%s1383_s26 + $0x164] sm:$0xf0]  ;;  %613 = vmatpush.bf16.msra.mxu1 %v1048_v12  ;;  %v1040_v21 = vor.u32 %v1155_v18, %v1039_v16  ;;  %v1137_v24 = vld [vmem:[%s1383_s26 + $0x54] sm:$0xf0]  ;;  %v1031_v25 = vld [vmem:[%s1383_s26 + $0xd0] sm:$0xf] }
  0x38   : > { %627 = vmatpush.bf16.msra.mxu2 %v1112_v13  ;;  %v1104_v22 = vor.u32 %v1171_v20, %v1103_v19  ;;  %v1153_v26 = vld [vmem:[%s1383_s26 + $0xd4] sm:$0xf0]  ;;  %v1095_v27 = vld [vmem:[%s1383_s26 + $0x150] sm:$0xf]  ;;  %v968_v29 = vor.u32 %v1137_v24, %v967_v23  ;;  %v959_v30 = vld [vmem:[%s1383_s26 + $0x40] sm:$0xf] }
  0x39   : > { %v1169_v28 = vld [vmem:[%s1383_s26 + $0x154] sm:$0xf0]  ;;  %v1135_v31 = vld [vmem:[%s1383_s26 + $0x44] sm:$0xf0]  ;;  %v1032_v32 = vor.u32 %v1153_v26, %v1031_v25  ;;  %v1023_v34 = vld [vmem:[%s1383_s26 + $0xc0] sm:$0xf] }
  0x3a   : > { %600 = vmatpush.bf16.msra.mxu0 %v976_v17  ;;  %v1096_v33 = vor.u32 %v1169_v28, %v1095_v27  ;;  %v1140_v35 = vld [vmem:[%s1383_s26 + $0x74] sm:$0xf]  ;;  %v985_v36 = vld [vmem:[%s1383_s26 + $0x78] sm:$0xf0]  ;;  %v1151_v37 = vld [vmem:[%s1383_s26 + $0xc4] sm:$0xf0]  ;;  %v960_v42 = vor.u32 %v1135_v31, %v959_v30 }
  0x3b   : > { %614 = vmatpush.bf16.msra.mxu1 %v1040_v21  ;;  %v1087_v38 = vld [vmem:[%s1383_s26 + $0x140] sm:$0xf]  ;;  %v1167_v39 = vld [vmem:[%s1383_s26 + $0x144] sm:$0xf0]  ;;  %v988_v40 = vor.u32 %v1140_v35, %v985_v36  ;;  %v1138_v41 = vld [vmem:[%s1383_s26 + $0x64] sm:$0xf]  ;;  %v1024_v46 = vor.u32 %v1151_v37, %v1023_v34 }
  0x3c   : > { %628 = vmatpush.bf16.msra.mxu2 %v1104_v22  ;;  %v951_v43 = vld [vmem:[%s1383_s26 + $0x30] sm:$0xf]  ;;  %v1133_v44 = vld [vmem:[%s1383_s26 + $0x34] sm:$0xf0]  ;;  %v977_v45 = vld [vmem:[%s1383_s26 + $0x68] sm:$0xf0]  ;;  %v1088_v47 = vor.u32 %v1167_v39, %v1087_v38 }
  0x3d   : > { %641 = vmatpush.bf16.msra.mxu3 %v988_v40  ;;  %v1015_v48 = vld [vmem:[%s1383_s26 + $0xb0] sm:$0xf]  ;;  %v1149_v49 = vld [vmem:[%s1383_s26 + $0xb4] sm:$0xf0]  ;;  %v980_v51 = vor.u32 %v1138_v41, %v977_v45  ;;  %v1136_v53 = vld [vmem:[%s1383_s26 + $0x54] sm:$0xf]  ;;  %v952_v55 = vor.u32 %v1133_v44, %v951_v43 }
  0x3e   : > { %601 = vmatpush.bf16.msra.mxu0 %v968_v29  ;;  %v1079_v50 = vld [vmem:[%s1383_s26 + $0x130] sm:$0xf]  ;;  %v1165_v52 = vld [vmem:[%s1383_s26 + $0x134] sm:$0xf0]  ;;  %v969_v54 = vld [vmem:[%s1383_s26 + $0x58] sm:$0xf0]  ;;  %v1016_v59 = vor.u32 %v1149_v49, %v1015_v48 }
  0x3f   : > { %615 = vmatpush.bf16.msra.mxu1 %v1032_v32  ;;  %v943_v56 = vld [vmem:[%s1383_s26 + $0x20] sm:$0xf]  ;;  %v1131_v57 = vld [vmem:[%s1383_s26 + $0x24] sm:$0xf0]  ;;  %v972_v58 = vor.u32 %v1136_v53, %v969_v54  ;;  %v1080_v60 = vor.u32 %v1165_v52, %v1079_v50  ;;  %v1134_v62 = vld [vmem:[%s1383_s26 + $0x44] sm:$0xf] }
  0x40   : > { %629 = vmatpush.bf16.msra.mxu2 %v1096_v33  ;;  %v1007_v61 = vld [vmem:[%s1383_s26 + $0xa0] sm:$0xf]  ;;  %v961_v63 = vld [vmem:[%s1383_s26 + $0x48] sm:$0xf0]  ;;  %v1147_v0 = vld [vmem:[%s1383_s26 + $0xa4] sm:$0xf0]  ;;  %v944_v3 = vor.u32 %v1131_v57, %v943_v56 }
  0x41   : > { %642 = vmatpush.bf16.msra.mxu3 %v980_v51  ;;  %v1071_v1 = vld [vmem:[%s1383_s26 + $0x120] sm:$0xf]  ;;  %v1163_v2 = vld [vmem:[%s1383_s26 + $0x124] sm:$0xf0]  ;;  %v935_v4 = vld [vmem:[%s1383_s26 + $0x10] sm:$0xf]  ;;  %v964_v6 = vor.u32 %v1134_v62, %v961_v63  ;;  %v1008_v7 = vor.u32 %v1147_v0, %v1007_v61 }
  0x42   : > { %602 = vmatpush.bf16.msra.mxu0 %v960_v42  ;;  %v1129_v5 = vld [vmem:[%s1383_s26 + $0x14] sm:$0xf0]  ;;  %v1072_v8 = vor.u32 %v1163_v2, %v1071_v1  ;;  %v999_v9 = vld [vmem:[%s1383_s26 + $0x90] sm:$0xf]  ;;  %v1132_v10 = vld [vmem:[%s1383_s26 + $0x34] sm:$0xf] }
  0x43   : > { %616 = vmatpush.bf16.msra.mxu1 %v1024_v46  ;;  %v953_v11 = vld [vmem:[%s1383_s26 + $0x38] sm:$0xf0]  ;;  %v1145_v12 = vld [vmem:[%s1383_s26 + $0x94] sm:$0xf0]  ;;  %v1063_v13 = vld [vmem:[%s1383_s26 + $0x110] sm:$0xf]  ;;  %v936_v15 = vor.u32 %v1129_v5, %v935_v4 }
  0x44   : > { %630 = vmatpush.bf16.msra.mxu2 %v1088_v47  ;;  %v1161_v14 = vld [vmem:[%s1383_s26 + $0x114] sm:$0xf0]  ;;  %v927_v16 = vld [vmem:[%s1383_s26] sm:$0xf]  ;;  %v1127_v17 = vld [vmem:[%s1383_s26 + $0x4] sm:$0xf0]  ;;  %v956_v19 = vor.u32 %v1132_v10, %v953_v11  ;;  %v1000_v20 = vor.u32 %v1145_v12, %v999_v9 }
  0x45   : > { %643 = vmatpush.bf16.msra.mxu3 %v972_v58  ;;  %v991_v18 = vld [vmem:[%s1383_s26 + $0x80] sm:$0xf]  ;;  %v1064_v21 = vor.u32 %v1161_v14, %v1063_v13  ;;  %v1143_v22 = vld [vmem:[%s1383_s26 + $0x84] sm:$0xf0]  ;;  %v1130_v23 = vld [vmem:[%s1383_s26 + $0x24] sm:$0xf]  ;;  %v928_v31 = vor.u32 %v1127_v17, %v927_v16 }
  0x46   : > { %603 = vmatpush.bf16.msra.mxu0 %v952_v55  ;;  %v945_v24 = vld [vmem:[%s1383_s26 + $0x28] sm:$0xf0]  ;;  %v1055_v25 = vld [vmem:[%s1383_s26 + $0x100] sm:$0xf]  ;;  %v1159_v26 = vld [vmem:[%s1383_s26 + $0x104] sm:$0xf0]  ;;  %v992_v36 = vor.u32 %v1143_v22, %v991_v18 }
  0x47   : > { %617 = vmatpush.bf16.msra.mxu1 %v1016_v59  ;;  %v1156_v27 = vld [vmem:[%s1383_s26 + $0xf4] sm:$0xf]  ;;  %v1049_v28 = vld [vmem:[%s1383_s26 + $0xf8] sm:$0xf0]  ;;  %v923_v32 = vld [vmem:[%s1395_s5 + $0x8] sm:$0xf]  ;;  %v948_v33 = vor.u32 %v1130_v23, %v945_v24  ;;  %v1056_v37 = vor.u32 %v1159_v26, %v1055_v25 }
  0x48   : > { %631 = vmatpush.bf16.msra.mxu2 %v1080_v60  ;;  %v1172_v29 = vld [vmem:[%s1383_s26 + $0x174] sm:$0xf]  ;;  %v1113_v30 = vld [vmem:[%s1383_s26 + $0x178] sm:$0xf0]  ;;  %v915_v34 = vld [vmem:[%s1395_s5] sm:$0xf]  ;;  %v1052_v41 = vor.u32 %v1156_v27, %v1049_v28 }
  0x49   : > { %644 = vmatpush.bf16.msra.mxu3 %v964_v6  ;;  %v1124_v35 = vld [vmem:[%s1395_s5 + $0x8] sm:$0xf0]  ;;  %v1125_v38 = vld [vmem:[%s1395_s5 + $0x10] sm:$0xf0]  ;;  %v1123_v39 = vld [vmem:[%s1395_s5 + $0x4] sm:$0xf]  ;;  %v1116_v42 = vor.u32 %v1172_v29, %v1113_v30 }
  0x4a   : > { %604 = vmatpush.bf16.msra.mxu0 %v944_v3  ;;  %v917_v40 = vld [vmem:[%s1395_s5 + $0xc] sm:$0xf0]  ;;  %v1154_v43 = vld [vmem:[%s1383_s26 + $0xe4] sm:$0xf]  ;;  %v1128_v44 = vld [vmem:[%s1383_s26 + $0x14] sm:$0xf]  ;;  %v916_v49 = vor.u32 %v1124_v35, %v915_v34  ;;  %v1474_v50 = vor.u32 %v1125_v38, %v923_v32 }
  0x4b   : > { %618 = vmatpush.bf16.msra.mxu1 %v1008_v7  ;;  %v937_v45 = vld [vmem:[%s1383_s26 + $0x18] sm:$0xf0]  ;;  %v1041_v46 = vld [vmem:[%s1383_s26 + $0xe8] sm:$0xf0]  ;;  %v1170_v47 = vld [vmem:[%s1383_s26 + $0x164] sm:$0xf]  ;;  %v1476_v51 = vor.u32 %v1123_v39, %v917_v40 }
  0x4c   : > { %632 = vmatpush.bf16.msra.mxu2 %v1072_v8  ;;  %v1105_v48 = vld [vmem:[%s1383_s26 + $0x168] sm:$0xf0]  ;;  %v940_v52 = vor.u32 %v1128_v44, %v937_v45  ;;  %v1044_v53 = vor.u32 %v1154_v43, %v1041_v46  ;;  %v1152_v55 = vld [vmem:[%s1383_s26 + $0xd4] sm:$0xf]  ;;  %v1126_v56 = vld [vmem:[%s1383_s26 + $0x4] sm:$0xf] }
  0x4d   : > { %645 = vmatpush.bf16.msra.mxu3 %v956_v19  ;;  %v1108_v54 = vor.u32 %v1170_v47, %v1105_v48  ;;  %v929_v57 = vld [vmem:[%s1383_s26 + $0x8] sm:$0xf0]  ;;  %v1033_v58 = vld [vmem:[%s1383_s26 + $0xd8] sm:$0xf0]  ;;  %v1168_v59 = vld [vmem:[%s1383_s26 + $0x154] sm:$0xf] }
  0x4e   : > { %605 = vmatpush.bf16.msra.mxu0 %v936_v15  ;;  %v1097_v60 = vld [vmem:[%s1383_s26 + $0x158] sm:$0xf0]  ;;  %v932_v61 = vor.u32 %v1126_v56, %v929_v57  ;;  %v1036_v62 = vor.u32 %v1152_v55, %v1033_v58  ;;  %v1150_v0 = vld [vmem:[%s1383_s26 + $0xc4] sm:$0xf]  ;;  %v1025_v1 = vld [vmem:[%s1383_s26 + $0xc8] sm:$0xf0] }
  0x4f   : > { %619 = vmatpush.bf16.msra.mxu1 %v1000_v20  ;;  %v1100_v63 = vor.u32 %v1168_v59, %v1097_v60  ;;  %v1166_v2 = vld [vmem:[%s1383_s26 + $0x144] sm:$0xf]  ;;  %v1089_v3 = vld [vmem:[%s1383_s26 + $0x148] sm:$0xf0]  ;;  %v1028_v4 = vor.u32 %v1150_v0, %v1025_v1  ;;  %v1148_v6 = vld [vmem:[%s1383_s26 + $0xb4] sm:$0xf] }
  0x50   : > { %633 = vmatpush.bf16.msra.mxu2 %v1064_v21  ;;  %v1092_v5 = vor.u32 %v1166_v2, %v1089_v3  ;;  %v1017_v7 = vld [vmem:[%s1383_s26 + $0xb8] sm:$0xf0]  ;;  %v1164_v8 = vld [vmem:[%s1383_s26 + $0x134] sm:$0xf]  ;;  %v1146_v12 = vld [vmem:[%s1383_s26 + $0xa4] sm:$0xf] }
  0x51   : > { %646 = vmatpush.bf16.msra.mxu3 %v948_v33  ;;  %v1081_v9 = vld [vmem:[%s1383_s26 + $0x138] sm:$0xf0]  ;;  %v1020_v10 = vor.u32 %v1148_v6, %v1017_v7  ;;  %v1009_v13 = vld [vmem:[%s1383_s26 + $0xa8] sm:$0xf0]  ;;  %v1162_v14 = vld [vmem:[%s1383_s26 + $0x124] sm:$0xf] }
  0x52   : > { %606 = vmatpush.bf16.msra.mxu0 %v928_v31  ;;  %v1084_v11 = vor.u32 %v1164_v8, %v1081_v9  ;;  %v1073_v15 = vld [vmem:[%s1383_s26 + $0x128] sm:$0xf0]  ;;  %v1012_v16 = vor.u32 %v1146_v12, %v1009_v13  ;;  %v1144_v18 = vld [vmem:[%s1383_s26 + $0x94] sm:$0xf]  ;;  %v1001_v19 = vld [vmem:[%s1383_s26 + $0x98] sm:$0xf0] }
  0x53   : > { %620 = vmatpush.bf16.msra.mxu1 %v992_v36  ;;  %v1076_v17 = vor.u32 %v1162_v14, %v1073_v15  ;;  %v1160_v20 = vld [vmem:[%s1383_s26 + $0x114] sm:$0xf]  ;;  %v1065_v21 = vld [vmem:[%s1383_s26 + $0x118] sm:$0xf0]  ;;  %v1004_v22 = vor.u32 %v1144_v18, %v1001_v19  ;;  %v1142_v24 = vld [vmem:[%s1383_s26 + $0x84] sm:$0xf] }
  0x54   : > { %634 = vmatpush.bf16.msra.mxu2 %v1056_v37  ;;  %v1068_v23 = vor.u32 %v1160_v20, %v1065_v21  ;;  %v993_v25 = vld [vmem:[%s1383_s26 + $0x88] sm:$0xf0]  ;;  %v1158_v26 = vld [vmem:[%s1383_s26 + $0x104] sm:$0xf]  ;;  %v287_v33 = vld [vmem:[#allocation2 + $0x10] sm:$0xff]  ;;  %p1117_p13 = scmp.ne.s32.totalorder %s1276_s14, 5 }
  0x55   : > { %607 = vmatmul.bf16.vlgmr.msra.gmra.mxu0 %v916_v49  ;;  %647 = vmatpush.bf16.msra.mxu3 %v940_v52  ;;  %v1057_v27 = vld [vmem:[%s1383_s26 + $0x108] sm:$0xf0]  ;;  %v996_v28 = vor.u32 %v1142_v24, %v993_v25  ;;  %v289_v40 = vld [vmem:[#allocation2 + $0x18] sm:$0xff]  ;;  %v288_v48 = vld [vmem:[#allocation2] sm:$0xff] }
  0x56   : > { %655 = vmatpush.bf16.msrb.mxu0 %v1052_v41  ;;  %621 = vmatmul.bf16.vlgmr.msra.gmra.mxu1 %v1476_v51  ;;  %v1060_v29 = vor.u32 %v1158_v26, %v1057_v27 }
  0x57   : > { %669 = vmatpush.bf16.msrb.mxu1 %v1116_v42  ;;  %635 = vmatmul.bf16.vlgmr.msra.gmra.mxu2 %v1474_v50 }
  0x59   : > { %648 = vmatpush.bf16.msra.mxu3 %v932_v61 }
  0x5a   : > { %656 = vmatpush.bf16.msrb.mxu0 %v1044_v53 }
  0x5b   : > { %670 = vmatpush.bf16.msrb.mxu1 %v1108_v54  ;;  %v290_v54 = vld [vmem:[#allocation2 + $0x8] sm:$0xff] }
  0x5c   : > { %649 = vmatmul.bf16.vlgmr.msra.gmra.mxu3 %v916_v49 }
  0x5e   : > { %657 = vmatpush.bf16.msrb.mxu0 %v1036_v62 }
  0x5f   : > { %671 = vmatpush.bf16.msrb.mxu1 %v1100_v63 }
  0x62   : > { %658 = vmatpush.bf16.msrb.mxu0 %v1028_v4 }
  0x63   : > { %672 = vmatpush.bf16.msrb.mxu1 %v1092_v5 }
  0x66   : > { %659 = vmatpush.bf16.msrb.mxu0 %v1020_v10 }
  0x67   : > { %673 = vmatpush.bf16.msrb.mxu1 %v1084_v11 }
  0x6a   : > { %660 = vmatpush.bf16.msrb.mxu0 %v1012_v16 }
  0x6b   : > { %674 = vmatpush.bf16.msrb.mxu1 %v1076_v17 }
  0x6e   : > { %661 = vmatpush.bf16.msrb.mxu0 %v1004_v22 }
  0x6f   : > { %675 = vmatpush.bf16.msrb.mxu1 %v1068_v23 }
  0x72   : > { %662 = vmatpush.bf16.msrb.mxu0 %v996_v28 }
  0x73   : > { %676 = vmatpush.bf16.msrb.mxu1 %v1060_v29 }
  0x75   : > { %663 = vmatmul.bf16.vlgmr.msrb.gmra.mxu0 %v1476_v51 }
  0x76   : > { %677 = vmatmul.bf16.vlgmr.msrb.gmra.mxu1 %v1474_v50 }
  0xd2   : > { %v608_v30 = vpop.f32.mrf.mxu0 }
  0xd3   : > { %v622_v31 = vpop.f32.mrf.mxu1 }
  0xd4   : > { %v623_v32 = vadd.f32 %v622_v31, %v608_v30 }
  0xda   : > { %v636_v34 = vpop.f32.mrf.mxu2  ;;  %v610_v36 = vpop.f32.mrf.mxu0 }
  0xdb   : > { %v637_v35 = vadd.f32 %v636_v34, %v623_v32  ;;  %v624_v37 = vpop.f32.mrf.mxu1 }
  0xdc   : > { %v625_v39 = vadd.f32 %v624_v37, %v610_v36 }
  0xdd   : > { %v683_v38 = vadd.f32 %v637_v35, %v287_v33 }
  0xdf   : > { %687 = vst [vmem:[#allocation2 + $0x10] sm:$0xff] %v683_v38  ;;  %v650_v44 = vpop.f32.mrf.mxu3 }
  0xe2   : > { %v638_v41 = vpop.f32.mrf.mxu2 }
  0xe3   : > { %v639_v42 = vadd.f32 %v638_v41, %v625_v39 }
  0xe5   : > { %v685_v43 = vadd.f32 %v639_v42, %v289_v40 }
  0xe7   : > { %689 = vst [vmem:[#allocation2 + $0x18] sm:$0xff] %v685_v43  ;;  %v652_v51 = vpop.f32.mrf.mxu3 }
  0xf2   : > { %v664_v45 = vpop.f32.mrf.mxu0 }
  0xf3   : > { %v678_v46 = vpop.f32.mrf.mxu1  ;;  %v665_v47 = vadd.f32 %v664_v45, %v650_v44 }
  0xf5   : > { %v679_v49 = vadd.f32 %v678_v46, %v665_v47 }
  0xf7   : > { %v684_v50 = vadd.f32 %v679_v49, %v288_v48 }
  0xf9   : > { %688 = vst [vmem:[#allocation2] sm:$0xff] %v684_v50 }
  0xfa   : > { %v666_v52 = vpop.f32.mrf.mxu0 }
  0xfb   : > { %v667_v53 = vadd.f32 %v666_v52, %v652_v51  ;;  %v680_v55 = vpop.f32.mrf.mxu1 }
  0xfd   : > { %v681_v56 = vadd.f32 %v680_v55, %v667_v53  ;;  %694 = sbr.rel (%p1117_p13) target bundleno = 315 (0x13b), region = 66 }
  0xff   : > { %v686_v57 = vadd.f32 %v681_v56, %v290_v54 }
 0x101   : > { %690 = vst [vmem:[#allocation2 + $0x8] sm:$0xff] %v686_v57 }
 0x102   : > { %v1509_v58 = vld [vmem:[#allocation2 + $0x10] sm:$0xff]  ;;  %v1511_v59 = vld [vmem:[#allocation2] sm:$0xff]  ;;  %v1513_v60 = vld [vmem:[#allocation2 + $0x18] sm:$0xff] }
 0x103   : > { %v699_v62 = vadd.f32 %v1513_v60, %v1509_v58  ;;  %v715_v63 = vmul.f32 %v1509_v58, %v1509_v58  ;;  %v716_v0 = vmul.f32 %v1511_v59, %v1511_v59  ;;  %v717_v1 = vmul.f32 %v1513_v60, %v1513_v60  ;;  %v771_v51 = vld [vmem:[%s1388_s30] sm:$0xff]  ;;  %v772_v52 = vld [vmem:[%s1388_s30 + $0x8] sm:$0xff] }
 0x105   : > { %v700_v4 = vrot.slane %v699_v62, 4  ;;  %v719_v5 = vadd.f32 %v717_v1, %v715_v63  ;;  %v775_v1 = vunpack.c.l.bf16 %v772_v52 }
 0x107   : > { %v701_v8 = vadd.f32 %v700_v4, %v699_v62  ;;  %v720_v9 = vrot.slane %v719_v5, 4  ;;  %v776_v4 = vunpack.c.h.bf16 %v772_v52 }
 0x108   : > { %v1515_v61 = vld [vmem:[#allocation2 + $0x8] sm:$0xff] }
 0x109   : > { %v706_v2 = vadd.f32 %v1515_v61, %v1511_v59  ;;  %v718_v3 = vmul.f32 %v1515_v61, %v1515_v61  ;;  %v702_v12 = vrot.slane %v701_v8, 2  ;;  %v721_v13 = vadd.f32 %v720_v9, %v719_v5 }
 0x10b   : > { %v707_v6 = vrot.slane %v706_v2, 4  ;;  %v726_v7 = vadd.f32 %v718_v3, %v716_v0  ;;  %v703_v16 = vadd.f32 %v702_v12, %v701_v8  ;;  %v722_v17 = vrot.slane %v721_v13, 2 }
 0x10c   : > { %v773_v0 = vunpack.c.l.bf16 %v771_v51  ;;  %v774_v3 = vunpack.c.h.bf16 %v771_v51 }
 0x10d   : > { %v708_v10 = vadd.f32 %v707_v6, %v706_v2  ;;  %v727_v11 = vrot.slane %v726_v7, 4  ;;  %v704_v20 = vrot.slane %v703_v16, 1  ;;  %v723_v21 = vadd.f32 %v722_v17, %v721_v13 }
 0x10f   : > { %v709_v14 = vrot.slane %v708_v10, 2  ;;  %v728_v15 = vadd.f32 %v727_v11, %v726_v7  ;;  %v705_v24 = vadd.f32 %v704_v20, %v703_v16  ;;  %v724_v25 = vrot.slane %v723_v21, 1 }
 0x111   : > { %v710_v18 = vadd.f32 %v709_v14, %v708_v10  ;;  %v729_v19 = vrot.slane %v728_v15, 2  ;;  %v713_v28 = vmul.f32 0.0625, %v705_v24  ;;  %v725_v29 = vadd.f32 %v724_v25, %v723_v21 }
 0x113   : > { %v711_v22 = vrot.slane %v710_v18, 1  ;;  %v730_v23 = vadd.f32 %v729_v19, %v728_v15  ;;  %v733_v32 = vmul.f32 0.0625, %v725_v29  ;;  %v735_v33 = vmul.f32 %v713_v28, %v713_v28 }
 0x114   : > { %v741_v53 = vsub.f32 %v1509_v58, %v713_v28  ;;  %v743_v55 = vsub.f32 %v1513_v60, %v713_v28 }
 0x115   : > { %v712_v26 = vadd.f32 %v711_v22, %v710_v18  ;;  %v731_v27 = vrot.slane %v730_v23, 1  ;;  %v737_v36 = vsub.f32 %v733_v32, %v735_v33 }
 0x117   : > { %v714_v30 = vmul.f32 0.0625, %v712_v26  ;;  %v732_v31 = vadd.f32 %v731_v27, %v730_v23  ;;  %v739_v38 = vmax.f32 %v737_v36, 0.0 }
 0x119   : > { %v734_v34 = vmul.f32 0.0625, %v732_v31  ;;  %v736_v35 = vmul.f32 %v714_v30, %v714_v30  ;;  %v745_v40 = vadd.f32 1e-05, %v739_v38  ;;  %v742_v56 = vsub.f32 %v1511_v59, %v714_v30 }
 0x11a   : > { %v744_v62 = vsub.f32 %v1515_v61, %v714_v30 }
 0x11b   : > { %v738_v37 = vsub.f32 %v734_v34, %v736_v35  ;;  %1234 = vrsqrt.f32 %v745_v40  ;;  %vm753_vm0 = vweird.f32 %v745_v40 }
 0x11d   : > { %v740_v39 = vmax.f32 %v738_v37, 0.0 }
 0x11f   : > { %v746_v41 = vadd.f32 1e-05, %v740_v39 }
 0x121   : > { %1236 = vrsqrt.f32 %v746_v41  ;;  %v1235_v42 = vpop.eup %1234  ;;  %vm763_vm2 = vweird.f32 %v746_v41 }
 0x122   : > { %v748_v44 = vmul.f32 %v1235_v42, %v745_v40  ;;  %vm754_vm1 = vweird.f32 %v1235_v42 }
 0x123   : > { %vm755_vm4 = vmor %vm753_vm0, %vm754_vm1 }
 0x124   : > { %v749_v46 = vmul.f32 %v1235_v42, %v748_v44 }
 0x126   : > { %v750_v48 = vmul.f32 0.5, %v749_v46 }
 0x127   : > { %v1237_v43 = vpop.eup %1236 }
 0x128   : > { %v758_v45 = vmul.f32 %v1237_v43, %v746_v41  ;;  %vm764_vm3 = vweird.f32 %v1237_v43  ;;  %v751_v50 = vsub.f32 1.5, %v750_v48 }
 0x129   : > { %vm765_vm5 = vmor %vm763_vm2, %vm764_vm3 }
 0x12a   : > { %v759_v47 = vmul.f32 %v1237_v43, %v758_v45  ;;  %v752_v57 = vmul.f32 %v1235_v42, %v751_v50 }
 0x12c   : > { %v760_v49 = vmul.f32 0.5, %v759_v47  ;;  %v756_v2 = vsel %vm755_vm4, %v1235_v42, %v752_v57 }
 0x12d   : > { %v767_v58 = vmul.f32 %v756_v2, %v741_v53  ;;  %v769_v6 = vmul.f32 %v756_v2, %v743_v55 }
 0x12e   : > { %v761_v54 = vsub.f32 1.5, %v760_v49 }
 0x12f   : > { %v777_v60 = vadd.f32 %v773_v0, %v767_v58  ;;  %v779_v9 = vadd.f32 %v775_v1, %v769_v6 }
 0x130   : > { %v762_v63 = vmul.f32 %v1237_v43, %v761_v54 }
 0x132   : > { %v766_v5 = vsel %vm765_vm5, %v1237_v43, %v762_v63 }
 0x133   : > { %v768_v7 = vmul.f32 %v766_v5, %v742_v56  ;;  %v770_v8 = vmul.f32 %v766_v5, %v744_v62 }
 0x135   : > { %v778_v59 = vadd.f32 %v774_v3, %v768_v7  ;;  %v780_v10 = vadd.f32 %v776_v4, %v770_v8 }
 0x137   : > { %v781_v11 = vpack.c.bf16 %v778_v59, %v777_v60  ;;  %v782_v12 = vpack.c.bf16 %v780_v10, %v779_v9 }
 0x139   : > { %783 = vst [vmem:[%s1393_s15] sm:$0xff] %v781_v11 }
 0x13a   : > { %784 = vst [vmem:[%s1393_s15 + $0x8] sm:$0xff] %v782_v12 }
 0x13b PF: > { %s13_s18 = sadd.s32 1, %s1292_s18   ;;  %s1562_s12 = smov %s1272_s13 }
 0x13c   : > { %p10_p0 = scmp.ge.s32.totalorder %s13_s18, 14   ;;  %s1563_s13 = smov %s1366_s25 }
 0x13d   : > { %s1564_s14 = smov %s1284_s16  ;;  %s1565_s15 = smov %s1288_s17 }
 0x13e   : > { %s1566_s16 = smov %s1569_s19  ;;  %s1567_s17 = smov %s1573_s20 }
 0x13f   :  { %12 = sbr.rel (!%p10_p0) target bundleno = 4 (0x4), region = 113 }

// kernel: generator_forward.35
= control target key start
LH: loop header
LB: loop body
LE: loop exit
PB: predicated region body
PF: predicated region fallthrough
CT: control target
= control target key end

     0   :  { %s1236_s9 = smov 0   ;;  %s1238_s10 = smov 0   ;;  %s1472_s0 = inlined_call_operand.vmem [shape: bf16[32,2304], index: 0, kind: input, shape index: {}]   ;;  %s1473_s1 = inlined_call_operand.vmem [shape: bf16[2304,256], index: 1, kind: input, shape index: {}]   ;;  %s1474_s2 = inlined_call_operand.vmem [shape: bf16[32,256], index: 2, kind: output, shape index: {}]  }
   0x1   :  { %s1240_s11 = smov 0   ;;  %s1242_s12 = smov 0  }
   0x2   :  { %s1244_s13 = smov 0   ;;  %s1246_s14 = smov 0  }
   0x3   :  { %s1248_s15 = smov 0  }
   0x4 LB: > { %s21_s16 = sadd.s32 1, %s1210_s13  ;;  %s24_s17 = sadd.s32 1, %s1214_s14  ;;  %s1218_s15 = sphi %s1248_s15, %s12_s15   ;;  %s1214_s14 = sphi %s1246_s14, %s1480_s14   ;;  %s1210_s13 = sphi %s1244_s13, %s1479_s13   ;;  %s1206_s12 = sphi %s1242_s12, %s1478_s12   ;;  %s1202_s11 = sphi %s1240_s11, %s1477_s11   ;;  %s1198_s10 = sphi %s1238_s10, %s1476_s10   ;;  %s1194_s9 = sphi %s1236_s9, %s1475_s9  }
   0x5   : > { %p22_p0 = scmp.ge.s32.totalorder %s21_s16, 6  ;;  %p40_p1 = scmp.ne.s32.totalorder %s1198_s10, %s1194_s9 }
   0x6   : > { %p41_p2 = scmp.eq.s32.totalorder %s1218_s15, 0  ;;  %s33_s21 = sadd.s32 1, %s1198_s10 }
   0x7   : > { %s1482_s16 = smov (%p22_p0, %s21_s16), 0  ;;  %s1484_s17 = smov (!%p22_p0, %s24_s17), %s1214_s14 }
   0x8   : > { %p42_p3 = por %p41_p2, %p40_p1  ;;  %p26_p4 = scmp.ge.s32.totalorder %s1484_s17, 2 }
   0x9   : > { %s29_s18 = ssub.s32 %s1210_s13, %s1482_s16  ;;  %p825_p6 = scmp.ge.s32.totalorder %s1218_s15, 12 }
   0xa   : > { %s1486_s17 = smov (%p26_p4, %s1484_s17), 0 }
   0xb   : > { %s28_s19 = ssub.s32 %s1214_s14, %s1486_s17  ;;  %118 = sbr.rel (%p825_p6) target bundleno = 29 (0x1d), region = 16 }
   0xc   : > { %s30_s20 = sor.u32 %s29_s18, %s28_s19 }
   0xd   : > { %p31_p5 = scmp.eq.s32.totalorder %s30_s20, 0 }
   0xf   : > { %s1287_s22 = scalar_select %p31_p5, %s1198_s10, %s33_s21  }
  0x10   : > { %121 = sbr.rel (!%p42_p3) target bundleno = 29 (0x1d), region = 20  ;;  %s123_s23 = sand.u32 (%p42_p3), 1, %s1198_s10  }
  0x11   : > { %s127_s24 = smul.u32 (%p42_p3), 3, %s1210_s13 }
  0x12   : > { %s1100_s25 = smul.u32 (%p42_p3), 24, %s123_s23 }
  0x13   : > { %s1101_s26 = smul.u32 (%p42_p3), 36, %s1214_s14 }
  0x14   : > { %s125_s4 = scalar_lea.vmem (%p42_p3), [#allocation3], %s1100_s25 }
  0x15   : > { %s129_s27 = sadd.s32 %s1101_s26, %s127_s24 }
  0x16   : > { %s828_s28 = sshll.u32 %s129_s27, 2 }
  0x17   : > { %s131_s3 = scalar_lea.vmem %s1472_s0, %s828_s28 }
  0x18   : > { %v146_v0 = vld [vmem:[%s131_s3] sm:$0xff]  ;;  %v148_v1 = vld [vmem:[%s131_s3 + $0x48] sm:$0xff]  ;;  %v831_v3 = vld [vmem:[%s131_s3 + $0x50] sm:$0xf] }
  0x19   : > { %v829_v2 = vld [vmem:[%s131_s3 + $0x8] sm:$0xf]  ;;  %147 = vst [vmem:[%s125_s4] sm:$0xff] %v146_v0 }
  0x1a   : > { %149 = vst [vmem:[%s125_s4 + $0xc] sm:$0xff] %v148_v1 }
  0x1b   : > { %830 = vst [vmem:[%s125_s4 + $0x8] sm:$0xf] %v829_v2 }
  0x1c   : > { %832 = vst [vmem:[%s125_s4 + $0x14] sm:$0xf] %v831_v3 }
  0x1d PF: > { %p833_p7 = scmp.ge.s32.totalorder %s1218_s15, 1  ;;  %p176_p8 = scmp.lt.s32.totalorder %s1218_s15, 13 }
  0x1f   : > { %p177_p9 = pnand %p833_p7, %p176_p8 }
  0x20   : > { %s183_s5 = sand.u32 (!%p177_p9), 1, %s1194_s9   ;;  %s213_s6 = smul.u32 (!%p177_p9), 48, %s1202_s11 }
  0x21   : > { %180 = sbr.rel (%p177_p9) target bundleno = 315 (0x13b), region = 50  ;;  %s836_s8 = sshll.u32 (!%p177_p9), %s1206_s12, 1 }
  0x22   : > { %s1102_s7 = smul.u32 (!%p177_p9), 24, %s183_s5  ;;  %p214_p10 = scmp.lt.s32.totalorder (!%p177_p9), %s213_s6, 287 }
  0x23   : > { %p221_p11 = scmp.lt.s32.totalorder (!%p177_p9), %s836_s8, 3  ;;  %p839_p12 = scmp.ne.s32.totalorder (!%p177_p9), %s1202_s11, 0 }
  0x24   : > { %s1311_s9 = scalar_lea.vmem (!%p177_p9), [#allocation3], %s1102_s7 }
  0x26   : > { %s1488_s6 = smov (!%p214_p10, %s213_s6), 287  ;;  %s1490_s8 = smov (!%p221_p11, %s836_s8), 3 }
  0x27   : > { %s1047_s18 = sshll.u32 %s1488_s6, 3  ;;  %s1048_s23 = sshll.u32 %s1490_s8, 3 }
  0x28   : > { %s1304_s21 = scalar_lea.vmem %s1473_s1, %s1047_s18  ;;  %s1309_s26 = scalar_lea.vmem %s1474_s2, %s1048_s23 }
  0x29   : > { %230 = sbr.rel (%p839_p12) target bundleno = 51 (0x33), region = 58 }
  0x2e   : > { %v1220_v4 = vmov 0.0  }
  0x2f   : > { %231 = vst [vmem:[#allocation2 + $0x10] sm:$0xff] %v1220_v4 }
  0x30   : > { %232 = vst [vmem:[#allocation2] sm:$0xff] %v1220_v4 }
  0x31   : > { %233 = vst [vmem:[#allocation2 + $0x18] sm:$0xff] %v1220_v4 }
  0x32   : > { %234 = vst [vmem:[#allocation2 + $0x8] sm:$0xff] %v1220_v4 }
  0x33 PF: > { %v910_v5 = vld [vmem:[%s1304_s21 + $0x70] sm:$0xf]  ;;  %v1067_v6 = vld [vmem:[%s1304_s21 + $0x74] sm:$0xf0]  ;;  %v902_v14 = vld [vmem:[%s1304_s21 + $0x60] sm:$0xf] }
  0x34   : > { %v974_v7 = vld [vmem:[%s1304_s21 + $0xf0] sm:$0xf]  ;;  %v911_v8 = vor.u32 %v1067_v6, %v910_v5  ;;  %v1083_v9 = vld [vmem:[%s1304_s21 + $0xf4] sm:$0xf0]  ;;  %v1065_v15 = vld [vmem:[%s1304_s21 + $0x64] sm:$0xf0] }
  0x35   : > { %v1038_v10 = vld [vmem:[%s1304_s21 + $0x170] sm:$0xf]  ;;  %v1099_v11 = vld [vmem:[%s1304_s21 + $0x174] sm:$0xf0]  ;;  %v975_v12 = vor.u32 %v1083_v9, %v974_v7  ;;  %v966_v16 = vld [vmem:[%s1304_s21 + $0xe0] sm:$0xf]  ;;  %v903_v17 = vor.u32 %v1065_v15, %v902_v14 }
  0x36   : > { %v1039_v13 = vor.u32 %v1099_v11, %v1038_v10  ;;  %547 = vmatpush.bf16.msra.mxu0 %v911_v8  ;;  %v1081_v18 = vld [vmem:[%s1304_s21 + $0xe4] sm:$0xf0]  ;;  %v1030_v19 = vld [vmem:[%s1304_s21 + $0x160] sm:$0xf]  ;;  %v894_v23 = vld [vmem:[%s1304_s21 + $0x50] sm:$0xf] }
  0x37   : > { %v1097_v20 = vld [vmem:[%s1304_s21 + $0x164] sm:$0xf0]  ;;  %561 = vmatpush.bf16.msra.mxu1 %v975_v12  ;;  %v967_v21 = vor.u32 %v1081_v18, %v966_v16  ;;  %v1063_v24 = vld [vmem:[%s1304_s21 + $0x54] sm:$0xf0]  ;;  %v958_v25 = vld [vmem:[%s1304_s21 + $0xd0] sm:$0xf] }
  0x38   : > { %575 = vmatpush.bf16.msra.mxu2 %v1039_v13  ;;  %v1031_v22 = vor.u32 %v1097_v20, %v1030_v19  ;;  %v1079_v26 = vld [vmem:[%s1304_s21 + $0xd4] sm:$0xf0]  ;;  %v1022_v27 = vld [vmem:[%s1304_s21 + $0x150] sm:$0xf]  ;;  %v895_v29 = vor.u32 %v1063_v24, %v894_v23  ;;  %v886_v30 = vld [vmem:[%s1304_s21 + $0x40] sm:$0xf] }
  0x39   : > { %v1095_v28 = vld [vmem:[%s1304_s21 + $0x154] sm:$0xf0]  ;;  %v1061_v31 = vld [vmem:[%s1304_s21 + $0x44] sm:$0xf0]  ;;  %v959_v32 = vor.u32 %v1079_v26, %v958_v25  ;;  %v950_v34 = vld [vmem:[%s1304_s21 + $0xc0] sm:$0xf] }
  0x3a   : > { %548 = vmatpush.bf16.msra.mxu0 %v903_v17  ;;  %v1023_v33 = vor.u32 %v1095_v28, %v1022_v27  ;;  %v1066_v35 = vld [vmem:[%s1304_s21 + $0x74] sm:$0xf]  ;;  %v912_v36 = vld [vmem:[%s1304_s21 + $0x78] sm:$0xf0]  ;;  %v1077_v37 = vld [vmem:[%s1304_s21 + $0xc4] sm:$0xf0]  ;;  %v887_v42 = vor.u32 %v1061_v31, %v886_v30 }
  0x3b   : > { %562 = vmatpush.bf16.msra.mxu1 %v967_v21  ;;  %v1014_v38 = vld [vmem:[%s1304_s21 + $0x140] sm:$0xf]  ;;  %v1093_v39 = vld [vmem:[%s1304_s21 + $0x144] sm:$0xf0]  ;;  %v915_v40 = vor.u32 %v1066_v35, %v912_v36  ;;  %v1064_v41 = vld [vmem:[%s1304_s21 + $0x64] sm:$0xf]  ;;  %v951_v46 = vor.u32 %v1077_v37, %v950_v34 }
  0x3c   : > { %576 = vmatpush.bf16.msra.mxu2 %v1031_v22  ;;  %v878_v43 = vld [vmem:[%s1304_s21 + $0x30] sm:$0xf]  ;;  %v1059_v44 = vld [vmem:[%s1304_s21 + $0x34] sm:$0xf0]  ;;  %v904_v45 = vld [vmem:[%s1304_s21 + $0x68] sm:$0xf0]  ;;  %v1015_v47 = vor.u32 %v1093_v39, %v1014_v38 }
  0x3d   : > { %589 = vmatpush.bf16.msra.mxu3 %v915_v40  ;;  %v942_v48 = vld [vmem:[%s1304_s21 + $0xb0] sm:$0xf]  ;;  %v1075_v49 = vld [vmem:[%s1304_s21 + $0xb4] sm:$0xf0]  ;;  %v907_v51 = vor.u32 %v1064_v41, %v904_v45  ;;  %v1062_v53 = vld [vmem:[%s1304_s21 + $0x54] sm:$0xf]  ;;  %v879_v55 = vor.u32 %v1059_v44, %v878_v43 }
  0x3e   : > { %549 = vmatpush.bf16.msra.mxu0 %v895_v29  ;;  %v1006_v50 = vld [vmem:[%s1304_s21 + $0x130] sm:$0xf]  ;;  %v1091_v52 = vld [vmem:[%s1304_s21 + $0x134] sm:$0xf0]  ;;  %v896_v54 = vld [vmem:[%s1304_s21 + $0x58] sm:$0xf0]  ;;  %v943_v59 = vor.u32 %v1075_v49, %v942_v48 }
  0x3f   : > { %563 = vmatpush.bf16.msra.mxu1 %v959_v32  ;;  %v870_v56 = vld [vmem:[%s1304_s21 + $0x20] sm:$0xf]  ;;  %v1057_v57 = vld [vmem:[%s1304_s21 + $0x24] sm:$0xf0]  ;;  %v899_v58 = vor.u32 %v1062_v53, %v896_v54  ;;  %v1007_v60 = vor.u32 %v1091_v52, %v1006_v50  ;;  %v1060_v62 = vld [vmem:[%s1304_s21 + $0x44] sm:$0xf] }
  0x40   : > { %577 = vmatpush.bf16.msra.mxu2 %v1023_v33  ;;  %v934_v61 = vld [vmem:[%s1304_s21 + $0xa0] sm:$0xf]  ;;  %v888_v63 = vld [vmem:[%s1304_s21 + $0x48] sm:$0xf0]  ;;  %v1073_v0 = vld [vmem:[%s1304_s21 + $0xa4] sm:$0xf0]  ;;  %v871_v3 = vor.u32 %v1057_v57, %v870_v56 }
  0x41   : > { %590 = vmatpush.bf16.msra.mxu3 %v907_v51  ;;  %v998_v1 = vld [vmem:[%s1304_s21 + $0x120] sm:$0xf]  ;;  %v1089_v2 = vld [vmem:[%s1304_s21 + $0x124] sm:$0xf0]  ;;  %v862_v4 = vld [vmem:[%s1304_s21 + $0x10] sm:$0xf]  ;;  %v891_v6 = vor.u32 %v1060_v62, %v888_v63  ;;  %v935_v7 = vor.u32 %v1073_v0, %v934_v61 }
  0x42   : > { %550 = vmatpush.bf16.msra.mxu0 %v887_v42  ;;  %v1055_v5 = vld [vmem:[%s1304_s21 + $0x14] sm:$0xf0]  ;;  %v999_v8 = vor.u32 %v1089_v2, %v998_v1  ;;  %v926_v9 = vld [vmem:[%s1304_s21 + $0x90] sm:$0xf]  ;;  %v1058_v10 = vld [vmem:[%s1304_s21 + $0x34] sm:$0xf] }
  0x43   : > { %564 = vmatpush.bf16.msra.mxu1 %v951_v46  ;;  %v880_v11 = vld [vmem:[%s1304_s21 + $0x38] sm:$0xf0]  ;;  %v1071_v12 = vld [vmem:[%s1304_s21 + $0x94] sm:$0xf0]  ;;  %v990_v13 = vld [vmem:[%s1304_s21 + $0x110] sm:$0xf]  ;;  %v863_v15 = vor.u32 %v1055_v5, %v862_v4 }
  0x44   : > { %578 = vmatpush.bf16.msra.mxu2 %v1015_v47  ;;  %v1087_v14 = vld [vmem:[%s1304_s21 + $0x114] sm:$0xf0]  ;;  %v854_v16 = vld [vmem:[%s1304_s21] sm:$0xf]  ;;  %v1053_v17 = vld [vmem:[%s1304_s21 + $0x4] sm:$0xf0]  ;;  %v883_v19 = vor.u32 %v1058_v10, %v880_v11  ;;  %v927_v20 = vor.u32 %v1071_v12, %v926_v9 }
  0x45   : > { %591 = vmatpush.bf16.msra.mxu3 %v899_v58  ;;  %v918_v18 = vld [vmem:[%s1304_s21 + $0x80] sm:$0xf]  ;;  %v991_v21 = vor.u32 %v1087_v14, %v990_v13  ;;  %v1069_v22 = vld [vmem:[%s1304_s21 + $0x84] sm:$0xf0]  ;;  %v1056_v23 = vld [vmem:[%s1304_s21 + $0x24] sm:$0xf]  ;;  %v855_v31 = vor.u32 %v1053_v17, %v854_v16 }
  0x46   : > { %551 = vmatpush.bf16.msra.mxu0 %v879_v55  ;;  %v872_v24 = vld [vmem:[%s1304_s21 + $0x28] sm:$0xf0]  ;;  %v982_v25 = vld [vmem:[%s1304_s21 + $0x100] sm:$0xf]  ;;  %v1085_v26 = vld [vmem:[%s1304_s21 + $0x104] sm:$0xf0]  ;;  %v919_v36 = vor.u32 %v1069_v22, %v918_v18 }
  0x47   : > { %565 = vmatpush.bf16.msra.mxu1 %v943_v59  ;;  %v1082_v27 = vld [vmem:[%s1304_s21 + $0xf4] sm:$0xf]  ;;  %v976_v28 = vld [vmem:[%s1304_s21 + $0xf8] sm:$0xf0]  ;;  %v850_v32 = vld [vmem:[%s1311_s9 + $0x8] sm:$0xf]  ;;  %v875_v33 = vor.u32 %v1056_v23, %v872_v24  ;;  %v983_v37 = vor.u32 %v1085_v26, %v982_v25 }
  0x48   : > { %579 = vmatpush.bf16.msra.mxu2 %v1007_v60  ;;  %v1098_v29 = vld [vmem:[%s1304_s21 + $0x174] sm:$0xf]  ;;  %v1040_v30 = vld [vmem:[%s1304_s21 + $0x178] sm:$0xf0]  ;;  %v842_v34 = vld [vmem:[%s1311_s9] sm:$0xf]  ;;  %v979_v41 = vor.u32 %v1082_v27, %v976_v28 }
  0x49   : > { %592 = vmatpush.bf16.msra.mxu3 %v891_v6  ;;  %v1050_v35 = vld [vmem:[%s1311_s9 + $0x8] sm:$0xf0]  ;;  %v1051_v38 = vld [vmem:[%s1311_s9 + $0x10] sm:$0xf0]  ;;  %v1049_v39 = vld [vmem:[%s1311_s9 + $0x4] sm:$0xf]  ;;  %v1043_v42 = vor.u32 %v1098_v29, %v1040_v30 }
  0x4a   : > { %552 = vmatpush.bf16.msra.mxu0 %v871_v3  ;;  %v844_v40 = vld [vmem:[%s1311_s9 + $0xc] sm:$0xf0]  ;;  %v1080_v43 = vld [vmem:[%s1304_s21 + $0xe4] sm:$0xf]  ;;  %v1054_v44 = vld [vmem:[%s1304_s21 + $0x14] sm:$0xf]  ;;  %v843_v49 = vor.u32 %v1050_v35, %v842_v34  ;;  %v1390_v50 = vor.u32 %v1051_v38, %v850_v32 }
  0x4b   : > { %566 = vmatpush.bf16.msra.mxu1 %v935_v7  ;;  %v864_v45 = vld [vmem:[%s1304_s21 + $0x18] sm:$0xf0]  ;;  %v968_v46 = vld [vmem:[%s1304_s21 + $0xe8] sm:$0xf0]  ;;  %v1096_v47 = vld [vmem:[%s1304_s21 + $0x164] sm:$0xf]  ;;  %v1392_v51 = vor.u32 %v1049_v39, %v844_v40 }
  0x4c   : > { %580 = vmatpush.bf16.msra.mxu2 %v999_v8  ;;  %v1032_v48 = vld [vmem:[%s1304_s21 + $0x168] sm:$0xf0]  ;;  %v867_v52 = vor.u32 %v1054_v44, %v864_v45  ;;  %v971_v53 = vor.u32 %v1080_v43, %v968_v46  ;;  %v1078_v55 = vld [vmem:[%s1304_s21 + $0xd4] sm:$0xf]  ;;  %v1052_v56 = vld [vmem:[%s1304_s21 + $0x4] sm:$0xf] }
  0x4d   : > { %593 = vmatpush.bf16.msra.mxu3 %v883_v19  ;;  %v1035_v54 = vor.u32 %v1096_v47, %v1032_v48  ;;  %v856_v57 = vld [vmem:[%s1304_s21 + $0x8] sm:$0xf0]  ;;  %v960_v58 = vld [vmem:[%s1304_s21 + $0xd8] sm:$0xf0]  ;;  %v1094_v59 = vld [vmem:[%s1304_s21 + $0x154] sm:$0xf] }
  0x4e   : > { %553 = vmatpush.bf16.msra.mxu0 %v863_v15  ;;  %v1024_v60 = vld [vmem:[%s1304_s21 + $0x158] sm:$0xf0]  ;;  %v859_v61 = vor.u32 %v1052_v56, %v856_v57  ;;  %v963_v62 = vor.u32 %v1078_v55, %v960_v58  ;;  %v1076_v0 = vld [vmem:[%s1304_s21 + $0xc4] sm:$0xf]  ;;  %v952_v1 = vld [vmem:[%s1304_s21 + $0xc8] sm:$0xf0] }
  0x4f   : > { %567 = vmatpush.bf16.msra.mxu1 %v927_v20  ;;  %v1027_v63 = vor.u32 %v1094_v59, %v1024_v60  ;;  %v1092_v2 = vld [vmem:[%s1304_s21 + $0x144] sm:$0xf]  ;;  %v1016_v3 = vld [vmem:[%s1304_s21 + $0x148] sm:$0xf0]  ;;  %v955_v4 = vor.u32 %v1076_v0, %v952_v1  ;;  %v1074_v6 = vld [vmem:[%s1304_s21 + $0xb4] sm:$0xf] }
  0x50   : > { %581 = vmatpush.bf16.msra.mxu2 %v991_v21  ;;  %v1019_v5 = vor.u32 %v1092_v2, %v1016_v3  ;;  %v944_v7 = vld [vmem:[%s1304_s21 + $0xb8] sm:$0xf0]  ;;  %v1090_v8 = vld [vmem:[%s1304_s21 + $0x134] sm:$0xf]  ;;  %v1072_v12 = vld [vmem:[%s1304_s21 + $0xa4] sm:$0xf] }
  0x51   : > { %594 = vmatpush.bf16.msra.mxu3 %v875_v33  ;;  %v1008_v9 = vld [vmem:[%s1304_s21 + $0x138] sm:$0xf0]  ;;  %v947_v10 = vor.u32 %v1074_v6, %v944_v7  ;;  %v936_v13 = vld [vmem:[%s1304_s21 + $0xa8] sm:$0xf0]  ;;  %v1088_v14 = vld [vmem:[%s1304_s21 + $0x124] sm:$0xf] }
  0x52   : > { %554 = vmatpush.bf16.msra.mxu0 %v855_v31  ;;  %v1011_v11 = vor.u32 %v1090_v8, %v1008_v9  ;;  %v1000_v15 = vld [vmem:[%s1304_s21 + $0x128] sm:$0xf0]  ;;  %v939_v16 = vor.u32 %v1072_v12, %v936_v13  ;;  %v1070_v18 = vld [vmem:[%s1304_s21 + $0x94] sm:$0xf]  ;;  %v928_v19 = vld [vmem:[%s1304_s21 + $0x98] sm:$0xf0] }
  0x53   : > { %568 = vmatpush.bf16.msra.mxu1 %v919_v36  ;;  %v1003_v17 = vor.u32 %v1088_v14, %v1000_v15  ;;  %v1086_v20 = vld [vmem:[%s1304_s21 + $0x114] sm:$0xf]  ;;  %v992_v21 = vld [vmem:[%s1304_s21 + $0x118] sm:$0xf0]  ;;  %v931_v22 = vor.u32 %v1070_v18, %v928_v19  ;;  %v1068_v24 = vld [vmem:[%s1304_s21 + $0x84] sm:$0xf] }
  0x54   : > { %582 = vmatpush.bf16.msra.mxu2 %v983_v37  ;;  %v995_v23 = vor.u32 %v1086_v20, %v992_v21  ;;  %v920_v25 = vld [vmem:[%s1304_s21 + $0x88] sm:$0xf0]  ;;  %v1084_v26 = vld [vmem:[%s1304_s21 + $0x104] sm:$0xf]  ;;  %v235_v33 = vld [vmem:[#allocation2 + $0x10] sm:$0xff]  ;;  %p1044_p13 = scmp.ne.s32.totalorder %s1202_s11, 5 }
  0x55   : > { %555 = vmatmul.bf16.vlgmr.msra.gmra.mxu0 %v843_v49  ;;  %595 = vmatpush.bf16.msra.mxu3 %v867_v52  ;;  %v984_v27 = vld [vmem:[%s1304_s21 + $0x108] sm:$0xf0]  ;;  %v923_v28 = vor.u32 %v1068_v24, %v920_v25  ;;  %v237_v40 = vld [vmem:[#allocation2 + $0x18] sm:$0xff]  ;;  %v236_v48 = vld [vmem:[#allocation2] sm:$0xff] }
  0x56   : > { %603 = vmatpush.bf16.msrb.mxu0 %v979_v41  ;;  %569 = vmatmul.bf16.vlgmr.msra.gmra.mxu1 %v1392_v51  ;;  %v987_v29 = vor.u32 %v1084_v26, %v984_v27 }
  0x57   : > { %617 = vmatpush.bf16.msrb.mxu1 %v1043_v42  ;;  %583 = vmatmul.bf16.vlgmr.msra.gmra.mxu2 %v1390_v50 }
  0x59   : > { %596 = vmatpush.bf16.msra.mxu3 %v859_v61 }
  0x5a   : > { %604 = vmatpush.bf16.msrb.mxu0 %v971_v53 }
  0x5b   : > { %618 = vmatpush.bf16.msrb.mxu1 %v1035_v54  ;;  %v238_v54 = vld [vmem:[#allocation2 + $0x8] sm:$0xff] }
  0x5c   : > { %597 = vmatmul.bf16.vlgmr.msra.gmra.mxu3 %v843_v49 }
  0x5e   : > { %605 = vmatpush.bf16.msrb.mxu0 %v963_v62 }
  0x5f   : > { %619 = vmatpush.bf16.msrb.mxu1 %v1027_v63 }
  0x62   : > { %606 = vmatpush.bf16.msrb.mxu0 %v955_v4 }
  0x63   : > { %620 = vmatpush.bf16.msrb.mxu1 %v1019_v5 }
  0x66   : > { %607 = vmatpush.bf16.msrb.mxu0 %v947_v10 }
  0x67   : > { %621 = vmatpush.bf16.msrb.mxu1 %v1011_v11 }
  0x6a   : > { %608 = vmatpush.bf16.msrb.mxu0 %v939_v16 }
  0x6b   : > { %622 = vmatpush.bf16.msrb.mxu1 %v1003_v17 }
  0x6e   : > { %609 = vmatpush.bf16.msrb.mxu0 %v931_v22 }
  0x6f   : > { %623 = vmatpush.bf16.msrb.mxu1 %v995_v23 }
  0x72   : > { %610 = vmatpush.bf16.msrb.mxu0 %v923_v28 }
  0x73   : > { %624 = vmatpush.bf16.msrb.mxu1 %v987_v29 }
  0x75   : > { %611 = vmatmul.bf16.vlgmr.msrb.gmra.mxu0 %v1392_v51 }
  0x76   : > { %625 = vmatmul.bf16.vlgmr.msrb.gmra.mxu1 %v1390_v50 }
  0xd2   : > { %v556_v30 = vpop.f32.mrf.mxu0 }
  0xd3   : > { %v570_v31 = vpop.f32.mrf.mxu1 }
  0xd4   : > { %v571_v32 = vadd.f32 %v570_v31, %v556_v30 }
  0xda   : > { %v584_v34 = vpop.f32.mrf.mxu2  ;;  %v558_v36 = vpop.f32.mrf.mxu0 }
  0xdb   : > { %v585_v35 = vadd.f32 %v584_v34, %v571_v32  ;;  %v572_v37 = vpop.f32.mrf.mxu1 }
  0xdc   : > { %v573_v39 = vadd.f32 %v572_v37, %v558_v36 }
  0xdd   : > { %v631_v38 = vadd.f32 %v585_v35, %v235_v33 }
  0xdf   : > { %635 = vst [vmem:[#allocation2 + $0x10] sm:$0xff] %v631_v38  ;;  %v598_v44 = vpop.f32.mrf.mxu3 }
  0xe2   : > { %v586_v41 = vpop.f32.mrf.mxu2 }
  0xe3   : > { %v587_v42 = vadd.f32 %v586_v41, %v573_v39 }
  0xe5   : > { %v633_v43 = vadd.f32 %v587_v42, %v237_v40 }
  0xe7   : > { %637 = vst [vmem:[#allocation2 + $0x18] sm:$0xff] %v633_v43  ;;  %v600_v51 = vpop.f32.mrf.mxu3 }
  0xf2   : > { %v612_v45 = vpop.f32.mrf.mxu0 }
  0xf3   : > { %v626_v46 = vpop.f32.mrf.mxu1  ;;  %v613_v47 = vadd.f32 %v612_v45, %v598_v44 }
  0xf5   : > { %v627_v49 = vadd.f32 %v626_v46, %v613_v47 }
  0xf7   : > { %v632_v50 = vadd.f32 %v627_v49, %v236_v48 }
  0xf9   : > { %636 = vst [vmem:[#allocation2] sm:$0xff] %v632_v50 }
  0xfa   : > { %v614_v52 = vpop.f32.mrf.mxu0 }
  0xfb   : > { %v615_v53 = vadd.f32 %v614_v52, %v600_v51  ;;  %v628_v55 = vpop.f32.mrf.mxu1 }
  0xfd   : > { %v629_v56 = vadd.f32 %v628_v55, %v615_v53  ;;  %642 = sbr.rel (%p1044_p13) target bundleno = 315 (0x13b), region = 62 }
  0xff   : > { %v634_v57 = vadd.f32 %v629_v56, %v238_v54 }
 0x101   : > { %638 = vst [vmem:[#allocation2 + $0x8] sm:$0xff] %v634_v57 }
 0x102   : > { %v1425_v58 = vld [vmem:[#allocation2 + $0x10] sm:$0xff]  ;;  %v1427_v59 = vld [vmem:[#allocation2] sm:$0xff]  ;;  %v1429_v60 = vld [vmem:[#allocation2 + $0x18] sm:$0xff] }
 0x103   : > { %v647_v62 = vadd.f32 %v1429_v60, %v1425_v58  ;;  %v663_v63 = vmul.f32 %v1425_v58, %v1425_v58  ;;  %v664_v0 = vmul.f32 %v1427_v59, %v1427_v59  ;;  %v665_v1 = vmul.f32 %v1429_v60, %v1429_v60 }
 0x105   : > { %v648_v4 = vrot.slane %v647_v62, 4  ;;  %v667_v5 = vadd.f32 %v665_v1, %v663_v63 }
 0x107   : > { %v649_v8 = vadd.f32 %v648_v4, %v647_v62  ;;  %v668_v9 = vrot.slane %v667_v5, 4 }
 0x108   : > { %v1431_v61 = vld [vmem:[#allocation2 + $0x8] sm:$0xff] }
 0x109   : > { %v654_v2 = vadd.f32 %v1431_v61, %v1427_v59  ;;  %v666_v3 = vmul.f32 %v1431_v61, %v1431_v61  ;;  %v650_v12 = vrot.slane %v649_v8, 2  ;;  %v669_v13 = vadd.f32 %v668_v9, %v667_v5 }
 0x10b   : > { %v655_v6 = vrot.slane %v654_v2, 4  ;;  %v674_v7 = vadd.f32 %v666_v3, %v664_v0  ;;  %v651_v16 = vadd.f32 %v650_v12, %v649_v8  ;;  %v670_v17 = vrot.slane %v669_v13, 2 }
 0x10d   : > { %v656_v10 = vadd.f32 %v655_v6, %v654_v2  ;;  %v675_v11 = vrot.slane %v674_v7, 4  ;;  %v652_v20 = vrot.slane %v651_v16, 1  ;;  %v671_v21 = vadd.f32 %v670_v17, %v669_v13 }
 0x10f   : > { %v657_v14 = vrot.slane %v656_v10, 2  ;;  %v676_v15 = vadd.f32 %v675_v11, %v674_v7  ;;  %v653_v24 = vadd.f32 %v652_v20, %v651_v16  ;;  %v672_v25 = vrot.slane %v671_v21, 1 }
 0x111   : > { %v658_v18 = vadd.f32 %v657_v14, %v656_v10  ;;  %v677_v19 = vrot.slane %v676_v15, 2  ;;  %v661_v28 = vmul.f32 0.0625, %v653_v24  ;;  %v673_v29 = vadd.f32 %v672_v25, %v671_v21 }
 0x113   : > { %v659_v22 = vrot.slane %v658_v18, 1  ;;  %v678_v23 = vadd.f32 %v677_v19, %v676_v15  ;;  %v681_v32 = vmul.f32 0.0625, %v673_v29  ;;  %v683_v33 = vmul.f32 %v661_v28, %v661_v28 }
 0x114   : > { %v689_v51 = vsub.f32 %v1425_v58, %v661_v28  ;;  %v691_v53 = vsub.f32 %v1429_v60, %v661_v28 }
 0x115   : > { %v660_v26 = vadd.f32 %v659_v22, %v658_v18  ;;  %v679_v27 = vrot.slane %v678_v23, 1  ;;  %v685_v36 = vsub.f32 %v681_v32, %v683_v33 }
 0x117   : > { %v662_v30 = vmul.f32 0.0625, %v660_v26  ;;  %v680_v31 = vadd.f32 %v679_v27, %v678_v23  ;;  %v687_v38 = vmax.f32 %v685_v36, 0.0 }
 0x119   : > { %v682_v34 = vmul.f32 0.0625, %v680_v31  ;;  %v684_v35 = vmul.f32 %v662_v30, %v662_v30  ;;  %v693_v40 = vadd.f32 1e-05, %v687_v38  ;;  %v690_v54 = vsub.f32 %v1427_v59, %v662_v30 }
 0x11a   : > { %v692_v56 = vsub.f32 %v1431_v61, %v662_v30 }
 0x11b   : > { %v686_v37 = vsub.f32 %v682_v34, %v684_v35  ;;  %1160 = vrsqrt.f32 %v693_v40  ;;  %vm701_vm0 = vweird.f32 %v693_v40 }
 0x11d   : > { %v688_v39 = vmax.f32 %v686_v37, 0.0 }
 0x11f   : > { %v694_v41 = vadd.f32 1e-05, %v688_v39 }
 0x121   : > { %1162 = vrsqrt.f32 %v694_v41  ;;  %v1161_v42 = vpop.eup %1160  ;;  %vm711_vm2 = vweird.f32 %v694_v41 }
 0x122   : > { %v696_v44 = vmul.f32 %v1161_v42, %v693_v40  ;;  %vm702_vm1 = vweird.f32 %v1161_v42 }
 0x123   : > { %vm703_vm4 = vmor %vm701_vm0, %vm702_vm1 }
 0x124   : > { %v697_v46 = vmul.f32 %v1161_v42, %v696_v44 }
 0x126   : > { %v698_v48 = vmul.f32 0.5, %v697_v46 }
 0x127   : > { %v1163_v43 = vpop.eup %1162 }
 0x128   : > { %v706_v45 = vmul.f32 %v1163_v43, %v694_v41  ;;  %vm712_vm3 = vweird.f32 %v1163_v43  ;;  %v699_v50 = vsub.f32 1.5, %v698_v48 }
 0x129   : > { %vm713_vm5 = vmor %vm711_vm2, %vm712_vm3 }
 0x12a   : > { %v707_v47 = vmul.f32 %v1163_v43, %v706_v45  ;;  %v700_v55 = vmul.f32 %v1161_v42, %v699_v50 }
 0x12c   : > { %v708_v49 = vmul.f32 0.5, %v707_v47  ;;  %v704_v62 = vsel %vm703_vm4, %v1161_v42, %v700_v55 }
 0x12d   : > { %v715_v0 = vmul.f32 %v704_v62, %v689_v51  ;;  %v717_v1 = vmul.f32 %v704_v62, %v691_v53 }
 0x12e   : > { %v709_v52 = vsub.f32 1.5, %v708_v49 }
 0x12f   : > { %v719_v58 = vmax.f32 %v715_v0, 0.0  ;;  %v721_v4 = vmax.f32 %v717_v1, 0.0 }
 0x130   : > { %v710_v57 = vmul.f32 %v1163_v43, %v709_v52 }
 0x132   : > { %v714_v63 = vsel %vm713_vm5, %v1163_v43, %v710_v57 }
 0x133   : > { %v716_v2 = vmul.f32 %v714_v63, %v690_v54  ;;  %v718_v3 = vmul.f32 %v714_v63, %v692_v56 }
 0x135   : > { %v720_v5 = vmax.f32 %v716_v2, 0.0  ;;  %v722_v6 = vmax.f32 %v718_v3, 0.0 }
 0x137   : > { %v723_v60 = vpack.c.bf16 %v720_v5, %v719_v58  ;;  %v724_v7 = vpack.c.bf16 %v722_v6, %v721_v4 }
 0x139   : > { %725 = vst [vmem:[%s1309_s26] sm:$0xff] %v723_v60 }
 0x13a   : > { %726 = vst [vmem:[%s1309_s26 + $0x8] sm:$0xff] %v724_v7 }
 0x13b PF: > { %s12_s15 = sadd.s32 1, %s1218_s15   ;;  %s1475_s9 = smov %s1198_s10 }
 0x13c   : > { %p9_p0 = scmp.ge.s32.totalorder %s12_s15, 14   ;;  %s1476_s10 = smov %s1287_s22 }
 0x13d   : > { %s1477_s11 = smov %s1210_s13  ;;  %s1478_s12 = smov %s1214_s14 }
 0x13e   : > { %s1479_s13 = smov %s1482_s16  ;;  %s1480_s14 = smov %s1486_s17 }
 0x13f   :  { %11 = sbr.rel (!%p9_p0) target bundleno = 4 (0x4), region = 106 }

// kernel: generator_forward.38
= control target key start
LH: loop header
LB: loop body
LE: loop exit
PB: predicated region body
PF: predicated region fallthrough
CT: control target
= control target key end

     0   :  { %8 = vsyncpa [#allocation4], 0  ;;  %s1626_s0 = inlined_call_operand.hbm [shape: bf16[32,2304], index: 0, kind: input, shape index: {}]   ;;  %s1627_s1 = inlined_call_operand.vmem [shape: bf16[2304,256], index: 1, kind: input, shape index: {}]   ;;  %s1628_s2 = inlined_call_operand.vmem [shape: bf16[32,256], index: 2, kind: input, shape index: {}]   ;;  %s1629_s3 = inlined_call_operand.vmem [shape: bf16[32,256], index: 3, kind: output, shape index: {}]  }
   0x1   :  { %10 = vsyncpa [#allocation4 + $0x1], 0  ;;  %s1361_s12 = smov 0   ;;  %s1363_s13 = smov 0  }
   0x2   :  { %s1365_s14 = smov 0   ;;  %s1367_s15 = smov 0  }
   0x3   :  { %s1369_s16 = smov 0   ;;  %s1371_s17 = smov 0  }
   0x4   :  { %s1373_s18 = smov 0   ;;  %s1375_s19 = smov 0  }
   0x5 LB: > { %s879_s20 = sadd.s32 4294967295, %s1335_s19   ;;  %s25_s21 = sadd.s32 1, %s1327_s17  ;;  %s1335_s19 = sphi %s1375_s19, %s16_s19   ;;  %s1331_s18 = sphi %s1373_s18, %s1641_s18   ;;  %s1327_s17 = sphi %s1371_s17, %s1640_s17   ;;  %s1323_s16 = sphi %s1369_s16, %s1639_s16   ;;  %s1319_s15 = sphi %s1367_s15, %s1638_s15   ;;  %s1315_s14 = sphi %s1365_s14, %s1637_s14   ;;  %s1311_s13 = sphi %s1363_s13, %s1636_s13   ;;  %s1307_s12 = sphi %s1361_s12, %s1635_s12  }
   0x6   : > { %p26_p0 = scmp.ge.s32.totalorder %s25_s21, 6  ;;  %s28_s22 = sadd.s32 1, %s1331_s18 }
   0x7   : > { %s37_s23 = sadd.s32 1, %s1315_s14  ;;  %p44_p1 = scmp.ne.s32.totalorder %s1315_s14, %s1311_s13 }
   0x8   : > { %s1643_s21 = smov (%p26_p0, %s25_s21), 0  ;;  %s1645_s22 = smov (!%p26_p0, %s28_s22), %s1331_s18 }
   0x9   : > { %s33_s24 = ssub.s32 %s1327_s17, %s1643_s21  ;;  %p45_p2 = scmp.eq.s32.totalorder %s1335_s19, 0 }
   0xa   : > { %p30_p3 = scmp.ge.s32.totalorder %s1645_s22, 2  ;;  %p50_p4 = scmp.ne.s32.totalorder %s1311_s13, %s1307_s12 }
   0xb   : > { %p46_p5 = por %p45_p2, %p44_p1  ;;  %p51_p6 = scmp.eq.s32.totalorder %s879_s20, 0 }
   0xc   : > { %s1647_s22 = smov (%p30_p3, %s1645_s22), 0  ;;  %p1166_p8 = scmp.lt.s32.totalorder %s1335_s19, 12 }
   0xd   : > { %1631 = sst [smem:[#allocation6_spill]] %s1647_s22  ;;  %p1414_p7 = por %p51_p6, %p50_p4 }
   0xe   : > { %s32_s26 = ssub.s32 %s1331_s18, %s1647_s22  ;;  %s152_s28 = sand.u32 1, %s1315_s14  }
   0xf   : > { %s34_s27 = sor.u32 %s33_s24, %s32_s26  ;;  %s1157_s29 = smul.u32 24, %s152_s28 }
  0x10   : > { %p35_p9 = scmp.eq.s32.totalorder %s34_s27, 0  ;;  %p1422_p10 = pnand %p1166_p8, %p46_p5 }
  0x11   : > { %s158_s5 = smul.u32 3, %s1327_s17  ;;  %s156_s7 = scalar_lea.vmem [#allocation3], %s1157_s29 }
  0x12   : > { %s1427_s4 = scalar_select %p35_p9, %s1315_s14, %s37_s23  }
  0x13   : > { %s1158_s6 = smul.u32 36, %s1331_s18  ;;  %s167_s8 = sshll.u32 %s156_s7, 4  ;;  %s168_s8 = int_to_ptr.vmem [resolvable:$true] %s167_s8 }
  0x14   : > { %p886_p11 = scmp.ge.s32.totalorder %s1335_s19, 1  ;;  %p195_p12 = scmp.lt.s32.totalorder %s1335_s19, 13 }
  0x15   : > { %s162_s9 = sadd.s32 %s1158_s6, %s158_s5  ;;  %s153_s26 = scalar_lea.sflag [#allocation4], %s152_s28 }
  0x16   : > { %s885_s10 = sshll.u32 %s162_s9, 2  ;;  %s1337_s27 = smov 1152  }
  0x17   : > { %s164_s20 = scalar_lea.hbm %s1626_s0, %s885_s10  ;;  %s1338_s23 = smov 192  }
  0x18   : > { %s165_s24 = sshll.u32 %s164_s20, 4  ;;  %s1339_s22 = smov 12   ;;  %s166_s24 = int_to_ptr.hbm [resolvable:$true] %s165_s24 }
  0x19   : > { %1165 = dma.hbm_to_vmem [thread:$0]  (!%p1422_p10), %s166_s24, 384, %s168_s8, %s153_s26, %s1337_s27, %s1338_s23, %s1339_s22  }
  0x1a   : > { %p196_p13 = pnand %p886_p11, %p195_p12 }
  0x1b   : > { %s201_s29 = sand.u32 (!%p196_p13), 1, %s1311_s13  }
  0x1c   : > { %199 = sbr.rel (%p196_p13) target bundleno = 311 (0x137), region = 32  ;;  %s202_s6 = scalar_lea.sflag (!%p196_p13), [#allocation4], %s201_s29 }
  0x1d   : > { %s1159_s5 = smul.u32 (!%p196_p13), 24, %s201_s29 }
  0x1f   : > { %s1439_s7 = scalar_lea.vmem (!%p196_p13), [#allocation3], %s1159_s5 }
  0x21   : > { %1302 = dma.done.wait (%p1414_p7), %s202_s6, 384  }
  0x22   : > { %1304 = vsyncadd (%p1414_p7), %s202_s6, 4294966912  ;;  %s244_s28 = smul.u32 48, %s1319_s15  ;;  %s889_s9 = sshll.u32 %s1323_s16, 1 }
  0x23   : > { %p252_p0 = scmp.lt.s32.totalorder %s889_s9, 3  ;;  %p895_p2 = scmp.ne.s32.totalorder %s1319_s15, 0 }
  0x24   : > { %p245_p1 = scmp.lt.s32.totalorder %s244_s28, 287 }
  0x25   : > { %s1649_s9 = smov (!%p252_p0, %s889_s9), 3  ;;  %268 = sbr.rel (%p895_p2) target bundleno = 47 (0x2f), region = 40 }
  0x26   : > { %s1651_s28 = smov (!%p245_p1, %s244_s28), 287  ;;  %s1104_s22 = sshll.u32 %s1649_s9, 3 }
  0x27   : > { %s1103_s30 = sshll.u32 %s1651_s28, 3  ;;  %s1450_s11 = scalar_lea.vmem %s1628_s2, %s1104_s22 }
  0x28   : > { %s1455_s25 = scalar_lea.vmem %s1627_s1, %s1103_s30  ;;  %s1460_s16 = scalar_lea.vmem %s1629_s3, %s1104_s22 }
  0x2a   : > { %v1340_v0 = vmov 0.0  }
  0x2b   : > { %269 = vst [vmem:[#allocation2 + $0x10] sm:$0xff] %v1340_v0 }
  0x2c   : > { %270 = vst [vmem:[#allocation2] sm:$0xff] %v1340_v0 }
  0x2d   : > { %271 = vst [vmem:[#allocation2 + $0x18] sm:$0xff] %v1340_v0 }
  0x2e   : > { %272 = vst [vmem:[#allocation2 + $0x8] sm:$0xff] %v1340_v0 }
  0x2f PF: > { %v966_v1 = vld [vmem:[%s1455_s25 + $0x70] sm:$0xf]  ;;  %v1124_v2 = vld [vmem:[%s1455_s25 + $0x74] sm:$0xf0]  ;;  %v958_v10 = vld [vmem:[%s1455_s25 + $0x60] sm:$0xf] }
  0x30   : > { %v1030_v3 = vld [vmem:[%s1455_s25 + $0xf0] sm:$0xf]  ;;  %v967_v4 = vor.u32 %v1124_v2, %v966_v1  ;;  %v1140_v5 = vld [vmem:[%s1455_s25 + $0xf4] sm:$0xf0]  ;;  %v1122_v11 = vld [vmem:[%s1455_s25 + $0x64] sm:$0xf0] }
  0x31   : > { %v1094_v6 = vld [vmem:[%s1455_s25 + $0x170] sm:$0xf]  ;;  %v1156_v7 = vld [vmem:[%s1455_s25 + $0x174] sm:$0xf0]  ;;  %v1031_v8 = vor.u32 %v1140_v5, %v1030_v3  ;;  %v1022_v12 = vld [vmem:[%s1455_s25 + $0xe0] sm:$0xf]  ;;  %v959_v13 = vor.u32 %v1122_v11, %v958_v10 }
  0x32   : > { %v1095_v9 = vor.u32 %v1156_v7, %v1094_v6  ;;  %585 = vmatpush.bf16.msra.mxu0 %v967_v4  ;;  %v1138_v14 = vld [vmem:[%s1455_s25 + $0xe4] sm:$0xf0]  ;;  %v1086_v15 = vld [vmem:[%s1455_s25 + $0x160] sm:$0xf]  ;;  %v950_v19 = vld [vmem:[%s1455_s25 + $0x50] sm:$0xf] }
  0x33   : > { %v1154_v16 = vld [vmem:[%s1455_s25 + $0x164] sm:$0xf0]  ;;  %599 = vmatpush.bf16.msra.mxu1 %v1031_v8  ;;  %v1023_v17 = vor.u32 %v1138_v14, %v1022_v12  ;;  %v1120_v20 = vld [vmem:[%s1455_s25 + $0x54] sm:$0xf0]  ;;  %v1014_v21 = vld [vmem:[%s1455_s25 + $0xd0] sm:$0xf] }
  0x34   : > { %613 = vmatpush.bf16.msra.mxu2 %v1095_v9  ;;  %v1087_v18 = vor.u32 %v1154_v16, %v1086_v15  ;;  %v1136_v22 = vld [vmem:[%s1455_s25 + $0xd4] sm:$0xf0]  ;;  %v1078_v23 = vld [vmem:[%s1455_s25 + $0x150] sm:$0xf]  ;;  %v951_v25 = vor.u32 %v1120_v20, %v950_v19  ;;  %v942_v26 = vld [vmem:[%s1455_s25 + $0x40] sm:$0xf] }
  0x35   : > { %v1152_v24 = vld [vmem:[%s1455_s25 + $0x154] sm:$0xf0]  ;;  %v1118_v27 = vld [vmem:[%s1455_s25 + $0x44] sm:$0xf0]  ;;  %v1015_v28 = vor.u32 %v1136_v22, %v1014_v21  ;;  %v1006_v30 = vld [vmem:[%s1455_s25 + $0xc0] sm:$0xf] }
  0x36   : > { %586 = vmatpush.bf16.msra.mxu0 %v959_v13  ;;  %v1079_v29 = vor.u32 %v1152_v24, %v1078_v23  ;;  %v1123_v31 = vld [vmem:[%s1455_s25 + $0x74] sm:$0xf]  ;;  %v968_v32 = vld [vmem:[%s1455_s25 + $0x78] sm:$0xf0]  ;;  %v1134_v33 = vld [vmem:[%s1455_s25 + $0xc4] sm:$0xf0]  ;;  %v943_v38 = vor.u32 %v1118_v27, %v942_v26 }
  0x37   : > { %600 = vmatpush.bf16.msra.mxu1 %v1023_v17  ;;  %v1070_v34 = vld [vmem:[%s1455_s25 + $0x140] sm:$0xf]  ;;  %v1150_v35 = vld [vmem:[%s1455_s25 + $0x144] sm:$0xf0]  ;;  %v971_v36 = vor.u32 %v1123_v31, %v968_v32  ;;  %v1121_v37 = vld [vmem:[%s1455_s25 + $0x64] sm:$0xf]  ;;  %v1007_v42 = vor.u32 %v1134_v33, %v1006_v30 }
  0x38   : > { %614 = vmatpush.bf16.msra.mxu2 %v1087_v18  ;;  %v934_v39 = vld [vmem:[%s1455_s25 + $0x30] sm:$0xf]  ;;  %v1116_v40 = vld [vmem:[%s1455_s25 + $0x34] sm:$0xf0]  ;;  %v960_v41 = vld [vmem:[%s1455_s25 + $0x68] sm:$0xf0]  ;;  %v1071_v43 = vor.u32 %v1150_v35, %v1070_v34 }
  0x39   : > { %627 = vmatpush.bf16.msra.mxu3 %v971_v36  ;;  %v998_v44 = vld [vmem:[%s1455_s25 + $0xb0] sm:$0xf]  ;;  %v1132_v45 = vld [vmem:[%s1455_s25 + $0xb4] sm:$0xf0]  ;;  %v963_v47 = vor.u32 %v1121_v37, %v960_v41  ;;  %v1119_v49 = vld [vmem:[%s1455_s25 + $0x54] sm:$0xf]  ;;  %v935_v51 = vor.u32 %v1116_v40, %v934_v39 }
  0x3a   : > { %587 = vmatpush.bf16.msra.mxu0 %v951_v25  ;;  %v1062_v46 = vld [vmem:[%s1455_s25 + $0x130] sm:$0xf]  ;;  %v1148_v48 = vld [vmem:[%s1455_s25 + $0x134] sm:$0xf0]  ;;  %v952_v50 = vld [vmem:[%s1455_s25 + $0x58] sm:$0xf0]  ;;  %v999_v55 = vor.u32 %v1132_v45, %v998_v44 }
  0x3b   : > { %601 = vmatpush.bf16.msra.mxu1 %v1015_v28  ;;  %v926_v52 = vld [vmem:[%s1455_s25 + $0x20] sm:$0xf]  ;;  %v1114_v53 = vld [vmem:[%s1455_s25 + $0x24] sm:$0xf0]  ;;  %v955_v54 = vor.u32 %v1119_v49, %v952_v50  ;;  %v1063_v56 = vor.u32 %v1148_v48, %v1062_v46  ;;  %v1117_v58 = vld [vmem:[%s1455_s25 + $0x44] sm:$0xf] }
  0x3c   : > { %615 = vmatpush.bf16.msra.mxu2 %v1079_v29  ;;  %v990_v57 = vld [vmem:[%s1455_s25 + $0xa0] sm:$0xf]  ;;  %v944_v59 = vld [vmem:[%s1455_s25 + $0x48] sm:$0xf0]  ;;  %v1130_v60 = vld [vmem:[%s1455_s25 + $0xa4] sm:$0xf0]  ;;  %v927_v63 = vor.u32 %v1114_v53, %v926_v52 }
  0x3d   : > { %628 = vmatpush.bf16.msra.mxu3 %v963_v47  ;;  %v1054_v61 = vld [vmem:[%s1455_s25 + $0x120] sm:$0xf]  ;;  %v1146_v62 = vld [vmem:[%s1455_s25 + $0x124] sm:$0xf0]  ;;  %v918_v0 = vld [vmem:[%s1455_s25 + $0x10] sm:$0xf]  ;;  %v947_v2 = vor.u32 %v1117_v58, %v944_v59  ;;  %v991_v3 = vor.u32 %v1130_v60, %v990_v57 }
  0x3e   : > { %588 = vmatpush.bf16.msra.mxu0 %v943_v38  ;;  %v1112_v1 = vld [vmem:[%s1455_s25 + $0x14] sm:$0xf0]  ;;  %v1055_v4 = vor.u32 %v1146_v62, %v1054_v61  ;;  %v982_v5 = vld [vmem:[%s1455_s25 + $0x90] sm:$0xf]  ;;  %v1115_v6 = vld [vmem:[%s1455_s25 + $0x34] sm:$0xf] }
  0x3f   : > { %602 = vmatpush.bf16.msra.mxu1 %v1007_v42  ;;  %v936_v7 = vld [vmem:[%s1455_s25 + $0x38] sm:$0xf0]  ;;  %v1128_v8 = vld [vmem:[%s1455_s25 + $0x94] sm:$0xf0]  ;;  %v1046_v9 = vld [vmem:[%s1455_s25 + $0x110] sm:$0xf]  ;;  %v919_v11 = vor.u32 %v1112_v1, %v918_v0 }
  0x40   : > { %616 = vmatpush.bf16.msra.mxu2 %v1071_v43  ;;  %v1144_v10 = vld [vmem:[%s1455_s25 + $0x114] sm:$0xf0]  ;;  %v910_v12 = vld [vmem:[%s1455_s25] sm:$0xf]  ;;  %v1110_v13 = vld [vmem:[%s1455_s25 + $0x4] sm:$0xf0]  ;;  %v939_v15 = vor.u32 %v1115_v6, %v936_v7  ;;  %v983_v16 = vor.u32 %v1128_v8, %v982_v5 }
  0x41   : > { %629 = vmatpush.bf16.msra.mxu3 %v955_v54  ;;  %v974_v14 = vld [vmem:[%s1455_s25 + $0x80] sm:$0xf]  ;;  %v1047_v17 = vor.u32 %v1144_v10, %v1046_v9  ;;  %v1126_v18 = vld [vmem:[%s1455_s25 + $0x84] sm:$0xf0]  ;;  %v1113_v19 = vld [vmem:[%s1455_s25 + $0x24] sm:$0xf]  ;;  %v911_v27 = vor.u32 %v1110_v13, %v910_v12 }
  0x42   : > { %589 = vmatpush.bf16.msra.mxu0 %v935_v51  ;;  %v928_v20 = vld [vmem:[%s1455_s25 + $0x28] sm:$0xf0]  ;;  %v1038_v21 = vld [vmem:[%s1455_s25 + $0x100] sm:$0xf]  ;;  %v1142_v22 = vld [vmem:[%s1455_s25 + $0x104] sm:$0xf0]  ;;  %v975_v32 = vor.u32 %v1126_v18, %v974_v14 }
  0x43   : > { %603 = vmatpush.bf16.msra.mxu1 %v999_v55  ;;  %v1139_v23 = vld [vmem:[%s1455_s25 + $0xf4] sm:$0xf]  ;;  %v1032_v24 = vld [vmem:[%s1455_s25 + $0xf8] sm:$0xf0]  ;;  %v906_v28 = vld [vmem:[%s1439_s7 + $0x8] sm:$0xf]  ;;  %v931_v29 = vor.u32 %v1113_v19, %v928_v20  ;;  %v1039_v33 = vor.u32 %v1142_v22, %v1038_v21 }
  0x44   : > { %617 = vmatpush.bf16.msra.mxu2 %v1063_v56  ;;  %v1155_v25 = vld [vmem:[%s1455_s25 + $0x174] sm:$0xf]  ;;  %v1096_v26 = vld [vmem:[%s1455_s25 + $0x178] sm:$0xf0]  ;;  %v898_v30 = vld [vmem:[%s1439_s7] sm:$0xf]  ;;  %v1035_v37 = vor.u32 %v1139_v23, %v1032_v24 }
  0x45   : > { %630 = vmatpush.bf16.msra.mxu3 %v947_v2  ;;  %v1107_v31 = vld [vmem:[%s1439_s7 + $0x8] sm:$0xf0]  ;;  %v1108_v34 = vld [vmem:[%s1439_s7 + $0x10] sm:$0xf0]  ;;  %v1106_v35 = vld [vmem:[%s1439_s7 + $0x4] sm:$0xf]  ;;  %v1099_v38 = vor.u32 %v1155_v25, %v1096_v26 }
  0x46   : > { %590 = vmatpush.bf16.msra.mxu0 %v927_v63  ;;  %v900_v36 = vld [vmem:[%s1439_s7 + $0xc] sm:$0xf0]  ;;  %v1137_v39 = vld [vmem:[%s1455_s25 + $0xe4] sm:$0xf]  ;;  %v1111_v40 = vld [vmem:[%s1455_s25 + $0x14] sm:$0xf]  ;;  %v899_v45 = vor.u32 %v1107_v31, %v898_v30  ;;  %v1539_v46 = vor.u32 %v1108_v34, %v906_v28 }
  0x47   : > { %604 = vmatpush.bf16.msra.mxu1 %v991_v3  ;;  %v920_v41 = vld [vmem:[%s1455_s25 + $0x18] sm:$0xf0]  ;;  %v1024_v42 = vld [vmem:[%s1455_s25 + $0xe8] sm:$0xf0]  ;;  %v1153_v43 = vld [vmem:[%s1455_s25 + $0x164] sm:$0xf]  ;;  %v1541_v47 = vor.u32 %v1106_v35, %v900_v36 }
  0x48   : > { %618 = vmatpush.bf16.msra.mxu2 %v1055_v4  ;;  %v1088_v44 = vld [vmem:[%s1455_s25 + $0x168] sm:$0xf0]  ;;  %v923_v48 = vor.u32 %v1111_v40, %v920_v41  ;;  %v1027_v49 = vor.u32 %v1137_v39, %v1024_v42  ;;  %v1135_v51 = vld [vmem:[%s1455_s25 + $0xd4] sm:$0xf]  ;;  %v1109_v52 = vld [vmem:[%s1455_s25 + $0x4] sm:$0xf] }
  0x49   : > { %631 = vmatpush.bf16.msra.mxu3 %v939_v15  ;;  %v1091_v50 = vor.u32 %v1153_v43, %v1088_v44  ;;  %v912_v53 = vld [vmem:[%s1455_s25 + $0x8] sm:$0xf0]  ;;  %v1016_v54 = vld [vmem:[%s1455_s25 + $0xd8] sm:$0xf0]  ;;  %v1151_v55 = vld [vmem:[%s1455_s25 + $0x154] sm:$0xf] }
  0x4a   : > { %591 = vmatpush.bf16.msra.mxu0 %v919_v11  ;;  %v1080_v56 = vld [vmem:[%s1455_s25 + $0x158] sm:$0xf0]  ;;  %v915_v57 = vor.u32 %v1109_v52, %v912_v53  ;;  %v1019_v58 = vor.u32 %v1135_v51, %v1016_v54  ;;  %v1133_v60 = vld [vmem:[%s1455_s25 + $0xc4] sm:$0xf]  ;;  %v1008_v61 = vld [vmem:[%s1455_s25 + $0xc8] sm:$0xf0] }
  0x4b   : > { %605 = vmatpush.bf16.msra.mxu1 %v983_v16  ;;  %v1083_v59 = vor.u32 %v1151_v55, %v1080_v56  ;;  %v1149_v62 = vld [vmem:[%s1455_s25 + $0x144] sm:$0xf]  ;;  %v1072_v63 = vld [vmem:[%s1455_s25 + $0x148] sm:$0xf0]  ;;  %v1011_v0 = vor.u32 %v1133_v60, %v1008_v61  ;;  %v1131_v2 = vld [vmem:[%s1455_s25 + $0xb4] sm:$0xf] }
  0x4c   : > { %619 = vmatpush.bf16.msra.mxu2 %v1047_v17  ;;  %v1075_v1 = vor.u32 %v1149_v62, %v1072_v63  ;;  %v1000_v3 = vld [vmem:[%s1455_s25 + $0xb8] sm:$0xf0]  ;;  %v1147_v4 = vld [vmem:[%s1455_s25 + $0x134] sm:$0xf]  ;;  %v1129_v8 = vld [vmem:[%s1455_s25 + $0xa4] sm:$0xf] }
  0x4d   : > { %632 = vmatpush.bf16.msra.mxu3 %v931_v29  ;;  %v1064_v5 = vld [vmem:[%s1455_s25 + $0x138] sm:$0xf0]  ;;  %v1003_v6 = vor.u32 %v1131_v2, %v1000_v3  ;;  %v992_v9 = vld [vmem:[%s1455_s25 + $0xa8] sm:$0xf0]  ;;  %v1145_v10 = vld [vmem:[%s1455_s25 + $0x124] sm:$0xf] }
  0x4e   : > { %592 = vmatpush.bf16.msra.mxu0 %v911_v27  ;;  %v1067_v7 = vor.u32 %v1147_v4, %v1064_v5  ;;  %v1056_v11 = vld [vmem:[%s1455_s25 + $0x128] sm:$0xf0]  ;;  %v995_v12 = vor.u32 %v1129_v8, %v992_v9  ;;  %v1127_v14 = vld [vmem:[%s1455_s25 + $0x94] sm:$0xf]  ;;  %v984_v15 = vld [vmem:[%s1455_s25 + $0x98] sm:$0xf0] }
  0x4f   : > { %606 = vmatpush.bf16.msra.mxu1 %v975_v32  ;;  %v1059_v13 = vor.u32 %v1145_v10, %v1056_v11  ;;  %v1143_v16 = vld [vmem:[%s1455_s25 + $0x114] sm:$0xf]  ;;  %v1048_v17 = vld [vmem:[%s1455_s25 + $0x118] sm:$0xf0]  ;;  %v987_v18 = vor.u32 %v1127_v14, %v984_v15  ;;  %v1125_v20 = vld [vmem:[%s1455_s25 + $0x84] sm:$0xf] }
  0x50   : > { %620 = vmatpush.bf16.msra.mxu2 %v1039_v33  ;;  %v1051_v19 = vor.u32 %v1143_v16, %v1048_v17  ;;  %v976_v21 = vld [vmem:[%s1455_s25 + $0x88] sm:$0xf0]  ;;  %v1141_v22 = vld [vmem:[%s1455_s25 + $0x104] sm:$0xf]  ;;  %v273_v29 = vld [vmem:[#allocation2 + $0x10] sm:$0xff]  ;;  %p1100_p3 = scmp.ne.s32.totalorder %s1319_s15, 5 }
  0x51   : > { %593 = vmatmul.bf16.vlgmr.msra.gmra.mxu0 %v899_v45  ;;  %633 = vmatpush.bf16.msra.mxu3 %v923_v48  ;;  %v1040_v23 = vld [vmem:[%s1455_s25 + $0x108] sm:$0xf0]  ;;  %v979_v24 = vor.u32 %v1125_v20, %v976_v21  ;;  %v275_v36 = vld [vmem:[#allocation2 + $0x18] sm:$0xff]  ;;  %v274_v44 = vld [vmem:[#allocation2] sm:$0xff] }
  0x52   : > { %641 = vmatpush.bf16.msrb.mxu0 %v1035_v37  ;;  %607 = vmatmul.bf16.vlgmr.msra.gmra.mxu1 %v1541_v47  ;;  %v1043_v25 = vor.u32 %v1141_v22, %v1040_v23 }
  0x53   : > { %655 = vmatpush.bf16.msrb.mxu1 %v1099_v38  ;;  %621 = vmatmul.bf16.vlgmr.msra.gmra.mxu2 %v1539_v46 }
  0x55   : > { %634 = vmatpush.bf16.msra.mxu3 %v915_v57 }
  0x56   : > { %642 = vmatpush.bf16.msrb.mxu0 %v1027_v49 }
  0x57   : > { %656 = vmatpush.bf16.msrb.mxu1 %v1091_v50  ;;  %v276_v50 = vld [vmem:[#allocation2 + $0x8] sm:$0xff] }
  0x58   : > { %635 = vmatmul.bf16.vlgmr.msra.gmra.mxu3 %v899_v45 }
  0x5a   : > { %643 = vmatpush.bf16.msrb.mxu0 %v1019_v58 }
  0x5b   : > { %657 = vmatpush.bf16.msrb.mxu1 %v1083_v59 }
  0x5e   : > { %644 = vmatpush.bf16.msrb.mxu0 %v1011_v0 }
  0x5f   : > { %658 = vmatpush.bf16.msrb.mxu1 %v1075_v1 }
  0x62   : > { %645 = vmatpush.bf16.msrb.mxu0 %v1003_v6 }
  0x63   : > { %659 = vmatpush.bf16.msrb.mxu1 %v1067_v7 }
  0x66   : > { %646 = vmatpush.bf16.msrb.mxu0 %v995_v12 }
  0x67   : > { %660 = vmatpush.bf16.msrb.mxu1 %v1059_v13 }
  0x6a   : > { %647 = vmatpush.bf16.msrb.mxu0 %v987_v18 }
  0x6b   : > { %661 = vmatpush.bf16.msrb.mxu1 %v1051_v19 }
  0x6e   : > { %648 = vmatpush.bf16.msrb.mxu0 %v979_v24 }
  0x6f   : > { %662 = vmatpush.bf16.msrb.mxu1 %v1043_v25 }
  0x71   : > { %649 = vmatmul.bf16.vlgmr.msrb.gmra.mxu0 %v1541_v47 }
  0x72   : > { %663 = vmatmul.bf16.vlgmr.msrb.gmra.mxu1 %v1539_v46 }
  0xce   : > { %v594_v26 = vpop.f32.mrf.mxu0 }
  0xcf   : > { %v608_v27 = vpop.f32.mrf.mxu1 }
  0xd0   : > { %v609_v28 = vadd.f32 %v608_v27, %v594_v26 }
  0xd6   : > { %v622_v30 = vpop.f32.mrf.mxu2  ;;  %v596_v32 = vpop.f32.mrf.mxu0 }
  0xd7   : > { %v623_v31 = vadd.f32 %v622_v30, %v609_v28  ;;  %v610_v33 = vpop.f32.mrf.mxu1 }
  0xd8   : > { %v611_v35 = vadd.f32 %v610_v33, %v596_v32 }
  0xd9   : > { %v669_v34 = vadd.f32 %v623_v31, %v273_v29 }
  0xdb   : > { %673 = vst [vmem:[#allocation2 + $0x10] sm:$0xff] %v669_v34  ;;  %v636_v40 = vpop.f32.mrf.mxu3 }
  0xde   : > { %v624_v37 = vpop.f32.mrf.mxu2 }
  0xdf   : > { %v625_v38 = vadd.f32 %v624_v37, %v611_v35 }
  0xe1   : > { %v671_v39 = vadd.f32 %v625_v38, %v275_v36 }
  0xe3   : > { %675 = vst [vmem:[#allocation2 + $0x18] sm:$0xff] %v671_v39  ;;  %v638_v47 = vpop.f32.mrf.mxu3 }
  0xee   : > { %v650_v41 = vpop.f32.mrf.mxu0 }
  0xef   : > { %v664_v42 = vpop.f32.mrf.mxu1  ;;  %v651_v43 = vadd.f32 %v650_v41, %v636_v40 }
  0xf1   : > { %v665_v45 = vadd.f32 %v664_v42, %v651_v43 }
  0xf3   : > { %v670_v46 = vadd.f32 %v665_v45, %v274_v44 }
  0xf5   : > { %674 = vst [vmem:[#allocation2] sm:$0xff] %v670_v46 }
  0xf6   : > { %v652_v48 = vpop.f32.mrf.mxu0 }
  0xf7   : > { %v653_v49 = vadd.f32 %v652_v48, %v638_v47  ;;  %v666_v51 = vpop.f32.mrf.mxu1 }
  0xf9   : > { %v667_v52 = vadd.f32 %v666_v51, %v653_v49  ;;  %680 = sbr.rel (%p1100_p3) target bundleno = 311 (0x137), region = 44 }
  0xfb   : > { %v672_v53 = vadd.f32 %v667_v52, %v276_v50 }
  0xfd   : > { %676 = vst [vmem:[#allocation2 + $0x8] sm:$0xff] %v672_v53 }
  0xfe   : > { %v1574_v54 = vld [vmem:[#allocation2 + $0x10] sm:$0xff]  ;;  %v1576_v55 = vld [vmem:[#allocation2] sm:$0xff]  ;;  %v1578_v56 = vld [vmem:[#allocation2 + $0x18] sm:$0xff] }
  0xff   : > { %v685_v58 = vadd.f32 %v1578_v56, %v1574_v54  ;;  %v701_v59 = vmul.f32 %v1574_v54, %v1574_v54  ;;  %v702_v60 = vmul.f32 %v1576_v55, %v1576_v55  ;;  %v703_v61 = vmul.f32 %v1578_v56, %v1578_v56  ;;  %v757_v47 = vld [vmem:[%s1450_s11] sm:$0xff]  ;;  %v758_v48 = vld [vmem:[%s1450_s11 + $0x8] sm:$0xff] }
 0x101   : > { %v686_v0 = vrot.slane %v685_v58, 4  ;;  %v705_v1 = vadd.f32 %v703_v61, %v701_v59  ;;  %v761_v61 = vunpack.c.l.bf16 %v758_v48 }
 0x103   : > { %v687_v4 = vadd.f32 %v686_v0, %v685_v58  ;;  %v706_v5 = vrot.slane %v705_v1, 4  ;;  %v762_v0 = vunpack.c.h.bf16 %v758_v48 }
 0x104   : > { %v1580_v57 = vld [vmem:[#allocation2 + $0x8] sm:$0xff] }
 0x105   : > { %v692_v62 = vadd.f32 %v1580_v57, %v1576_v55  ;;  %v704_v63 = vmul.f32 %v1580_v57, %v1580_v57  ;;  %v688_v8 = vrot.slane %v687_v4, 2  ;;  %v707_v9 = vadd.f32 %v706_v5, %v705_v1 }
 0x107   : > { %v693_v2 = vrot.slane %v692_v62, 4  ;;  %v712_v3 = vadd.f32 %v704_v63, %v702_v60  ;;  %v689_v12 = vadd.f32 %v688_v8, %v687_v4  ;;  %v708_v13 = vrot.slane %v707_v9, 2 }
 0x108   : > { %v759_v60 = vunpack.c.l.bf16 %v757_v47  ;;  %v760_v63 = vunpack.c.h.bf16 %v757_v47 }
 0x109   : > { %v694_v6 = vadd.f32 %v693_v2, %v692_v62  ;;  %v713_v7 = vrot.slane %v712_v3, 4  ;;  %v690_v16 = vrot.slane %v689_v12, 1  ;;  %v709_v17 = vadd.f32 %v708_v13, %v707_v9 }
 0x10b   : > { %v695_v10 = vrot.slane %v694_v6, 2  ;;  %v714_v11 = vadd.f32 %v713_v7, %v712_v3  ;;  %v691_v20 = vadd.f32 %v690_v16, %v689_v12  ;;  %v710_v21 = vrot.slane %v709_v17, 1 }
 0x10d   : > { %v696_v14 = vadd.f32 %v695_v10, %v694_v6  ;;  %v715_v15 = vrot.slane %v714_v11, 2  ;;  %v699_v24 = vmul.f32 0.0625, %v691_v20  ;;  %v711_v25 = vadd.f32 %v710_v21, %v709_v17 }
 0x10f   : > { %v697_v18 = vrot.slane %v696_v14, 1  ;;  %v716_v19 = vadd.f32 %v715_v15, %v714_v11  ;;  %v719_v28 = vmul.f32 0.0625, %v711_v25  ;;  %v721_v29 = vmul.f32 %v699_v24, %v699_v24 }
 0x110   : > { %v727_v49 = vsub.f32 %v1574_v54, %v699_v24  ;;  %v729_v51 = vsub.f32 %v1578_v56, %v699_v24 }
 0x111   : > { %v698_v22 = vadd.f32 %v697_v18, %v696_v14  ;;  %v717_v23 = vrot.slane %v716_v19, 1  ;;  %v723_v32 = vsub.f32 %v719_v28, %v721_v29 }
 0x113   : > { %v700_v26 = vmul.f32 0.0625, %v698_v22  ;;  %v718_v27 = vadd.f32 %v717_v23, %v716_v19  ;;  %v725_v34 = vmax.f32 %v723_v32, 0.0 }
 0x115   : > { %v720_v30 = vmul.f32 0.0625, %v718_v27  ;;  %v722_v31 = vmul.f32 %v700_v26, %v700_v26  ;;  %v731_v36 = vadd.f32 1e-05, %v725_v34  ;;  %v728_v52 = vsub.f32 %v1576_v55, %v700_v26 }
 0x116   : > { %v730_v58 = vsub.f32 %v1580_v57, %v700_v26 }
 0x117   : > { %v724_v33 = vsub.f32 %v720_v30, %v722_v31  ;;  %1235 = vrsqrt.f32 %v731_v36  ;;  %vm739_vm0 = vweird.f32 %v731_v36 }
 0x119   : > { %v726_v35 = vmax.f32 %v724_v33, 0.0 }
 0x11b   : > { %v732_v37 = vadd.f32 1e-05, %v726_v35 }
 0x11d   : > { %1237 = vrsqrt.f32 %v732_v37  ;;  %v1236_v38 = vpop.eup %1235  ;;  %vm749_vm2 = vweird.f32 %v732_v37 }
 0x11e   : > { %v734_v40 = vmul.f32 %v1236_v38, %v731_v36  ;;  %vm740_vm1 = vweird.f32 %v1236_v38 }
 0x11f   : > { %vm741_vm4 = vmor %vm739_vm0, %vm740_vm1 }
 0x120   : > { %v735_v42 = vmul.f32 %v1236_v38, %v734_v40 }
 0x122   : > { %v736_v44 = vmul.f32 0.5, %v735_v42 }
 0x123   : > { %v1238_v39 = vpop.eup %1237 }
 0x124   : > { %v744_v41 = vmul.f32 %v1238_v39, %v732_v37  ;;  %vm750_vm3 = vweird.f32 %v1238_v39  ;;  %v737_v46 = vsub.f32 1.5, %v736_v44 }
 0x125   : > { %vm751_vm5 = vmor %vm749_vm2, %vm750_vm3 }
 0x126   : > { %v745_v43 = vmul.f32 %v1238_v39, %v744_v41  ;;  %v738_v53 = vmul.f32 %v1236_v38, %v737_v46 }
 0x128   : > { %v746_v45 = vmul.f32 0.5, %v745_v43  ;;  %v742_v62 = vsel %vm741_vm4, %v1236_v38, %v738_v53 }
 0x129   : > { %v753_v54 = vmul.f32 %v742_v62, %v727_v49  ;;  %v755_v2 = vmul.f32 %v742_v62, %v729_v51 }
 0x12a   : > { %v747_v50 = vsub.f32 1.5, %v746_v45 }
 0x12b   : > { %v763_v56 = vadd.f32 %v759_v60, %v753_v54  ;;  %v765_v5 = vadd.f32 %v761_v61, %v755_v2 }
 0x12c   : > { %v748_v59 = vmul.f32 %v1238_v39, %v747_v50 }
 0x12e   : > { %v752_v1 = vsel %vm751_vm5, %v1238_v39, %v748_v59 }
 0x12f   : > { %v754_v3 = vmul.f32 %v752_v1, %v728_v52  ;;  %v756_v4 = vmul.f32 %v752_v1, %v730_v58 }
 0x131   : > { %v764_v55 = vadd.f32 %v760_v63, %v754_v3  ;;  %v766_v6 = vadd.f32 %v762_v0, %v756_v4 }
 0x133   : > { %v767_v7 = vpack.c.bf16 %v764_v55, %v763_v56  ;;  %v768_v8 = vpack.c.bf16 %v766_v6, %v765_v5 }
 0x135   : > { %769 = vst [vmem:[%s1460_s16] sm:$0xff] %v767_v7 }
 0x136   : > { %770 = vst [vmem:[%s1460_s16 + $0x8] sm:$0xff] %v768_v8 }
 0x137 PF: > { %s16_s19 = sadd.s32 1, %s1335_s19   ;;  %s1634_s27 = sld [smem:[#allocation6_spill]] }
 0x138   : > { %p13_p4 = scmp.ge.s32.totalorder %s16_s19, 14   ;;  %s1635_s12 = smov %s1311_s13 }
 0x139   : > { %s1636_s13 = smov %s1315_s14  ;;  %s1637_s14 = smov %s1427_s4 }
 0x13a   : > { %s1638_s15 = smov %s1327_s17  ;;  %s1639_s16 = smov %s1331_s18 }
 0x13b   : > { %s1640_s17 = smov %s1643_s21  ;;  %15 = sbr.rel (!%p13_p4) target bundleno = 5 (0x5), region = 86 }
 0x13d   : > { %s1641_s18 = smov %s1634_s27 }
 0x140   :  { %795 = vsyncpa [#allocation4], 1 }
 0x141   :  { %797 = vsyncpa [#allocation4 + $0x1], 1 }

// kernel: generator_forward.37
= control target key start
LH: loop header
LB: loop body
LE: loop exit
PB: predicated region body
PF: predicated region fallthrough
CT: control target
= control target key end

     0   :  { %7 = vsyncpa [#allocation4], 0  ;;  %s1540_s0 = inlined_call_operand.hbm [shape: bf16[32,2304], index: 0, kind: input, shape index: {}]   ;;  %s1541_s1 = inlined_call_operand.vmem [shape: bf16[2304,256], index: 1, kind: input, shape index: {}]   ;;  %s1542_s2 = inlined_call_operand.vmem [shape: bf16[32,256], index: 2, kind: output, shape index: {}]  }
   0x1   :  { %9 = vsyncpa [#allocation4 + $0x1], 0  ;;  %s1282_s9 = smov 0   ;;  %s1284_s10 = smov 0  }
   0x2   :  { %s1286_s11 = smov 0   ;;  %s1288_s12 = smov 0  }
   0x3   :  { %s1290_s13 = smov 0   ;;  %s1292_s14 = smov 0  }
   0x4   :  { %s1294_s15 = smov 0   ;;  %s1296_s16 = smov 0  }
   0x5 LB: > { %s809_s17 = sadd.s32 4294967295, %s1261_s16   ;;  %s24_s18 = sadd.s32 1, %s1253_s14  ;;  %s1261_s16 = sphi %s1296_s16, %s15_s16   ;;  %s1257_s15 = sphi %s1294_s15, %s1551_s15   ;;  %s1253_s14 = sphi %s1292_s14, %s1550_s14   ;;  %s1249_s13 = sphi %s1290_s13, %s1549_s13   ;;  %s1245_s12 = sphi %s1288_s12, %s1548_s12   ;;  %s1241_s11 = sphi %s1286_s11, %s1547_s11   ;;  %s1237_s10 = sphi %s1284_s10, %s1546_s10   ;;  %s1233_s9 = sphi %s1282_s9, %s1545_s9  }
   0x6   : > { %p25_p0 = scmp.ge.s32.totalorder %s24_s18, 6  ;;  %s27_s19 = sadd.s32 1, %s1257_s15 }
   0x7   : > { %s36_s20 = sadd.s32 1, %s1241_s11  ;;  %p43_p1 = scmp.ne.s32.totalorder %s1241_s11, %s1237_s10 }
   0x8   : > { %s1553_s18 = smov (%p25_p0, %s24_s18), 0  ;;  %s1555_s19 = smov (!%p25_p0, %s27_s19), %s1257_s15 }
   0x9   : > { %s32_s21 = ssub.s32 %s1253_s14, %s1553_s18  ;;  %p44_p2 = scmp.eq.s32.totalorder %s1261_s16, 0 }
   0xa   : > { %p29_p3 = scmp.ge.s32.totalorder %s1555_s19, 2  ;;  %p49_p4 = scmp.ne.s32.totalorder %s1237_s10, %s1233_s9 }
   0xb   : > { %p45_p5 = por %p44_p2, %p43_p1  ;;  %p50_p6 = scmp.eq.s32.totalorder %s809_s17, 0 }
   0xc   : > { %s1557_s19 = smov (%p29_p3, %s1555_s19), 0  ;;  %p1092_p8 = scmp.lt.s32.totalorder %s1261_s16, 12 }
   0xd   : > { %p1335_p7 = por %p50_p6, %p49_p4  ;;  %s31_s23 = ssub.s32 %s1257_s15, %s1557_s19 }
   0xe   : > { %s33_s24 = sor.u32 %s32_s21, %s31_s23  ;;  %s125_s25 = sand.u32 1, %s1241_s11  }
   0xf   : > { %p34_p9 = scmp.eq.s32.totalorder %s33_s24, 0  ;;  %s1083_s26 = smul.u32 24, %s125_s25 }
  0x10   : > { %p1343_p10 = pnand %p1092_p8, %p45_p5  ;;  %s131_s29 = smul.u32 3, %s1253_s14 }
  0x11   : > { %s1348_s28 = scalar_select %p34_p9, %s1241_s11, %s36_s20  }
  0x12   : > { %s1084_s30 = smul.u32 36, %s1257_s15  ;;  %s129_s3 = scalar_lea.vmem [#allocation3], %s1083_s26 }
  0x13   : > { %s140_s4 = sshll.u32 %s129_s3, 4  ;;  %p816_p11 = scmp.ge.s32.totalorder %s1261_s16, 1  ;;  %s141_s4 = int_to_ptr.vmem [resolvable:$true] %s140_s4 }
  0x14   : > { %s135_s5 = sadd.s32 %s1084_s30, %s131_s29  ;;  %p158_p12 = scmp.lt.s32.totalorder %s1261_s16, 13 }
  0x15   : > { %s815_s6 = sshll.u32 %s135_s5, 2  ;;  %s126_s21 = scalar_lea.sflag [#allocation4], %s125_s25 }
  0x16   : > { %s137_s9 = scalar_lea.hbm %s1540_s0, %s815_s6  ;;  %s1263_s23 = smov 1152  }
  0x17   : > { %s138_s17 = sshll.u32 %s137_s9, 4  ;;  %s1264_s20 = smov 192   ;;  %s139_s17 = int_to_ptr.hbm [resolvable:$true] %s138_s17 }
  0x18   : > { %s1265_s24 = smov 12   ;;  %p159_p13 = pnand %p816_p11, %p158_p12 }
  0x19   : > { %1091 = dma.hbm_to_vmem [thread:$0]  (!%p1343_p10), %s139_s17, 384, %s141_s4, %s126_s21, %s1263_s23, %s1264_s20, %s1265_s24  }
  0x1a   : > { %162 = sbr.rel (%p159_p13) target bundleno = 309 (0x135), region = 28  ;;  %s164_s26 = sand.u32 (!%p159_p13), 1, %s1237_s10  }
  0x1b   : > { %s1085_s29 = smul.u32 (!%p159_p13), 24, %s164_s26  ;;  %s165_s30 = scalar_lea.sflag (!%p159_p13), [#allocation4], %s164_s26 }
  0x1d   : > { %s1360_s3 = scalar_lea.vmem (!%p159_p13), [#allocation3], %s1085_s29 }
  0x1f   : > { %1228 = dma.done.wait (%p1335_p7), %s165_s30, 384  }
  0x20   : > { %1230 = vsyncadd (%p1335_p7), %s165_s30, 4294966912  ;;  %s199_s25 = smul.u32 48, %s1245_s12  ;;  %s819_s5 = sshll.u32 %s1249_s13, 1 }
  0x21   : > { %p207_p0 = scmp.lt.s32.totalorder %s819_s5, 3  ;;  %p822_p2 = scmp.ne.s32.totalorder %s1245_s12, 0 }
  0x22   : > { %p200_p1 = scmp.lt.s32.totalorder %s199_s25, 287 }
  0x23   : > { %s1559_s5 = smov (!%p207_p0, %s819_s5), 3  ;;  %216 = sbr.rel (%p822_p2) target bundleno = 45 (0x2d), region = 36 }
  0x24   : > { %s1561_s25 = smov (!%p200_p1, %s199_s25), 287  ;;  %s1031_s27 = sshll.u32 %s1559_s5, 3 }
  0x25   : > { %s1030_s4 = sshll.u32 %s1561_s25, 3  ;;  %s1371_s8 = scalar_lea.vmem %s1542_s2, %s1031_s27 }
  0x26   : > { %s1376_s22 = scalar_lea.vmem %s1541_s1, %s1030_s4 }
  0x28   : > { %v1266_v0 = vmov 0.0  }
  0x29   : > { %217 = vst [vmem:[#allocation2 + $0x10] sm:$0xff] %v1266_v0 }
  0x2a   : > { %218 = vst [vmem:[#allocation2] sm:$0xff] %v1266_v0 }
  0x2b   : > { %219 = vst [vmem:[#allocation2 + $0x18] sm:$0xff] %v1266_v0 }
  0x2c   : > { %220 = vst [vmem:[#allocation2 + $0x8] sm:$0xff] %v1266_v0 }
  0x2d PF: > { %v893_v1 = vld [vmem:[%s1376_s22 + $0x70] sm:$0xf]  ;;  %v1050_v2 = vld [vmem:[%s1376_s22 + $0x74] sm:$0xf0]  ;;  %v885_v10 = vld [vmem:[%s1376_s22 + $0x60] sm:$0xf] }
  0x2e   : > { %v957_v3 = vld [vmem:[%s1376_s22 + $0xf0] sm:$0xf]  ;;  %v894_v4 = vor.u32 %v1050_v2, %v893_v1  ;;  %v1066_v5 = vld [vmem:[%s1376_s22 + $0xf4] sm:$0xf0]  ;;  %v1048_v11 = vld [vmem:[%s1376_s22 + $0x64] sm:$0xf0] }
  0x2f   : > { %v1021_v6 = vld [vmem:[%s1376_s22 + $0x170] sm:$0xf]  ;;  %v1082_v7 = vld [vmem:[%s1376_s22 + $0x174] sm:$0xf0]  ;;  %v958_v8 = vor.u32 %v1066_v5, %v957_v3  ;;  %v949_v12 = vld [vmem:[%s1376_s22 + $0xe0] sm:$0xf]  ;;  %v886_v13 = vor.u32 %v1048_v11, %v885_v10 }
  0x30   : > { %v1022_v9 = vor.u32 %v1082_v7, %v1021_v6  ;;  %533 = vmatpush.bf16.msra.mxu0 %v894_v4  ;;  %v1064_v14 = vld [vmem:[%s1376_s22 + $0xe4] sm:$0xf0]  ;;  %v1013_v15 = vld [vmem:[%s1376_s22 + $0x160] sm:$0xf]  ;;  %v877_v19 = vld [vmem:[%s1376_s22 + $0x50] sm:$0xf] }
  0x31   : > { %v1080_v16 = vld [vmem:[%s1376_s22 + $0x164] sm:$0xf0]  ;;  %547 = vmatpush.bf16.msra.mxu1 %v958_v8  ;;  %v950_v17 = vor.u32 %v1064_v14, %v949_v12  ;;  %v1046_v20 = vld [vmem:[%s1376_s22 + $0x54] sm:$0xf0]  ;;  %v941_v21 = vld [vmem:[%s1376_s22 + $0xd0] sm:$0xf] }
  0x32   : > { %561 = vmatpush.bf16.msra.mxu2 %v1022_v9  ;;  %v1014_v18 = vor.u32 %v1080_v16, %v1013_v15  ;;  %v1062_v22 = vld [vmem:[%s1376_s22 + $0xd4] sm:$0xf0]  ;;  %v1005_v23 = vld [vmem:[%s1376_s22 + $0x150] sm:$0xf]  ;;  %v878_v25 = vor.u32 %v1046_v20, %v877_v19  ;;  %v869_v26 = vld [vmem:[%s1376_s22 + $0x40] sm:$0xf] }
  0x33   : > { %v1078_v24 = vld [vmem:[%s1376_s22 + $0x154] sm:$0xf0]  ;;  %v1044_v27 = vld [vmem:[%s1376_s22 + $0x44] sm:$0xf0]  ;;  %v942_v28 = vor.u32 %v1062_v22, %v941_v21  ;;  %v933_v30 = vld [vmem:[%s1376_s22 + $0xc0] sm:$0xf] }
  0x34   : > { %534 = vmatpush.bf16.msra.mxu0 %v886_v13  ;;  %v1006_v29 = vor.u32 %v1078_v24, %v1005_v23  ;;  %v1049_v31 = vld [vmem:[%s1376_s22 + $0x74] sm:$0xf]  ;;  %v895_v32 = vld [vmem:[%s1376_s22 + $0x78] sm:$0xf0]  ;;  %v1060_v33 = vld [vmem:[%s1376_s22 + $0xc4] sm:$0xf0]  ;;  %v870_v38 = vor.u32 %v1044_v27, %v869_v26 }
  0x35   : > { %548 = vmatpush.bf16.msra.mxu1 %v950_v17  ;;  %v997_v34 = vld [vmem:[%s1376_s22 + $0x140] sm:$0xf]  ;;  %v1076_v35 = vld [vmem:[%s1376_s22 + $0x144] sm:$0xf0]  ;;  %v898_v36 = vor.u32 %v1049_v31, %v895_v32  ;;  %v1047_v37 = vld [vmem:[%s1376_s22 + $0x64] sm:$0xf]  ;;  %v934_v42 = vor.u32 %v1060_v33, %v933_v30 }
  0x36   : > { %562 = vmatpush.bf16.msra.mxu2 %v1014_v18  ;;  %v861_v39 = vld [vmem:[%s1376_s22 + $0x30] sm:$0xf]  ;;  %v1042_v40 = vld [vmem:[%s1376_s22 + $0x34] sm:$0xf0]  ;;  %v887_v41 = vld [vmem:[%s1376_s22 + $0x68] sm:$0xf0]  ;;  %v998_v43 = vor.u32 %v1076_v35, %v997_v34 }
  0x37   : > { %575 = vmatpush.bf16.msra.mxu3 %v898_v36  ;;  %v925_v44 = vld [vmem:[%s1376_s22 + $0xb0] sm:$0xf]  ;;  %v1058_v45 = vld [vmem:[%s1376_s22 + $0xb4] sm:$0xf0]  ;;  %v890_v47 = vor.u32 %v1047_v37, %v887_v41  ;;  %v1045_v49 = vld [vmem:[%s1376_s22 + $0x54] sm:$0xf]  ;;  %v862_v51 = vor.u32 %v1042_v40, %v861_v39 }
  0x38   : > { %535 = vmatpush.bf16.msra.mxu0 %v878_v25  ;;  %v989_v46 = vld [vmem:[%s1376_s22 + $0x130] sm:$0xf]  ;;  %v1074_v48 = vld [vmem:[%s1376_s22 + $0x134] sm:$0xf0]  ;;  %v879_v50 = vld [vmem:[%s1376_s22 + $0x58] sm:$0xf0]  ;;  %v926_v55 = vor.u32 %v1058_v45, %v925_v44 }
  0x39   : > { %549 = vmatpush.bf16.msra.mxu1 %v942_v28  ;;  %v853_v52 = vld [vmem:[%s1376_s22 + $0x20] sm:$0xf]  ;;  %v1040_v53 = vld [vmem:[%s1376_s22 + $0x24] sm:$0xf0]  ;;  %v882_v54 = vor.u32 %v1045_v49, %v879_v50  ;;  %v990_v56 = vor.u32 %v1074_v48, %v989_v46  ;;  %v1043_v58 = vld [vmem:[%s1376_s22 + $0x44] sm:$0xf] }
  0x3a   : > { %563 = vmatpush.bf16.msra.mxu2 %v1006_v29  ;;  %v917_v57 = vld [vmem:[%s1376_s22 + $0xa0] sm:$0xf]  ;;  %v871_v59 = vld [vmem:[%s1376_s22 + $0x48] sm:$0xf0]  ;;  %v1056_v60 = vld [vmem:[%s1376_s22 + $0xa4] sm:$0xf0]  ;;  %v854_v63 = vor.u32 %v1040_v53, %v853_v52 }
  0x3b   : > { %576 = vmatpush.bf16.msra.mxu3 %v890_v47  ;;  %v981_v61 = vld [vmem:[%s1376_s22 + $0x120] sm:$0xf]  ;;  %v1072_v62 = vld [vmem:[%s1376_s22 + $0x124] sm:$0xf0]  ;;  %v845_v0 = vld [vmem:[%s1376_s22 + $0x10] sm:$0xf]  ;;  %v874_v2 = vor.u32 %v1043_v58, %v871_v59  ;;  %v918_v3 = vor.u32 %v1056_v60, %v917_v57 }
  0x3c   : > { %536 = vmatpush.bf16.msra.mxu0 %v870_v38  ;;  %v1038_v1 = vld [vmem:[%s1376_s22 + $0x14] sm:$0xf0]  ;;  %v982_v4 = vor.u32 %v1072_v62, %v981_v61  ;;  %v909_v5 = vld [vmem:[%s1376_s22 + $0x90] sm:$0xf]  ;;  %v1041_v6 = vld [vmem:[%s1376_s22 + $0x34] sm:$0xf] }
  0x3d   : > { %550 = vmatpush.bf16.msra.mxu1 %v934_v42  ;;  %v863_v7 = vld [vmem:[%s1376_s22 + $0x38] sm:$0xf0]  ;;  %v1054_v8 = vld [vmem:[%s1376_s22 + $0x94] sm:$0xf0]  ;;  %v973_v9 = vld [vmem:[%s1376_s22 + $0x110] sm:$0xf]  ;;  %v846_v11 = vor.u32 %v1038_v1, %v845_v0 }
  0x3e   : > { %564 = vmatpush.bf16.msra.mxu2 %v998_v43  ;;  %v1070_v10 = vld [vmem:[%s1376_s22 + $0x114] sm:$0xf0]  ;;  %v837_v12 = vld [vmem:[%s1376_s22] sm:$0xf]  ;;  %v1036_v13 = vld [vmem:[%s1376_s22 + $0x4] sm:$0xf0]  ;;  %v866_v15 = vor.u32 %v1041_v6, %v863_v7  ;;  %v910_v16 = vor.u32 %v1054_v8, %v909_v5 }
  0x3f   : > { %577 = vmatpush.bf16.msra.mxu3 %v882_v54  ;;  %v901_v14 = vld [vmem:[%s1376_s22 + $0x80] sm:$0xf]  ;;  %v974_v17 = vor.u32 %v1070_v10, %v973_v9  ;;  %v1052_v18 = vld [vmem:[%s1376_s22 + $0x84] sm:$0xf0]  ;;  %v1039_v19 = vld [vmem:[%s1376_s22 + $0x24] sm:$0xf]  ;;  %v838_v27 = vor.u32 %v1036_v13, %v837_v12 }
  0x40   : > { %537 = vmatpush.bf16.msra.mxu0 %v862_v51  ;;  %v855_v20 = vld [vmem:[%s1376_s22 + $0x28] sm:$0xf0]  ;;  %v965_v21 = vld [vmem:[%s1376_s22 + $0x100] sm:$0xf]  ;;  %v1068_v22 = vld [vmem:[%s1376_s22 + $0x104] sm:$0xf0]  ;;  %v902_v32 = vor.u32 %v1052_v18, %v901_v14 }
  0x41   : > { %551 = vmatpush.bf16.msra.mxu1 %v926_v55  ;;  %v1065_v23 = vld [vmem:[%s1376_s22 + $0xf4] sm:$0xf]  ;;  %v959_v24 = vld [vmem:[%s1376_s22 + $0xf8] sm:$0xf0]  ;;  %v833_v28 = vld [vmem:[%s1360_s3 + $0x8] sm:$0xf]  ;;  %v858_v29 = vor.u32 %v1039_v19, %v855_v20  ;;  %v966_v33 = vor.u32 %v1068_v22, %v965_v21 }
  0x42   : > { %565 = vmatpush.bf16.msra.mxu2 %v990_v56  ;;  %v1081_v25 = vld [vmem:[%s1376_s22 + $0x174] sm:$0xf]  ;;  %v1023_v26 = vld [vmem:[%s1376_s22 + $0x178] sm:$0xf0]  ;;  %v825_v30 = vld [vmem:[%s1360_s3] sm:$0xf]  ;;  %v962_v37 = vor.u32 %v1065_v23, %v959_v24 }
  0x43   : > { %578 = vmatpush.bf16.msra.mxu3 %v874_v2  ;;  %v1033_v31 = vld [vmem:[%s1360_s3 + $0x8] sm:$0xf0]  ;;  %v1034_v34 = vld [vmem:[%s1360_s3 + $0x10] sm:$0xf0]  ;;  %v1032_v35 = vld [vmem:[%s1360_s3 + $0x4] sm:$0xf]  ;;  %v1026_v38 = vor.u32 %v1081_v25, %v1023_v26 }
  0x44   : > { %538 = vmatpush.bf16.msra.mxu0 %v854_v63  ;;  %v827_v36 = vld [vmem:[%s1360_s3 + $0xc] sm:$0xf0]  ;;  %v1063_v39 = vld [vmem:[%s1376_s22 + $0xe4] sm:$0xf]  ;;  %v1037_v40 = vld [vmem:[%s1376_s22 + $0x14] sm:$0xf]  ;;  %v826_v45 = vor.u32 %v1033_v31, %v825_v30  ;;  %v1455_v46 = vor.u32 %v1034_v34, %v833_v28 }
  0x45   : > { %552 = vmatpush.bf16.msra.mxu1 %v918_v3  ;;  %v847_v41 = vld [vmem:[%s1376_s22 + $0x18] sm:$0xf0]  ;;  %v951_v42 = vld [vmem:[%s1376_s22 + $0xe8] sm:$0xf0]  ;;  %v1079_v43 = vld [vmem:[%s1376_s22 + $0x164] sm:$0xf]  ;;  %v1457_v47 = vor.u32 %v1032_v35, %v827_v36 }
  0x46   : > { %566 = vmatpush.bf16.msra.mxu2 %v982_v4  ;;  %v1015_v44 = vld [vmem:[%s1376_s22 + $0x168] sm:$0xf0]  ;;  %v850_v48 = vor.u32 %v1037_v40, %v847_v41  ;;  %v954_v49 = vor.u32 %v1063_v39, %v951_v42  ;;  %v1061_v51 = vld [vmem:[%s1376_s22 + $0xd4] sm:$0xf]  ;;  %v1035_v52 = vld [vmem:[%s1376_s22 + $0x4] sm:$0xf] }
  0x47   : > { %579 = vmatpush.bf16.msra.mxu3 %v866_v15  ;;  %v1018_v50 = vor.u32 %v1079_v43, %v1015_v44  ;;  %v839_v53 = vld [vmem:[%s1376_s22 + $0x8] sm:$0xf0]  ;;  %v943_v54 = vld [vmem:[%s1376_s22 + $0xd8] sm:$0xf0]  ;;  %v1077_v55 = vld [vmem:[%s1376_s22 + $0x154] sm:$0xf] }
  0x48   : > { %539 = vmatpush.bf16.msra.mxu0 %v846_v11  ;;  %v1007_v56 = vld [vmem:[%s1376_s22 + $0x158] sm:$0xf0]  ;;  %v842_v57 = vor.u32 %v1035_v52, %v839_v53  ;;  %v946_v58 = vor.u32 %v1061_v51, %v943_v54  ;;  %v1059_v60 = vld [vmem:[%s1376_s22 + $0xc4] sm:$0xf]  ;;  %v935_v61 = vld [vmem:[%s1376_s22 + $0xc8] sm:$0xf0] }
  0x49   : > { %553 = vmatpush.bf16.msra.mxu1 %v910_v16  ;;  %v1010_v59 = vor.u32 %v1077_v55, %v1007_v56  ;;  %v1075_v62 = vld [vmem:[%s1376_s22 + $0x144] sm:$0xf]  ;;  %v999_v63 = vld [vmem:[%s1376_s22 + $0x148] sm:$0xf0]  ;;  %v938_v0 = vor.u32 %v1059_v60, %v935_v61  ;;  %v1057_v2 = vld [vmem:[%s1376_s22 + $0xb4] sm:$0xf] }
  0x4a   : > { %567 = vmatpush.bf16.msra.mxu2 %v974_v17  ;;  %v1002_v1 = vor.u32 %v1075_v62, %v999_v63  ;;  %v927_v3 = vld [vmem:[%s1376_s22 + $0xb8] sm:$0xf0]  ;;  %v1073_v4 = vld [vmem:[%s1376_s22 + $0x134] sm:$0xf]  ;;  %v1055_v8 = vld [vmem:[%s1376_s22 + $0xa4] sm:$0xf] }
  0x4b   : > { %580 = vmatpush.bf16.msra.mxu3 %v858_v29  ;;  %v991_v5 = vld [vmem:[%s1376_s22 + $0x138] sm:$0xf0]  ;;  %v930_v6 = vor.u32 %v1057_v2, %v927_v3  ;;  %v919_v9 = vld [vmem:[%s1376_s22 + $0xa8] sm:$0xf0]  ;;  %v1071_v10 = vld [vmem:[%s1376_s22 + $0x124] sm:$0xf] }
  0x4c   : > { %540 = vmatpush.bf16.msra.mxu0 %v838_v27  ;;  %v994_v7 = vor.u32 %v1073_v4, %v991_v5  ;;  %v983_v11 = vld [vmem:[%s1376_s22 + $0x128] sm:$0xf0]  ;;  %v922_v12 = vor.u32 %v1055_v8, %v919_v9  ;;  %v1053_v14 = vld [vmem:[%s1376_s22 + $0x94] sm:$0xf]  ;;  %v911_v15 = vld [vmem:[%s1376_s22 + $0x98] sm:$0xf0] }
  0x4d   : > { %554 = vmatpush.bf16.msra.mxu1 %v902_v32  ;;  %v986_v13 = vor.u32 %v1071_v10, %v983_v11  ;;  %v1069_v16 = vld [vmem:[%s1376_s22 + $0x114] sm:$0xf]  ;;  %v975_v17 = vld [vmem:[%s1376_s22 + $0x118] sm:$0xf0]  ;;  %v914_v18 = vor.u32 %v1053_v14, %v911_v15  ;;  %v1051_v20 = vld [vmem:[%s1376_s22 + $0x84] sm:$0xf] }
  0x4e   : > { %568 = vmatpush.bf16.msra.mxu2 %v966_v33  ;;  %v978_v19 = vor.u32 %v1069_v16, %v975_v17  ;;  %v903_v21 = vld [vmem:[%s1376_s22 + $0x88] sm:$0xf0]  ;;  %v1067_v22 = vld [vmem:[%s1376_s22 + $0x104] sm:$0xf]  ;;  %v221_v29 = vld [vmem:[#allocation2 + $0x10] sm:$0xff]  ;;  %p1027_p3 = scmp.ne.s32.totalorder %s1245_s12, 5 }
  0x4f   : > { %541 = vmatmul.bf16.vlgmr.msra.gmra.mxu0 %v826_v45  ;;  %581 = vmatpush.bf16.msra.mxu3 %v850_v48  ;;  %v967_v23 = vld [vmem:[%s1376_s22 + $0x108] sm:$0xf0]  ;;  %v906_v24 = vor.u32 %v1051_v20, %v903_v21  ;;  %v223_v36 = vld [vmem:[#allocation2 + $0x18] sm:$0xff]  ;;  %v222_v44 = vld [vmem:[#allocation2] sm:$0xff] }
  0x50   : > { %589 = vmatpush.bf16.msrb.mxu0 %v962_v37  ;;  %555 = vmatmul.bf16.vlgmr.msra.gmra.mxu1 %v1457_v47  ;;  %v970_v25 = vor.u32 %v1067_v22, %v967_v23 }
  0x51   : > { %603 = vmatpush.bf16.msrb.mxu1 %v1026_v38  ;;  %569 = vmatmul.bf16.vlgmr.msra.gmra.mxu2 %v1455_v46 }
  0x53   : > { %582 = vmatpush.bf16.msra.mxu3 %v842_v57 }
  0x54   : > { %590 = vmatpush.bf16.msrb.mxu0 %v954_v49 }
  0x55   : > { %604 = vmatpush.bf16.msrb.mxu1 %v1018_v50  ;;  %v224_v50 = vld [vmem:[#allocation2 + $0x8] sm:$0xff] }
  0x56   : > { %583 = vmatmul.bf16.vlgmr.msra.gmra.mxu3 %v826_v45 }
  0x58   : > { %591 = vmatpush.bf16.msrb.mxu0 %v946_v58 }
  0x59   : > { %605 = vmatpush.bf16.msrb.mxu1 %v1010_v59 }
  0x5c   : > { %592 = vmatpush.bf16.msrb.mxu0 %v938_v0 }
  0x5d   : > { %606 = vmatpush.bf16.msrb.mxu1 %v1002_v1 }
  0x60   : > { %593 = vmatpush.bf16.msrb.mxu0 %v930_v6 }
  0x61   : > { %607 = vmatpush.bf16.msrb.mxu1 %v994_v7 }
  0x64   : > { %594 = vmatpush.bf16.msrb.mxu0 %v922_v12 }
  0x65   : > { %608 = vmatpush.bf16.msrb.mxu1 %v986_v13 }
  0x68   : > { %595 = vmatpush.bf16.msrb.mxu0 %v914_v18 }
  0x69   : > { %609 = vmatpush.bf16.msrb.mxu1 %v978_v19 }
  0x6c   : > { %596 = vmatpush.bf16.msrb.mxu0 %v906_v24 }
  0x6d   : > { %610 = vmatpush.bf16.msrb.mxu1 %v970_v25 }
  0x6f   : > { %597 = vmatmul.bf16.vlgmr.msrb.gmra.mxu0 %v1457_v47 }
  0x70   : > { %611 = vmatmul.bf16.vlgmr.msrb.gmra.mxu1 %v1455_v46 }
  0xcc   : > { %v542_v26 = vpop.f32.mrf.mxu0 }
  0xcd   : > { %v556_v27 = vpop.f32.mrf.mxu1 }
  0xce   : > { %v557_v28 = vadd.f32 %v556_v27, %v542_v26 }
  0xd4   : > { %v570_v30 = vpop.f32.mrf.mxu2  ;;  %v544_v32 = vpop.f32.mrf.mxu0 }
  0xd5   : > { %v571_v31 = vadd.f32 %v570_v30, %v557_v28  ;;  %v558_v33 = vpop.f32.mrf.mxu1 }
  0xd6   : > { %v559_v35 = vadd.f32 %v558_v33, %v544_v32 }
  0xd7   : > { %v617_v34 = vadd.f32 %v571_v31, %v221_v29 }
  0xd9   : > { %621 = vst [vmem:[#allocation2 + $0x10] sm:$0xff] %v617_v34  ;;  %v584_v40 = vpop.f32.mrf.mxu3 }
  0xdc   : > { %v572_v37 = vpop.f32.mrf.mxu2 }
  0xdd   : > { %v573_v38 = vadd.f32 %v572_v37, %v559_v35 }
  0xdf   : > { %v619_v39 = vadd.f32 %v573_v38, %v223_v36 }
  0xe1   : > { %623 = vst [vmem:[#allocation2 + $0x18] sm:$0xff] %v619_v39  ;;  %v586_v47 = vpop.f32.mrf.mxu3 }
  0xec   : > { %v598_v41 = vpop.f32.mrf.mxu0 }
  0xed   : > { %v612_v42 = vpop.f32.mrf.mxu1  ;;  %v599_v43 = vadd.f32 %v598_v41, %v584_v40 }
  0xef   : > { %v613_v45 = vadd.f32 %v612_v42, %v599_v43 }
  0xf1   : > { %v618_v46 = vadd.f32 %v613_v45, %v222_v44 }
  0xf3   : > { %622 = vst [vmem:[#allocation2] sm:$0xff] %v618_v46 }
  0xf4   : > { %v600_v48 = vpop.f32.mrf.mxu0 }
  0xf5   : > { %v601_v49 = vadd.f32 %v600_v48, %v586_v47  ;;  %v614_v51 = vpop.f32.mrf.mxu1 }
  0xf7   : > { %v615_v52 = vadd.f32 %v614_v51, %v601_v49  ;;  %628 = sbr.rel (%p1027_p3) target bundleno = 309 (0x135), region = 40 }
  0xf9   : > { %v620_v53 = vadd.f32 %v615_v52, %v224_v50 }
  0xfb   : > { %624 = vst [vmem:[#allocation2 + $0x8] sm:$0xff] %v620_v53 }
  0xfc   : > { %v1490_v54 = vld [vmem:[#allocation2 + $0x10] sm:$0xff]  ;;  %v1492_v55 = vld [vmem:[#allocation2] sm:$0xff]  ;;  %v1494_v56 = vld [vmem:[#allocation2 + $0x18] sm:$0xff] }
  0xfd   : > { %v633_v58 = vadd.f32 %v1494_v56, %v1490_v54  ;;  %v649_v59 = vmul.f32 %v1490_v54, %v1490_v54  ;;  %v650_v60 = vmul.f32 %v1492_v55, %v1492_v55  ;;  %v651_v61 = vmul.f32 %v1494_v56, %v1494_v56 }
  0xff   : > { %v634_v0 = vrot.slane %v633_v58, 4  ;;  %v653_v1 = vadd.f32 %v651_v61, %v649_v59 }
 0x101   : > { %v635_v4 = vadd.f32 %v634_v0, %v633_v58  ;;  %v654_v5 = vrot.slane %v653_v1, 4 }
 0x102   : > { %v1496_v57 = vld [vmem:[#allocation2 + $0x8] sm:$0xff] }
 0x103   : > { %v640_v62 = vadd.f32 %v1496_v57, %v1492_v55  ;;  %v652_v63 = vmul.f32 %v1496_v57, %v1496_v57  ;;  %v636_v8 = vrot.slane %v635_v4, 2  ;;  %v655_v9 = vadd.f32 %v654_v5, %v653_v1 }
 0x105   : > { %v641_v2 = vrot.slane %v640_v62, 4  ;;  %v660_v3 = vadd.f32 %v652_v63, %v650_v60  ;;  %v637_v12 = vadd.f32 %v636_v8, %v635_v4  ;;  %v656_v13 = vrot.slane %v655_v9, 2 }
 0x107   : > { %v642_v6 = vadd.f32 %v641_v2, %v640_v62  ;;  %v661_v7 = vrot.slane %v660_v3, 4  ;;  %v638_v16 = vrot.slane %v637_v12, 1  ;;  %v657_v17 = vadd.f32 %v656_v13, %v655_v9 }
 0x109   : > { %v643_v10 = vrot.slane %v642_v6, 2  ;;  %v662_v11 = vadd.f32 %v661_v7, %v660_v3  ;;  %v639_v20 = vadd.f32 %v638_v16, %v637_v12  ;;  %v658_v21 = vrot.slane %v657_v17, 1 }
 0x10b   : > { %v644_v14 = vadd.f32 %v643_v10, %v642_v6  ;;  %v663_v15 = vrot.slane %v662_v11, 2  ;;  %v647_v24 = vmul.f32 0.0625, %v639_v20  ;;  %v659_v25 = vadd.f32 %v658_v21, %v657_v17 }
 0x10d   : > { %v645_v18 = vrot.slane %v644_v14, 1  ;;  %v664_v19 = vadd.f32 %v663_v15, %v662_v11  ;;  %v667_v28 = vmul.f32 0.0625, %v659_v25  ;;  %v669_v29 = vmul.f32 %v647_v24, %v647_v24 }
 0x10e   : > { %v675_v47 = vsub.f32 %v1490_v54, %v647_v24  ;;  %v677_v49 = vsub.f32 %v1494_v56, %v647_v24 }
 0x10f   : > { %v646_v22 = vadd.f32 %v645_v18, %v644_v14  ;;  %v665_v23 = vrot.slane %v664_v19, 1  ;;  %v671_v32 = vsub.f32 %v667_v28, %v669_v29 }
 0x111   : > { %v648_v26 = vmul.f32 0.0625, %v646_v22  ;;  %v666_v27 = vadd.f32 %v665_v23, %v664_v19  ;;  %v673_v34 = vmax.f32 %v671_v32, 0.0 }
 0x113   : > { %v668_v30 = vmul.f32 0.0625, %v666_v27  ;;  %v670_v31 = vmul.f32 %v648_v26, %v648_v26  ;;  %v679_v36 = vadd.f32 1e-05, %v673_v34  ;;  %v676_v50 = vsub.f32 %v1492_v55, %v648_v26 }
 0x114   : > { %v678_v52 = vsub.f32 %v1496_v57, %v648_v26 }
 0x115   : > { %v672_v33 = vsub.f32 %v668_v30, %v670_v31  ;;  %1161 = vrsqrt.f32 %v679_v36  ;;  %vm687_vm0 = vweird.f32 %v679_v36 }
 0x117   : > { %v674_v35 = vmax.f32 %v672_v33, 0.0 }
 0x119   : > { %v680_v37 = vadd.f32 1e-05, %v674_v35 }
 0x11b   : > { %1163 = vrsqrt.f32 %v680_v37  ;;  %v1162_v38 = vpop.eup %1161  ;;  %vm697_vm2 = vweird.f32 %v680_v37 }
 0x11c   : > { %v682_v40 = vmul.f32 %v1162_v38, %v679_v36  ;;  %vm688_vm1 = vweird.f32 %v1162_v38 }
 0x11d   : > { %vm689_vm4 = vmor %vm687_vm0, %vm688_vm1 }
 0x11e   : > { %v683_v42 = vmul.f32 %v1162_v38, %v682_v40 }
 0x120   : > { %v684_v44 = vmul.f32 0.5, %v683_v42 }
 0x121   : > { %v1164_v39 = vpop.eup %1163 }
 0x122   : > { %v692_v41 = vmul.f32 %v1164_v39, %v680_v37  ;;  %vm698_vm3 = vweird.f32 %v1164_v39  ;;  %v685_v46 = vsub.f32 1.5, %v684_v44 }
 0x123   : > { %vm699_vm5 = vmor %vm697_vm2, %vm698_vm3 }
 0x124   : > { %v693_v43 = vmul.f32 %v1164_v39, %v692_v41  ;;  %v686_v51 = vmul.f32 %v1162_v38, %v685_v46 }
 0x126   : > { %v694_v45 = vmul.f32 0.5, %v693_v43  ;;  %v690_v58 = vsel %vm689_vm4, %v1162_v38, %v686_v51 }
 0x127   : > { %v701_v60 = vmul.f32 %v690_v58, %v675_v47  ;;  %v703_v61 = vmul.f32 %v690_v58, %v677_v49 }
 0x128   : > { %v695_v48 = vsub.f32 1.5, %v694_v45 }
 0x129   : > { %v705_v54 = vmax.f32 %v701_v60, 0.0  ;;  %v707_v0 = vmax.f32 %v703_v61, 0.0 }
 0x12a   : > { %v696_v53 = vmul.f32 %v1164_v39, %v695_v48 }
 0x12c   : > { %v700_v59 = vsel %vm699_vm5, %v1164_v39, %v696_v53 }
 0x12d   : > { %v702_v62 = vmul.f32 %v700_v59, %v676_v50  ;;  %v704_v63 = vmul.f32 %v700_v59, %v678_v52 }
 0x12f   : > { %v706_v1 = vmax.f32 %v702_v62, 0.0  ;;  %v708_v2 = vmax.f32 %v704_v63, 0.0 }
 0x131   : > { %v709_v56 = vpack.c.bf16 %v706_v1, %v705_v54  ;;  %v710_v3 = vpack.c.bf16 %v708_v2, %v707_v0 }
 0x133   : > { %711 = vst [vmem:[%s1371_s8] sm:$0xff] %v709_v56 }
 0x134   : > { %712 = vst [vmem:[%s1371_s8 + $0x8] sm:$0xff] %v710_v3 }
 0x135 PF: > { %s15_s16 = sadd.s32 1, %s1261_s16   ;;  %s1545_s9 = smov %s1237_s10 }
 0x136   : > { %p12_p4 = scmp.ge.s32.totalorder %s15_s16, 14   ;;  %s1546_s10 = smov %s1241_s11 }
 0x137   : > { %s1547_s11 = smov %s1348_s28  ;;  %s1548_s12 = smov %s1253_s14 }
 0x138   : > { %s1549_s13 = smov %s1257_s15  ;;  %s1550_s14 = smov %s1553_s18 }
 0x139   : > { %s1551_s15 = smov %s1557_s19  ;;  %14 = sbr.rel (!%p12_p4) target bundleno = 5 (0x5), region = 79 }
 0x13e   :  { %737 = vsyncpa [#allocation4], 1 }
 0x13f   :  { %739 = vsyncpa [#allocation4 + $0x1], 1 }

// kernel: generator_forward.56
= control target key start
LH: loop header
LB: loop body
LE: loop exit
PB: predicated region body
PF: predicated region fallthrough
CT: control target
= control target key end

     0   :  { %s1154_s12 = smov 0   ;;  %s1156_s13 = smov 0   ;;  %s1282_s0 = inlined_call_operand.vmem [shape: bf16[32,1024], index: 0, kind: input, shape index: {}]   ;;  %s1283_s1 = inlined_call_operand.vmem [shape: bf16[1024,128], index: 1, kind: input, shape index: {}]   ;;  %s1284_s2 = inlined_call_operand.vmem [shape: f32[1,128], index: 2, kind: input, shape index: {}]   ;;  %s1285_s3 = inlined_call_operand.vmem [shape: bf16[32,128], index: 3, kind: output, shape index: {}]  }
   0x1   :  { %s1158_s14 = smov 0   ;;  %s1160_s15 = smov 0  }
   0x2   :  { %s1162_s16 = smov 0  }
   0x3 LB: > { %s25_s17 = sadd.s32 1, %s1127_s15  ;;  %p48_p1 = scmp.ne.s32.totalorder %s1119_s13, %s1115_s12  ;;  %s1131_s16 = sphi %s1162_s16, %s13_s16   ;;  %s1127_s15 = sphi %s1160_s15, %s1289_s15   ;;  %s1123_s14 = sphi %s1158_s14, %s1288_s14   ;;  %s1119_s13 = sphi %s1156_s13, %s1287_s13   ;;  %s1115_s12 = sphi %s1154_s12, %s1286_s12  }
   0x4   : > { %p26_p0 = scmp.ge.s32.totalorder %s25_s17, 2  ;;  %p49_p2 = scmp.eq.s32.totalorder %s1131_s16, 0 }
   0x5   : > { %s41_s19 = sadd.s32 1, %s1119_s13  ;;  %p825_p5 = scmp.ge.s32.totalorder %s1131_s16, 2 }
   0x6   : > { %s1291_s17 = smov (%p26_p0, %s25_s17), 0  ;;  %p50_p3 = por %p49_p2, %p48_p1 }
   0x7   : > { %s37_s18 = ssub.s32 %s1127_s15, %s1291_s17  ;;  %162 = sbr.rel (%p825_p5) target bundleno = 24 (0x18), region = 20 }
   0x8   : > { %p39_p4 = scmp.eq.s32.totalorder %s37_s18, 0 }
   0xa   : > { %s1189_s20 = scalar_select %p39_p4, %s1119_s13, %s41_s19  }
   0xc   : > { %165 = sbr.rel (!%p50_p3) target bundleno = 24 (0x18), region = 24  ;;  %s167_s21 = sand.u32 (%p50_p3), 1, %s1119_s13  }
   0xd   : > { %s999_s22 = sshll.u32 (%p50_p3), %s1127_s15, 4  ;;  %s826_s23 = sshll.u32 (%p50_p3), %s167_s21, 6 }
   0xe   : > { %s175_s26 = scalar_lea.vmem (%p50_p3), %s1282_s0, %s999_s22  ;;  %s169_s27 = scalar_lea.vmem (%p50_p3), [#allocation3], %s826_s23 }
   0xf   : > { %v188_v0 = vld [vmem:[%s175_s26] sm:$0xff] (%p50_p3)  ;;  %v190_v1 = vld [vmem:[%s175_s26 + $0x8] sm:$0xff] (%p50_p3) }
  0x10   : > { %v192_v2 = vld [vmem:[%s175_s26 + $0x20] sm:$0xff] (%p50_p3)  ;;  %189 = vst [vmem:[%s169_s27] sm:$0xff] (%p50_p3), %v188_v0  ;;  %v194_v3 = vld [vmem:[%s175_s26 + $0x28] sm:$0xff] (%p50_p3) }
  0x11   : > { %191 = vst [vmem:[%s169_s27 + $0x8] sm:$0xff] %v190_v1  ;;  %v196_v4 = vld [vmem:[%s175_s26 + $0x40] sm:$0xff]  ;;  %v198_v5 = vld [vmem:[%s175_s26 + $0x48] sm:$0xff] }
  0x12   : > { %193 = vst [vmem:[%s169_s27 + $0x10] sm:$0xff] %v192_v2  ;;  %v200_v6 = vld [vmem:[%s175_s26 + $0x60] sm:$0xff]  ;;  %v202_v7 = vld [vmem:[%s175_s26 + $0x68] sm:$0xff] }
  0x13   : > { %195 = vst [vmem:[%s169_s27 + $0x18] sm:$0xff] %v194_v3 }
  0x14   : > { %197 = vst [vmem:[%s169_s27 + $0x20] sm:$0xff] %v196_v4 }
  0x15   : > { %199 = vst [vmem:[%s169_s27 + $0x28] sm:$0xff] %v198_v5 }
  0x16   : > { %201 = vst [vmem:[%s169_s27 + $0x30] sm:$0xff] %v200_v6 }
  0x17   : > { %203 = vst [vmem:[%s169_s27 + $0x38] sm:$0xff] %v202_v7 }
  0x18 PF: > { %p829_p6 = scmp.ge.s32.totalorder %s1131_s16, 1  ;;  %p220_p7 = scmp.lt.s32.totalorder %s1131_s16, 3 }
  0x1a   : > { %p221_p8 = pnand %p829_p6, %p220_p7 }
  0x1b   : > { %s227_s28 = sand.u32 (!%p221_p8), 1, %s1115_s12   ;;  %s831_s29 = sshll.u32 (!%p221_p8), %s1123_s14, 6 }
  0x1c   : > { %224 = sbr.rel (%p221_p8) target bundleno = 252 (0xfc), region = 51  ;;  %s830_s30 = sshll.u32 (!%p221_p8), %s227_s28, 6 }
  0x1d   : > { %p267_p9 = scmp.lt.s32.totalorder (!%p221_p8), %s831_s29, 127  ;;  %s1206_s8 = scalar_lea.vmem (!%p221_p8), [#allocation3], %s830_s30 }
  0x1e   : > { %p833_p10 = scmp.ne.s32.totalorder (!%p221_p8), %s1123_s14, 0 }
  0x21   : > { %s1293_s29 = smov (!%p267_p9, %s831_s29), 127  ;;  %290 = sbr.rel (%p833_p10) target bundleno = 43 (0x2b), region = 59 }
  0x22   : > { %s832_s4 = sshll.u32 %s1293_s29, 2 }
  0x23   : > { %s1204_s7 = scalar_lea.vmem %s1283_s1, %s832_s4 }
  0x26   : > { %v1133_v8 = vmov 0.0  }
  0x27   : > { %291 = vst [vmem:[#allocation2 + $0x10] sm:$0xff] %v1133_v8 }
  0x28   : > { %292 = vst [vmem:[#allocation2] sm:$0xff] %v1133_v8 }
  0x29   : > { %293 = vst [vmem:[#allocation2 + $0x18] sm:$0xff] %v1133_v8 }
  0x2a   : > { %294 = vst [vmem:[#allocation2 + $0x8] sm:$0xff] %v1133_v8 }
  0x2b PF: > { %v1015_v9 = vld [vmem:[%s1204_s7 + $0x38] sm:$0xff]  ;;  %v1014_v13 = vld [vmem:[%s1204_s7 + $0x30] sm:$0xff]  ;;  %v1013_v17 = vld [vmem:[%s1204_s7 + $0x28] sm:$0xff]  ;;  %p994_p11 = scmp.ne.s32.totalorder %s1123_s14, 1 }
  0x2c   : > { %v1023_v10 = vld [vmem:[%s1204_s7 + $0x78] sm:$0xff]  ;;  %603 = vmatpush.bf16.msra.mxu0 %v1015_v9  ;;  %v1022_v14 = vld [vmem:[%s1204_s7 + $0x70] sm:$0xff]  ;;  %v1021_v18 = vld [vmem:[%s1204_s7 + $0x68] sm:$0xff] }
  0x2d   : > { %v1031_v11 = vld [vmem:[%s1204_s7 + $0xb8] sm:$0xff]  ;;  %622 = vmatpush.bf16.msra.mxu1 %v1023_v10  ;;  %v1030_v15 = vld [vmem:[%s1204_s7 + $0xb0] sm:$0xff]  ;;  %v1029_v19 = vld [vmem:[%s1204_s7 + $0xa8] sm:$0xff] }
  0x2e   : > { %v1039_v12 = vld [vmem:[%s1204_s7 + $0xf8] sm:$0xff]  ;;  %641 = vmatpush.bf16.msra.mxu2 %v1031_v11  ;;  %v1038_v16 = vld [vmem:[%s1204_s7 + $0xf0] sm:$0xff]  ;;  %v1037_v20 = vld [vmem:[%s1204_s7 + $0xe8] sm:$0xff] }
  0x2f   : > { %660 = vmatpush.bf16.msra.mxu3 %v1039_v12  ;;  %v1012_v21 = vld [vmem:[%s1204_s7 + $0x20] sm:$0xff]  ;;  %v1011_v25 = vld [vmem:[%s1204_s7 + $0x18] sm:$0xff]  ;;  %v1010_v29 = vld [vmem:[%s1204_s7 + $0x10] sm:$0xff] }
  0x30   : > { %604 = vmatpush.bf16.msra.mxu0 %v1014_v13  ;;  %v1020_v22 = vld [vmem:[%s1204_s7 + $0x60] sm:$0xff]  ;;  %v1019_v26 = vld [vmem:[%s1204_s7 + $0x58] sm:$0xff]  ;;  %v1018_v30 = vld [vmem:[%s1204_s7 + $0x50] sm:$0xff] }
  0x31   : > { %623 = vmatpush.bf16.msra.mxu1 %v1022_v14  ;;  %v1028_v23 = vld [vmem:[%s1204_s7 + $0xa0] sm:$0xff]  ;;  %v1027_v27 = vld [vmem:[%s1204_s7 + $0x98] sm:$0xff]  ;;  %v1026_v31 = vld [vmem:[%s1204_s7 + $0x90] sm:$0xff] }
  0x32   : > { %642 = vmatpush.bf16.msra.mxu2 %v1030_v15  ;;  %v1036_v24 = vld [vmem:[%s1204_s7 + $0xe0] sm:$0xff]  ;;  %v1035_v28 = vld [vmem:[%s1204_s7 + $0xd8] sm:$0xff]  ;;  %v1034_v32 = vld [vmem:[%s1204_s7 + $0xd0] sm:$0xff] }
  0x33   : > { %661 = vmatpush.bf16.msra.mxu3 %v1038_v16  ;;  %v1009_v33 = vld [vmem:[%s1204_s7 + $0x8] sm:$0xff]  ;;  %v1008_v37 = vld [vmem:[%s1204_s7] sm:$0xff]  ;;  %v1002_v42 = vld [vmem:[%s1206_s8 + $0xc] sm:$0xf0] }
  0x34   : > { %605 = vmatpush.bf16.msra.mxu0 %v1013_v17  ;;  %v1017_v34 = vld [vmem:[%s1204_s7 + $0x48] sm:$0xff]  ;;  %v1016_v38 = vld [vmem:[%s1204_s7 + $0x40] sm:$0xff]  ;;  %v838_v44 = vld [vmem:[%s1206_s8 + $0x10] sm:$0xf0] }
  0x35   : > { %624 = vmatpush.bf16.msra.mxu1 %v1021_v18  ;;  %v1025_v35 = vld [vmem:[%s1204_s7 + $0x88] sm:$0xff]  ;;  %v1024_v39 = vld [vmem:[%s1204_s7 + $0x80] sm:$0xff]  ;;  %v1003_v46 = vld [vmem:[%s1206_s8 + $0x14] sm:$0xf0] }
  0x36   : > { %643 = vmatpush.bf16.msra.mxu2 %v1029_v19  ;;  %v1033_v36 = vld [vmem:[%s1204_s7 + $0xc8] sm:$0xff]  ;;  %v1032_v40 = vld [vmem:[%s1204_s7 + $0xc0] sm:$0xff]  ;;  %v846_v48 = vld [vmem:[%s1206_s8 + $0x18] sm:$0xf0] }
  0x37   : > { %662 = vmatpush.bf16.msra.mxu3 %v1037_v20  ;;  %v836_v41 = vld [vmem:[%s1206_s8] sm:$0xf]  ;;  %v1000_v43 = vld [vmem:[%s1206_s8 + $0x4] sm:$0xf]  ;;  %v844_v45 = vld [vmem:[%s1206_s8 + $0x8] sm:$0xf] }
  0x38   : > { %606 = vmatpush.bf16.msra.mxu0 %v1012_v21  ;;  %v1001_v47 = vld [vmem:[%s1206_s8 + $0xc] sm:$0xf]  ;;  %v837_v49 = vor.u32 %v1002_v42, %v836_v41  ;;  %v841_v50 = vor.u32 %v1000_v43, %v838_v44  ;;  %v845_v51 = vor.u32 %v1003_v46, %v844_v45  ;;  %v852_v53 = vld [vmem:[%s1206_s8 + $0x20] sm:$0xf]  ;;  %v1006_v54 = vld [vmem:[%s1206_s8 + $0x2c] sm:$0xf0] }
  0x39   : > { %625 = vmatpush.bf16.msra.mxu1 %v1020_v22  ;;  %v849_v52 = vor.u32 %v1001_v47, %v846_v48  ;;  %v1004_v55 = vld [vmem:[%s1206_s8 + $0x24] sm:$0xf]  ;;  %v854_v56 = vld [vmem:[%s1206_s8 + $0x30] sm:$0xf0]  ;;  %v860_v57 = vld [vmem:[%s1206_s8 + $0x28] sm:$0xf]  ;;  %v853_v61 = vor.u32 %v1006_v54, %v852_v53 }
  0x3a   : > { %644 = vmatpush.bf16.msra.mxu2 %v1028_v23  ;;  %v1007_v58 = vld [vmem:[%s1206_s8 + $0x34] sm:$0xf0]  ;;  %v1005_v59 = vld [vmem:[%s1206_s8 + $0x2c] sm:$0xf]  ;;  %v862_v60 = vld [vmem:[%s1206_s8 + $0x38] sm:$0xf0]  ;;  %v857_v62 = vor.u32 %v1004_v55, %v854_v56 }
  0x3b   : > { %663 = vmatpush.bf16.msra.mxu3 %v1036_v24  ;;  %v861_v63 = vor.u32 %v1007_v58, %v860_v57  ;;  %v865_v0 = vor.u32 %v1005_v59, %v862_v60  ;;  %v295_v9 = vld [vmem:[#allocation2 + $0x10] sm:$0xff]  ;;  %v296_v16 = vld [vmem:[#allocation2] sm:$0xff] }
  0x3c   : > { %607 = vmatpush.bf16.msra.mxu0 %v1011_v25  ;;  %v297_v25 = vld [vmem:[#allocation2 + $0x18] sm:$0xff] }
  0x3d   : > { %626 = vmatpush.bf16.msra.mxu1 %v1019_v26 }
  0x3e   : > { %645 = vmatpush.bf16.msra.mxu2 %v1027_v27 }
  0x3f   : > { %664 = vmatpush.bf16.msra.mxu3 %v1035_v28 }
  0x40   : > { %608 = vmatpush.bf16.msra.mxu0 %v1010_v29 }
  0x41   : > { %627 = vmatpush.bf16.msra.mxu1 %v1018_v30 }
  0x42   : > { %646 = vmatpush.bf16.msra.mxu2 %v1026_v31 }
  0x43   : > { %665 = vmatpush.bf16.msra.mxu3 %v1034_v32 }
  0x44   : > { %609 = vmatpush.bf16.msra.mxu0 %v1009_v33  ;;  %v298_v33 = vld [vmem:[#allocation2 + $0x8] sm:$0xff] }
  0x45   : > { %628 = vmatpush.bf16.msra.mxu1 %v1017_v34 }
  0x46   : > { %647 = vmatpush.bf16.msra.mxu2 %v1025_v35 }
  0x47   : > { %666 = vmatpush.bf16.msra.mxu3 %v1033_v36 }
  0x48   : > { %610 = vmatpush.bf16.msra.mxu0 %v1008_v37 }
  0x49   : > { %629 = vmatpush.bf16.msra.mxu1 %v1016_v38 }
  0x4a   : > { %648 = vmatpush.bf16.msra.mxu2 %v1024_v39 }
  0x4b   : > { %667 = vmatpush.bf16.msra.mxu3 %v1032_v40  ;;  %611 = vmatmul.bf16.vlgmr.msra.gmra.mxu0 %v837_v49 }
  0x4c   : > { %630 = vmatmul.bf16.vlgmr.msra.gmra.mxu1 %v841_v50 }
  0x4d   : > { %649 = vmatmul.bf16.vlgmr.msra.gmra.mxu2 %v845_v51 }
  0x4e   : > { %668 = vmatmul.bf16.vlgmr.msra.gmra.mxu3 %v849_v52 }
  0x5b   : > { %616 = vmatmul.bf16.gmra.mxu0 %v853_v61 }
  0x5c   : > { %635 = vmatmul.bf16.gmra.mxu1 %v857_v62 }
  0x5d   : > { %654 = vmatmul.bf16.gmra.mxu2 %v861_v63 }
  0x5e   : > { %673 = vmatmul.bf16.gmra.mxu3 %v865_v0 }
  0xc8   : > { %v612_v1 = vpop.f32.mrf.mxu0 }
  0xc9   : > { %v631_v2 = vpop.f32.mrf.mxu1 }
  0xca   : > { %v632_v3 = vadd.f32 %v631_v2, %v612_v1 }
  0xd0   : > { %v650_v4 = vpop.f32.mrf.mxu2  ;;  %v614_v7 = vpop.f32.mrf.mxu0 }
  0xd1   : > { %v669_v5 = vpop.f32.mrf.mxu3  ;;  %v651_v6 = vadd.f32 %v650_v4, %v632_v3  ;;  %v633_v8 = vpop.f32.mrf.mxu1 }
  0xd2   : > { %v634_v12 = vadd.f32 %v633_v8, %v614_v7 }
  0xd3   : > { %v670_v10 = vadd.f32 %v669_v5, %v651_v6 }
  0xd5   : > { %v679_v11 = vadd.f32 %v670_v10, %v295_v9 }
  0xd7   : > { %683 = vst [vmem:[#allocation2 + $0x10] sm:$0xff] %v679_v11 }
  0xd8   : > { %v652_v13 = vpop.f32.mrf.mxu2  ;;  %v617_v17 = vpop.f32.mrf.mxu0 }
  0xd9   : > { %v671_v14 = vpop.f32.mrf.mxu3  ;;  %v653_v15 = vadd.f32 %v652_v13, %v634_v12  ;;  %v636_v18 = vpop.f32.mrf.mxu1 }
  0xda   : > { %v637_v21 = vadd.f32 %v636_v18, %v617_v17 }
  0xdb   : > { %v672_v19 = vadd.f32 %v671_v14, %v653_v15 }
  0xdd   : > { %v680_v20 = vadd.f32 %v672_v19, %v296_v16 }
  0xdf   : > { %684 = vst [vmem:[#allocation2] sm:$0xff] %v680_v20 }
  0xe0   : > { %v655_v22 = vpop.f32.mrf.mxu2  ;;  %v619_v27 = vpop.f32.mrf.mxu0 }
  0xe1   : > { %v674_v23 = vpop.f32.mrf.mxu3  ;;  %v656_v24 = vadd.f32 %v655_v22, %v637_v21  ;;  %v638_v28 = vpop.f32.mrf.mxu1 }
  0xe2   : > { %v639_v30 = vadd.f32 %v638_v28, %v619_v27 }
  0xe3   : > { %v675_v26 = vadd.f32 %v674_v23, %v656_v24 }
  0xe5   : > { %v681_v29 = vadd.f32 %v675_v26, %v297_v25 }
  0xe7   : > { %685 = vst [vmem:[#allocation2 + $0x18] sm:$0xff] %v681_v29 }
  0xe8   : > { %v657_v31 = vpop.f32.mrf.mxu2 }
  0xe9   : > { %v658_v32 = vadd.f32 %v657_v31, %v639_v30  ;;  %v676_v34 = vpop.f32.mrf.mxu3 }
  0xeb   : > { %v677_v35 = vadd.f32 %v676_v34, %v658_v32  ;;  %690 = sbr.rel (%p994_p11) target bundleno = 252 (0xfc), region = 63 }
  0xed   : > { %v682_v36 = vadd.f32 %v677_v35, %v298_v33 }
  0xef   : > { %686 = vst [vmem:[#allocation2 + $0x8] sm:$0xff] %v682_v36 }
  0xf0   : > { %v691_v37 = vld [vmem:[#allocation2 + $0x10] sm:$0xff]  ;;  %v692_v38 = vld [vmem:[#allocation2] sm:$0xff]  ;;  %v693_v40 = vld [vmem:[#allocation2 + $0x18] sm:$0xff] }
  0xf1   : > { %v1092_v39 = vld [vmem:[%s1284_s2] ss:$0 sm:$0xff] }
  0xf2   : > { %v699_v42 = vadd.f32 %v1092_v39, %v691_v37  ;;  %v700_v43 = vadd.f32 %v1092_v39, %v692_v38  ;;  %v701_v44 = vadd.f32 %v1092_v39, %v693_v40 }
  0xf4   : > { %v1043_v46 = vpack.c.bf16 %v700_v43, %v699_v42 }
  0xf6   : > { %v694_v41 = vld [vmem:[#allocation2 + $0x8] sm:$0xff]  ;;  %1044 = vst [vmem:[%s1285_s3] sm:$0xff] %v1043_v46  }
  0xf7   : > { %v702_v45 = vadd.f32 %v1092_v39, %v694_v41 }
  0xf9   : > { %v1048_v47 = vpack.c.bf16 %v702_v45, %v701_v44 }
  0xfb   : > { %1050 = vst [vmem:[%s1285_s3 + $0x8] sm:$0xff] %v1048_v47  }
  0xfc PF: > { %s13_s16 = sadd.s32 1, %s1131_s16   ;;  %s1286_s12 = smov %s1119_s13 }
  0xfd   : > { %p10_p12 = scmp.ge.s32.totalorder %s13_s16, 4   ;;  %s1287_s13 = smov %s1189_s20 }
  0xfe   : > { %s1288_s14 = smov %s1127_s15  ;;  %s1289_s15 = smov %s1291_s17 }
  0xff   :  { %12 = sbr.rel (!%p10_p12) target bundleno = 3 (0x3), region = 104 }

// kernel: generator_forward.55
= control target key start
LH: loop header
LB: loop body
LE: loop exit
PB: predicated region body
PF: predicated region fallthrough
CT: control target
= control target key end

     0   :  { %s826_s1 = inlined_call_operand.vmem [shape: bf16[512,128], index: 1, kind: input, shape index: {}]   ;;  %s827_s0 = inlined_call_operand.vmem [shape: bf16[32,512], index: 0, kind: input, shape index: {}]   ;;  %s828_s2 = inlined_call_operand.vmem [shape: f32[1,128], index: 2, kind: input, shape index: {}]   ;;  %s829_s3 = inlined_call_operand.vmem [shape: bf16[32,128], index: 3, kind: output, shape index: {}]  }
   0x1   :  { %v616_v0 = vld [vmem:[%s826_s1 + $0x38] sm:$0xff]  ;;  %v615_v4 = vld [vmem:[%s826_s1 + $0x30] sm:$0xff]  ;;  %v614_v8 = vld [vmem:[%s826_s1 + $0x28] sm:$0xff] }
   0x2   :  { %v624_v1 = vld [vmem:[%s826_s1 + $0x78] sm:$0xff]  ;;  %330 = vmatpush.bf16.msra.mxu0 %v616_v0  ;;  %v623_v5 = vld [vmem:[%s826_s1 + $0x70] sm:$0xff]  ;;  %v622_v9 = vld [vmem:[%s826_s1 + $0x68] sm:$0xff] }
   0x3   :  { %v632_v2 = vld [vmem:[%s826_s1 + $0xb8] sm:$0xff]  ;;  %349 = vmatpush.bf16.msra.mxu1 %v624_v1  ;;  %v631_v6 = vld [vmem:[%s826_s1 + $0xb0] sm:$0xff]  ;;  %v630_v10 = vld [vmem:[%s826_s1 + $0xa8] sm:$0xff] }
   0x4   :  { %v640_v3 = vld [vmem:[%s826_s1 + $0xf8] sm:$0xff]  ;;  %368 = vmatpush.bf16.msra.mxu2 %v632_v2  ;;  %v639_v7 = vld [vmem:[%s826_s1 + $0xf0] sm:$0xff]  ;;  %v638_v11 = vld [vmem:[%s826_s1 + $0xe8] sm:$0xff] }
   0x5   :  { %387 = vmatpush.bf16.msra.mxu3 %v640_v3  ;;  %v613_v12 = vld [vmem:[%s826_s1 + $0x20] sm:$0xff]  ;;  %v612_v16 = vld [vmem:[%s826_s1 + $0x18] sm:$0xff]  ;;  %v611_v20 = vld [vmem:[%s826_s1 + $0x10] sm:$0xff] }
   0x6   :  { %331 = vmatpush.bf16.msra.mxu0 %v615_v4  ;;  %v621_v13 = vld [vmem:[%s826_s1 + $0x60] sm:$0xff]  ;;  %v620_v17 = vld [vmem:[%s826_s1 + $0x58] sm:$0xff]  ;;  %v619_v21 = vld [vmem:[%s826_s1 + $0x50] sm:$0xff] }
   0x7   :  { %350 = vmatpush.bf16.msra.mxu1 %v623_v5  ;;  %v629_v14 = vld [vmem:[%s826_s1 + $0xa0] sm:$0xff]  ;;  %v628_v18 = vld [vmem:[%s826_s1 + $0x98] sm:$0xff]  ;;  %v627_v22 = vld [vmem:[%s826_s1 + $0x90] sm:$0xff] }
   0x8   :  { %369 = vmatpush.bf16.msra.mxu2 %v631_v6  ;;  %v637_v15 = vld [vmem:[%s826_s1 + $0xe0] sm:$0xff]  ;;  %v636_v19 = vld [vmem:[%s826_s1 + $0xd8] sm:$0xff]  ;;  %v635_v23 = vld [vmem:[%s826_s1 + $0xd0] sm:$0xff] }
   0x9   :  { %388 = vmatpush.bf16.msra.mxu3 %v639_v7  ;;  %v610_v24 = vld [vmem:[%s826_s1 + $0x8] sm:$0xff]  ;;  %v609_v28 = vld [vmem:[%s826_s1] sm:$0xff]  ;;  %v603_v33 = vld [vmem:[%s827_s0 + $0xc] sm:$0xf0] }
   0xa   :  { %332 = vmatpush.bf16.msra.mxu0 %v614_v8  ;;  %v618_v25 = vld [vmem:[%s826_s1 + $0x48] sm:$0xff]  ;;  %v617_v29 = vld [vmem:[%s826_s1 + $0x40] sm:$0xff]  ;;  %v445_v35 = vld [vmem:[%s827_s0 + $0x10] sm:$0xf0] }
   0xb   :  { %351 = vmatpush.bf16.msra.mxu1 %v622_v9  ;;  %v626_v26 = vld [vmem:[%s826_s1 + $0x88] sm:$0xff]  ;;  %v625_v30 = vld [vmem:[%s826_s1 + $0x80] sm:$0xff]  ;;  %v604_v37 = vld [vmem:[%s827_s0 + $0x14] sm:$0xf0] }
   0xc   :  { %370 = vmatpush.bf16.msra.mxu2 %v630_v10  ;;  %v634_v27 = vld [vmem:[%s826_s1 + $0xc8] sm:$0xff]  ;;  %v633_v31 = vld [vmem:[%s826_s1 + $0xc0] sm:$0xff]  ;;  %v453_v39 = vld [vmem:[%s827_s0 + $0x18] sm:$0xf0] }
   0xd   :  { %389 = vmatpush.bf16.msra.mxu3 %v638_v11  ;;  %v443_v32 = vld [vmem:[%s827_s0] sm:$0xf]  ;;  %v601_v34 = vld [vmem:[%s827_s0 + $0x4] sm:$0xf]  ;;  %v451_v36 = vld [vmem:[%s827_s0 + $0x8] sm:$0xf] }
   0xe   :  { %333 = vmatpush.bf16.msra.mxu0 %v613_v12  ;;  %v602_v38 = vld [vmem:[%s827_s0 + $0xc] sm:$0xf]  ;;  %v444_v40 = vor.u32 %v603_v33, %v443_v32  ;;  %v448_v41 = vor.u32 %v601_v34, %v445_v35  ;;  %v452_v42 = vor.u32 %v604_v37, %v451_v36  ;;  %v459_v44 = vld [vmem:[%s827_s0 + $0x20] sm:$0xf]  ;;  %v607_v45 = vld [vmem:[%s827_s0 + $0x2c] sm:$0xf0] }
   0xf   :  { %352 = vmatpush.bf16.msra.mxu1 %v621_v13  ;;  %v456_v43 = vor.u32 %v602_v38, %v453_v39  ;;  %v605_v46 = vld [vmem:[%s827_s0 + $0x24] sm:$0xf]  ;;  %v461_v47 = vld [vmem:[%s827_s0 + $0x30] sm:$0xf0]  ;;  %v467_v48 = vld [vmem:[%s827_s0 + $0x28] sm:$0xf]  ;;  %v460_v52 = vor.u32 %v607_v45, %v459_v44 }
  0x10   :  { %371 = vmatpush.bf16.msra.mxu2 %v629_v14  ;;  %v608_v49 = vld [vmem:[%s827_s0 + $0x34] sm:$0xf0]  ;;  %v606_v50 = vld [vmem:[%s827_s0 + $0x2c] sm:$0xf]  ;;  %v469_v51 = vld [vmem:[%s827_s0 + $0x38] sm:$0xf0]  ;;  %v464_v53 = vor.u32 %v605_v46, %v461_v47 }
  0x11   :  { %390 = vmatpush.bf16.msra.mxu3 %v637_v15  ;;  %v468_v54 = vor.u32 %v608_v49, %v467_v48  ;;  %v472_v55 = vor.u32 %v606_v50, %v469_v51  ;;  %v652_v4 = vld [vmem:[%s828_s2] ss:$0 sm:$0xff] }
  0x12   :  { %334 = vmatpush.bf16.msra.mxu0 %v612_v16 }
  0x13   :  { %353 = vmatpush.bf16.msra.mxu1 %v620_v17 }
  0x14   :  { %372 = vmatpush.bf16.msra.mxu2 %v628_v18 }
  0x15   :  { %391 = vmatpush.bf16.msra.mxu3 %v636_v19 }
  0x16   :  { %335 = vmatpush.bf16.msra.mxu0 %v611_v20 }
  0x17   :  { %354 = vmatpush.bf16.msra.mxu1 %v619_v21 }
  0x18   :  { %373 = vmatpush.bf16.msra.mxu2 %v627_v22 }
  0x19   :  { %392 = vmatpush.bf16.msra.mxu3 %v635_v23 }
  0x1a   :  { %336 = vmatpush.bf16.msra.mxu0 %v610_v24 }
  0x1b   :  { %355 = vmatpush.bf16.msra.mxu1 %v618_v25 }
  0x1c   :  { %374 = vmatpush.bf16.msra.mxu2 %v626_v26 }
  0x1d   :  { %393 = vmatpush.bf16.msra.mxu3 %v634_v27 }
  0x1e   :  { %337 = vmatpush.bf16.msra.mxu0 %v609_v28 }
  0x1f   :  { %356 = vmatpush.bf16.msra.mxu1 %v617_v29 }
  0x20   :  { %375 = vmatpush.bf16.msra.mxu2 %v625_v30 }
  0x21   :  { %394 = vmatpush.bf16.msra.mxu3 %v633_v31  ;;  %338 = vmatmul.bf16.vlgmr.msra.gmra.mxu0 %v444_v40 }
  0x22   :  { %357 = vmatmul.bf16.vlgmr.msra.gmra.mxu1 %v448_v41 }
  0x23   :  { %376 = vmatmul.bf16.vlgmr.msra.gmra.mxu2 %v452_v42 }
  0x24   :  { %395 = vmatmul.bf16.vlgmr.msra.gmra.mxu3 %v456_v43 }
  0x31   :  { %343 = vmatmul.bf16.gmra.mxu0 %v460_v52 }
  0x32   :  { %362 = vmatmul.bf16.gmra.mxu1 %v464_v53 }
  0x33   :  { %381 = vmatmul.bf16.gmra.mxu2 %v468_v54 }
  0x34   :  { %400 = vmatmul.bf16.gmra.mxu3 %v472_v55 }
  0x9e   :  { %v339_v56 = vpop.f32.mrf.mxu0 }
  0x9f   :  { %v358_v57 = vpop.f32.mrf.mxu1 }
  0xa0   :  { %v359_v60 = vadd.f32 %v358_v57, %v339_v56 }
  0xa6   :  { %v377_v58 = vpop.f32.mrf.mxu2  ;;  %v341_v61 = vpop.f32.mrf.mxu0 }
  0xa7   :  { %v396_v59 = vpop.f32.mrf.mxu3  ;;  %v360_v62 = vpop.f32.mrf.mxu1  ;;  %v378_v63 = vadd.f32 %v377_v58, %v359_v60 }
  0xa8   :  { %v361_v0 = vadd.f32 %v360_v62, %v341_v61 }
  0xa9   :  { %v397_v3 = vadd.f32 %v396_v59, %v378_v63 }
  0xab   :  { %v425_v9 = vadd.f32 %v652_v4, %v397_v3 }
  0xae   :  { %v379_v1 = vpop.f32.mrf.mxu2  ;;  %v344_v6 = vpop.f32.mrf.mxu0 }
  0xaf   :  { %v398_v2 = vpop.f32.mrf.mxu3  ;;  %v380_v5 = vadd.f32 %v379_v1, %v361_v0  ;;  %v363_v7 = vpop.f32.mrf.mxu1 }
  0xb0   :  { %v364_v14 = vadd.f32 %v363_v7, %v344_v6 }
  0xb1   :  { %v399_v8 = vadd.f32 %v398_v2, %v380_v5 }
  0xb3   :  { %v426_v10 = vadd.f32 %v652_v4, %v399_v8 }
  0xb5   :  { %v644_v11 = vpack.c.bf16 %v426_v10, %v425_v9 }
  0xb6   :  { %v382_v12 = vpop.f32.mrf.mxu2  ;;  %v346_v15 = vpop.f32.mrf.mxu0 }
  0xb7   :  { %v401_v13 = vpop.f32.mrf.mxu3  ;;  %645 = vst [vmem:[%s829_s3] sm:$0xff] %v644_v11   ;;  %v365_v16 = vpop.f32.mrf.mxu1  ;;  %v383_v17 = vadd.f32 %v382_v12, %v364_v14 }
  0xb8   :  { %v366_v18 = vadd.f32 %v365_v16, %v346_v15 }
  0xb9   :  { %v402_v20 = vadd.f32 %v401_v13, %v383_v17 }
  0xbb   :  { %v427_v24 = vadd.f32 %v652_v4, %v402_v20 }
  0xbe   :  { %v384_v19 = vpop.f32.mrf.mxu2 }
  0xbf   :  { %v385_v21 = vadd.f32 %v384_v19, %v366_v18  ;;  %v403_v22 = vpop.f32.mrf.mxu3 }
  0xc1   :  { %v404_v23 = vadd.f32 %v403_v22, %v385_v21 }
  0xc3   :  { %v428_v25 = vadd.f32 %v652_v4, %v404_v23 }
  0xc5   :  { %v649_v26 = vpack.c.bf16 %v428_v25, %v427_v24 }
  0xc7   :  { %651 = vst [vmem:[%s829_s3 + $0x8] sm:$0xff] %v649_v26  }

// kernel: generator_forward.53
= control target key start
LH: loop header
LB: loop body
LE: loop exit
PB: predicated region body
PF: predicated region fallthrough
CT: control target
= control target key end

     0   :  { %s480_s1 = inlined_call_operand.vmem [shape: bf16[256,128], index: 1, kind: input, shape index: {}]   ;;  %s481_s0 = inlined_call_operand.vmem [shape: bf16[32,256], index: 0, kind: input, shape index: {}]   ;;  %s482_s2 = inlined_call_operand.vmem [shape: f32[1,128], index: 2, kind: input, shape index: {}]   ;;  %s483_s3 = inlined_call_operand.vmem [shape: bf16[32,128], index: 3, kind: output, shape index: {}]  }
   0x1   :  { %v342_v0 = vld [vmem:[%s480_s1 + $0x38] sm:$0xff]  ;;  %v341_v2 = vld [vmem:[%s480_s1 + $0x30] sm:$0xff]  ;;  %v340_v4 = vld [vmem:[%s480_s1 + $0x28] sm:$0xff] }
   0x2   :  { %v350_v1 = vld [vmem:[%s480_s1 + $0x78] sm:$0xff]  ;;  %178 = vmatpush.bf16.msra.mxu0 %v342_v0  ;;  %362 = vmatpush.bf16.msra.mxu2 %v342_v0  ;;  %v349_v3 = vld [vmem:[%s480_s1 + $0x70] sm:$0xff]  ;;  %v348_v5 = vld [vmem:[%s480_s1 + $0x68] sm:$0xff] }
   0x3   :  { %197 = vmatpush.bf16.msra.mxu1 %v350_v1  ;;  %370 = vmatpush.bf16.msra.mxu3 %v350_v1  ;;  %v339_v6 = vld [vmem:[%s480_s1 + $0x20] sm:$0xff]  ;;  %v338_v8 = vld [vmem:[%s480_s1 + $0x18] sm:$0xff]  ;;  %v337_v10 = vld [vmem:[%s480_s1 + $0x10] sm:$0xff] }
   0x4   :  { %v347_v7 = vld [vmem:[%s480_s1 + $0x60] sm:$0xff]  ;;  %v346_v9 = vld [vmem:[%s480_s1 + $0x58] sm:$0xff]  ;;  %v345_v11 = vld [vmem:[%s480_s1 + $0x50] sm:$0xff] }
   0x5   :  { %v336_v12 = vld [vmem:[%s480_s1 + $0x8] sm:$0xff]  ;;  %v335_v14 = vld [vmem:[%s480_s1] sm:$0xff]  ;;  %v261_v18 = vld [vmem:[%s481_s0 + $0x10] sm:$0xf] }
   0x6   :  { %179 = vmatpush.bf16.msra.mxu0 %v341_v2  ;;  %363 = vmatpush.bf16.msra.mxu2 %v341_v2  ;;  %v344_v13 = vld [vmem:[%s480_s1 + $0x48] sm:$0xff]  ;;  %v343_v15 = vld [vmem:[%s480_s1 + $0x40] sm:$0xff]  ;;  %v334_v19 = vld [vmem:[%s481_s0 + $0x14] sm:$0xf0] }
   0x7   :  { %198 = vmatpush.bf16.msra.mxu1 %v349_v3  ;;  %371 = vmatpush.bf16.msra.mxu3 %v349_v3  ;;  %v253_v16 = vld [vmem:[%s481_s0] sm:$0xf]  ;;  %v332_v17 = vld [vmem:[%s481_s0 + $0x4] sm:$0xf0]  ;;  %v331_v20 = vld [vmem:[%s481_s0 + $0x4] sm:$0xf]  ;;  %v262_v25 = vor.u32 %v334_v19, %v261_v18 }
   0x8   :  { %v255_v21 = vld [vmem:[%s481_s0 + $0x8] sm:$0xf0]  ;;  %v333_v22 = vld [vmem:[%s481_s0 + $0x14] sm:$0xf]  ;;  %v263_v23 = vld [vmem:[%s481_s0 + $0x18] sm:$0xf0]  ;;  %v254_v24 = vor.u32 %v332_v17, %v253_v16 }
   0x9   :  { %v258_v26 = vor.u32 %v331_v20, %v255_v21  ;;  %v266_v27 = vor.u32 %v333_v22, %v263_v23  ;;  %v378_v33 = vld [vmem:[%s482_s2] ss:$0 sm:$0xff] }
   0xa   :  { %180 = vmatpush.bf16.msra.mxu0 %v340_v4  ;;  %364 = vmatpush.bf16.msra.mxu2 %v340_v4 }
   0xb   :  { %199 = vmatpush.bf16.msra.mxu1 %v348_v5  ;;  %372 = vmatpush.bf16.msra.mxu3 %v348_v5 }
   0xe   :  { %181 = vmatpush.bf16.msra.mxu0 %v339_v6  ;;  %365 = vmatpush.bf16.msra.mxu2 %v339_v6 }
   0xf   :  { %200 = vmatpush.bf16.msra.mxu1 %v347_v7  ;;  %373 = vmatpush.bf16.msra.mxu3 %v347_v7 }
  0x12   :  { %182 = vmatpush.bf16.msra.mxu0 %v338_v8  ;;  %366 = vmatpush.bf16.msra.mxu2 %v338_v8 }
  0x13   :  { %201 = vmatpush.bf16.msra.mxu1 %v346_v9  ;;  %374 = vmatpush.bf16.msra.mxu3 %v346_v9 }
  0x16   :  { %183 = vmatpush.bf16.msra.mxu0 %v337_v10  ;;  %367 = vmatpush.bf16.msra.mxu2 %v337_v10 }
  0x17   :  { %202 = vmatpush.bf16.msra.mxu1 %v345_v11  ;;  %375 = vmatpush.bf16.msra.mxu3 %v345_v11 }
  0x1a   :  { %184 = vmatpush.bf16.msra.mxu0 %v336_v12  ;;  %368 = vmatpush.bf16.msra.mxu2 %v336_v12 }
  0x1b   :  { %203 = vmatpush.bf16.msra.mxu1 %v344_v13  ;;  %376 = vmatpush.bf16.msra.mxu3 %v344_v13 }
  0x1e   :  { %185 = vmatpush.bf16.msra.mxu0 %v335_v14  ;;  %369 = vmatpush.bf16.msra.mxu2 %v335_v14 }
  0x1f   :  { %204 = vmatpush.bf16.msra.mxu1 %v343_v15  ;;  %377 = vmatpush.bf16.msra.mxu3 %v343_v15 }
  0x21   :  { %186 = vmatmul.bf16.vlgmr.msra.gmra.mxu0 %v254_v24  ;;  %191 = vmatmul.bf16.vlgmr.msra.gmra.mxu2 %v262_v25 }
  0x22   :  { %205 = vmatmul.bf16.vlgmr.msra.gmra.mxu1 %v258_v26  ;;  %210 = vmatmul.bf16.vlgmr.msra.gmra.mxu3 %v266_v27 }
  0x9e   :  { %v187_v28 = vpop.f32.mrf.mxu0 }
  0x9f   :  { %v206_v29 = vpop.f32.mrf.mxu1 }
  0xa0   :  { %v207_v32 = vadd.f32 %v206_v29, %v187_v28 }
  0xa2   :  { %v235_v37 = vadd.f32 %v378_v33, %v207_v32 }
  0xa4   :  { %v192_v30 = vpop.f32.mrf.mxu2 }
  0xa5   :  { %v211_v31 = vpop.f32.mrf.mxu3 }
  0xa6   :  { %v189_v34 = vpop.f32.mrf.mxu0  ;;  %v212_v39 = vadd.f32 %v211_v31, %v192_v30 }
  0xa7   :  { %v208_v35 = vpop.f32.mrf.mxu1 }
  0xa8   :  { %v209_v36 = vadd.f32 %v208_v35, %v189_v34  ;;  %v237_v44 = vadd.f32 %v378_v33, %v212_v39 }
  0xaa   :  { %v236_v38 = vadd.f32 %v378_v33, %v209_v36 }
  0xac   :  { %v354_v40 = vpack.c.bf16 %v236_v38, %v235_v37  ;;  %v194_v41 = vpop.f32.mrf.mxu2 }
  0xad   :  { %v213_v42 = vpop.f32.mrf.mxu3 }
  0xae   :  { %355 = vst [vmem:[%s483_s3] sm:$0xff] %v354_v40   ;;  %v214_v43 = vadd.f32 %v213_v42, %v194_v41 }
  0xb0   :  { %v238_v45 = vadd.f32 %v378_v33, %v214_v43 }
  0xb2   :  { %v359_v46 = vpack.c.bf16 %v238_v45, %v237_v44 }
  0xb4   :  { %361 = vst [vmem:[%s483_s3 + $0x8] sm:$0xff] %v359_v46  }

// kernel: generator_forward.57
= control target key start
LH: loop header
LB: loop body
LE: loop exit
PB: predicated region body
PF: predicated region fallthrough
CT: control target
= control target key end

     0   :  { %s452_s6 = smov 0   ;;  %s454_s7 = smov 0   ;;  %s528_s0 = inlined_call_operand.vmem [shape: bf16[2,64,128], index: 0, kind: input, shape index: {}]   ;;  %s529_s1 = inlined_call_operand.vmem [shape: bf16[2,64,128], index: 1, kind: output, shape index: {}]  }
   0x1   :  { %s456_s8 = smov 0  }
   0x2 LB: > { %s23_s9 = sadd.s32 1, %s436_s7  ;;  %p341_p0 = scmp.ge.s32.totalorder %s440_s8, 1  ;;  %s440_s8 = sphi %s456_s8, %s11_s8   ;;  %s436_s7 = sphi %s454_s7, %s531_s7   ;;  %s432_s6 = sphi %s452_s6, %s530_s6  }
   0x3   : > { %p25_p1 = scmp.ge.s32.totalorder %s23_s9, 2  ;;  %p106_p2 = scmp.lt.s32.totalorder %s440_s8, 3 }
   0x5   : > { %s533_s9 = smov (%p25_p1, %s23_s9), 0  ;;  %p107_p3 = pnand %p341_p0, %p106_p2 }
   0x6   : > { %p132_p4 = scmp.lt.s32.totalorder (!%p107_p3), %s432_s6, 1 }
   0x7   : > { %110 = sbr.rel (%p107_p3) target bundleno = 82 (0x52), region = 24 }
   0xc   : > { %s535_s6 = smov (!%p132_p4, %s432_s6), 1 }
   0xd   : > { %s348_s10 = sshll.u32 %s535_s6, 5 }
   0xe   : > { %s139_s13 = scalar_lea.vmem %s528_s0, %s348_s10  ;;  %s147_s16 = scalar_lea.vmem %s529_s1, %s348_s10 }
   0xf   : > { %v351_v0 = vld [vmem:[%s139_s13] sm:$0xff]   ;;  %v386_v1 = vld [vmem:[%s139_s13 + $0x8] sm:$0xff]   ;;  %v387_v2 = vld [vmem:[%s139_s13 + $0x10] sm:$0xff]  }
  0x10   : > { %v478_v3 = vunpack.c.l.bf16 %v351_v0  ;;  %v480_v4 = vunpack.c.h.bf16 %v351_v0  ;;  %v482_v5 = vunpack.c.l.bf16 %v386_v1  ;;  %v484_v6 = vunpack.c.h.bf16 %v386_v1  ;;  %v388_v12 = vld [vmem:[%s139_s13 + $0x18] sm:$0xff]  }
  0x11   : > { %v486_v7 = vunpack.c.l.bf16 %v387_v2  ;;  %v496_v13 = vunpack.c.h.bf16 %v387_v2  ;;  %v364_v17 = vunpack.c.l.bf16 %v388_v12  ;;  %v365_v21 = vunpack.c.h.bf16 %v388_v12 }
  0x12   : > { %v164_v8 = vadd.f32 %v480_v4, %v478_v3  ;;  %v178_v9 = vmul.f32 %v478_v3, %v478_v3  ;;  %v179_v10 = vmul.f32 %v480_v4, %v480_v4  ;;  %v180_v11 = vmul.f32 %v482_v5, %v482_v5 }
  0x13   : > { %v181_v15 = vmul.f32 %v484_v6, %v484_v6  ;;  %v182_v19 = vmul.f32 %v486_v7, %v486_v7  ;;  %v183_v23 = vmul.f32 %v496_v13, %v496_v13  ;;  %v184_v26 = vmul.f32 %v364_v17, %v364_v17 }
  0x14   : > { %v165_v14 = vadd.f32 %v482_v5, %v164_v8  ;;  %v186_v16 = vadd.f32 %v179_v10, %v178_v9  ;;  %v185_v29 = vmul.f32 %v365_v21, %v365_v21 }
  0x16   : > { %v166_v18 = vadd.f32 %v484_v6, %v165_v14  ;;  %v187_v20 = vadd.f32 %v186_v16, %v180_v11 }
  0x18   : > { %v167_v22 = vadd.f32 %v486_v7, %v166_v18  ;;  %v188_v24 = vadd.f32 %v187_v20, %v181_v15 }
  0x1a   : > { %v168_v25 = vadd.f32 %v496_v13, %v167_v22  ;;  %v189_v27 = vadd.f32 %v188_v24, %v182_v19 }
  0x1c   : > { %v169_v28 = vadd.f32 %v364_v17, %v168_v25  ;;  %v190_v30 = vadd.f32 %v189_v27, %v183_v23 }
  0x1e   : > { %v170_v31 = vadd.f32 %v365_v21, %v169_v28  ;;  %v191_v32 = vadd.f32 %v190_v30, %v184_v26 }
  0x20   : > { %v171_v33 = vrot.slane %v170_v31, 4  ;;  %v192_v34 = vadd.f32 %v191_v32, %v185_v29 }
  0x22   : > { %v172_v35 = vadd.f32 %v171_v33, %v170_v31  ;;  %v193_v36 = vrot.slane %v192_v34, 4 }
  0x24   : > { %v173_v37 = vrot.slane %v172_v35, 2  ;;  %v194_v38 = vadd.f32 %v193_v36, %v192_v34 }
  0x26   : > { %v174_v39 = vadd.f32 %v173_v37, %v172_v35  ;;  %v195_v40 = vrot.slane %v194_v38, 2 }
  0x28   : > { %v175_v41 = vrot.slane %v174_v39, 1  ;;  %v196_v42 = vadd.f32 %v195_v40, %v194_v38 }
  0x2a   : > { %v176_v43 = vadd.f32 %v175_v41, %v174_v39  ;;  %v197_v44 = vrot.slane %v196_v42, 1 }
  0x2c   : > { %v177_v45 = vmul.f32 0.015625, %v176_v43  ;;  %v198_v46 = vadd.f32 %v197_v44, %v196_v42 }
  0x2e   : > { %v199_v47 = vmul.f32 0.015625, %v198_v46  ;;  %v200_v48 = vmul.f32 %v177_v45, %v177_v45  ;;  %v203_v56 = vsub.f32 %v478_v3, %v177_v45  ;;  %v204_v58 = vsub.f32 %v480_v4, %v177_v45 }
  0x2f   : > { %v205_v59 = vsub.f32 %v482_v5, %v177_v45  ;;  %v206_v60 = vsub.f32 %v484_v6, %v177_v45  ;;  %v207_v61 = vsub.f32 %v486_v7, %v177_v45  ;;  %v208_v63 = vsub.f32 %v496_v13, %v177_v45 }
  0x30   : > { %v201_v49 = vsub.f32 %v199_v47, %v200_v48  ;;  %v209_v0 = vsub.f32 %v364_v17, %v177_v45  ;;  %v210_v1 = vsub.f32 %v365_v21, %v177_v45 }
  0x32   : > { %v202_v50 = vmax.f32 %v201_v49, 0.0 }
  0x34   : > { %v211_v51 = vadd.f32 1e-05, %v202_v50 }
  0x36   : > { %416 = vrsqrt.f32 %v211_v51  ;;  %vm218_vm0 = vweird.f32 %v211_v51 }
  0x3c   : > { %v417_v52 = vpop.eup %416 }
  0x3d   : > { %v213_v53 = vmul.f32 %v417_v52, %v211_v51  ;;  %vm219_vm1 = vweird.f32 %v417_v52 }
  0x3e   : > { %vm220_vm2 = vmor %vm218_vm0, %vm219_vm1 }
  0x3f   : > { %v214_v54 = vmul.f32 %v417_v52, %v213_v53 }
  0x41   : > { %v215_v55 = vmul.f32 0.5, %v214_v54 }
  0x43   : > { %v216_v57 = vsub.f32 1.5, %v215_v55 }
  0x45   : > { %v217_v62 = vmul.f32 %v417_v52, %v216_v57 }
  0x47   : > { %v221_v2 = vsel %vm220_vm2, %v417_v52, %v217_v62 }
  0x48   : > { %v222_v8 = vmul.f32 %v221_v2, %v203_v56  ;;  %v223_v9 = vmul.f32 %v221_v2, %v204_v58  ;;  %v224_v3 = vmul.f32 %v221_v2, %v205_v59  ;;  %v225_v10 = vmul.f32 %v221_v2, %v206_v60 }
  0x49   : > { %v226_v11 = vmul.f32 %v221_v2, %v207_v61  ;;  %v227_v4 = vmul.f32 %v221_v2, %v208_v63  ;;  %v228_v12 = vmul.f32 %v221_v2, %v209_v0  ;;  %v229_v14 = vmul.f32 %v221_v2, %v210_v1 }
  0x4a   : > { %v230_v5 = vmax.f32 %v222_v8, 0.0  ;;  %v231_v15 = vmax.f32 %v223_v9, 0.0  ;;  %v232_v6 = vmax.f32 %v224_v3, 0.0  ;;  %v233_v16 = vmax.f32 %v225_v10, 0.0 }
  0x4b   : > { %v234_v7 = vmax.f32 %v226_v11, 0.0  ;;  %v235_v13 = vmax.f32 %v227_v4, 0.0  ;;  %v236_v17 = vmax.f32 %v228_v12, 0.0  ;;  %v237_v18 = vmax.f32 %v229_v14, 0.0 }
  0x4c   : > { %v369_v19 = vpack.c.bf16 %v231_v15, %v230_v5  ;;  %v374_v20 = vpack.c.bf16 %v233_v16, %v232_v6 }
  0x4d   : > { %v379_v21 = vpack.c.bf16 %v235_v13, %v234_v7  ;;  %v384_v22 = vpack.c.bf16 %v237_v18, %v236_v17 }
  0x4e   : > { %370 = vst [vmem:[%s147_s16] sm:$0xff] %v369_v19  }
  0x4f   : > { %389 = vst [vmem:[%s147_s16 + $0x8] sm:$0xff] %v374_v20  }
  0x50   : > { %390 = vst [vmem:[%s147_s16 + $0x10] sm:$0xff] %v379_v21  }
  0x51   : > { %391 = vst [vmem:[%s147_s16 + $0x18] sm:$0xff] %v384_v22  }
  0x52 PF: > { %s11_s8 = sadd.s32 1, %s440_s8   ;;  %s530_s6 = smov %s436_s7 }
  0x53   : > { %p8_p5 = scmp.ge.s32.totalorder %s11_s8, 4   ;;  %s531_s7 = smov %s533_s9 }
  0x55   :  { %10 = sbr.rel (!%p8_p5) target bundleno = 2 (0x2), region = 54 }

// kernel: generator_forward.61
= control target key start
LH: loop header
LB: loop body
LE: loop exit
PB: predicated region body
PF: predicated region fallthrough
CT: control target
= control target key end

     0   :  { %s1522_s1 = inlined_call_operand.vmem [shape: bf16[512,128], index: 1, kind: input, shape index: {}]   ;;  %s1523_s0 = inlined_call_operand.vmem [shape: bf16[128,512], index: 0, kind: input, shape index: {}]   ;;  %s1524_s2 = inlined_call_operand.vmem [shape: f32[1,128], index: 2, kind: input, shape index: {}]   ;;  %s1525_s3 = inlined_call_operand.vmem [shape: bf16[128,128], index: 3, kind: output, shape index: {}]  }
   0x1   :  { %v1096_v0 = vld [vmem:[%s1522_s1 + $0x38] sm:$0xff]  ;;  %v1095_v4 = vld [vmem:[%s1522_s1 + $0x30] sm:$0xff]  ;;  %v1094_v8 = vld [vmem:[%s1522_s1 + $0x28] sm:$0xff] }
   0x2   :  { %v1104_v1 = vld [vmem:[%s1522_s1 + $0x78] sm:$0xff]  ;;  %498 = vmatpush.bf16.msra.mxu0 %v1096_v0  ;;  %v1103_v5 = vld [vmem:[%s1522_s1 + $0x70] sm:$0xff]  ;;  %v1102_v9 = vld [vmem:[%s1522_s1 + $0x68] sm:$0xff] }
   0x3   :  { %v1112_v2 = vld [vmem:[%s1522_s1 + $0xb8] sm:$0xff]  ;;  %547 = vmatpush.bf16.msra.mxu1 %v1104_v1  ;;  %v1111_v6 = vld [vmem:[%s1522_s1 + $0xb0] sm:$0xff]  ;;  %v1110_v10 = vld [vmem:[%s1522_s1 + $0xa8] sm:$0xff] }
   0x4   :  { %v1120_v3 = vld [vmem:[%s1522_s1 + $0xf8] sm:$0xff]  ;;  %596 = vmatpush.bf16.msra.mxu2 %v1112_v2  ;;  %v1119_v7 = vld [vmem:[%s1522_s1 + $0xf0] sm:$0xff]  ;;  %v1118_v11 = vld [vmem:[%s1522_s1 + $0xe8] sm:$0xff] }
   0x5   :  { %645 = vmatpush.bf16.msra.mxu3 %v1120_v3  ;;  %v1093_v12 = vld [vmem:[%s1522_s1 + $0x20] sm:$0xff]  ;;  %v1092_v16 = vld [vmem:[%s1522_s1 + $0x18] sm:$0xff]  ;;  %v1091_v20 = vld [vmem:[%s1522_s1 + $0x10] sm:$0xff] }
   0x6   :  { %499 = vmatpush.bf16.msra.mxu0 %v1095_v4  ;;  %v1101_v13 = vld [vmem:[%s1522_s1 + $0x60] sm:$0xff]  ;;  %v1100_v17 = vld [vmem:[%s1522_s1 + $0x58] sm:$0xff]  ;;  %v1099_v21 = vld [vmem:[%s1522_s1 + $0x50] sm:$0xff] }
   0x7   :  { %548 = vmatpush.bf16.msra.mxu1 %v1103_v5  ;;  %v1109_v14 = vld [vmem:[%s1522_s1 + $0xa0] sm:$0xff]  ;;  %v1108_v18 = vld [vmem:[%s1522_s1 + $0x98] sm:$0xff]  ;;  %v1107_v22 = vld [vmem:[%s1522_s1 + $0x90] sm:$0xff] }
   0x8   :  { %597 = vmatpush.bf16.msra.mxu2 %v1111_v6  ;;  %v1117_v15 = vld [vmem:[%s1522_s1 + $0xe0] sm:$0xff]  ;;  %v1116_v19 = vld [vmem:[%s1522_s1 + $0xd8] sm:$0xff]  ;;  %v1115_v23 = vld [vmem:[%s1522_s1 + $0xd0] sm:$0xff] }
   0x9   :  { %646 = vmatpush.bf16.msra.mxu3 %v1119_v7  ;;  %v1090_v24 = vld [vmem:[%s1522_s1 + $0x8] sm:$0xff]  ;;  %v1089_v28 = vld [vmem:[%s1522_s1] sm:$0xff]  ;;  %v1059_v33 = vld [vmem:[%s1523_s0 + $0xc] sm:$0xf0] }
   0xa   :  { %500 = vmatpush.bf16.msra.mxu0 %v1094_v8  ;;  %v1098_v25 = vld [vmem:[%s1522_s1 + $0x48] sm:$0xff]  ;;  %v1097_v29 = vld [vmem:[%s1522_s1 + $0x40] sm:$0xff]  ;;  %v805_v35 = vld [vmem:[%s1523_s0 + $0x10] sm:$0xf0] }
   0xb   :  { %549 = vmatpush.bf16.msra.mxu1 %v1102_v9  ;;  %v1106_v26 = vld [vmem:[%s1522_s1 + $0x88] sm:$0xff]  ;;  %v1105_v30 = vld [vmem:[%s1522_s1 + $0x80] sm:$0xff]  ;;  %v1060_v37 = vld [vmem:[%s1523_s0 + $0x14] sm:$0xf0] }
   0xc   :  { %598 = vmatpush.bf16.msra.mxu2 %v1110_v10  ;;  %v1114_v27 = vld [vmem:[%s1522_s1 + $0xc8] sm:$0xff]  ;;  %v1113_v31 = vld [vmem:[%s1522_s1 + $0xc0] sm:$0xff]  ;;  %v813_v39 = vld [vmem:[%s1523_s0 + $0x18] sm:$0xf0] }
   0xd   :  { %647 = vmatpush.bf16.msra.mxu3 %v1118_v11  ;;  %v803_v32 = vld [vmem:[%s1523_s0] sm:$0xf]  ;;  %v1057_v34 = vld [vmem:[%s1523_s0 + $0x4] sm:$0xf]  ;;  %v811_v36 = vld [vmem:[%s1523_s0 + $0x8] sm:$0xf] }
   0xe   :  { %501 = vmatpush.bf16.msra.mxu0 %v1093_v12  ;;  %v1058_v38 = vld [vmem:[%s1523_s0 + $0xc] sm:$0xf]  ;;  %v804_v40 = vor.u32 %v1059_v33, %v803_v32  ;;  %v808_v41 = vor.u32 %v1057_v34, %v805_v35  ;;  %v812_v42 = vor.u32 %v1060_v37, %v811_v36  ;;  %v819_v44 = vld [vmem:[%s1523_s0 + $0x20] sm:$0xf]  ;;  %v1063_v45 = vld [vmem:[%s1523_s0 + $0x2c] sm:$0xf0] }
   0xf   :  { %550 = vmatpush.bf16.msra.mxu1 %v1101_v13  ;;  %v816_v43 = vor.u32 %v1058_v38, %v813_v39  ;;  %v1061_v46 = vld [vmem:[%s1523_s0 + $0x24] sm:$0xf]  ;;  %v821_v47 = vld [vmem:[%s1523_s0 + $0x30] sm:$0xf0]  ;;  %v827_v48 = vld [vmem:[%s1523_s0 + $0x28] sm:$0xf]  ;;  %v820_v52 = vor.u32 %v1063_v45, %v819_v44 }
  0x10   :  { %599 = vmatpush.bf16.msra.mxu2 %v1109_v14  ;;  %v1064_v49 = vld [vmem:[%s1523_s0 + $0x34] sm:$0xf0]  ;;  %v1062_v50 = vld [vmem:[%s1523_s0 + $0x2c] sm:$0xf]  ;;  %v829_v51 = vld [vmem:[%s1523_s0 + $0x38] sm:$0xf0]  ;;  %v824_v53 = vor.u32 %v1061_v46, %v821_v47 }
  0x11   :  { %648 = vmatpush.bf16.msra.mxu3 %v1117_v15  ;;  %v828_v54 = vor.u32 %v1064_v49, %v827_v48  ;;  %v832_v55 = vor.u32 %v1062_v50, %v829_v51  ;;  %v835_v56 = vld [vmem:[%s1523_s0 + $0x40] sm:$0xf]  ;;  %v1067_v57 = vld [vmem:[%s1523_s0 + $0x4c] sm:$0xf0]  ;;  %v1065_v58 = vld [vmem:[%s1523_s0 + $0x44] sm:$0xf] }
  0x12   :  { %502 = vmatpush.bf16.msra.mxu0 %v1092_v16  ;;  %v837_v59 = vld [vmem:[%s1523_s0 + $0x50] sm:$0xf0]  ;;  %v843_v60 = vld [vmem:[%s1523_s0 + $0x48] sm:$0xf]  ;;  %v1068_v61 = vld [vmem:[%s1523_s0 + $0x54] sm:$0xf0]  ;;  %v836_v0 = vor.u32 %v1067_v57, %v835_v56 }
  0x13   :  { %551 = vmatpush.bf16.msra.mxu1 %v1100_v17  ;;  %v1066_v62 = vld [vmem:[%s1523_s0 + $0x4c] sm:$0xf]  ;;  %v845_v63 = vld [vmem:[%s1523_s0 + $0x58] sm:$0xf0]  ;;  %v840_v1 = vor.u32 %v1065_v58, %v837_v59  ;;  %v844_v2 = vor.u32 %v1068_v61, %v843_v60  ;;  %v851_v4 = vld [vmem:[%s1523_s0 + $0x60] sm:$0xf] }
  0x14   :  { %600 = vmatpush.bf16.msra.mxu2 %v1108_v18  ;;  %v848_v3 = vor.u32 %v1066_v62, %v845_v63  ;;  %v1071_v5 = vld [vmem:[%s1523_s0 + $0x6c] sm:$0xf0]  ;;  %v1069_v6 = vld [vmem:[%s1523_s0 + $0x64] sm:$0xf]  ;;  %v853_v7 = vld [vmem:[%s1523_s0 + $0x70] sm:$0xf0] }
  0x15   :  { %649 = vmatpush.bf16.msra.mxu3 %v1116_v19  ;;  %v859_v8 = vld [vmem:[%s1523_s0 + $0x68] sm:$0xf]  ;;  %v1072_v9 = vld [vmem:[%s1523_s0 + $0x74] sm:$0xf0]  ;;  %v1070_v10 = vld [vmem:[%s1523_s0 + $0x6c] sm:$0xf]  ;;  %v852_v12 = vor.u32 %v1071_v5, %v851_v4  ;;  %v856_v13 = vor.u32 %v1069_v6, %v853_v7 }
  0x16   :  { %503 = vmatpush.bf16.msra.mxu0 %v1091_v20  ;;  %v861_v11 = vld [vmem:[%s1523_s0 + $0x78] sm:$0xf0]  ;;  %v860_v14 = vor.u32 %v1072_v9, %v859_v8  ;;  %v867_v16 = vld [vmem:[%s1523_s0 + $0x80] sm:$0xf]  ;;  %v1075_v17 = vld [vmem:[%s1523_s0 + $0x8c] sm:$0xf0] }
  0x17   :  { %552 = vmatpush.bf16.msra.mxu1 %v1099_v21  ;;  %v864_v15 = vor.u32 %v1070_v10, %v861_v11  ;;  %v1073_v18 = vld [vmem:[%s1523_s0 + $0x84] sm:$0xf]  ;;  %v869_v19 = vld [vmem:[%s1523_s0 + $0x90] sm:$0xf0]  ;;  %v875_v20 = vld [vmem:[%s1523_s0 + $0x88] sm:$0xf] }
  0x18   :  { %601 = vmatpush.bf16.msra.mxu2 %v1107_v22  ;;  %v1076_v21 = vld [vmem:[%s1523_s0 + $0x94] sm:$0xf0]  ;;  %v1074_v22 = vld [vmem:[%s1523_s0 + $0x8c] sm:$0xf]  ;;  %v891_v32 = vld [vmem:[%s1523_s0 + $0xa8] sm:$0xf] }
  0x19   :  { %650 = vmatpush.bf16.msra.mxu3 %v1115_v23  ;;  %v877_v23 = vld [vmem:[%s1523_s0 + $0x98] sm:$0xf0]  ;;  %v1080_v33 = vld [vmem:[%s1523_s0 + $0xb4] sm:$0xf0]  ;;  %v1078_v34 = vld [vmem:[%s1523_s0 + $0xac] sm:$0xf] }
  0x1a   :  { %504 = vmatpush.bf16.msra.mxu0 %v1090_v24  ;;  %v868_v24 = vor.u32 %v1075_v17, %v867_v16  ;;  %v893_v35 = vld [vmem:[%s1523_s0 + $0xb8] sm:$0xf0]  ;;  %v892_v38 = vor.u32 %v1080_v33, %v891_v32  ;;  %v907_v44 = vld [vmem:[%s1523_s0 + $0xc8] sm:$0xf]  ;;  %v1084_v45 = vld [vmem:[%s1523_s0 + $0xd4] sm:$0xf0] }
  0x1b   :  { %553 = vmatpush.bf16.msra.mxu1 %v1098_v25  ;;  %v872_v25 = vor.u32 %v1073_v18, %v869_v19  ;;  %v896_v39 = vor.u32 %v1078_v34, %v893_v35  ;;  %v1082_v46 = vld [vmem:[%s1523_s0 + $0xcc] sm:$0xf]  ;;  %v909_v47 = vld [vmem:[%s1523_s0 + $0xd8] sm:$0xf0]  ;;  %v908_v50 = vor.u32 %v1084_v45, %v907_v44  ;;  %v923_v56 = vld [vmem:[%s1523_s0 + $0xe8] sm:$0xf] }
  0x1c   :  { %602 = vmatpush.bf16.msra.mxu2 %v1106_v26  ;;  %v876_v26 = vor.u32 %v1076_v21, %v875_v20  ;;  %v912_v51 = vor.u32 %v1082_v46, %v909_v47  ;;  %v1088_v57 = vld [vmem:[%s1523_s0 + $0xf4] sm:$0xf0]  ;;  %v1086_v58 = vld [vmem:[%s1523_s0 + $0xec] sm:$0xf]  ;;  %v925_v59 = vld [vmem:[%s1523_s0 + $0xf8] sm:$0xf0] }
  0x1d   :  { %651 = vmatpush.bf16.msra.mxu3 %v1114_v27  ;;  %v880_v27 = vor.u32 %v1074_v22, %v877_v23  ;;  %v924_v62 = vor.u32 %v1088_v57, %v923_v56  ;;  %v928_v63 = vor.u32 %v1086_v58, %v925_v59 }
  0x1e   :  { %505 = vmatpush.bf16.msra.mxu0 %v1089_v28  ;;  %v883_v28 = vld [vmem:[%s1523_s0 + $0xa0] sm:$0xf] }
  0x1f   :  { %554 = vmatpush.bf16.msra.mxu1 %v1097_v29  ;;  %v1079_v29 = vld [vmem:[%s1523_s0 + $0xac] sm:$0xf0] }
  0x20   :  { %603 = vmatpush.bf16.msra.mxu2 %v1105_v30  ;;  %v1077_v30 = vld [vmem:[%s1523_s0 + $0xa4] sm:$0xf]  ;;  %v884_v36 = vor.u32 %v1079_v29, %v883_v28 }
  0x21   :  { %652 = vmatpush.bf16.msra.mxu3 %v1113_v31  ;;  %506 = vmatmul.bf16.vlgmr.msra.gmra.mxu0 %v804_v40  ;;  %v885_v31 = vld [vmem:[%s1523_s0 + $0xb0] sm:$0xf0]  ;;  %v899_v40 = vld [vmem:[%s1523_s0 + $0xc0] sm:$0xf] }
  0x22   :  { %555 = vmatmul.bf16.vlgmr.msra.gmra.mxu1 %v808_v41  ;;  %v888_v37 = vor.u32 %v1077_v30, %v885_v31  ;;  %v1083_v41 = vld [vmem:[%s1523_s0 + $0xcc] sm:$0xf0] }
  0x23   :  { %604 = vmatmul.bf16.vlgmr.msra.gmra.mxu2 %v812_v42  ;;  %v1081_v42 = vld [vmem:[%s1523_s0 + $0xc4] sm:$0xf]  ;;  %v900_v48 = vor.u32 %v1083_v41, %v899_v40 }
  0x24   :  { %653 = vmatmul.bf16.vlgmr.msra.gmra.mxu3 %v816_v43  ;;  %v901_v43 = vld [vmem:[%s1523_s0 + $0xd0] sm:$0xf0] }
  0x25   :  { %v904_v49 = vor.u32 %v1081_v42, %v901_v43 }
  0x31   :  { %511 = vmatmul.bf16.gmra.mxu0 %v820_v52  ;;  %v915_v52 = vld [vmem:[%s1523_s0 + $0xe0] sm:$0xf] }
  0x32   :  { %560 = vmatmul.bf16.gmra.mxu1 %v824_v53  ;;  %v1087_v53 = vld [vmem:[%s1523_s0 + $0xec] sm:$0xf0] }
  0x33   :  { %609 = vmatmul.bf16.gmra.mxu2 %v828_v54  ;;  %v1085_v54 = vld [vmem:[%s1523_s0 + $0xe4] sm:$0xf]  ;;  %v916_v60 = vor.u32 %v1087_v53, %v915_v52 }
  0x34   :  { %658 = vmatmul.bf16.gmra.mxu3 %v832_v55  ;;  %v917_v55 = vld [vmem:[%s1523_s0 + $0xf0] sm:$0xf0] }
  0x35   :  { %v920_v61 = vor.u32 %v1085_v54, %v917_v55 }
  0x41   :  { %516 = vmatmul.bf16.gmra.mxu0 %v836_v0 }
  0x42   :  { %565 = vmatmul.bf16.gmra.mxu1 %v840_v1 }
  0x43   :  { %614 = vmatmul.bf16.gmra.mxu2 %v844_v2 }
  0x44   :  { %663 = vmatmul.bf16.gmra.mxu3 %v848_v3 }
  0x51   :  { %521 = vmatmul.bf16.gmra.mxu0 %v852_v12  ;;  %v1480_v12 = vld [vmem:[%s1524_s2] ss:$0 sm:$0xff] }
  0x52   :  { %570 = vmatmul.bf16.gmra.mxu1 %v856_v13 }
  0x53   :  { %619 = vmatmul.bf16.gmra.mxu2 %v860_v14 }
  0x54   :  { %668 = vmatmul.bf16.gmra.mxu3 %v864_v15 }
  0x61   :  { %526 = vmatmul.bf16.gmra.mxu0 %v868_v24 }
  0x62   :  { %575 = vmatmul.bf16.gmra.mxu1 %v872_v25 }
  0x63   :  { %624 = vmatmul.bf16.gmra.mxu2 %v876_v26 }
  0x64   :  { %673 = vmatmul.bf16.gmra.mxu3 %v880_v27 }
  0x71   :  { %531 = vmatmul.bf16.gmra.mxu0 %v884_v36 }
  0x72   :  { %580 = vmatmul.bf16.gmra.mxu1 %v888_v37 }
  0x73   :  { %629 = vmatmul.bf16.gmra.mxu2 %v892_v38 }
  0x74   :  { %678 = vmatmul.bf16.gmra.mxu3 %v896_v39 }
  0x81   :  { %536 = vmatmul.bf16.gmra.mxu0 %v900_v48 }
  0x82   :  { %585 = vmatmul.bf16.gmra.mxu1 %v904_v49 }
  0x83   :  { %634 = vmatmul.bf16.gmra.mxu2 %v908_v50 }
  0x84   :  { %683 = vmatmul.bf16.gmra.mxu3 %v912_v51 }
  0x91   :  { %541 = vmatmul.bf16.gmra.mxu0 %v916_v60 }
  0x92   :  { %590 = vmatmul.bf16.gmra.mxu1 %v920_v61 }
  0x93   :  { %639 = vmatmul.bf16.gmra.mxu2 %v924_v62 }
  0x94   :  { %688 = vmatmul.bf16.gmra.mxu3 %v928_v63 }
  0x9e   :  { %v507_v0 = vpop.f32.mrf.mxu0 }
  0x9f   :  { %v556_v1 = vpop.f32.mrf.mxu1 }
  0xa0   :  { %v557_v4 = vadd.f32 %v556_v1, %v507_v0 }
  0xa6   :  { %v605_v2 = vpop.f32.mrf.mxu2  ;;  %v509_v5 = vpop.f32.mrf.mxu0 }
  0xa7   :  { %v654_v3 = vpop.f32.mrf.mxu3  ;;  %v558_v6 = vpop.f32.mrf.mxu1  ;;  %v606_v7 = vadd.f32 %v605_v2, %v557_v4 }
  0xa8   :  { %v559_v8 = vadd.f32 %v558_v6, %v509_v5 }
  0xa9   :  { %v655_v11 = vadd.f32 %v654_v3, %v606_v7 }
  0xab   :  { %v749_v17 = vadd.f32 %v1480_v12, %v655_v11 }
  0xae   :  { %v607_v9 = vpop.f32.mrf.mxu2  ;;  %v512_v14 = vpop.f32.mrf.mxu0 }
  0xaf   :  { %v656_v10 = vpop.f32.mrf.mxu3  ;;  %v608_v13 = vadd.f32 %v607_v9, %v559_v8  ;;  %v561_v15 = vpop.f32.mrf.mxu1 }
  0xb0   :  { %v562_v22 = vadd.f32 %v561_v15, %v512_v14 }
  0xb1   :  { %v657_v16 = vadd.f32 %v656_v10, %v608_v13 }
  0xb3   :  { %v750_v18 = vadd.f32 %v1480_v12, %v657_v16 }
  0xb5   :  { %v1124_v19 = vpack.c.bf16 %v750_v18, %v749_v17 }
  0xb6   :  { %v610_v20 = vpop.f32.mrf.mxu2  ;;  %v514_v23 = vpop.f32.mrf.mxu0 }
  0xb7   :  { %v659_v21 = vpop.f32.mrf.mxu3  ;;  %1125 = vst [vmem:[%s1525_s3] sm:$0xff] %v1124_v19   ;;  %v563_v24 = vpop.f32.mrf.mxu1  ;;  %v611_v25 = vadd.f32 %v610_v20, %v562_v22 }
  0xb8   :  { %v564_v26 = vadd.f32 %v563_v24, %v514_v23 }
  0xb9   :  { %v660_v29 = vadd.f32 %v659_v21, %v611_v25 }
  0xbb   :  { %v751_v34 = vadd.f32 %v1480_v12, %v660_v29 }
  0xbe   :  { %v612_v27 = vpop.f32.mrf.mxu2  ;;  %v517_v31 = vpop.f32.mrf.mxu0 }
  0xbf   :  { %v661_v28 = vpop.f32.mrf.mxu3  ;;  %v613_v30 = vadd.f32 %v612_v27, %v564_v26  ;;  %v566_v32 = vpop.f32.mrf.mxu1 }
  0xc0   :  { %v567_v39 = vadd.f32 %v566_v32, %v517_v31 }
  0xc1   :  { %v662_v33 = vadd.f32 %v661_v28, %v613_v30 }
  0xc3   :  { %v752_v35 = vadd.f32 %v1480_v12, %v662_v33 }
  0xc5   :  { %v1129_v36 = vpack.c.bf16 %v752_v35, %v751_v34 }
  0xc6   :  { %v615_v37 = vpop.f32.mrf.mxu2  ;;  %v519_v40 = vpop.f32.mrf.mxu0 }
  0xc7   :  { %v664_v38 = vpop.f32.mrf.mxu3  ;;  %1161 = vst [vmem:[%s1525_s3 + $0x8] sm:$0xff] %v1129_v36   ;;  %v568_v41 = vpop.f32.mrf.mxu1  ;;  %v616_v42 = vadd.f32 %v615_v37, %v567_v39 }
  0xc8   :  { %v569_v43 = vadd.f32 %v568_v41, %v519_v40 }
  0xc9   :  { %v665_v46 = vadd.f32 %v664_v38, %v616_v42 }
  0xcb   :  { %v753_v51 = vadd.f32 %v1480_v12, %v665_v46 }
  0xce   :  { %v617_v44 = vpop.f32.mrf.mxu2  ;;  %v522_v48 = vpop.f32.mrf.mxu0 }
  0xcf   :  { %v666_v45 = vpop.f32.mrf.mxu3  ;;  %v618_v47 = vadd.f32 %v617_v44, %v569_v43  ;;  %v571_v49 = vpop.f32.mrf.mxu1 }
  0xd0   :  { %v572_v56 = vadd.f32 %v571_v49, %v522_v48 }
  0xd1   :  { %v667_v50 = vadd.f32 %v666_v45, %v618_v47 }
  0xd3   :  { %v754_v52 = vadd.f32 %v1480_v12, %v667_v50 }
  0xd5   :  { %v1134_v53 = vpack.c.bf16 %v754_v52, %v753_v51 }
  0xd6   :  { %v620_v54 = vpop.f32.mrf.mxu2  ;;  %v524_v57 = vpop.f32.mrf.mxu0 }
  0xd7   :  { %v669_v55 = vpop.f32.mrf.mxu3  ;;  %1162 = vst [vmem:[%s1525_s3 + $0x10] sm:$0xff] %v1134_v53   ;;  %v573_v58 = vpop.f32.mrf.mxu1  ;;  %v621_v59 = vadd.f32 %v620_v54, %v572_v56 }
  0xd8   :  { %v574_v60 = vadd.f32 %v573_v58, %v524_v57 }
  0xd9   :  { %v670_v63 = vadd.f32 %v669_v55, %v621_v59 }
  0xdb   :  { %v755_v4 = vadd.f32 %v1480_v12, %v670_v63 }
  0xde   :  { %v622_v61 = vpop.f32.mrf.mxu2  ;;  %v527_v1 = vpop.f32.mrf.mxu0 }
  0xdf   :  { %v671_v62 = vpop.f32.mrf.mxu3  ;;  %v623_v0 = vadd.f32 %v622_v61, %v574_v60  ;;  %v576_v2 = vpop.f32.mrf.mxu1 }
  0xe0   :  { %v577_v9 = vadd.f32 %v576_v2, %v527_v1 }
  0xe1   :  { %v672_v3 = vadd.f32 %v671_v62, %v623_v0 }
  0xe3   :  { %v756_v5 = vadd.f32 %v1480_v12, %v672_v3 }
  0xe5   :  { %v1139_v6 = vpack.c.bf16 %v756_v5, %v755_v4 }
  0xe6   :  { %v625_v7 = vpop.f32.mrf.mxu2  ;;  %v529_v10 = vpop.f32.mrf.mxu0 }
  0xe7   :  { %v674_v8 = vpop.f32.mrf.mxu3  ;;  %1163 = vst [vmem:[%s1525_s3 + $0x18] sm:$0xff] %v1139_v6   ;;  %v578_v11 = vpop.f32.mrf.mxu1  ;;  %v626_v13 = vadd.f32 %v625_v7, %v577_v9 }
  0xe8   :  { %v579_v14 = vadd.f32 %v578_v11, %v529_v10 }
  0xe9   :  { %v675_v17 = vadd.f32 %v674_v8, %v626_v13 }
  0xeb   :  { %v757_v22 = vadd.f32 %v1480_v12, %v675_v17 }
  0xee   :  { %v627_v15 = vpop.f32.mrf.mxu2  ;;  %v532_v19 = vpop.f32.mrf.mxu0 }
  0xef   :  { %v676_v16 = vpop.f32.mrf.mxu3  ;;  %v628_v18 = vadd.f32 %v627_v15, %v579_v14  ;;  %v581_v20 = vpop.f32.mrf.mxu1 }
  0xf0   :  { %v582_v27 = vadd.f32 %v581_v20, %v532_v19 }
  0xf1   :  { %v677_v21 = vadd.f32 %v676_v16, %v628_v18 }
  0xf3   :  { %v758_v23 = vadd.f32 %v1480_v12, %v677_v21 }
  0xf5   :  { %v1144_v24 = vpack.c.bf16 %v758_v23, %v757_v22 }
  0xf6   :  { %v630_v25 = vpop.f32.mrf.mxu2  ;;  %v534_v28 = vpop.f32.mrf.mxu0 }
  0xf7   :  { %v679_v26 = vpop.f32.mrf.mxu3  ;;  %1164 = vst [vmem:[%s1525_s3 + $0x20] sm:$0xff] %v1144_v24   ;;  %v583_v29 = vpop.f32.mrf.mxu1  ;;  %v631_v30 = vadd.f32 %v630_v25, %v582_v27 }
  0xf8   :  { %v584_v31 = vadd.f32 %v583_v29, %v534_v28 }
  0xf9   :  { %v680_v34 = vadd.f32 %v679_v26, %v631_v30 }
  0xfb   :  { %v759_v39 = vadd.f32 %v1480_v12, %v680_v34 }
  0xfe   :  { %v632_v32 = vpop.f32.mrf.mxu2  ;;  %v537_v36 = vpop.f32.mrf.mxu0 }
  0xff   :  { %v681_v33 = vpop.f32.mrf.mxu3  ;;  %v633_v35 = vadd.f32 %v632_v32, %v584_v31  ;;  %v586_v37 = vpop.f32.mrf.mxu1 }
 0x100   :  { %v587_v44 = vadd.f32 %v586_v37, %v537_v36 }
 0x101   :  { %v682_v38 = vadd.f32 %v681_v33, %v633_v35 }
 0x103   :  { %v760_v40 = vadd.f32 %v1480_v12, %v682_v38 }
 0x105   :  { %v1149_v41 = vpack.c.bf16 %v760_v40, %v759_v39 }
 0x106   :  { %v635_v42 = vpop.f32.mrf.mxu2  ;;  %v539_v45 = vpop.f32.mrf.mxu0 }
 0x107   :  { %v684_v43 = vpop.f32.mrf.mxu3  ;;  %1165 = vst [vmem:[%s1525_s3 + $0x28] sm:$0xff] %v1149_v41   ;;  %v588_v46 = vpop.f32.mrf.mxu1  ;;  %v636_v47 = vadd.f32 %v635_v42, %v587_v44 }
 0x108   :  { %v589_v48 = vadd.f32 %v588_v46, %v539_v45 }
 0x109   :  { %v685_v51 = vadd.f32 %v684_v43, %v636_v47 }
 0x10b   :  { %v761_v56 = vadd.f32 %v1480_v12, %v685_v51 }
 0x10e   :  { %v637_v49 = vpop.f32.mrf.mxu2  ;;  %v542_v53 = vpop.f32.mrf.mxu0 }
 0x10f   :  { %v686_v50 = vpop.f32.mrf.mxu3  ;;  %v638_v52 = vadd.f32 %v637_v49, %v589_v48  ;;  %v591_v54 = vpop.f32.mrf.mxu1 }
 0x110   :  { %v592_v61 = vadd.f32 %v591_v54, %v542_v53 }
 0x111   :  { %v687_v55 = vadd.f32 %v686_v50, %v638_v52 }
 0x113   :  { %v762_v57 = vadd.f32 %v1480_v12, %v687_v55 }
 0x115   :  { %v1154_v58 = vpack.c.bf16 %v762_v57, %v761_v56 }
 0x116   :  { %v640_v59 = vpop.f32.mrf.mxu2  ;;  %v544_v62 = vpop.f32.mrf.mxu0 }
 0x117   :  { %v689_v60 = vpop.f32.mrf.mxu3  ;;  %1166 = vst [vmem:[%s1525_s3 + $0x30] sm:$0xff] %v1154_v58   ;;  %v593_v63 = vpop.f32.mrf.mxu1  ;;  %v641_v0 = vadd.f32 %v640_v59, %v592_v61 }
 0x118   :  { %v594_v1 = vadd.f32 %v593_v63, %v544_v62 }
 0x119   :  { %v690_v3 = vadd.f32 %v689_v60, %v641_v0 }
 0x11b   :  { %v763_v7 = vadd.f32 %v1480_v12, %v690_v3 }
 0x11e   :  { %v642_v2 = vpop.f32.mrf.mxu2 }
 0x11f   :  { %v643_v4 = vadd.f32 %v642_v2, %v594_v1  ;;  %v691_v5 = vpop.f32.mrf.mxu3 }
 0x121   :  { %v692_v6 = vadd.f32 %v691_v5, %v643_v4 }
 0x123   :  { %v764_v8 = vadd.f32 %v1480_v12, %v692_v6 }
 0x125   :  { %v1159_v9 = vpack.c.bf16 %v764_v8, %v763_v7 }
 0x127   :  { %1167 = vst [vmem:[%s1525_s3 + $0x38] sm:$0xff] %v1159_v9  }

// kernel: generator_forward.58
= control target key start
LH: loop header
LB: loop body
LE: loop exit
PB: predicated region body
PF: predicated region fallthrough
CT: control target
= control target key end

     0   :  { %s581_s1 = inlined_call_operand.vmem [shape: bf16[128,128], index: 1, kind: input, shape index: {}]   ;;  %s582_s2 = inlined_call_operand.vmem [shape: f32[1,128], index: 2, kind: input, shape index: {}]   ;;  %s583_s0 = inlined_call_operand.vmem [shape: bf16[128,128], index: 0, kind: input, shape index: {}]   ;;  %s584_s3 = inlined_call_operand.vmem [shape: bf16[128,128], index: 3, kind: output, shape index: {}]  }
   0x1   :  { %v413_v0 = vld [vmem:[%s581_s1 + $0x38] sm:$0xff]  ;;  %v412_v1 = vld [vmem:[%s581_s1 + $0x30] sm:$0xff]  ;;  %v411_v2 = vld [vmem:[%s581_s1 + $0x28] sm:$0xff] }
   0x2   :  { %178 = vmatpush.bf16.msra.mxu0 %v413_v0  ;;  %461 = vmatpush.bf16.msra.mxu1 %v413_v0  ;;  %v410_v3 = vld [vmem:[%s581_s1 + $0x20] sm:$0xff]  ;;  %v409_v4 = vld [vmem:[%s581_s1 + $0x18] sm:$0xff]  ;;  %v408_v5 = vld [vmem:[%s581_s1 + $0x10] sm:$0xff] }
   0x3   :  { %462 = vmatpush.bf16.msra.mxu2 %v413_v0  ;;  %463 = vmatpush.bf16.msra.mxu3 %v413_v0  ;;  %v407_v6 = vld [vmem:[%s581_s1 + $0x8] sm:$0xff]  ;;  %v406_v7 = vld [vmem:[%s581_s1] sm:$0xff]  ;;  %v400_v9 = vld [vmem:[%s583_s0 + $0x10] sm:$0xff] }
   0x4   :  { %v398_v8 = vld [vmem:[%s583_s0] sm:$0xff]  ;;  %v404_v11 = vld [vmem:[%s583_s0 + $0x30] sm:$0xff]  ;;  %v399_v12 = vld [vmem:[%s583_s0 + $0x8] sm:$0xff] }
   0x5   :  { %v402_v10 = vld [vmem:[%s583_s0 + $0x20] sm:$0xff]  ;;  %v401_v13 = vld [vmem:[%s583_s0 + $0x18] sm:$0xff]  ;;  %v403_v14 = vld [vmem:[%s583_s0 + $0x28] sm:$0xff] }
   0x6   :  { %179 = vmatpush.bf16.msra.mxu0 %v412_v1  ;;  %464 = vmatpush.bf16.msra.mxu1 %v412_v1  ;;  %v405_v15 = vld [vmem:[%s583_s0 + $0x38] sm:$0xff]  ;;  %v485_v18 = vld [vmem:[%s582_s2] ss:$0 sm:$0xff] }
   0x7   :  { %465 = vmatpush.bf16.msra.mxu2 %v412_v1  ;;  %466 = vmatpush.bf16.msra.mxu3 %v412_v1 }
   0xa   :  { %180 = vmatpush.bf16.msra.mxu0 %v411_v2  ;;  %467 = vmatpush.bf16.msra.mxu1 %v411_v2 }
   0xb   :  { %468 = vmatpush.bf16.msra.mxu2 %v411_v2  ;;  %469 = vmatpush.bf16.msra.mxu3 %v411_v2 }
   0xe   :  { %181 = vmatpush.bf16.msra.mxu0 %v410_v3  ;;  %470 = vmatpush.bf16.msra.mxu1 %v410_v3 }
   0xf   :  { %471 = vmatpush.bf16.msra.mxu2 %v410_v3  ;;  %472 = vmatpush.bf16.msra.mxu3 %v410_v3 }
  0x12   :  { %182 = vmatpush.bf16.msra.mxu0 %v409_v4  ;;  %473 = vmatpush.bf16.msra.mxu1 %v409_v4 }
  0x13   :  { %474 = vmatpush.bf16.msra.mxu2 %v409_v4  ;;  %475 = vmatpush.bf16.msra.mxu3 %v409_v4 }
  0x16   :  { %183 = vmatpush.bf16.msra.mxu0 %v408_v5  ;;  %476 = vmatpush.bf16.msra.mxu1 %v408_v5 }
  0x17   :  { %477 = vmatpush.bf16.msra.mxu2 %v408_v5  ;;  %478 = vmatpush.bf16.msra.mxu3 %v408_v5 }
  0x1a   :  { %184 = vmatpush.bf16.msra.mxu0 %v407_v6  ;;  %479 = vmatpush.bf16.msra.mxu1 %v407_v6 }
  0x1b   :  { %480 = vmatpush.bf16.msra.mxu2 %v407_v6  ;;  %481 = vmatpush.bf16.msra.mxu3 %v407_v6 }
  0x1e   :  { %185 = vmatpush.bf16.msra.mxu0 %v406_v7  ;;  %482 = vmatpush.bf16.msra.mxu1 %v406_v7 }
  0x1f   :  { %483 = vmatpush.bf16.msra.mxu2 %v406_v7  ;;  %484 = vmatpush.bf16.msra.mxu3 %v406_v7 }
  0x21   :  { %186 = vmatmul.bf16.vlgmr.msra.gmra.mxu0 %v398_v8  ;;  %196 = vmatmul.bf16.vlgmr.msra.gmra.mxu1 %v400_v9 }
  0x22   :  { %206 = vmatmul.bf16.vlgmr.msra.gmra.mxu2 %v402_v10  ;;  %216 = vmatmul.bf16.vlgmr.msra.gmra.mxu3 %v404_v11 }
  0x31   :  { %191 = vmatmul.bf16.gmra.mxu0 %v399_v12  ;;  %201 = vmatmul.bf16.gmra.mxu1 %v401_v13 }
  0x32   :  { %211 = vmatmul.bf16.gmra.mxu2 %v403_v14  ;;  %221 = vmatmul.bf16.gmra.mxu3 %v405_v15 }
  0x9e   :  { %v187_v16 = vpop.f32.mrf.mxu0  ;;  %v197_v17 = vpop.f32.mrf.mxu1 }
  0x9f   :  { %v282_v23 = vadd.f32 %v485_v18, %v187_v16  ;;  %v286_v24 = vadd.f32 %v485_v18, %v197_v17 }
  0xa5   :  { %v207_v19 = vpop.f32.mrf.mxu2  ;;  %v217_v20 = vpop.f32.mrf.mxu3 }
  0xa6   :  { %v189_v21 = vpop.f32.mrf.mxu0  ;;  %v199_v22 = vpop.f32.mrf.mxu1  ;;  %v290_v31 = vadd.f32 %v485_v18, %v207_v19  ;;  %v294_v32 = vadd.f32 %v485_v18, %v217_v20 }
  0xa7   :  { %v283_v25 = vadd.f32 %v485_v18, %v189_v21  ;;  %v287_v26 = vadd.f32 %v485_v18, %v199_v22 }
  0xa9   :  { %v417_v27 = vpack.c.bf16 %v283_v25, %v282_v23  ;;  %v427_v28 = vpack.c.bf16 %v287_v26, %v286_v24 }
  0xab   :  { %418 = vst [vmem:[%s584_s3] sm:$0xff] %v417_v27  }
  0xac   :  { %455 = vst [vmem:[%s584_s3 + $0x10] sm:$0xff] %v427_v28  }
  0xad   :  { %v209_v29 = vpop.f32.mrf.mxu2  ;;  %v219_v30 = vpop.f32.mrf.mxu3 }
  0xae   :  { %v291_v33 = vadd.f32 %v485_v18, %v209_v29  ;;  %v295_v34 = vadd.f32 %v485_v18, %v219_v30  ;;  %v192_v35 = vpop.f32.mrf.mxu0  ;;  %v202_v36 = vpop.f32.mrf.mxu1 }
  0xaf   :  { %v284_v43 = vadd.f32 %v485_v18, %v192_v35  ;;  %v288_v44 = vadd.f32 %v485_v18, %v202_v36 }
  0xb0   :  { %v437_v37 = vpack.c.bf16 %v291_v33, %v290_v31  ;;  %v447_v38 = vpack.c.bf16 %v295_v34, %v294_v32 }
  0xb2   :  { %457 = vst [vmem:[%s584_s3 + $0x20] sm:$0xff] %v437_v37  }
  0xb3   :  { %459 = vst [vmem:[%s584_s3 + $0x30] sm:$0xff] %v447_v38  }
  0xb5   :  { %v212_v39 = vpop.f32.mrf.mxu2  ;;  %v222_v40 = vpop.f32.mrf.mxu3 }
  0xb6   :  { %v194_v41 = vpop.f32.mrf.mxu0  ;;  %v204_v42 = vpop.f32.mrf.mxu1  ;;  %v292_v51 = vadd.f32 %v485_v18, %v212_v39  ;;  %v296_v52 = vadd.f32 %v485_v18, %v222_v40 }
  0xb7   :  { %v285_v45 = vadd.f32 %v485_v18, %v194_v41  ;;  %v289_v46 = vadd.f32 %v485_v18, %v204_v42 }
  0xb9   :  { %v422_v47 = vpack.c.bf16 %v285_v45, %v284_v43  ;;  %v432_v48 = vpack.c.bf16 %v289_v46, %v288_v44 }
  0xbb   :  { %454 = vst [vmem:[%s584_s3 + $0x8] sm:$0xff] %v422_v47  }
  0xbc   :  { %456 = vst [vmem:[%s584_s3 + $0x18] sm:$0xff] %v432_v48  }
  0xbd   :  { %v214_v49 = vpop.f32.mrf.mxu2  ;;  %v224_v50 = vpop.f32.mrf.mxu3 }
  0xbe   :  { %v293_v53 = vadd.f32 %v485_v18, %v214_v49  ;;  %v297_v54 = vadd.f32 %v485_v18, %v224_v50 }
  0xc0   :  { %v442_v55 = vpack.c.bf16 %v293_v53, %v292_v51  ;;  %v452_v56 = vpack.c.bf16 %v297_v54, %v296_v52 }
  0xc2   :  { %458 = vst [vmem:[%s584_s3 + $0x28] sm:$0xff] %v442_v55  }
  0xc3   :  { %460 = vst [vmem:[%s584_s3 + $0x38] sm:$0xff] %v452_v56  }

// kernel: generator_forward.60
= control target key start
LH: loop header
LB: loop body
LE: loop exit
PB: predicated region body
PF: predicated region fallthrough
CT: control target
= control target key end

     0   :  { %s912_s1 = inlined_call_operand.vmem [shape: bf16[256,128], index: 1, kind: input, shape index: {}]   ;;  %s913_s0 = inlined_call_operand.vmem [shape: bf16[128,256], index: 0, kind: input, shape index: {}]   ;;  %s914_s2 = inlined_call_operand.vmem [shape: f32[1,128], index: 2, kind: input, shape index: {}]   ;;  %s915_s3 = inlined_call_operand.vmem [shape: bf16[128,128], index: 3, kind: output, shape index: {}]  }
   0x1   :  { %v630_v0 = vld [vmem:[%s912_s1 + $0x38] sm:$0xff]  ;;  %v629_v2 = vld [vmem:[%s912_s1 + $0x30] sm:$0xff]  ;;  %v628_v4 = vld [vmem:[%s912_s1 + $0x28] sm:$0xff] }
   0x2   :  { %v638_v1 = vld [vmem:[%s912_s1 + $0x78] sm:$0xff]  ;;  %274 = vmatpush.bf16.msra.mxu0 %v630_v0  ;;  %686 = vmatpush.bf16.msra.mxu2 %v630_v0  ;;  %v637_v3 = vld [vmem:[%s912_s1 + $0x70] sm:$0xff]  ;;  %v636_v5 = vld [vmem:[%s912_s1 + $0x68] sm:$0xff] }
   0x3   :  { %323 = vmatpush.bf16.msra.mxu1 %v638_v1  ;;  %694 = vmatpush.bf16.msra.mxu3 %v638_v1  ;;  %v627_v6 = vld [vmem:[%s912_s1 + $0x20] sm:$0xff]  ;;  %v626_v8 = vld [vmem:[%s912_s1 + $0x18] sm:$0xff]  ;;  %v625_v10 = vld [vmem:[%s912_s1 + $0x10] sm:$0xff] }
   0x4   :  { %v635_v7 = vld [vmem:[%s912_s1 + $0x60] sm:$0xff]  ;;  %v634_v9 = vld [vmem:[%s912_s1 + $0x58] sm:$0xff]  ;;  %v633_v11 = vld [vmem:[%s912_s1 + $0x50] sm:$0xff] }
   0x5   :  { %v624_v12 = vld [vmem:[%s912_s1 + $0x8] sm:$0xff]  ;;  %v623_v14 = vld [vmem:[%s912_s1] sm:$0xff]  ;;  %v489_v28 = vld [vmem:[%s913_s0 + $0x10] sm:$0xf] }
   0x6   :  { %275 = vmatpush.bf16.msra.mxu0 %v629_v2  ;;  %687 = vmatpush.bf16.msra.mxu2 %v629_v2  ;;  %v632_v13 = vld [vmem:[%s912_s1 + $0x48] sm:$0xff]  ;;  %v631_v15 = vld [vmem:[%s912_s1 + $0x40] sm:$0xff]  ;;  %v610_v29 = vld [vmem:[%s913_s0 + $0x14] sm:$0xf0] }
   0x7   :  { %324 = vmatpush.bf16.msra.mxu1 %v637_v3  ;;  %695 = vmatpush.bf16.msra.mxu3 %v637_v3  ;;  %v481_v16 = vld [vmem:[%s913_s0] sm:$0xf]  ;;  %v608_v17 = vld [vmem:[%s913_s0 + $0x4] sm:$0xf0]  ;;  %v607_v20 = vld [vmem:[%s913_s0 + $0x4] sm:$0xf]  ;;  %v490_v36 = vor.u32 %v610_v29, %v489_v28 }
   0x8   :  { %v513_v18 = vld [vmem:[%s913_s0 + $0x40] sm:$0xf]  ;;  %v616_v19 = vld [vmem:[%s913_s0 + $0x44] sm:$0xf0]  ;;  %v483_v21 = vld [vmem:[%s913_s0 + $0x8] sm:$0xf0]  ;;  %v482_v24 = vor.u32 %v608_v17, %v481_v16 }
   0x9   :  { %v615_v22 = vld [vmem:[%s913_s0 + $0x44] sm:$0xf]  ;;  %v515_v23 = vld [vmem:[%s913_s0 + $0x48] sm:$0xf0]  ;;  %v514_v25 = vor.u32 %v616_v19, %v513_v18  ;;  %v486_v26 = vor.u32 %v607_v20, %v483_v21  ;;  %v521_v30 = vld [vmem:[%s913_s0 + $0x50] sm:$0xf] }
   0xa   :  { %276 = vmatpush.bf16.msra.mxu0 %v628_v4  ;;  %688 = vmatpush.bf16.msra.mxu2 %v628_v4  ;;  %v518_v27 = vor.u32 %v615_v22, %v515_v23  ;;  %v618_v31 = vld [vmem:[%s913_s0 + $0x54] sm:$0xf0]  ;;  %v609_v32 = vld [vmem:[%s913_s0 + $0x14] sm:$0xf]  ;;  %v491_v33 = vld [vmem:[%s913_s0 + $0x18] sm:$0xf0] }
   0xb   :  { %325 = vmatpush.bf16.msra.mxu1 %v636_v5  ;;  %696 = vmatpush.bf16.msra.mxu3 %v636_v5  ;;  %v617_v34 = vld [vmem:[%s913_s0 + $0x54] sm:$0xf]  ;;  %v523_v35 = vld [vmem:[%s913_s0 + $0x58] sm:$0xf0]  ;;  %v522_v37 = vor.u32 %v618_v31, %v521_v30  ;;  %v494_v38 = vor.u32 %v609_v32, %v491_v33  ;;  %v497_v40 = vld [vmem:[%s913_s0 + $0x20] sm:$0xf] }
   0xc   :  { %v526_v39 = vor.u32 %v617_v34, %v523_v35  ;;  %v612_v41 = vld [vmem:[%s913_s0 + $0x24] sm:$0xf0]  ;;  %v529_v42 = vld [vmem:[%s913_s0 + $0x60] sm:$0xf]  ;;  %v611_v44 = vld [vmem:[%s913_s0 + $0x24] sm:$0xf] }
   0xd   :  { %v620_v43 = vld [vmem:[%s913_s0 + $0x64] sm:$0xf0]  ;;  %v499_v45 = vld [vmem:[%s913_s0 + $0x28] sm:$0xf0]  ;;  %v619_v46 = vld [vmem:[%s913_s0 + $0x64] sm:$0xf]  ;;  %v498_v48 = vor.u32 %v612_v41, %v497_v40 }
   0xe   :  { %277 = vmatpush.bf16.msra.mxu0 %v627_v6  ;;  %689 = vmatpush.bf16.msra.mxu2 %v627_v6  ;;  %v531_v47 = vld [vmem:[%s913_s0 + $0x68] sm:$0xf0]  ;;  %v530_v49 = vor.u32 %v620_v43, %v529_v42  ;;  %v502_v50 = vor.u32 %v611_v44, %v499_v45  ;;  %v505_v52 = vld [vmem:[%s913_s0 + $0x30] sm:$0xf]  ;;  %v614_v53 = vld [vmem:[%s913_s0 + $0x34] sm:$0xf0] }
   0xf   :  { %326 = vmatpush.bf16.msra.mxu1 %v635_v7  ;;  %697 = vmatpush.bf16.msra.mxu3 %v635_v7  ;;  %v534_v51 = vor.u32 %v619_v46, %v531_v47  ;;  %v537_v54 = vld [vmem:[%s913_s0 + $0x70] sm:$0xf]  ;;  %v622_v55 = vld [vmem:[%s913_s0 + $0x74] sm:$0xf0]  ;;  %v613_v56 = vld [vmem:[%s913_s0 + $0x34] sm:$0xf]  ;;  %v506_v60 = vor.u32 %v614_v53, %v505_v52 }
  0x10   :  { %v507_v57 = vld [vmem:[%s913_s0 + $0x38] sm:$0xf0]  ;;  %v621_v58 = vld [vmem:[%s913_s0 + $0x74] sm:$0xf]  ;;  %v538_v61 = vor.u32 %v622_v55, %v537_v54  ;;  %v870_v5 = vld [vmem:[%s914_s2] ss:$0 sm:$0xff] }
  0x11   :  { %v539_v59 = vld [vmem:[%s913_s0 + $0x78] sm:$0xf0]  ;;  %v510_v62 = vor.u32 %v613_v56, %v507_v57 }
  0x12   :  { %278 = vmatpush.bf16.msra.mxu0 %v626_v8  ;;  %690 = vmatpush.bf16.msra.mxu2 %v626_v8  ;;  %v542_v63 = vor.u32 %v621_v58, %v539_v59 }
  0x13   :  { %327 = vmatpush.bf16.msra.mxu1 %v634_v9  ;;  %698 = vmatpush.bf16.msra.mxu3 %v634_v9 }
  0x16   :  { %279 = vmatpush.bf16.msra.mxu0 %v625_v10  ;;  %691 = vmatpush.bf16.msra.mxu2 %v625_v10 }
  0x17   :  { %328 = vmatpush.bf16.msra.mxu1 %v633_v11  ;;  %699 = vmatpush.bf16.msra.mxu3 %v633_v11 }
  0x1a   :  { %280 = vmatpush.bf16.msra.mxu0 %v624_v12  ;;  %692 = vmatpush.bf16.msra.mxu2 %v624_v12 }
  0x1b   :  { %329 = vmatpush.bf16.msra.mxu1 %v632_v13  ;;  %700 = vmatpush.bf16.msra.mxu3 %v632_v13 }
  0x1e   :  { %281 = vmatpush.bf16.msra.mxu0 %v623_v14  ;;  %693 = vmatpush.bf16.msra.mxu2 %v623_v14 }
  0x1f   :  { %330 = vmatpush.bf16.msra.mxu1 %v631_v15  ;;  %701 = vmatpush.bf16.msra.mxu3 %v631_v15 }
  0x21   :  { %282 = vmatmul.bf16.vlgmr.msra.gmra.mxu0 %v482_v24  ;;  %302 = vmatmul.bf16.vlgmr.msra.gmra.mxu2 %v514_v25 }
  0x22   :  { %331 = vmatmul.bf16.vlgmr.msra.gmra.mxu1 %v486_v26  ;;  %351 = vmatmul.bf16.vlgmr.msra.gmra.mxu3 %v518_v27 }
  0x31   :  { %287 = vmatmul.bf16.gmra.mxu0 %v490_v36  ;;  %307 = vmatmul.bf16.gmra.mxu2 %v522_v37 }
  0x32   :  { %336 = vmatmul.bf16.gmra.mxu1 %v494_v38  ;;  %356 = vmatmul.bf16.gmra.mxu3 %v526_v39 }
  0x41   :  { %292 = vmatmul.bf16.gmra.mxu0 %v498_v48  ;;  %312 = vmatmul.bf16.gmra.mxu2 %v530_v49 }
  0x42   :  { %341 = vmatmul.bf16.gmra.mxu1 %v502_v50  ;;  %361 = vmatmul.bf16.gmra.mxu3 %v534_v51 }
  0x51   :  { %297 = vmatmul.bf16.gmra.mxu0 %v506_v60  ;;  %317 = vmatmul.bf16.gmra.mxu2 %v538_v61 }
  0x52   :  { %346 = vmatmul.bf16.gmra.mxu1 %v510_v62  ;;  %366 = vmatmul.bf16.gmra.mxu3 %v542_v63 }
  0x9e   :  { %v283_v0 = vpop.f32.mrf.mxu0 }
  0x9f   :  { %v332_v1 = vpop.f32.mrf.mxu1 }
  0xa0   :  { %v333_v4 = vadd.f32 %v332_v1, %v283_v0 }
  0xa2   :  { %v427_v9 = vadd.f32 %v870_v5, %v333_v4 }
  0xa4   :  { %v303_v2 = vpop.f32.mrf.mxu2 }
  0xa5   :  { %v352_v3 = vpop.f32.mrf.mxu3 }
  0xa6   :  { %v285_v6 = vpop.f32.mrf.mxu0  ;;  %v353_v11 = vadd.f32 %v352_v3, %v303_v2 }
  0xa7   :  { %v334_v7 = vpop.f32.mrf.mxu1 }
  0xa8   :  { %v335_v8 = vadd.f32 %v334_v7, %v285_v6  ;;  %v435_v18 = vadd.f32 %v870_v5, %v353_v11 }
  0xaa   :  { %v428_v10 = vadd.f32 %v870_v5, %v335_v8 }
  0xac   :  { %v642_v12 = vpack.c.bf16 %v428_v10, %v427_v9  ;;  %v305_v13 = vpop.f32.mrf.mxu2 }
  0xad   :  { %v354_v14 = vpop.f32.mrf.mxu3 }
  0xae   :  { %643 = vst [vmem:[%s915_s3] sm:$0xff] %v642_v12   ;;  %v355_v15 = vadd.f32 %v354_v14, %v305_v13  ;;  %v288_v16 = vpop.f32.mrf.mxu0 }
  0xaf   :  { %v337_v17 = vpop.f32.mrf.mxu1 }
  0xb0   :  { %v436_v19 = vadd.f32 %v870_v5, %v355_v15  ;;  %v338_v23 = vadd.f32 %v337_v17, %v288_v16 }
  0xb2   :  { %v662_v20 = vpack.c.bf16 %v436_v19, %v435_v18  ;;  %v429_v27 = vadd.f32 %v870_v5, %v338_v23 }
  0xb4   :  { %682 = vst [vmem:[%s915_s3 + $0x20] sm:$0xff] %v662_v20   ;;  %v308_v21 = vpop.f32.mrf.mxu2 }
  0xb5   :  { %v357_v22 = vpop.f32.mrf.mxu3 }
  0xb6   :  { %v290_v24 = vpop.f32.mrf.mxu0  ;;  %v358_v29 = vadd.f32 %v357_v22, %v308_v21 }
  0xb7   :  { %v339_v25 = vpop.f32.mrf.mxu1 }
  0xb8   :  { %v340_v26 = vadd.f32 %v339_v25, %v290_v24  ;;  %v437_v36 = vadd.f32 %v870_v5, %v358_v29 }
  0xba   :  { %v430_v28 = vadd.f32 %v870_v5, %v340_v26 }
  0xbc   :  { %v647_v30 = vpack.c.bf16 %v430_v28, %v429_v27  ;;  %v310_v31 = vpop.f32.mrf.mxu2 }
  0xbd   :  { %v359_v32 = vpop.f32.mrf.mxu3 }
  0xbe   :  { %679 = vst [vmem:[%s915_s3 + $0x8] sm:$0xff] %v647_v30   ;;  %v360_v33 = vadd.f32 %v359_v32, %v310_v31  ;;  %v293_v34 = vpop.f32.mrf.mxu0 }
  0xbf   :  { %v342_v35 = vpop.f32.mrf.mxu1 }
  0xc0   :  { %v438_v37 = vadd.f32 %v870_v5, %v360_v33  ;;  %v343_v41 = vadd.f32 %v342_v35, %v293_v34 }
  0xc2   :  { %v667_v38 = vpack.c.bf16 %v438_v37, %v437_v36  ;;  %v431_v45 = vadd.f32 %v870_v5, %v343_v41 }
  0xc4   :  { %683 = vst [vmem:[%s915_s3 + $0x28] sm:$0xff] %v667_v38   ;;  %v313_v39 = vpop.f32.mrf.mxu2 }
  0xc5   :  { %v362_v40 = vpop.f32.mrf.mxu3 }
  0xc6   :  { %v295_v42 = vpop.f32.mrf.mxu0  ;;  %v363_v47 = vadd.f32 %v362_v40, %v313_v39 }
  0xc7   :  { %v344_v43 = vpop.f32.mrf.mxu1 }
  0xc8   :  { %v345_v44 = vadd.f32 %v344_v43, %v295_v42  ;;  %v439_v54 = vadd.f32 %v870_v5, %v363_v47 }
  0xca   :  { %v432_v46 = vadd.f32 %v870_v5, %v345_v44 }
  0xcc   :  { %v652_v48 = vpack.c.bf16 %v432_v46, %v431_v45  ;;  %v315_v49 = vpop.f32.mrf.mxu2 }
  0xcd   :  { %v364_v50 = vpop.f32.mrf.mxu3 }
  0xce   :  { %680 = vst [vmem:[%s915_s3 + $0x10] sm:$0xff] %v652_v48   ;;  %v365_v51 = vadd.f32 %v364_v50, %v315_v49  ;;  %v298_v52 = vpop.f32.mrf.mxu0 }
  0xcf   :  { %v347_v53 = vpop.f32.mrf.mxu1 }
  0xd0   :  { %v440_v55 = vadd.f32 %v870_v5, %v365_v51  ;;  %v348_v59 = vadd.f32 %v347_v53, %v298_v52 }
  0xd2   :  { %v672_v56 = vpack.c.bf16 %v440_v55, %v439_v54  ;;  %v433_v63 = vadd.f32 %v870_v5, %v348_v59 }
  0xd4   :  { %684 = vst [vmem:[%s915_s3 + $0x30] sm:$0xff] %v672_v56   ;;  %v318_v57 = vpop.f32.mrf.mxu2 }
  0xd5   :  { %v367_v58 = vpop.f32.mrf.mxu3 }
  0xd6   :  { %v300_v60 = vpop.f32.mrf.mxu0  ;;  %v368_v1 = vadd.f32 %v367_v58, %v318_v57 }
  0xd7   :  { %v349_v61 = vpop.f32.mrf.mxu1 }
  0xd8   :  { %v350_v62 = vadd.f32 %v349_v61, %v300_v60  ;;  %v441_v7 = vadd.f32 %v870_v5, %v368_v1 }
  0xda   :  { %v434_v0 = vadd.f32 %v870_v5, %v350_v62 }
  0xdc   :  { %v657_v2 = vpack.c.bf16 %v434_v0, %v433_v63  ;;  %v320_v3 = vpop.f32.mrf.mxu2 }
  0xdd   :  { %v369_v4 = vpop.f32.mrf.mxu3 }
  0xde   :  { %681 = vst [vmem:[%s915_s3 + $0x18] sm:$0xff] %v657_v2   ;;  %v370_v6 = vadd.f32 %v369_v4, %v320_v3 }
  0xe0   :  { %v442_v8 = vadd.f32 %v870_v5, %v370_v6 }
  0xe2   :  { %v677_v9 = vpack.c.bf16 %v442_v8, %v441_v7 }
  0xe4   :  { %685 = vst [vmem:[%s915_s3 + $0x38] sm:$0xff] %v677_v9  }

// kernel: generator_forward.62
= control target key start
LH: loop header
LB: loop body
LE: loop exit
PB: predicated region body
PF: predicated region fallthrough
CT: control target
= control target key end

     0   :  { %s795_s6 = smov 0   ;;  %s797_s7 = smov 0   ;;  %s1245_s0 = inlined_call_operand.vmem [shape: bf16[2,256,64], index: 0, kind: input, shape index: {}]   ;;  %s1246_s1 = inlined_call_operand.vmem [shape: bf16[2,256,64], index: 1, kind: output, shape index: {}]  }
   0x1   :  { %s799_s8 = smov 0  }
   0x2 LB: > { %s23_s9 = sadd.s32 1, %s779_s7  ;;  %p647_p0 = scmp.ge.s32.totalorder %s783_s8, 1  ;;  %s783_s8 = sphi %s799_s8, %s11_s8   ;;  %s779_s7 = sphi %s797_s7, %s1248_s7   ;;  %s775_s6 = sphi %s795_s6, %s1247_s6  }
   0x3   : > { %p25_p1 = scmp.ge.s32.totalorder %s23_s9, 2  ;;  %p106_p2 = scmp.lt.s32.totalorder %s783_s8, 3 }
   0x5   : > { %s1250_s9 = smov (%p25_p1, %s23_s9), 0  ;;  %p107_p3 = pnand %p647_p0, %p106_p2 }
   0x6   : > { %p132_p4 = scmp.lt.s32.totalorder (!%p107_p3), %s775_s6, 1 }
   0x7   : > { %110 = sbr.rel (%p107_p3) target bundleno = 162 (0xa2), region = 24 }
   0xc   : > { %s1252_s6 = smov (!%p132_p4, %s775_s6), 1  ;;  %vm212_vm0 = vcmask 523264   ;;  %vm527_vm4 = vcmask 519168  }
   0xd   : > { %s654_s10 = sshll.u32 %s1252_s6, 7 }
   0xe   : > { %s821_s13 = scalar_lea.vmem %s1245_s0, %s654_s10  ;;  %s1114_s16 = scalar_lea.vmem %s1246_s1, %s654_s10 }
   0xf   : > { %v657_v0 = vld [vmem:[%s821_s13] sm:$0xff]   ;;  %v720_v1 = vld [vmem:[%s821_s13 + $0x8] sm:$0xff]   ;;  %v721_v5 = vld [vmem:[%s821_s13 + $0x10] sm:$0xff]  }
  0x10   : > { %v825_v2 = vunpack.c.l.bf16 %v657_v0  ;;  %v827_v3 = vunpack.c.h.bf16 %v657_v0  ;;  %v829_v4 = vunpack.c.l.bf16 %v720_v1  ;;  %v832_v6 = vunpack.c.h.bf16 %v720_v1  ;;  %v722_v11 = vld [vmem:[%s821_s13 + $0x18] sm:$0xff]   ;;  %v723_v18 = vld [vmem:[%s821_s13 + $0x20] sm:$0xff]   ;;  %v724_v26 = vld [vmem:[%s821_s13 + $0x28] sm:$0xff]  }
  0x11   : > { %v834_v7 = vunpack.c.l.bf16 %v721_v5  ;;  %v843_v13 = vunpack.c.h.bf16 %v721_v5  ;;  %v847_v16 = vunpack.c.l.bf16 %v722_v11  ;;  %v852_v20 = vunpack.c.h.bf16 %v722_v11  ;;  %v725_v37 = vld [vmem:[%s821_s13 + $0x30] sm:$0xff]   ;;  %v726_v51 = vld [vmem:[%s821_s13 + $0x38] sm:$0xff]   ;;  %v727_v0 = vld [vmem:[%s821_s13 + $0x40] sm:$0xff]  }
  0x12   : > { %v213_v8 = vsel %vm212_vm0, %v825_v2, 0.0  ;;  %v214_v9 = vsel %vm212_vm0, %v827_v3, 0.0  ;;  %v216_v10 = vsel %vm212_vm0, %v829_v4, 0.0  ;;  %v218_v14 = vsel %vm212_vm0, %v832_v6, 0.0 }
  0x13   : > { %v215_v12 = vadd.f32 %v214_v9, %v213_v8  ;;  %v220_v17 = vsel %vm212_vm0, %v834_v7, 0.0  ;;  %v222_v21 = vsel %vm212_vm0, %v843_v13, 0.0  ;;  %v856_v23 = vunpack.c.l.bf16 %v723_v18 }
  0x14   : > { %v224_v24 = vsel %vm212_vm0, %v847_v16, 0.0  ;;  %v283_v25 = vmul.f32 %v825_v2, %v825_v2  ;;  %v284_v28 = vmul.f32 %v827_v3, %v827_v3  ;;  %v285_v29 = vmul.f32 %v829_v4, %v829_v4 }
  0x15   : > { %v217_v15 = vadd.f32 %v216_v10, %v215_v12  ;;  %v867_v30 = vunpack.c.h.bf16 %v723_v18  ;;  %v226_v31 = vsel %vm212_vm0, %v852_v20, 0.0  ;;  %v286_v33 = vmul.f32 %v832_v6, %v832_v6 }
  0x16   : > { %v873_v34 = vunpack.c.l.bf16 %v724_v26  ;;  %v228_v35 = vsel %vm212_vm0, %v856_v23, 0.0  ;;  %v315_v36 = vsel %vm212_vm0, %v283_v25, 0.0  ;;  %v287_v39 = vmul.f32 %v834_v7, %v834_v7 }
  0x17   : > { %v219_v19 = vadd.f32 %v218_v14, %v217_v15  ;;  %v316_v40 = vsel %vm212_vm0, %v284_v28, 0.0  ;;  %v318_v41 = vsel %vm212_vm0, %v285_v29, 0.0  ;;  %v883_v42 = vunpack.c.h.bf16 %v724_v26 }
  0x18   : > { %v230_v43 = vsel %vm212_vm0, %v867_v30, 0.0  ;;  %v317_v44 = vadd.f32 %v316_v40, %v315_v36  ;;  %v288_v46 = vmul.f32 %v843_v13, %v843_v13  ;;  %v320_v47 = vsel %vm212_vm0, %v286_v33, 0.0 }
  0x19   : > { %v221_v22 = vadd.f32 %v220_v17, %v219_v19  ;;  %v890_v48 = vunpack.c.l.bf16 %v725_v37  ;;  %v232_v49 = vsel %vm212_vm0, %v873_v34, 0.0  ;;  %v289_v53 = vmul.f32 %v847_v16, %v847_v16 }
  0x1a   : > { %v319_v50 = vadd.f32 %v318_v41, %v317_v44  ;;  %v322_v54 = vsel %vm212_vm0, %v287_v39, 0.0  ;;  %v898_v55 = vunpack.c.h.bf16 %v725_v37  ;;  %v234_v56 = vsel %vm212_vm0, %v883_v42, 0.0  ;;  %v729_v37 = vld [vmem:[%s821_s13 + $0x50] sm:$0xff]  }
  0x1b   : > { %v223_v27 = vadd.f32 %v222_v21, %v221_v22  ;;  %v290_v59 = vmul.f32 %v852_v20, %v852_v20  ;;  %v324_v60 = vsel %vm212_vm0, %v288_v46, 0.0  ;;  %v905_v61 = vunpack.c.l.bf16 %v726_v51  ;;  %v728_v21 = vld [vmem:[%s821_s13 + $0x48] sm:$0xff]  }
  0x1c   : > { %v321_v57 = vadd.f32 %v320_v47, %v319_v50  ;;  %v236_v62 = vsel %vm212_vm0, %v890_v48, 0.0  ;;  %v291_v5 = vmul.f32 %v856_v23, %v856_v23  ;;  %v326_v8 = vsel %vm212_vm0, %v289_v53, 0.0 }
  0x1d   : > { %v225_v32 = vadd.f32 %v224_v24, %v223_v27  ;;  %v913_v9 = vunpack.c.h.bf16 %v726_v51  ;;  %v238_v10 = vsel %vm212_vm0, %v898_v55, 0.0  ;;  %v292_v14 = vmul.f32 %v867_v30, %v867_v30 }
  0x1e   : > { %v323_v63 = vadd.f32 %v322_v54, %v321_v57  ;;  %v328_v15 = vsel %vm212_vm0, %v290_v59, 0.0  ;;  %v920_v17 = vunpack.c.l.bf16 %v727_v0  ;;  %v240_v18 = vsel %vm212_vm0, %v905_v61, 0.0 }
  0x1f   : > { %v227_v38 = vadd.f32 %v226_v31, %v225_v32  ;;  %v293_v24 = vmul.f32 %v873_v34, %v873_v34  ;;  %v330_v25 = vsel %vm212_vm0, %v291_v5, 0.0  ;;  %v928_v26 = vunpack.c.h.bf16 %v727_v0 }
  0x20   : > { %v325_v11 = vadd.f32 %v324_v60, %v323_v63  ;;  %v242_v27 = vsel %vm212_vm0, %v913_v9, 0.0  ;;  %v294_v31 = vmul.f32 %v883_v42, %v883_v42  ;;  %v332_v32 = vsel %vm212_vm0, %v292_v14, 0.0 }
  0x21   : > { %v229_v45 = vadd.f32 %v228_v35, %v227_v38  ;;  %v935_v33 = vunpack.c.l.bf16 %v728_v21  ;;  %v244_v35 = vsel %vm212_vm0, %v920_v17, 0.0  ;;  %v295_v39 = vmul.f32 %v890_v48, %v890_v48 }
  0x22   : > { %v327_v19 = vadd.f32 %v326_v8, %v325_v11  ;;  %v334_v40 = vsel %vm212_vm0, %v293_v24, 0.0  ;;  %v943_v41 = vunpack.c.h.bf16 %v728_v21  ;;  %v296_v46 = vmul.f32 %v898_v55, %v898_v55  ;;  %v731_v8 = vld [vmem:[%s821_s13 + $0x60] sm:$0xff]  }
  0x23   : > { %v231_v52 = vadd.f32 %v230_v43, %v229_v45  ;;  %v246_v43 = vsel %vm212_vm0, %v928_v26, 0.0  ;;  %v336_v47 = vsel %vm212_vm0, %v294_v31, 0.0  ;;  %v248_v50 = vsel %vm212_vm0, %v935_v33, 0.0 }
  0x24   : > { %v329_v28 = vadd.f32 %v328_v15, %v327_v19  ;;  %v297_v54 = vmul.f32 %v905_v61, %v905_v61  ;;  %v958_v57 = vunpack.c.h.bf16 %v729_v37  ;;  %v340_v63 = vsel %vm212_vm0, %v296_v46, 0.0  ;;  %v733_v46 = vld [vmem:[%s821_s13 + $0x70] sm:$0xff]  }
  0x25   : > { %v233_v58 = vadd.f32 %v232_v49, %v231_v52  ;;  %v950_v49 = vunpack.c.l.bf16 %v729_v37  ;;  %v730_v52 = vld [vmem:[%s821_s13 + $0x58] sm:$0xff]   ;;  %v299_v11 = vmul.f32 %v920_v17, %v920_v17  ;;  %v300_v21 = vmul.f32 %v928_v26, %v928_v26 }
  0x26   : > { %v331_v36 = vadd.f32 %v330_v25, %v329_v28  ;;  %v965_v0 = vunpack.c.l.bf16 %v730_v52  ;;  %v973_v14 = vunpack.c.h.bf16 %v730_v52  ;;  %v254_v15 = vsel %vm212_vm0, %v958_v57, 0.0  ;;  %v732_v28 = vld [vmem:[%s821_s13 + $0x68] sm:$0xff]  }
  0x27   : > { %v235_v1 = vadd.f32 %v234_v56, %v233_v58  ;;  %v338_v56 = vsel %vm212_vm0, %v295_v39, 0.0  ;;  %v250_v58 = vsel %vm212_vm0, %v943_v41, 0.0  ;;  %v980_v24 = vunpack.c.l.bf16 %v731_v8 }
  0x28   : > { %v333_v44 = vadd.f32 %v332_v32, %v331_v36  ;;  %v256_v25 = vsel %vm212_vm0, %v965_v0, 0.0  ;;  %v301_v31 = vmul.f32 %v935_v33, %v935_v33  ;;  %v346_v32 = vsel %vm212_vm0, %v299_v11, 0.0 }
  0x29   : > { %v237_v12 = vadd.f32 %v236_v62, %v235_v1  ;;  %v298_v62 = vmul.f32 %v913_v9, %v913_v9  ;;  %v252_v1 = vsel %vm212_vm0, %v950_v49, 0.0  ;;  %v258_v36 = vsel %vm212_vm0, %v973_v14, 0.0 }
  0x2a   : > { %v335_v51 = vadd.f32 %v334_v40, %v333_v44  ;;  %v302_v39 = vmul.f32 %v943_v41, %v943_v41  ;;  %v348_v40 = vsel %vm212_vm0, %v300_v21, 0.0  ;;  %v260_v44 = vsel %vm212_vm0, %v980_v24, 0.0 }
  0x2b   : > { %v239_v22 = vadd.f32 %v238_v10, %v237_v12  ;;  %v342_v12 = vsel %vm212_vm0, %v297_v54, 0.0  ;;  %v1003_v52 = vunpack.c.h.bf16 %v732_v28  ;;  %v1018_v11 = vunpack.c.h.bf16 %v733_v46 }
  0x2c   : > { %v337_v59 = vadd.f32 %v336_v47, %v335_v51  ;;  %v350_v51 = vsel %vm212_vm0, %v301_v31, 0.0 }
  0x2d   : > { %v241_v29 = vadd.f32 %v240_v18, %v239_v22  ;;  %v344_v22 = vsel %vm212_vm0, %v298_v62, 0.0 }
  0x2e   : > { %v339_v5 = vadd.f32 %v338_v56, %v337_v59  ;;  %v352_v59 = vsel %vm212_vm0, %v302_v39, 0.0 }
  0x2f   : > { %v243_v38 = vadd.f32 %v242_v27, %v241_v29 }
  0x30   : > { %v341_v18 = vadd.f32 %v340_v63, %v339_v5 }
  0x31   : > { %v245_v45 = vadd.f32 %v244_v35, %v243_v38  ;;  %v988_v35 = vunpack.c.h.bf16 %v731_v8  ;;  %v305_v8 = vmul.f32 %v965_v0, %v965_v0 }
  0x32   : > { %v343_v27 = vadd.f32 %v342_v12, %v341_v18  ;;  %v266_v12 = vsel %vm212_vm0, %v1003_v52, 0.0 }
  0x33   : > { %v247_v53 = vadd.f32 %v246_v43, %v245_v45  ;;  %v995_v43 = vunpack.c.l.bf16 %v732_v28  ;;  %v358_v31 = vsel %vm212_vm0, %v305_v8, 0.0  ;;  %v308_v39 = vmul.f32 %v988_v35, %v988_v35 }
  0x34   : > { %v345_v37 = vadd.f32 %v344_v22, %v343_v27 }
  0x35   : > { %v249_v60 = vadd.f32 %v248_v50, %v247_v53  ;;  %v303_v50 = vmul.f32 %v950_v49, %v950_v49  ;;  %v262_v53 = vsel %vm212_vm0, %v988_v35, 0.0  ;;  %v264_v62 = vsel %vm212_vm0, %v995_v43, 0.0 }
  0x36   : > { %v347_v45 = vadd.f32 %v346_v32, %v345_v37 }
  0x37   : > { %v251_v10 = vadd.f32 %v250_v58, %v249_v60  ;;  %v304_v58 = vmul.f32 %v958_v57, %v958_v57  ;;  %v1010_v60 = vunpack.c.l.bf16 %v733_v46 }
  0x38   : > { %v349_v54 = vadd.f32 %v348_v40, %v347_v45 }
  0x39   : > { %v253_v19 = vadd.f32 %v252_v1, %v251_v10  ;;  %v734_v1 = vld [vmem:[%s821_s13 + $0x78] sm:$0xff]   ;;  %v354_v10 = vsel %vm212_vm0, %v303_v50, 0.0  ;;  %v356_v21 = vsel %vm212_vm0, %v304_v58, 0.0  ;;  %v364_v58 = vsel %vm212_vm0, %v308_v39, 0.0 }
  0x3a   : > { %v351_v63 = vadd.f32 %v350_v51, %v349_v54  ;;  %v1025_v22 = vunpack.c.l.bf16 %v734_v1  ;;  %v1032_v32 = vunpack.c.h.bf16 %v734_v1 }
  0x3b   : > { %v255_v29 = vadd.f32 %v254_v15, %v253_v19  ;;  %v306_v19 = vmul.f32 %v973_v14, %v973_v14 }
  0x3c   : > { %v353_v15 = vadd.f32 %v352_v59, %v351_v63  ;;  %v274_v51 = vsel %vm212_vm0, %v1032_v32, 0.0  ;;  %v311_v63 = vmul.f32 %v1010_v60, %v1010_v60 }
  0x3d   : > { %v257_v38 = vadd.f32 %v256_v25, %v255_v29  ;;  %v268_v25 = vsel %vm212_vm0, %v1010_v60, 0.0  ;;  %v307_v29 = vmul.f32 %v980_v24, %v980_v24  ;;  %v360_v40 = vsel %vm212_vm0, %v306_v19, 0.0 }
  0x3e   : > { %v355_v27 = vadd.f32 %v354_v10, %v353_v15  ;;  %v312_v10 = vmul.f32 %v1018_v11, %v1018_v11  ;;  %v313_v19 = vmul.f32 %v1025_v22, %v1025_v22 }
  0x3f   : > { %v259_v47 = vadd.f32 %v258_v36, %v257_v38  ;;  %v270_v36 = vsel %vm212_vm0, %v1018_v11, 0.0  ;;  %v362_v50 = vsel %vm212_vm0, %v307_v29, 0.0 }
  0x40   : > { %v357_v37 = vadd.f32 %v356_v21, %v355_v27  ;;  %v370_v21 = vsel %vm212_vm0, %v311_v63, 0.0  ;;  %v372_v29 = vsel %vm212_vm0, %v312_v10, 0.0 }
  0x41   : > { %v261_v56 = vadd.f32 %v260_v44, %v259_v47  ;;  %v272_v44 = vsel %vm212_vm0, %v1025_v22, 0.0  ;;  %v309_v47 = vmul.f32 %v995_v43, %v995_v43 }
  0x42   : > { %v359_v45 = vadd.f32 %v358_v31, %v357_v37 }
  0x43   : > { %v263_v5 = vadd.f32 %v262_v53, %v261_v56  ;;  %v310_v56 = vmul.f32 %v1003_v52, %v1003_v52  ;;  %v366_v1 = vsel %vm212_vm0, %v309_v47, 0.0 }
  0x44   : > { %v361_v53 = vadd.f32 %v360_v40, %v359_v45 }
  0x45   : > { %v265_v18 = vadd.f32 %v264_v62, %v263_v5 }
  0x46   : > { %v363_v59 = vadd.f32 %v362_v50, %v361_v53 }
  0x47   : > { %v267_v28 = vadd.f32 %v266_v12, %v265_v18  ;;  %v368_v12 = vsel %vm212_vm0, %v310_v56, 0.0 }
  0x48   : > { %v365_v5 = vadd.f32 %v364_v58, %v363_v59 }
  0x49   : > { %v269_v38 = vadd.f32 %v268_v25, %v267_v28  ;;  %v314_v28 = vmul.f32 %v1032_v32, %v1032_v32 }
  0x4a   : > { %v367_v15 = vadd.f32 %v366_v1, %v365_v5 }
  0x4b   : > { %v271_v46 = vadd.f32 %v270_v36, %v269_v38  ;;  %v374_v36 = vsel %vm212_vm0, %v313_v19, 0.0  ;;  %v376_v39 = vsel %vm212_vm0, %v314_v28, 0.0 }
  0x4c   : > { %v369_v25 = vadd.f32 %v368_v12, %v367_v15 }
  0x4d   : > { %v273_v54 = vadd.f32 %v272_v44, %v271_v46 }
  0x4e   : > { %v371_v31 = vadd.f32 %v370_v21, %v369_v25 }
  0x4f   : > { %v275_v62 = vadd.f32 %v274_v51, %v273_v54 }
  0x50   : > { %v373_v38 = vadd.f32 %v372_v29, %v371_v31 }
  0x51   : > { %v276_v8 = vrot.slane %v275_v62, 4 }
  0x52   : > { %v375_v40 = vadd.f32 %v374_v36, %v373_v38 }
  0x53   : > { %v277_v18 = vadd.f32 %v276_v8, %v275_v62 }
  0x54   : > { %v377_v45 = vadd.f32 %v376_v39, %v375_v40 }
  0x55   : > { %v278_v27 = vrot.slane %v277_v18, 2 }
  0x56   : > { %v378_v46 = vrot.slane %v377_v45, 4 }
  0x57   : > { %v279_v37 = vadd.f32 %v278_v27, %v277_v18 }
  0x58   : > { %v379_v50 = vadd.f32 %v378_v46, %v377_v45 }
  0x59   : > { %v280_v44 = vrot.slane %v279_v37, 1 }
  0x5a   : > { %v380_v51 = vrot.slane %v379_v50, 2 }
  0x5b   : > { %v281_v47 = vadd.f32 %v280_v44, %v279_v37 }
  0x5c   : > { %v381_v54 = vadd.f32 %v380_v51, %v379_v50 }
  0x5d   : > { %v1063_v53 = vmul.f32 0.00390625, %v281_v47 }
  0x5e   : > { %v382_v56 = vrot.slane %v381_v54, 1 }
  0x5f   : > { %v385_v59 = vmul.f32 %v1063_v53, %v1063_v53  ;;  %v388_v18 = vsub.f32 %v825_v2, %v1063_v53  ;;  %v389_v21 = vsub.f32 %v827_v3, %v1063_v53  ;;  %v390_v25 = vsub.f32 %v829_v4, %v1063_v53 }
  0x60   : > { %v383_v58 = vadd.f32 %v382_v56, %v381_v54  ;;  %v391_v27 = vsub.f32 %v832_v6, %v1063_v53  ;;  %v392_v28 = vsub.f32 %v834_v7, %v1063_v53  ;;  %v393_v29 = vsub.f32 %v843_v13, %v1063_v53 }
  0x61   : > { %v394_v2 = vsub.f32 %v847_v16, %v1063_v53  ;;  %v395_v3 = vsub.f32 %v852_v20, %v1063_v53  ;;  %v396_v4 = vsub.f32 %v856_v23, %v1063_v53  ;;  %v397_v6 = vsub.f32 %v867_v30, %v1063_v53 }
  0x62   : > { %v384_v62 = vmul.f32 0.00390625, %v383_v58  ;;  %v398_v7 = vsub.f32 %v873_v34, %v1063_v53  ;;  %v399_v13 = vsub.f32 %v883_v42, %v1063_v53  ;;  %v400_v16 = vsub.f32 %v890_v48, %v1063_v53 }
  0x63   : > { %v401_v20 = vsub.f32 %v898_v55, %v1063_v53  ;;  %v402_v23 = vsub.f32 %v905_v61, %v1063_v53  ;;  %v403_v30 = vsub.f32 %v913_v9, %v1063_v53  ;;  %v404_v50 = vsub.f32 %v920_v17, %v1063_v53 }
  0x64   : > { %v386_v63 = vsub.f32 %v384_v62, %v385_v59  ;;  %v405_v51 = vsub.f32 %v928_v26, %v1063_v53 }
  0x66   : > { %v387_v1 = vmax.f32 %v386_v63, 0.0 }
  0x68   : > { %v420_v5 = vadd.f32 1e-05, %v387_v1 }
  0x6a   : > { %759 = vrsqrt.f32 %v420_v5  ;;  %vm427_vm1 = vweird.f32 %v420_v5 }
  0x70   : > { %v760_v8 = vpop.eup %759 }
  0x71   : > { %v422_v10 = vmul.f32 %v760_v8, %v420_v5  ;;  %vm428_vm2 = vweird.f32 %v760_v8  ;;  %v406_v5 = vsub.f32 %v935_v33, %v1063_v53 }
  0x72   : > { %vm429_vm3 = vmor %vm427_vm1, %vm428_vm2 }
  0x73   : > { %v423_v12 = vmul.f32 %v760_v8, %v422_v10 }
  0x75   : > { %v424_v15 = vmul.f32 0.5, %v423_v12 }
  0x77   : > { %v425_v19 = vsub.f32 1.5, %v424_v15 }
  0x79   : > { %v426_v31 = vmul.f32 %v760_v8, %v425_v19 }
  0x7b   : > { %v1093_v36 = vsel %vm429_vm3, %v760_v8, %v426_v31  ;;  %v407_v31 = vsub.f32 %v943_v41, %v1063_v53  ;;  %v410_v41 = vsub.f32 %v965_v0, %v1063_v53  ;;  %v411_v0 = vsub.f32 %v973_v14, %v1063_v53 }
  0x7c   : > { %v431_v34 = vmul.f32 %v1093_v36, %v388_v18  ;;  %v432_v37 = vmul.f32 %v1093_v36, %v389_v21  ;;  %v433_v42 = vmul.f32 %v1093_v36, %v390_v25  ;;  %v434_v48 = vmul.f32 %v1093_v36, %v391_v27 }
  0x7d   : > { %v435_v38 = vmul.f32 %v1093_v36, %v392_v28  ;;  %v436_v39 = vmul.f32 %v1093_v36, %v393_v29  ;;  %v437_v55 = vmul.f32 %v1093_v36, %v394_v2  ;;  %v438_v40 = vmul.f32 %v1093_v36, %v395_v3 }
  0x7e   : > { %v463_v61 = vmax.f32 %v431_v34, 0.0  ;;  %v464_v44 = vmax.f32 %v432_v37, 0.0  ;;  %v465_v45 = vmax.f32 %v433_v42, 0.0  ;;  %v466_v9 = vmax.f32 %v434_v48, 0.0 }
  0x7f   : > { %v467_v46 = vmax.f32 %v435_v38, 0.0  ;;  %v468_v47 = vmax.f32 %v436_v39, 0.0  ;;  %v469_v59 = vmax.f32 %v437_v55, 0.0  ;;  %v470_v1 = vmax.f32 %v438_v40, 0.0 }
  0x80   : > { %v495_v54 = vpack.c.bf16 %v463_v61, %v463_v61  ;;  %v496_v56 = vpack.c.bf16 %v464_v44, %v464_v44  ;;  %v497_v58 = vpack.c.bf16 %v465_v45, %v465_v45  ;;  %v498_v62 = vpack.c.bf16 %v466_v9, %v466_v9 }
  0x81   : > { %v499_v63 = vpack.c.bf16 %v467_v46, %v467_v46  ;;  %v439_v8 = vmul.f32 %v1093_v36, %v396_v4  ;;  %v440_v17 = vmul.f32 %v1093_v36, %v397_v6  ;;  %v441_v26 = vmul.f32 %v1093_v36, %v398_v7 }
  0x82   : > { %528 = vst.msk [vmem:[%s1114_s16] sm:$0xf] %vm527_vm4, %v495_v54  ;;  %v442_v10 = vmul.f32 %v1093_v36, %v399_v13  ;;  %v500_v12 = vpack.c.bf16 %v468_v47, %v468_v47  ;;  %v443_v15 = vmul.f32 %v1093_v36, %v400_v16  ;;  %v444_v18 = vmul.f32 %v1093_v36, %v401_v20 }
  0x83   : > { %529 = vst.msk [vmem:[%s1114_s16 + $0x4] sm:$0xf] %vm527_vm4, %v496_v56  ;;  %v445_v33 = vmul.f32 %v1093_v36, %v402_v23  ;;  %v501_v19 = vpack.c.bf16 %v469_v59, %v469_v59  ;;  %v471_v21 = vmax.f32 %v439_v8, 0.0  ;;  %v472_v25 = vmax.f32 %v440_v17, 0.0 }
  0x84   : > { %530 = vst.msk [vmem:[%s1114_s16 + $0x8] sm:$0xf] %vm527_vm4, %v497_v58  ;;  %v473_v27 = vmax.f32 %v441_v26, 0.0  ;;  %v502_v28 = vpack.c.bf16 %v470_v1, %v470_v1  ;;  %v474_v29 = vmax.f32 %v442_v10, 0.0  ;;  %v446_v2 = vmul.f32 %v1093_v36, %v403_v30 }
  0x85   : > { %531 = vst.msk [vmem:[%s1114_s16 + $0xc] sm:$0xf] %vm527_vm4, %v498_v62  ;;  %v503_v3 = vpack.c.bf16 %v471_v21, %v471_v21  ;;  %v475_v4 = vmax.f32 %v443_v15, 0.0  ;;  %v408_v6 = vsub.f32 %v950_v49, %v1063_v53  ;;  %v409_v7 = vsub.f32 %v958_v57, %v1063_v53 }
  0x86   : > { %532 = vst.msk [vmem:[%s1114_s16 + $0x10] sm:$0xf] %vm527_vm4, %v499_v63  ;;  %v504_v13 = vpack.c.bf16 %v472_v25, %v472_v25  ;;  %v476_v16 = vmax.f32 %v444_v18, 0.0  ;;  %v477_v20 = vmax.f32 %v445_v33, 0.0  ;;  %v505_v23 = vpack.c.bf16 %v473_v27, %v473_v27 }
  0x87   : > { %533 = vst.msk [vmem:[%s1114_s16 + $0x14] sm:$0xf] %vm527_vm4, %v500_v12  ;;  %v447_v30 = vmul.f32 %v1093_v36, %v404_v50  ;;  %v448_v49 = vmul.f32 %v1093_v36, %v405_v51  ;;  %v449_v34 = vmul.f32 %v1093_v36, %v406_v5  ;;  %v506_v57 = vpack.c.bf16 %v474_v29, %v474_v29 }
  0x88   : > { %534 = vst.msk [vmem:[%s1114_s16 + $0x18] sm:$0xf] %vm527_vm4, %v501_v19  ;;  %v478_v37 = vmax.f32 %v446_v2, 0.0  ;;  %v450_v42 = vmul.f32 %v1093_v36, %v407_v31  ;;  %v507_v48 = vpack.c.bf16 %v475_v4, %v475_v4  ;;  %v451_v39 = vmul.f32 %v1093_v36, %v408_v6 }
  0x89   : > { %535 = vst.msk [vmem:[%s1114_s16 + $0x1c] sm:$0xf] %vm527_vm4, %v502_v28  ;;  %v479_v38 = vmax.f32 %v447_v30, 0.0  ;;  %v412_v55 = vsub.f32 %v980_v24, %v1063_v53  ;;  %v508_v40 = vpack.c.bf16 %v476_v16, %v476_v16  ;;  %v480_v61 = vmax.f32 %v448_v49, 0.0 }
  0x8a   : > { %536 = vst.msk [vmem:[%s1114_s16 + $0x20] sm:$0xf] %vm527_vm4, %v503_v3  ;;  %v452_v44 = vmul.f32 %v1093_v36, %v409_v7  ;;  %v413_v14 = vsub.f32 %v988_v35, %v1063_v53  ;;  %v509_v45 = vpack.c.bf16 %v477_v20, %v477_v20  ;;  %v481_v9 = vmax.f32 %v449_v34, 0.0 }
  0x8b   : > { %537 = vst.msk [vmem:[%s1114_s16 + $0x24] sm:$0xf] %vm527_vm4, %v504_v13  ;;  %v453_v46 = vmul.f32 %v1093_v36, %v410_v41  ;;  %v414_v24 = vsub.f32 %v995_v43, %v1063_v53  ;;  %v510_v47 = vpack.c.bf16 %v478_v37, %v478_v37  ;;  %v482_v50 = vmax.f32 %v450_v42, 0.0 }
  0x8c   : > { %538 = vst.msk [vmem:[%s1114_s16 + $0x28] sm:$0xf] %vm527_vm4, %v505_v23  ;;  %v454_v51 = vmul.f32 %v1093_v36, %v411_v0  ;;  %v415_v35 = vsub.f32 %v1003_v52, %v1063_v53  ;;  %v511_v54 = vpack.c.bf16 %v479_v38, %v479_v38  ;;  %v483_v56 = vmax.f32 %v451_v39, 0.0 }
  0x8d   : > { %539 = vst.msk [vmem:[%s1114_s16 + $0x2c] sm:$0xf] %vm527_vm4, %v506_v57  ;;  %v455_v58 = vmul.f32 %v1093_v36, %v412_v55  ;;  %v416_v43 = vsub.f32 %v1010_v60, %v1063_v53  ;;  %v512_v59 = vpack.c.bf16 %v480_v61, %v480_v61  ;;  %v484_v62 = vmax.f32 %v452_v44, 0.0 }
  0x8e   : > { %540 = vst.msk [vmem:[%s1114_s16 + $0x30] sm:$0xf] %vm527_vm4, %v507_v48  ;;  %v456_v63 = vmul.f32 %v1093_v36, %v413_v14  ;;  %v417_v52 = vsub.f32 %v1018_v11, %v1063_v53  ;;  %v513_v1 = vpack.c.bf16 %v481_v9, %v481_v9  ;;  %v485_v5 = vmax.f32 %v453_v46, 0.0 }
  0x8f   : > { %541 = vst.msk [vmem:[%s1114_s16 + $0x34] sm:$0xf] %vm527_vm4, %v508_v40  ;;  %v457_v8 = vmul.f32 %v1093_v36, %v414_v24  ;;  %v418_v60 = vsub.f32 %v1025_v22, %v1063_v53  ;;  %v514_v17 = vpack.c.bf16 %v482_v50, %v482_v50  ;;  %v486_v26 = vmax.f32 %v454_v51, 0.0 }
  0x90   : > { %542 = vst.msk [vmem:[%s1114_s16 + $0x38] sm:$0xf] %vm527_vm4, %v509_v45  ;;  %v458_v10 = vmul.f32 %v1093_v36, %v415_v35  ;;  %v419_v11 = vsub.f32 %v1032_v32, %v1063_v53  ;;  %v515_v12 = vpack.c.bf16 %v483_v56, %v483_v56  ;;  %v487_v15 = vmax.f32 %v455_v58, 0.0 }
  0x91   : > { %543 = vst.msk [vmem:[%s1114_s16 + $0x3c] sm:$0xf] %vm527_vm4, %v510_v47  ;;  %v459_v18 = vmul.f32 %v1093_v36, %v416_v43  ;;  %v516_v22 = vpack.c.bf16 %v484_v62, %v484_v62  ;;  %v488_v33 = vmax.f32 %v456_v63, 0.0  ;;  %v460_v19 = vmul.f32 %v1093_v36, %v417_v52 }
  0x92   : > { %544 = vst.msk [vmem:[%s1114_s16 + $0x40] sm:$0xf] %vm527_vm4, %v511_v54  ;;  %v517_v21 = vpack.c.bf16 %v485_v5, %v485_v5  ;;  %v489_v32 = vmax.f32 %v457_v8, 0.0  ;;  %v461_v53 = vmul.f32 %v1093_v36, %v418_v60  ;;  %v518_v25 = vpack.c.bf16 %v486_v26, %v486_v26 }
  0x93   : > { %545 = vst.msk [vmem:[%s1114_s16 + $0x44] sm:$0xf] %vm527_vm4, %v512_v59  ;;  %v490_v27 = vmax.f32 %v458_v10, 0.0  ;;  %v462_v28 = vmul.f32 %v1093_v36, %v419_v11  ;;  %v519_v29 = vpack.c.bf16 %v487_v15, %v487_v15  ;;  %v491_v2 = vmax.f32 %v459_v18, 0.0 }
  0x94   : > { %546 = vst.msk [vmem:[%s1114_s16 + $0x48] sm:$0xf] %vm527_vm4, %v513_v1  ;;  %v520_v31 = vpack.c.bf16 %v488_v33, %v488_v33  ;;  %v492_v3 = vmax.f32 %v460_v19, 0.0  ;;  %v521_v4 = vpack.c.bf16 %v489_v32, %v489_v32  ;;  %v493_v6 = vmax.f32 %v461_v53, 0.0 }
  0x95   : > { %547 = vst.msk [vmem:[%s1114_s16 + $0x4c] sm:$0xf] %vm527_vm4, %v514_v17  ;;  %v522_v36 = vpack.c.bf16 %v490_v27, %v490_v27  ;;  %v494_v7 = vmax.f32 %v462_v28, 0.0  ;;  %v523_v13 = vpack.c.bf16 %v491_v2, %v491_v2 }
  0x96   : > { %548 = vst.msk [vmem:[%s1114_s16 + $0x50] sm:$0xf] %vm527_vm4, %v515_v12  ;;  %v524_v16 = vpack.c.bf16 %v492_v3, %v492_v3  ;;  %v525_v20 = vpack.c.bf16 %v493_v6, %v493_v6 }
  0x97   : > { %549 = vst.msk [vmem:[%s1114_s16 + $0x54] sm:$0xf] %vm527_vm4, %v516_v22  ;;  %v526_v41 = vpack.c.bf16 %v494_v7, %v494_v7 }
  0x98   : > { %550 = vst.msk [vmem:[%s1114_s16 + $0x58] sm:$0xf] %vm527_vm4, %v517_v21 }
  0x99   : > { %551 = vst.msk [vmem:[%s1114_s16 + $0x5c] sm:$0xf] %vm527_vm4, %v518_v25 }
  0x9a   : > { %552 = vst.msk [vmem:[%s1114_s16 + $0x60] sm:$0xf] %vm527_vm4, %v519_v29 }
  0x9b   : > { %553 = vst.msk [vmem:[%s1114_s16 + $0x64] sm:$0xf] %vm527_vm4, %v520_v31 }
  0x9c   : > { %554 = vst.msk [vmem:[%s1114_s16 + $0x68] sm:$0xf] %vm527_vm4, %v521_v4 }
  0x9d   : > { %555 = vst.msk [vmem:[%s1114_s16 + $0x6c] sm:$0xf] %vm527_vm4, %v522_v36 }
  0x9e   : > { %556 = vst.msk [vmem:[%s1114_s16 + $0x70] sm:$0xf] %vm527_vm4, %v523_v13 }
  0x9f   : > { %557 = vst.msk [vmem:[%s1114_s16 + $0x74] sm:$0xf] %vm527_vm4, %v524_v16 }
  0xa0   : > { %558 = vst.msk [vmem:[%s1114_s16 + $0x78] sm:$0xf] %vm527_vm4, %v525_v20 }
  0xa1   : > { %559 = vst.msk [vmem:[%s1114_s16 + $0x7c] sm:$0xf] %vm527_vm4, %v526_v41 }
  0xa2 PF: > { %s11_s8 = sadd.s32 1, %s783_s8   ;;  %s1247_s6 = smov %s779_s7 }
  0xa3   : > { %p8_p5 = scmp.ge.s32.totalorder %s11_s8, 4   ;;  %s1248_s7 = smov %s1250_s9 }
  0xa5   :  { %10 = sbr.rel (!%p8_p5) target bundleno = 2 (0x2), region = 54 }

// kernel: generator_forward.63
= control target key start
LH: loop header
LB: loop body
LE: loop exit
PB: predicated region body
PF: predicated region fallthrough
CT: control target
= control target key end

     0   :  { %s1447_s12 = smov 0   ;;  %s1449_s13 = smov 0   ;;  %s1708_s0 = inlined_call_operand.vmem [shape: bf16[512,3200], index: 0, kind: input, shape index: {}]   ;;  %s1709_s1 = inlined_call_operand.vmem [shape: bf16[3200,128], index: 1, kind: input, shape index: {}]   ;;  %s1710_s2 = inlined_call_operand.vmem [shape: f32[1,128], index: 2, kind: input, shape index: {}]   ;;  %s1711_s3 = inlined_call_operand.vmem [shape: f32[512,128], index: 3, kind: output, shape index: {}]  }
   0x1   :  { %s1451_s14 = smov 0   ;;  %s1453_s15 = smov 0  }
   0x2   :  { %s1455_s16 = smov 0   ;;  %s1457_s17 = smov 0  }
   0x3   :  { %s1459_s18 = smov 0  }
   0x4 LB: > { %s25_s19 = sadd.s32 1, %s1416_s16  ;;  %s32_s20 = sadd.s32 1, %s1420_s17  ;;  %s1424_s18 = sphi %s1459_s18, %s13_s18   ;;  %s1420_s17 = sphi %s1457_s17, %s1717_s17   ;;  %s1416_s16 = sphi %s1455_s16, %s1716_s16   ;;  %s1412_s15 = sphi %s1453_s15, %s1715_s15   ;;  %s1408_s14 = sphi %s1451_s14, %s1714_s14   ;;  %s1404_s13 = sphi %s1449_s13, %s1713_s13   ;;  %s1400_s12 = sphi %s1447_s12, %s1712_s12  }
   0x5   : > { %p26_p0 = scmp.ge.s32.totalorder %s25_s19, 25  ;;  %p48_p1 = scmp.ne.s32.totalorder %s1404_s13, %s1400_s12 }
   0x6   : > { %p49_p2 = scmp.eq.s32.totalorder %s1424_s18, 0  ;;  %s41_s24 = sadd.s32 1, %s1404_s13 }
   0x7   : > { %s1719_s19 = smov (%p26_p0, %s25_s19), 0  ;;  %s1721_s20 = smov (!%p26_p0, %s32_s20), %s1420_s17 }
   0x8   : > { %p50_p3 = por %p49_p2, %p48_p1  ;;  %p34_p4 = scmp.ge.s32.totalorder %s1721_s20, 2 }
   0x9   : > { %s37_s21 = ssub.s32 %s1416_s16, %s1719_s19  ;;  %p1088_p6 = scmp.ge.s32.totalorder %s1424_s18, 50 }
   0xa   : > { %s1723_s20 = smov (%p34_p4, %s1721_s20), 0 }
   0xb   : > { %s36_s22 = ssub.s32 %s1420_s17, %s1723_s20  ;;  %162 = sbr.rel (%p1088_p6) target bundleno = 55 (0x37), region = 20 }
   0xc   : > { %s38_s23 = sor.u32 %s37_s21, %s36_s22 }
   0xd   : > { %p39_p5 = scmp.eq.s32.totalorder %s38_s23, 0 }
   0xf   : > { %s1498_s25 = scalar_select %p39_p5, %s1404_s13, %s41_s24  }
  0x10   : > { %165 = sbr.rel (!%p50_p3) target bundleno = 55 (0x37), region = 24  ;;  %s167_s26 = sand.u32 (%p50_p3), 1, %s1404_s13  }
  0x11   : > { %s1247_s27 = smul.u32 (%p50_p3), 800, %s1420_s17  ;;  %s1089_s28 = sshll.u32 (%p50_p3), %s167_s26, 7 }
  0x12   : > { %s1512_s7 = scalar_lea.vmem (%p50_p3), [#allocation3], %s1089_s28 }
  0x13   : > { %s172_s29 = sadd.s32 (%p50_p3), %s1416_s16, %s1247_s27 }
  0x14   : > { %s1092_s30 = sshll.u32 (%p50_p3), %s172_s29, 2 }
  0x15   : > { %s1507_s6 = scalar_lea.vmem %s1708_s0, %s1092_s30 }
  0x16   : > { %v191_v0 = vld [vmem:[%s1507_s6] sm:$0xf]  ;;  %v193_v1 = vld [vmem:[%s1507_s6 + $0x64] sm:$0xf]  ;;  %v195_v2 = vld [vmem:[%s1507_s6 + $0xc8] sm:$0xf] }
  0x17   : > { %192 = vst [vmem:[%s1512_s7] sm:$0xf] %v191_v0  ;;  %v197_v3 = vld [vmem:[%s1507_s6 + $0x12c] sm:$0xf]  ;;  %v199_v4 = vld [vmem:[%s1507_s6 + $0x190] sm:$0xf] }
  0x18   : > { %194 = vst [vmem:[%s1512_s7 + $0x4] sm:$0xf] %v193_v1  ;;  %v201_v5 = vld [vmem:[%s1507_s6 + $0x1f4] sm:$0xf]  ;;  %v203_v6 = vld [vmem:[%s1507_s6 + $0x258] sm:$0xf] }
  0x19   : > { %196 = vst [vmem:[%s1512_s7 + $0x8] sm:$0xf] %v195_v2  ;;  %v205_v7 = vld [vmem:[%s1507_s6 + $0x2bc] sm:$0xf]  ;;  %v207_v8 = vld [vmem:[%s1507_s6 + $0x320] sm:$0xf] }
  0x1a   : > { %198 = vst [vmem:[%s1512_s7 + $0xc] sm:$0xf] %v197_v3  ;;  %v209_v9 = vld [vmem:[%s1507_s6 + $0x384] sm:$0xf]  ;;  %v211_v10 = vld [vmem:[%s1507_s6 + $0x3e8] sm:$0xf] }
  0x1b   : > { %200 = vst [vmem:[%s1512_s7 + $0x10] sm:$0xf] %v199_v4  ;;  %v213_v11 = vld [vmem:[%s1507_s6 + $0x44c] sm:$0xf]  ;;  %v215_v12 = vld [vmem:[%s1507_s6 + $0x4b0] sm:$0xf] }
  0x1c   : > { %202 = vst [vmem:[%s1512_s7 + $0x14] sm:$0xf] %v201_v5  ;;  %v217_v13 = vld [vmem:[%s1507_s6 + $0x514] sm:$0xf]  ;;  %v219_v14 = vld [vmem:[%s1507_s6 + $0x578] sm:$0xf] }
  0x1d   : > { %204 = vst [vmem:[%s1512_s7 + $0x18] sm:$0xf] %v203_v6  ;;  %v221_v15 = vld [vmem:[%s1507_s6 + $0x5dc] sm:$0xf]  ;;  %v223_v16 = vld [vmem:[%s1507_s6 + $0x640] sm:$0xf] }
  0x1e   : > { %206 = vst [vmem:[%s1512_s7 + $0x1c] sm:$0xf] %v205_v7  ;;  %v225_v17 = vld [vmem:[%s1507_s6 + $0x6a4] sm:$0xf]  ;;  %v227_v18 = vld [vmem:[%s1507_s6 + $0x708] sm:$0xf] }
  0x1f   : > { %208 = vst [vmem:[%s1512_s7 + $0x20] sm:$0xf] %v207_v8  ;;  %v229_v19 = vld [vmem:[%s1507_s6 + $0x76c] sm:$0xf]  ;;  %v231_v20 = vld [vmem:[%s1507_s6 + $0x7d0] sm:$0xf] }
  0x20   : > { %210 = vst [vmem:[%s1512_s7 + $0x24] sm:$0xf] %v209_v9  ;;  %v233_v21 = vld [vmem:[%s1507_s6 + $0x834] sm:$0xf]  ;;  %v235_v22 = vld [vmem:[%s1507_s6 + $0x898] sm:$0xf] }
  0x21   : > { %212 = vst [vmem:[%s1512_s7 + $0x28] sm:$0xf] %v211_v10  ;;  %v237_v23 = vld [vmem:[%s1507_s6 + $0x8fc] sm:$0xf]  ;;  %v239_v24 = vld [vmem:[%s1507_s6 + $0x960] sm:$0xf] }
  0x22   : > { %214 = vst [vmem:[%s1512_s7 + $0x2c] sm:$0xf] %v213_v11  ;;  %v241_v25 = vld [vmem:[%s1507_s6 + $0x9c4] sm:$0xf]  ;;  %v243_v26 = vld [vmem:[%s1507_s6 + $0xa28] sm:$0xf] }
  0x23   : > { %216 = vst [vmem:[%s1512_s7 + $0x30] sm:$0xf] %v215_v12  ;;  %v245_v27 = vld [vmem:[%s1507_s6 + $0xa8c] sm:$0xf]  ;;  %v247_v28 = vld [vmem:[%s1507_s6 + $0xaf0] sm:$0xf] }
  0x24   : > { %218 = vst [vmem:[%s1512_s7 + $0x34] sm:$0xf] %v217_v13  ;;  %v249_v29 = vld [vmem:[%s1507_s6 + $0xb54] sm:$0xf]  ;;  %v251_v30 = vld [vmem:[%s1507_s6 + $0xbb8] sm:$0xf] }
  0x25   : > { %220 = vst [vmem:[%s1512_s7 + $0x38] sm:$0xf] %v219_v14  ;;  %v253_v31 = vld [vmem:[%s1507_s6 + $0xc1c] sm:$0xf] }
  0x26   : > { %222 = vst [vmem:[%s1512_s7 + $0x3c] sm:$0xf] %v221_v15 }
  0x27   : > { %224 = vst [vmem:[%s1512_s7 + $0x40] sm:$0xf] %v223_v16 }
  0x28   : > { %226 = vst [vmem:[%s1512_s7 + $0x44] sm:$0xf] %v225_v17 }
  0x29   : > { %228 = vst [vmem:[%s1512_s7 + $0x48] sm:$0xf] %v227_v18 }
  0x2a   : > { %230 = vst [vmem:[%s1512_s7 + $0x4c] sm:$0xf] %v229_v19 }
  0x2b   : > { %232 = vst [vmem:[%s1512_s7 + $0x50] sm:$0xf] %v231_v20 }
  0x2c   : > { %234 = vst [vmem:[%s1512_s7 + $0x54] sm:$0xf] %v233_v21 }
  0x2d   : > { %236 = vst [vmem:[%s1512_s7 + $0x58] sm:$0xf] %v235_v22 }
  0x2e   : > { %238 = vst [vmem:[%s1512_s7 + $0x5c] sm:$0xf] %v237_v23 }
  0x2f   : > { %240 = vst [vmem:[%s1512_s7 + $0x60] sm:$0xf] %v239_v24 }
  0x30   : > { %242 = vst [vmem:[%s1512_s7 + $0x64] sm:$0xf] %v241_v25 }
  0x31   : > { %244 = vst [vmem:[%s1512_s7 + $0x68] sm:$0xf] %v243_v26 }
  0x32   : > { %246 = vst [vmem:[%s1512_s7 + $0x6c] sm:$0xf] %v245_v27 }
  0x33   : > { %248 = vst [vmem:[%s1512_s7 + $0x70] sm:$0xf] %v247_v28 }
  0x34   : > { %250 = vst [vmem:[%s1512_s7 + $0x74] sm:$0xf] %v249_v29 }
  0x35   : > { %252 = vst [vmem:[%s1512_s7 + $0x78] sm:$0xf] %v251_v30 }
  0x36   : > { %254 = vst [vmem:[%s1512_s7 + $0x7c] sm:$0xf] %v253_v31 }
  0x37 PF: > { %p1093_p7 = scmp.ge.s32.totalorder %s1424_s18, 1  ;;  %p353_p8 = scmp.lt.s32.totalorder %s1424_s18, 51 }
  0x39   : > { %p354_p9 = pnand %p1093_p7, %p353_p8 }
  0x3a   : > { %s360_s8 = sand.u32 (!%p354_p9), 1, %s1400_s12   ;;  %s1095_s9 = sshll.u32 (!%p354_p9), %s1408_s14, 4 }
  0x3b   : > { %357 = sbr.rel (%p354_p9) target bundleno = 372 (0x174), region = 69  ;;  %s1094_s10 = sshll.u32 (!%p354_p9), %s360_s8, 7 }
  0x3c   : > { %p399_p10 = scmp.lt.s32.totalorder (!%p354_p9), %s1095_s9, 399  ;;  %s1097_s11 = sshll.u32 (!%p354_p9), %s1412_s15, 5 }
  0x3d   : > { %p411_p11 = scmp.lt.s32.totalorder (!%p354_p9), %s1097_s11, 63  ;;  %s1590_s12 = scalar_lea.vmem (!%p354_p9), [#allocation3], %s1094_s10 }
  0x3e   : > { %p1099_p12 = scmp.ne.s32.totalorder (!%p354_p9), %s1408_s14, 0 }
  0x40   : > { %s1725_s9 = smov (!%p399_p10, %s1095_s9), 399  ;;  %s1727_s11 = smov (!%p411_p11, %s1097_s11), 63 }
  0x41   : > { %s1096_s21 = sshll.u32 %s1725_s9, 2  ;;  %s1098_s26 = sshll.u32 %s1727_s11, 3 }
  0x42   : > { %s1583_s24 = scalar_lea.vmem %s1709_s1, %s1096_s21  ;;  %s1588_s29 = scalar_lea.vmem %s1711_s3, %s1098_s26 }
  0x43   : > { %422 = sbr.rel (%p1099_p12) target bundleno = 105 (0x69), region = 77 }
  0x48   : > { %v1426_v32 = vmov 0.0  }
  0x49   : > { %423 = vst [vmem:[#allocation2 + $0xb0] sm:$0xff] %v1426_v32 }
  0x4a   : > { %424 = vst [vmem:[#allocation2] sm:$0xff] %v1426_v32 }
  0x4b   : > { %425 = vst [vmem:[#allocation2 + $0xd8] sm:$0xff] %v1426_v32 }
  0x4c   : > { %426 = vst [vmem:[#allocation2 + $0x18] sm:$0xff] %v1426_v32 }
  0x4d   : > { %427 = vst [vmem:[#allocation2 + $0x50] sm:$0xff] %v1426_v32 }
  0x4e   : > { %428 = vst [vmem:[#allocation2 + $0x68] sm:$0xff] %v1426_v32 }
  0x4f   : > { %429 = vst [vmem:[#allocation2 + $0x30] sm:$0xff] %v1426_v32 }
  0x50   : > { %430 = vst [vmem:[#allocation2 + $0x48] sm:$0xff] %v1426_v32 }
  0x51   : > { %431 = vst [vmem:[#allocation2 + $0x80] sm:$0xff] %v1426_v32 }
  0x52   : > { %432 = vst [vmem:[#allocation2 + $0x88] sm:$0xff] %v1426_v32 }
  0x53   : > { %433 = vst [vmem:[#allocation2 + $0xe8] sm:$0xff] %v1426_v32 }
  0x54   : > { %434 = vst [vmem:[#allocation2 + $0xb8] sm:$0xff] %v1426_v32 }
  0x55   : > { %435 = vst [vmem:[#allocation2 + $0x60] sm:$0xff] %v1426_v32 }
  0x56   : > { %436 = vst [vmem:[#allocation2 + $0xf0] sm:$0xff] %v1426_v32 }
  0x57   : > { %437 = vst [vmem:[#allocation2 + $0x8] sm:$0xff] %v1426_v32 }
  0x58   : > { %438 = vst [vmem:[#allocation2 + $0x78] sm:$0xff] %v1426_v32 }
  0x59   : > { %439 = vst [vmem:[#allocation2 + $0x38] sm:$0xff] %v1426_v32 }
  0x5a   : > { %440 = vst [vmem:[#allocation2 + $0x58] sm:$0xff] %v1426_v32 }
  0x5b   : > { %441 = vst [vmem:[#allocation2 + $0x40] sm:$0xff] %v1426_v32 }
  0x5c   : > { %442 = vst [vmem:[#allocation2 + $0xc8] sm:$0xff] %v1426_v32 }
  0x5d   : > { %443 = vst [vmem:[#allocation2 + $0xe0] sm:$0xff] %v1426_v32 }
  0x5e   : > { %444 = vst [vmem:[#allocation2 + $0x90] sm:$0xff] %v1426_v32 }
  0x5f   : > { %445 = vst [vmem:[#allocation2 + $0x70] sm:$0xff] %v1426_v32 }
  0x60   : > { %446 = vst [vmem:[#allocation2 + $0xc0] sm:$0xff] %v1426_v32 }
  0x61   : > { %447 = vst [vmem:[#allocation2 + $0xa8] sm:$0xff] %v1426_v32 }
  0x62   : > { %448 = vst [vmem:[#allocation2 + $0xd0] sm:$0xff] %v1426_v32 }
  0x63   : > { %449 = vst [vmem:[#allocation2 + $0x10] sm:$0xff] %v1426_v32 }
  0x64   : > { %450 = vst [vmem:[#allocation2 + $0x28] sm:$0xff] %v1426_v32 }
  0x65   : > { %451 = vst [vmem:[#allocation2 + $0xa0] sm:$0xff] %v1426_v32 }
  0x66   : > { %452 = vst [vmem:[#allocation2 + $0xf8] sm:$0xff] %v1426_v32 }
  0x67   : > { %453 = vst [vmem:[#allocation2 + $0x20] sm:$0xff] %v1426_v32 }
  0x68   : > { %454 = vst [vmem:[#allocation2 + $0x98] sm:$0xff] %v1426_v32 }
  0x69 PF: > { %v1222_v33 = vld [vmem:[%s1583_s24 + $0x38] sm:$0xff]  ;;  %v1221_v34 = vld [vmem:[%s1583_s24 + $0x30] sm:$0xff]  ;;  %v1220_v35 = vld [vmem:[%s1583_s24 + $0x28] sm:$0xff]  ;;  %p1196_p13 = scmp.ne.s32.totalorder %s1408_s14, 24 }
  0x6a   : > { %679 = vmatpush.bf16.msra.mxu0 %v1222_v33  ;;  %1223 = vmatpush.bf16.msra.mxu1 %v1222_v33  ;;  %v1219_v36 = vld [vmem:[%s1583_s24 + $0x20] sm:$0xff]  ;;  %v1218_v37 = vld [vmem:[%s1583_s24 + $0x18] sm:$0xff]  ;;  %v1217_v38 = vld [vmem:[%s1583_s24 + $0x10] sm:$0xff] }
  0x6b   : > { %1224 = vmatpush.bf16.msra.mxu2 %v1222_v33  ;;  %1225 = vmatpush.bf16.msra.mxu3 %v1222_v33  ;;  %v1216_v39 = vld [vmem:[%s1583_s24 + $0x8] sm:$0xff]  ;;  %v1215_v40 = vld [vmem:[%s1583_s24] sm:$0xff]  ;;  %v1201_v49 = vld [vmem:[%s1590_s12 + $0x10] sm:$0xff] }
  0x6c   : > { %v1199_v41 = vld [vmem:[%s1590_s12] sm:$0xff]  ;;  %v1200_v45 = vld [vmem:[%s1590_s12 + $0x8] sm:$0xff]  ;;  %v1205_v50 = vld [vmem:[%s1590_s12 + $0x30] sm:$0xff] }
  0x6d   : > { %v1203_v42 = vld [vmem:[%s1590_s12 + $0x20] sm:$0xff]  ;;  %v1204_v46 = vld [vmem:[%s1590_s12 + $0x28] sm:$0xff]  ;;  %v1209_v51 = vld [vmem:[%s1590_s12 + $0x50] sm:$0xff] }
  0x6e   : > { %680 = vmatpush.bf16.msra.mxu0 %v1221_v34  ;;  %1226 = vmatpush.bf16.msra.mxu1 %v1221_v34  ;;  %v1207_v43 = vld [vmem:[%s1590_s12 + $0x40] sm:$0xff]  ;;  %v1208_v47 = vld [vmem:[%s1590_s12 + $0x48] sm:$0xff]  ;;  %v1213_v52 = vld [vmem:[%s1590_s12 + $0x70] sm:$0xff] }
  0x6f   : > { %1227 = vmatpush.bf16.msra.mxu2 %v1221_v34  ;;  %1228 = vmatpush.bf16.msra.mxu3 %v1221_v34  ;;  %v1211_v44 = vld [vmem:[%s1590_s12 + $0x60] sm:$0xff]  ;;  %v1212_v48 = vld [vmem:[%s1590_s12 + $0x68] sm:$0xff]  ;;  %v1202_v53 = vld [vmem:[%s1590_s12 + $0x18] sm:$0xff] }
  0x70   : > { %v1206_v54 = vld [vmem:[%s1590_s12 + $0x38] sm:$0xff]  ;;  %v455_v57 = vld [vmem:[#allocation2 + $0xb0] sm:$0xff]  ;;  %v463_v58 = vld [vmem:[#allocation2 + $0x80] sm:$0xff] }
  0x71   : > { %v1210_v55 = vld [vmem:[%s1590_s12 + $0x58] sm:$0xff]  ;;  %v479_v0 = vld [vmem:[#allocation2 + $0xa8] sm:$0xff]  ;;  %v456_v1 = vld [vmem:[#allocation2] sm:$0xff] }
  0x72   : > { %681 = vmatpush.bf16.msra.mxu0 %v1220_v35  ;;  %1229 = vmatpush.bf16.msra.mxu1 %v1220_v35  ;;  %v1214_v56 = vld [vmem:[%s1590_s12 + $0x78] sm:$0xff]  ;;  %v464_v2 = vld [vmem:[#allocation2 + $0x88] sm:$0xff]  ;;  %v480_v12 = vld [vmem:[#allocation2 + $0xd0] sm:$0xff] }
  0x73   : > { %1230 = vmatpush.bf16.msra.mxu2 %v1220_v35  ;;  %1231 = vmatpush.bf16.msra.mxu3 %v1220_v35  ;;  %v471_v63 = vld [vmem:[#allocation2 + $0x38] sm:$0xff]  ;;  %v465_v14 = vld [vmem:[#allocation2 + $0xe8] sm:$0xff]  ;;  %v473_v23 = vld [vmem:[#allocation2 + $0x40] sm:$0xff] }
  0x74   : > { %v472_v11 = vld [vmem:[#allocation2 + $0x58] sm:$0xff]  ;;  %v481_v24 = vld [vmem:[#allocation2 + $0x10] sm:$0xff]  ;;  %v474_v35 = vld [vmem:[#allocation2 + $0xc8] sm:$0xff] }
  0x75   : > { %v457_v13 = vld [vmem:[#allocation2 + $0xd8] sm:$0xff] }
  0x76   : > { %682 = vmatpush.bf16.msra.mxu0 %v1219_v36  ;;  %1232 = vmatpush.bf16.msra.mxu1 %v1219_v36  ;;  %v458_v25 = vld [vmem:[#allocation2 + $0x18] sm:$0xff] }
  0x77   : > { %1233 = vmatpush.bf16.msra.mxu2 %v1219_v36  ;;  %1234 = vmatpush.bf16.msra.mxu3 %v1219_v36  ;;  %v466_v26 = vld [vmem:[#allocation2 + $0xb8] sm:$0xff]  ;;  %v482_v36 = vld [vmem:[#allocation2 + $0x28] sm:$0xff] }
  0x7a   : > { %683 = vmatpush.bf16.msra.mxu0 %v1218_v37  ;;  %1235 = vmatpush.bf16.msra.mxu1 %v1218_v37 }
  0x7b   : > { %1236 = vmatpush.bf16.msra.mxu2 %v1218_v37  ;;  %1237 = vmatpush.bf16.msra.mxu3 %v1218_v37  ;;  %v459_v37 = vld [vmem:[#allocation2 + $0x50] sm:$0xff] }
  0x7e   : > { %684 = vmatpush.bf16.msra.mxu0 %v1217_v38  ;;  %1238 = vmatpush.bf16.msra.mxu1 %v1217_v38 }
  0x7f   : > { %1239 = vmatpush.bf16.msra.mxu2 %v1217_v38  ;;  %1240 = vmatpush.bf16.msra.mxu3 %v1217_v38  ;;  %v467_v38 = vld [vmem:[#allocation2 + $0x60] sm:$0xff] }
  0x82   : > { %685 = vmatpush.bf16.msra.mxu0 %v1216_v39  ;;  %1241 = vmatpush.bf16.msra.mxu1 %v1216_v39 }
  0x83   : > { %1242 = vmatpush.bf16.msra.mxu2 %v1216_v39  ;;  %1243 = vmatpush.bf16.msra.mxu3 %v1216_v39 }
  0x86   : > { %686 = vmatpush.bf16.msra.mxu0 %v1215_v40  ;;  %1244 = vmatpush.bf16.msra.mxu1 %v1215_v40 }
  0x87   : > { %1245 = vmatpush.bf16.msra.mxu2 %v1215_v40  ;;  %1246 = vmatpush.bf16.msra.mxu3 %v1215_v40 }
  0x89   : > { %687 = vmatmul.bf16.vlgmr.msra.gmra.mxu0 %v1199_v41  ;;  %707 = vmatmul.bf16.vlgmr.msra.gmra.mxu1 %v1203_v42 }
  0x8a   : > { %727 = vmatmul.bf16.vlgmr.msra.gmra.mxu2 %v1207_v43  ;;  %747 = vmatmul.bf16.vlgmr.msra.gmra.mxu3 %v1211_v44 }
  0x99   : > { %692 = vmatmul.bf16.gmra.mxu0 %v1200_v45  ;;  %712 = vmatmul.bf16.gmra.mxu1 %v1204_v46 }
  0x9a   : > { %732 = vmatmul.bf16.gmra.mxu2 %v1208_v47  ;;  %752 = vmatmul.bf16.gmra.mxu3 %v1212_v48  ;;  %v475_v47 = vld [vmem:[#allocation2 + $0xe0] sm:$0xff] }
  0x9b   : > { %v483_v48 = vld [vmem:[#allocation2 + $0xa0] sm:$0xff] }
  0xa9   : > { %697 = vmatmul.bf16.gmra.mxu0 %v1201_v49  ;;  %717 = vmatmul.bf16.gmra.mxu1 %v1205_v50  ;;  %v460_v49 = vld [vmem:[#allocation2 + $0x68] sm:$0xff]  ;;  %v468_v50 = vld [vmem:[#allocation2 + $0xf0] sm:$0xff] }
  0xaa   : > { %737 = vmatmul.bf16.gmra.mxu2 %v1209_v51  ;;  %757 = vmatmul.bf16.gmra.mxu3 %v1213_v52 }
  0xb9   : > { %702 = vmatmul.bf16.gmra.mxu0 %v1202_v53  ;;  %722 = vmatmul.bf16.gmra.mxu1 %v1206_v54 }
  0xba   : > { %742 = vmatmul.bf16.gmra.mxu2 %v1210_v55  ;;  %762 = vmatmul.bf16.gmra.mxu3 %v1214_v56 }
 0x106   : > { %v688_v59 = vpop.f32.mrf.mxu0  ;;  %v708_v60 = vpop.f32.mrf.mxu1 }
 0x107   : > { %v768_v61 = vadd.f32 %v688_v59, %v455_v57  ;;  %v776_v62 = vadd.f32 %v708_v60, %v463_v58  ;;  %v476_v59 = vld [vmem:[#allocation2 + $0x90] sm:$0xff]  ;;  %v484_v60 = vld [vmem:[#allocation2 + $0xf8] sm:$0xff] }
 0x109   : > { %800 = vst [vmem:[#allocation2 + $0xb0] sm:$0xff] %v768_v61  ;;  %v461_v61 = vld [vmem:[#allocation2 + $0x30] sm:$0xff] }
 0x10a   : > { %808 = vst [vmem:[#allocation2 + $0x80] sm:$0xff] %v776_v62  ;;  %v469_v62 = vld [vmem:[#allocation2 + $0x8] sm:$0xff] }
 0x10d   : > { %v728_v3 = vpop.f32.mrf.mxu2  ;;  %v748_v4 = vpop.f32.mrf.mxu3 }
 0x10e   : > { %v784_v5 = vadd.f32 %v728_v3, %v471_v63  ;;  %v792_v6 = vadd.f32 %v748_v4, %v479_v0  ;;  %v690_v7 = vpop.f32.mrf.mxu0  ;;  %v710_v8 = vpop.f32.mrf.mxu1 }
 0x10f   : > { %v769_v9 = vadd.f32 %v690_v7, %v456_v1  ;;  %v777_v10 = vadd.f32 %v710_v8, %v464_v2  ;;  %v477_v7 = vld [vmem:[#allocation2 + $0x70] sm:$0xff]  ;;  %v485_v8 = vld [vmem:[#allocation2 + $0x20] sm:$0xff] }
 0x110   : > { %816 = vst [vmem:[#allocation2 + $0x38] sm:$0xff] %v784_v5 }
 0x111   : > { %824 = vst [vmem:[#allocation2 + $0xa8] sm:$0xff] %v792_v6 }
 0x112   : > { %801 = vst [vmem:[#allocation2] sm:$0xff] %v769_v9  ;;  %v462_v9 = vld [vmem:[#allocation2 + $0x48] sm:$0xff] }
 0x113   : > { %809 = vst [vmem:[#allocation2 + $0x88] sm:$0xff] %v777_v10  ;;  %v470_v10 = vld [vmem:[#allocation2 + $0x78] sm:$0xff] }
 0x115   : > { %v730_v15 = vpop.f32.mrf.mxu2  ;;  %v750_v16 = vpop.f32.mrf.mxu3 }
 0x116   : > { %v785_v17 = vadd.f32 %v730_v15, %v472_v11  ;;  %v793_v18 = vadd.f32 %v750_v16, %v480_v12  ;;  %v693_v19 = vpop.f32.mrf.mxu0  ;;  %v713_v20 = vpop.f32.mrf.mxu1 }
 0x117   : > { %v770_v21 = vadd.f32 %v693_v19, %v457_v13  ;;  %v778_v22 = vadd.f32 %v713_v20, %v465_v14  ;;  %v478_v19 = vld [vmem:[#allocation2 + $0xc0] sm:$0xff]  ;;  %v486_v20 = vld [vmem:[#allocation2 + $0x98] sm:$0xff] }
 0x118   : > { %817 = vst [vmem:[#allocation2 + $0x58] sm:$0xff] %v785_v17 }
 0x119   : > { %825 = vst [vmem:[#allocation2 + $0xd0] sm:$0xff] %v793_v18 }
 0x11a   : > { %802 = vst [vmem:[#allocation2 + $0xd8] sm:$0xff] %v770_v21 }
 0x11b   : > { %810 = vst [vmem:[#allocation2 + $0xe8] sm:$0xff] %v778_v22 }
 0x11d   : > { %v733_v27 = vpop.f32.mrf.mxu2  ;;  %v753_v28 = vpop.f32.mrf.mxu3 }
 0x11e   : > { %v786_v29 = vadd.f32 %v733_v27, %v473_v23  ;;  %v794_v30 = vadd.f32 %v753_v28, %v481_v24  ;;  %v695_v31 = vpop.f32.mrf.mxu0  ;;  %v715_v32 = vpop.f32.mrf.mxu1 }
 0x11f   : > { %v771_v33 = vadd.f32 %v695_v31, %v458_v25  ;;  %v779_v34 = vadd.f32 %v715_v32, %v466_v26 }
 0x120   : > { %818 = vst [vmem:[#allocation2 + $0x40] sm:$0xff] %v786_v29 }
 0x121   : > { %826 = vst [vmem:[#allocation2 + $0x10] sm:$0xff] %v794_v30 }
 0x122   : > { %803 = vst [vmem:[#allocation2 + $0x18] sm:$0xff] %v771_v33 }
 0x123   : > { %811 = vst [vmem:[#allocation2 + $0xb8] sm:$0xff] %v779_v34 }
 0x125   : > { %v735_v39 = vpop.f32.mrf.mxu2  ;;  %v755_v40 = vpop.f32.mrf.mxu3 }
 0x126   : > { %v787_v41 = vadd.f32 %v735_v39, %v474_v35  ;;  %v795_v42 = vadd.f32 %v755_v40, %v482_v36  ;;  %v698_v43 = vpop.f32.mrf.mxu0  ;;  %v718_v44 = vpop.f32.mrf.mxu1 }
 0x127   : > { %v772_v45 = vadd.f32 %v698_v43, %v459_v37  ;;  %v780_v46 = vadd.f32 %v718_v44, %v467_v38 }
 0x128   : > { %819 = vst [vmem:[#allocation2 + $0xc8] sm:$0xff] %v787_v41 }
 0x129   : > { %827 = vst [vmem:[#allocation2 + $0x28] sm:$0xff] %v795_v42 }
 0x12a   : > { %804 = vst [vmem:[#allocation2 + $0x50] sm:$0xff] %v772_v45 }
 0x12b   : > { %812 = vst [vmem:[#allocation2 + $0x60] sm:$0xff] %v780_v46 }
 0x12d   : > { %v738_v51 = vpop.f32.mrf.mxu2  ;;  %v758_v52 = vpop.f32.mrf.mxu3 }
 0x12e   : > { %v788_v53 = vadd.f32 %v738_v51, %v475_v47  ;;  %v796_v54 = vadd.f32 %v758_v52, %v483_v48  ;;  %v700_v55 = vpop.f32.mrf.mxu0  ;;  %v720_v56 = vpop.f32.mrf.mxu1 }
 0x12f   : > { %v773_v57 = vadd.f32 %v700_v55, %v460_v49  ;;  %v781_v58 = vadd.f32 %v720_v56, %v468_v50 }
 0x130   : > { %820 = vst [vmem:[#allocation2 + $0xe0] sm:$0xff] %v788_v53 }
 0x131   : > { %828 = vst [vmem:[#allocation2 + $0xa0] sm:$0xff] %v796_v54 }
 0x132   : > { %805 = vst [vmem:[#allocation2 + $0x68] sm:$0xff] %v773_v57 }
 0x133   : > { %813 = vst [vmem:[#allocation2 + $0xf0] sm:$0xff] %v781_v58 }
 0x135   : > { %v740_v63 = vpop.f32.mrf.mxu2  ;;  %v760_v0 = vpop.f32.mrf.mxu3 }
 0x136   : > { %v789_v1 = vadd.f32 %v740_v63, %v476_v59  ;;  %v797_v2 = vadd.f32 %v760_v0, %v484_v60  ;;  %v703_v3 = vpop.f32.mrf.mxu0  ;;  %v723_v4 = vpop.f32.mrf.mxu1 }
 0x137   : > { %v774_v5 = vadd.f32 %v703_v3, %v461_v61  ;;  %v782_v6 = vadd.f32 %v723_v4, %v469_v62 }
 0x138   : > { %821 = vst [vmem:[#allocation2 + $0x90] sm:$0xff] %v789_v1 }
 0x139   : > { %829 = vst [vmem:[#allocation2 + $0xf8] sm:$0xff] %v797_v2 }
 0x13a   : > { %806 = vst [vmem:[#allocation2 + $0x30] sm:$0xff] %v774_v5 }
 0x13b   : > { %814 = vst [vmem:[#allocation2 + $0x8] sm:$0xff] %v782_v6 }
 0x13d   : > { %v743_v11 = vpop.f32.mrf.mxu2  ;;  %v763_v12 = vpop.f32.mrf.mxu3 }
 0x13e   : > { %v790_v13 = vadd.f32 %v743_v11, %v477_v7  ;;  %v798_v14 = vadd.f32 %v763_v12, %v485_v8  ;;  %v705_v15 = vpop.f32.mrf.mxu0  ;;  %v725_v16 = vpop.f32.mrf.mxu1 }
 0x13f   : > { %v775_v17 = vadd.f32 %v705_v15, %v462_v9  ;;  %v783_v18 = vadd.f32 %v725_v16, %v470_v10 }
 0x140   : > { %822 = vst [vmem:[#allocation2 + $0x70] sm:$0xff] %v790_v13 }
 0x141   : > { %830 = vst [vmem:[#allocation2 + $0x20] sm:$0xff] %v798_v14 }
 0x142   : > { %807 = vst [vmem:[#allocation2 + $0x48] sm:$0xff] %v775_v17 }
 0x143   : > { %815 = vst [vmem:[#allocation2 + $0x78] sm:$0xff] %v783_v18 }
 0x145   : > { %v745_v21 = vpop.f32.mrf.mxu2  ;;  %v765_v22 = vpop.f32.mrf.mxu3  ;;  %835 = sbr.rel (%p1196_p13) target bundleno = 372 (0x174), region = 81 }
 0x146   : > { %v791_v23 = vadd.f32 %v745_v21, %v478_v19  ;;  %v799_v24 = vadd.f32 %v765_v22, %v486_v20 }
 0x148   : > { %823 = vst [vmem:[#allocation2 + $0xc0] sm:$0xff] %v791_v23 }
 0x149   : > { %831 = vst [vmem:[#allocation2 + $0x98] sm:$0xff] %v799_v24 }
 0x14a   : > { %v836_v25 = vld [vmem:[#allocation2 + $0xb0] sm:$0xff]  ;;  %v1621_v26 = vld [vmem:[%s1710_s2] ss:$0 sm:$0xff]  ;;  %v838_v28 = vld [vmem:[#allocation2 + $0xd8] sm:$0xff] }
 0x14b   : > { %v837_v27 = vld [vmem:[#allocation2] sm:$0xff]  ;;  %v839_v29 = vld [vmem:[#allocation2 + $0x18] sm:$0xff]  ;;  %v872_v30 = vadd.f32 %v1621_v26, %v836_v25  ;;  %v874_v32 = vadd.f32 %v1621_v26, %v838_v28  ;;  %v840_v33 = vld [vmem:[#allocation2 + $0x50] sm:$0xff] }
 0x14c   : > { %v873_v31 = vadd.f32 %v1621_v26, %v837_v27  ;;  %v841_v34 = vld [vmem:[#allocation2 + $0x68] sm:$0xff]  ;;  %v875_v35 = vadd.f32 %v1621_v26, %v839_v29  ;;  %v842_v36 = vld [vmem:[#allocation2 + $0x30] sm:$0xff]  ;;  %v876_v37 = vadd.f32 %v1621_v26, %v840_v33  ;;  %v844_v40 = vld [vmem:[#allocation2 + $0x80] sm:$0xff] }
 0x14d   : > { %1306 = vtanh.f32 %v872_v30  ;;  %v843_v38 = vld [vmem:[#allocation2 + $0x48] sm:$0xff]  ;;  %v877_v39 = vadd.f32 %v1621_v26, %v841_v34  ;;  %v878_v41 = vadd.f32 %v1621_v26, %v842_v36  ;;  %v880_v45 = vadd.f32 %v1621_v26, %v844_v40  ;;  %v847_v46 = vld [vmem:[#allocation2 + $0xb8] sm:$0xff]  ;;  %v848_v48 = vld [vmem:[#allocation2 + $0x60] sm:$0xff] }
 0x14e   : > { %1308 = vtanh.f32 %v873_v31  ;;  %v845_v42 = vld [vmem:[#allocation2 + $0x88] sm:$0xff]  ;;  %v879_v43 = vadd.f32 %v1621_v26, %v843_v38  ;;  %v849_v51 = vld [vmem:[#allocation2 + $0xf0] sm:$0xff]  ;;  %v883_v53 = vadd.f32 %v1621_v26, %v847_v46  ;;  %v884_v56 = vadd.f32 %v1621_v26, %v848_v48  ;;  %v851_v57 = vld [vmem:[#allocation2 + $0x78] sm:$0xff] }
 0x14f   : > { %1310 = vtanh.f32 %v874_v32  ;;  %v846_v44 = vld [vmem:[#allocation2 + $0xe8] sm:$0xff]  ;;  %v881_v47 = vadd.f32 %v1621_v26, %v845_v42  ;;  %v885_v59 = vadd.f32 %v1621_v26, %v849_v51  ;;  %v852_v60 = vld [vmem:[#allocation2 + $0x38] sm:$0xff]  ;;  %v887_v1 = vadd.f32 %v1621_v26, %v851_v57  ;;  %v854_v2 = vld [vmem:[#allocation2 + $0x40] sm:$0xff] }
 0x150   : > { %1312 = vtanh.f32 %v875_v35  ;;  %v882_v50 = vadd.f32 %v1621_v26, %v846_v44  ;;  %v850_v54 = vld [vmem:[#allocation2 + $0x8] sm:$0xff]  ;;  %v853_v63 = vld [vmem:[#allocation2 + $0x58] sm:$0xff]  ;;  %v888_v4 = vadd.f32 %v1621_v26, %v852_v60  ;;  %v856_v8 = vld [vmem:[#allocation2 + $0xe0] sm:$0xff]  ;;  %v890_v10 = vadd.f32 %v1621_v26, %v854_v2 }
 0x151   : > { %1314 = vtanh.f32 %v876_v37  ;;  %v886_v62 = vadd.f32 %v1621_v26, %v850_v54  ;;  %v855_v5 = vld [vmem:[#allocation2 + $0xc8] sm:$0xff]  ;;  %v889_v7 = vadd.f32 %v1621_v26, %v853_v63  ;;  %v857_v11 = vld [vmem:[#allocation2 + $0x90] sm:$0xff]  ;;  %v892_v16 = vadd.f32 %v1621_v26, %v856_v8  ;;  %v859_v17 = vld [vmem:[#allocation2 + $0xc0] sm:$0xff] }
 0x152   : > { %1316 = vtanh.f32 %v877_v39  ;;  %v891_v13 = vadd.f32 %v1621_v26, %v855_v5  ;;  %v858_v14 = vld [vmem:[#allocation2 + $0x70] sm:$0xff]  ;;  %v893_v19 = vadd.f32 %v1621_v26, %v857_v11  ;;  %v860_v20 = vld [vmem:[#allocation2 + $0xa8] sm:$0xff]  ;;  %v895_v25 = vadd.f32 %v1621_v26, %v859_v17  ;;  %v864_v33 = vld [vmem:[#allocation2 + $0xa0] sm:$0xff] }
 0x153   : > { %v1307_v49 = vpop.eup %1306  ;;  %1318 = vtanh.f32 %v878_v41  ;;  %v894_v22 = vadd.f32 %v1621_v26, %v858_v14  ;;  %v861_v23 = vld [vmem:[#allocation2 + $0xd0] sm:$0xff]  ;;  %v896_v29 = vadd.f32 %v1621_v26, %v860_v20  ;;  %v863_v30 = vld [vmem:[#allocation2 + $0x28] sm:$0xff]  ;;  %v865_v36 = vld [vmem:[#allocation2 + $0xf8] sm:$0xff]  ;;  %v900_v41 = vadd.f32 %v1621_v26, %v864_v33 }
 0x154   : > { %v1309_v52 = vpop.eup %1308  ;;  %936 = vst [vmem:[%s1588_s29] sm:$0xff] %v1307_v49  ;;  %1320 = vtanh.f32 %v879_v43  ;;  %v862_v27 = vld [vmem:[#allocation2 + $0x10] sm:$0xff]  ;;  %v897_v32 = vadd.f32 %v1621_v26, %v861_v23  ;;  %v899_v38 = vadd.f32 %v1621_v26, %v863_v30  ;;  %v866_v39 = vld [vmem:[#allocation2 + $0x20] sm:$0xff]  ;;  %v867_v42 = vld [vmem:[#allocation2 + $0x98] sm:$0xff]  ;;  %v901_v44 = vadd.f32 %v1621_v26, %v865_v36 }
 0x155   : > { %v1311_v55 = vpop.eup %1310  ;;  %937 = vst [vmem:[%s1588_s29 + $0x8] sm:$0xff] %v1309_v52  ;;  %1322 = vtanh.f32 %v880_v45  ;;  %v898_v35 = vadd.f32 %v1621_v26, %v862_v27  ;;  %v902_v46 = vadd.f32 %v1621_v26, %v866_v39  ;;  %v903_v48 = vadd.f32 %v1621_v26, %v867_v42 }
 0x156   : > { %v1313_v58 = vpop.eup %1312  ;;  %938 = vst [vmem:[%s1588_s29 + $0x10] sm:$0xff] %v1311_v55  ;;  %1324 = vtanh.f32 %v881_v47 }
 0x157   : > { %v1315_v61 = vpop.eup %1314  ;;  %939 = vst [vmem:[%s1588_s29 + $0x18] sm:$0xff] %v1313_v58  ;;  %1326 = vtanh.f32 %v882_v50 }
 0x158   : > { %v1317_v0 = vpop.eup %1316  ;;  %940 = vst [vmem:[%s1588_s29 + $0x20] sm:$0xff] %v1315_v61  ;;  %1328 = vtanh.f32 %v883_v53 }
 0x159   : > { %v1319_v3 = vpop.eup %1318  ;;  %941 = vst [vmem:[%s1588_s29 + $0x28] sm:$0xff] %v1317_v0  ;;  %1330 = vtanh.f32 %v884_v56 }
 0x15a   : > { %v1321_v6 = vpop.eup %1320  ;;  %942 = vst [vmem:[%s1588_s29 + $0x30] sm:$0xff] %v1319_v3  ;;  %1332 = vtanh.f32 %v885_v59 }
 0x15b   : > { %v1323_v9 = vpop.eup %1322  ;;  %943 = vst [vmem:[%s1588_s29 + $0x38] sm:$0xff] %v1321_v6  ;;  %1334 = vtanh.f32 %v886_v62 }
 0x15c   : > { %v1325_v12 = vpop.eup %1324  ;;  %944 = vst [vmem:[%s1588_s29 + $0x40] sm:$0xff] %v1323_v9  ;;  %1336 = vtanh.f32 %v887_v1 }
 0x15d   : > { %v1327_v15 = vpop.eup %1326  ;;  %945 = vst [vmem:[%s1588_s29 + $0x48] sm:$0xff] %v1325_v12  ;;  %1338 = vtanh.f32 %v888_v4 }
 0x15e   : > { %v1329_v18 = vpop.eup %1328  ;;  %946 = vst [vmem:[%s1588_s29 + $0x50] sm:$0xff] %v1327_v15  ;;  %1340 = vtanh.f32 %v889_v7 }
 0x15f   : > { %v1331_v21 = vpop.eup %1330  ;;  %947 = vst [vmem:[%s1588_s29 + $0x58] sm:$0xff] %v1329_v18  ;;  %1342 = vtanh.f32 %v890_v10 }
 0x160   : > { %v1333_v24 = vpop.eup %1332  ;;  %948 = vst [vmem:[%s1588_s29 + $0x60] sm:$0xff] %v1331_v21  ;;  %1344 = vtanh.f32 %v891_v13 }
 0x161   : > { %v1335_v28 = vpop.eup %1334  ;;  %949 = vst [vmem:[%s1588_s29 + $0x68] sm:$0xff] %v1333_v24  ;;  %1346 = vtanh.f32 %v892_v16 }
 0x162   : > { %v1337_v31 = vpop.eup %1336  ;;  %950 = vst [vmem:[%s1588_s29 + $0x70] sm:$0xff] %v1335_v28  ;;  %1348 = vtanh.f32 %v893_v19 }
 0x163   : > { %v1339_v34 = vpop.eup %1338  ;;  %951 = vst [vmem:[%s1588_s29 + $0x78] sm:$0xff] %v1337_v31  ;;  %1350 = vtanh.f32 %v894_v22 }
 0x164   : > { %v1341_v37 = vpop.eup %1340  ;;  %952 = vst [vmem:[%s1588_s29 + $0x80] sm:$0xff] %v1339_v34  ;;  %1352 = vtanh.f32 %v895_v25 }
 0x165   : > { %v1343_v40 = vpop.eup %1342  ;;  %953 = vst [vmem:[%s1588_s29 + $0x88] sm:$0xff] %v1341_v37  ;;  %1354 = vtanh.f32 %v896_v29 }
 0x166   : > { %v1345_v43 = vpop.eup %1344  ;;  %954 = vst [vmem:[%s1588_s29 + $0x90] sm:$0xff] %v1343_v40  ;;  %1356 = vtanh.f32 %v897_v32 }
 0x167   : > { %v1347_v45 = vpop.eup %1346  ;;  %955 = vst [vmem:[%s1588_s29 + $0x98] sm:$0xff] %v1345_v43  ;;  %1358 = vtanh.f32 %v898_v35 }
 0x168   : > { %v1349_v47 = vpop.eup %1348  ;;  %956 = vst [vmem:[%s1588_s29 + $0xa0] sm:$0xff] %v1347_v45  ;;  %1360 = vtanh.f32 %v899_v38 }
 0x169   : > { %v1351_v49 = vpop.eup %1350  ;;  %957 = vst [vmem:[%s1588_s29 + $0xa8] sm:$0xff] %v1349_v47  ;;  %1362 = vtanh.f32 %v900_v41 }
 0x16a   : > { %v1353_v50 = vpop.eup %1352  ;;  %958 = vst [vmem:[%s1588_s29 + $0xb0] sm:$0xff] %v1351_v49  ;;  %1364 = vtanh.f32 %v901_v44 }
 0x16b   : > { %v1355_v51 = vpop.eup %1354  ;;  %959 = vst [vmem:[%s1588_s29 + $0xb8] sm:$0xff] %v1353_v50  ;;  %1366 = vtanh.f32 %v902_v46 }
 0x16c   : > { %v1357_v52 = vpop.eup %1356  ;;  %960 = vst [vmem:[%s1588_s29 + $0xc0] sm:$0xff] %v1355_v51  ;;  %1368 = vtanh.f32 %v903_v48 }
 0x16d   : > { %v1359_v53 = vpop.eup %1358  ;;  %961 = vst [vmem:[%s1588_s29 + $0xc8] sm:$0xff] %v1357_v52 }
 0x16e   : > { %v1361_v26 = vpop.eup %1360  ;;  %962 = vst [vmem:[%s1588_s29 + $0xd0] sm:$0xff] %v1359_v53 }
 0x16f   : > { %v1363_v54 = vpop.eup %1362  ;;  %963 = vst [vmem:[%s1588_s29 + $0xd8] sm:$0xff] %v1361_v26 }
 0x170   : > { %v1365_v55 = vpop.eup %1364  ;;  %964 = vst [vmem:[%s1588_s29 + $0xe0] sm:$0xff] %v1363_v54 }
 0x171   : > { %v1367_v56 = vpop.eup %1366  ;;  %965 = vst [vmem:[%s1588_s29 + $0xe8] sm:$0xff] %v1365_v55 }
 0x172   : > { %v1369_v57 = vpop.eup %1368  ;;  %966 = vst [vmem:[%s1588_s29 + $0xf0] sm:$0xff] %v1367_v56 }
 0x173   : > { %967 = vst [vmem:[%s1588_s29 + $0xf8] sm:$0xff] %v1369_v57 }
 0x174 PF: > { %s13_s18 = sadd.s32 1, %s1424_s18   ;;  %s1712_s12 = smov %s1404_s13 }
 0x175   : > { %p10_p0 = scmp.ge.s32.totalorder %s13_s18, 52   ;;  %s1713_s13 = smov %s1498_s25 }
 0x176   : > { %s1714_s14 = smov %s1416_s16  ;;  %s1715_s15 = smov %s1420_s17 }
 0x177   : > { %s1716_s16 = smov %s1719_s19  ;;  %s1717_s17 = smov %s1723_s20 }
 0x178   :  { %12 = sbr.rel (!%p10_p0) target bundleno = 4 (0x4), region = 122 }

</bundles_post_ra>
